<compile_context>
chip_gen: v5e
topology: v5e:2x2
jax: 0.10.0
libtpu: 0.0.40
codegen_flags: <defaults>
</compile_context>

<pallas_src>
import functools

import jax
import jax.numpy as jnp
from jax import lax
from jax.experimental import pallas as pl
from jax.experimental.pallas import tpu as pltpu

NEG_INF = -1e30
NEG_SLOPE = 0.2  # PyG GATConv default negative_slope


def _round_up(v, m):
    return ((v + m - 1) // m) * m


# ---------------------------------------------------------------------------
# Kernel
# ---------------------------------------------------------------------------
def _gat_layer(x_bf, adjb_ref, w_ref, b_ref, out_ref, *, w_row, w_rows, b_row,
               n_heads, out_ch):
    """One GATConv (+ bias + ReLU), writing bf16 output into `out_ref`."""
    n = x_bf.shape[0]
    hc = n_heads * out_ch
    pw = hc + 16  # packed width: [h (hc) | s_dst (8-wide sect) | s_src (8-wide sect)]

    # Single MXU pass: features + both score projections.
    w = w_ref[w_row:w_row + w_rows, 0:pw]                       # bf16 [Fin, pw]
    res = jnp.dot(x_bf, w, preferred_element_type=jnp.float32)  # f32 [N, pw]

    h_bf = res[:, 0:hc].astype(jnp.bfloat16)                    # [N, HC] (f32 h dropped)
    s_dst = res[:, hc:hc + n_heads]                             # [N, H]

    # Move the (<=8-wide) source-score block onto the lane axis with a tiny
    # selector matmul (avoids any [N, HC] transpose on the XLU).
    sel_r = lax.broadcasted_iota(jnp.int32, (n_heads, 8), 0)
    sel_c = lax.broadcasted_iota(jnp.int32, (n_heads, 8), 1)
    sel = (sel_r == sel_c).astype(jnp.float32)                  # [H, 8]
    s_src = lax.dot_general(sel, res[:, hc + 8:hc + 16],
                            (((1,), (1,)), ((), ())),
                            preferred_element_type=jnp.float32)  # [H, N]

    ones8 = jnp.ones((n, 8), jnp.bfloat16)                      # MXU row-sum RHS

    for hd in range(n_heads):                                   # static loop
        c0 = hd * out_ch
        c1 = c0 + out_ch
        # e[i, j] = score of edge j -> i
        e = s_dst[:, hd:hd + 1] + s_src[hd:hd + 1, :]           # [N, N] f32
        e = jnp.where(e > 0, e, NEG_SLOPE * e)                  # LeakyReLU(0.2)
        e = e + adjb_ref[...]                                   # additive -inf mask (bf16 -> f32)
        m = jnp.max(e, axis=1, keepdims=True)                   # softmax max (XLU)
        p = jnp.exp(e - m).astype(jnp.bfloat16)                 # [N, N] bf16

        # Aggregation and denominator both on the MXU.
        num = jnp.dot(p, h_bf[:, c0:c1],
                      preferred_element_type=jnp.float32)       # [N, C]
        den = jnp.dot(p, ones8,
                      preferred_element_type=jnp.float32)[:, 0:1]  # [N, 1] row-sum

        o = num * pl.reciprocal(den, approx=True)               # deferred normalization (EUP)
        o = o + b_ref[b_row:b_row + 1, c0:c1]                   # bias slice
        out_ref[:, c0:c1] = jnp.maximum(o, 0.0).astype(out_ref.dtype)  # ReLU + bf16 store


def gnn_kernel(x_ref, adjb_ref, w_ref, b_ref, o_ref, scr_a, scr_b, *,
               heads, hidden, fin1, num_classes):
    hc = heads * hidden

    # Layer 1: input features -> scratch A.
    _gat_layer(x_ref[...], adjb_ref, w_ref, b_ref, scr_a,
               w_row=0, w_rows=fin1, b_row=0, n_heads=heads, out_ch=hidden)
    # TODO(synk): Dropout(p=0.3) between layers is identity at inference (eval mode).

    # Layer 2: scratch A -> scratch B.
    _gat_layer(scr_a[...], adjb_ref, w_ref, b_ref, scr_b,
               w_row=fin1, w_rows=hc, b_row=1, n_heads=heads, out_ch=hidden)

    # Layer 3 (single head): scratch B -> scratch A[:, :hidden].
    _gat_layer(scr_b[...], adjb_ref, w_ref, b_ref, scr_a,
               w_row=fin1 + hc, w_rows=hc, b_row=2, n_heads=1, out_ch=hidden)

    # Final Linear.
    rfc = fin1 + 2 * hc
    wfc = w_ref[rfc:rfc + hidden, 0:num_classes]                # bf16 [hidden, ncls]
    logits = jnp.dot(scr_a[:, 0:hidden], wfc,
                     preferred_element_type=jnp.float32)        # [N, ncls]
    o_ref[...] = (logits + b_ref[3:4, 0:num_classes]).astype(o_ref.dtype)


# ---------------------------------------------------------------------------
# Host-side packing + wrapper
# ---------------------------------------------------------------------------
def _pack_layer_w(w, a_src, a_dst, width):
    """W_pack = [W | W@A_dst (8-wide sect) | W@A_src (8-wide sect)], zero-padded."""
    heads, c = a_src.shape
    hc = heads * c
    fin = w.shape[0]
    a_src_m = jnp.zeros((hc, heads), jnp.float32)
    a_dst_m = jnp.zeros((hc, heads), jnp.float32)
    for hd in range(heads):
        a_src_m = a_src_m.at[hd * c:(hd + 1) * c, hd].set(a_src[hd])
        a_dst_m = a_dst_m.at[hd * c:(hd + 1) * c, hd].set(a_dst[hd])
    out = jnp.zeros((fin, width), jnp.float32)
    out = out.at[:, :hc].set(w)
    out = out.at[:, hc:hc + heads].set(w @ a_dst_m)
    out = out.at[:, hc + 8:hc + 8 + heads].set(w @ a_src_m)
    return out


def _pack_params(params, *, heads, hidden, input_dim, fin1, num_classes, width):
    hc = heads * hidden
    w1p = _pack_layer_w(params["w1"], params["as1"], params["ad1"], width)
    w1p = jnp.zeros((fin1, width), jnp.float32).at[:input_dim, :].set(w1p)
    w2p = _pack_layer_w(params["w2"], params["as2"], params["ad2"], width)
    w3p = _pack_layer_w(params["w3"], params["as3"], params["ad3"], width)
    wfcp = jnp.zeros((hidden, width), jnp.float32).at[:, :num_classes].set(params["wfc"])
    # Row offsets (fin1, hc, hidden all multiples of 16) keep every in-kernel
    # slice bf16-tile aligned.
    w_all = jnp.concatenate([w1p, w2p, w3p, wfcp], axis=0).astype(jnp.bfloat16)

    bw = max(hc, hidden, num_classes)
    b_all = jnp.zeros((4, bw), jnp.float32)
    b_all = b_all.at[0, :hc].set(params["b1"])
    b_all = b_all.at[1, :hc].set(params["b2"])
    b_all = b_all.at[2, :hidden].set(params["b3"])
    b_all = b_all.at[3, :num_classes].set(params["bfc"])
    return w_all, b_all


def gnn_forward(x, adj, params, *, heads=4, hidden_dim=32):
    n, input_dim = x.shape
    hc = heads * hidden_dim
    num_classes = params["wfc"].shape[1]
    width = hc + 16
    fin1 = _round_up(input_dim, 16)

    w_all, b_all = _pack_params(params, heads=heads, hidden=hidden_dim,
                                input_dim=input_dim, fin1=fin1,
                                num_classes=num_classes, width=width)
    x_p = (jnp.zeros((n, fin1), jnp.float32).at[:, :input_dim].set(x)
           ).astype(jnp.bfloat16)
    # Additive -inf mask for non-edges (0 / -1e30 survives bf16).
    adjb = jnp.where(adj > 0, 0.0, NEG_INF).astype(jnp.bfloat16)

    inputs = [x_p, adjb, w_all, b_all]

    def fb(shape):
        return pl.BlockSpec(shape, lambda i: (0,) * len(shape))

    kernel = functools.partial(gnn_kernel, heads=heads, hidden=hidden_dim,
                               fin1=fin1, num_classes=num_classes)
    return pl.pallas_call(
        kernel,
        out_shape=jax.ShapeDtypeStruct((n, num_classes), jnp.float32),
        grid=(1,),
        in_specs=[fb(a.shape) for a in inputs],
        out_specs=fb((n, num_classes)),
        scratch_shapes=[pltpu.VMEM((n, hc), jnp.bfloat16),   # ping
                        pltpu.VMEM((n, hc), jnp.bfloat16)],  # pong
        compiler_params=pltpu.CompilerParams(
            dimension_semantics=("arbitrary",)),
    )(*inputs)


# ---------------------------------------------------------------------------
# Parameters + pure-JAX reference (f32, exact softmax)
# ---------------------------------------------------------------------------
def init_params(key, input_dim, hidden_dim, num_classes, heads=4):
    ks = jax.random.split(key, 12)
    s = 0.1

    def nrm(k, shape):
        return (s * jax.random.normal(k, shape)).astype(jnp.float32)

    return {
        "w1": nrm(ks[0], (input_dim, heads * hidden_dim)),
        "as1": nrm(ks[1], (heads, hidden_dim)),
        "ad1": nrm(ks[2], (heads, hidden_dim)),
        "b1": nrm(ks[3], (heads * hidden_dim,)),
        "w2": nrm(ks[4], (heads * hidden_dim, heads * hidden_dim)),
        "as2": nrm(ks[5], (heads, hidden_dim)),
        "ad2": nrm(ks[6], (heads, hidden_dim)),
        "b2": nrm(ks[7], (heads * hidden_dim,)),
        "w3": nrm(ks[8], (heads * hidden_dim, hidden_dim)),
        "as3": nrm(ks[9], (1, hidden_dim)),
        "ad3": nrm(ks[10], (1, hidden_dim)),
        "b3": nrm(ks[11], (hidden_dim,)),
        "wfc": nrm(jax.random.fold_in(key, 100), (hidden_dim, num_classes)),
        "bfc": nrm(jax.random.fold_in(key, 101), (num_classes,)),
    }


def gnn_reference(x, adj, params, *, heads=4, hidden_dim=32):
    def gat(xx, w, a_src, a_dst, b, nh, c):
        n = xx.shape[0]
        h = xx @ w
        hh = h.reshape(n, nh, c)
        s_src = jnp.einsum("nhc,hc->nh", hh, a_src)
        s_dst = jnp.einsum("nhc,hc->nh", hh, a_dst)
        outs = []
        for hd in range(nh):
            e = s_dst[:, hd][:, None] + s_src[:, hd][None, :]
            e = jnp.where(e > 0, e, NEG_SLOPE * e)
            e = jnp.where(adj > 0, e, NEG_INF)
            p = jax.nn.softmax(e, axis=1)
            outs.append(p @ hh[:, hd, :])
        return jax.nn.relu(jnp.concatenate(outs, axis=1) + b)

    h = gat(x, params["w1"], params["as1"], params["ad1"], params["b1"],
            heads, hidden_dim)
    h = gat(h, params["w2"], params["as2"], params["ad2"], params["b2"],
            heads, hidden_dim)
    h = gat(h, params["w3"], params["as3"], params["ad3"], params["b3"],
            1, hidden_dim)
    return h @ params["wfc"] + params["bfc"]


if __name__ == "__main__":
    N = 128          # number of graph nodes
    INPUT_DIM = 16
    HIDDEN_DIM = 32
    NUM_CLASSES = 8

    key = jax.random.PRNGKey(0)
    kx, ke, kp = jax.random.split(key, 3)

    x = jax.random.normal(kx, (N, INPUT_DIM), dtype=jnp.float32)
    rand_adj = (jax.random.uniform(ke, (N, N)) < 0.05).astype(jnp.float32)
    adj = jnp.maximum(rand_adj, jnp.eye(N, dtype=jnp.float32))  # self-loops

    params = init_params(kp, INPUT_DIM, HIDDEN_DIM, NUM_CLASSES)

    fwd = jax.jit(gnn_forward)
    logits = fwd(x, adj, params)
    jax.block_until_ready(logits)
    assert logits.shape == (N, NUM_CLASSES)
    assert bool(jnp.all(jnp.isfinite(logits)))

    ref = gnn_reference(x, adj, params, heads=4, hidden_dim=HIDDEN_DIM)
    err = float(jnp.max(jnp.abs(logits - ref)))
    # bf16 operands + approx reciprocal -> inference-level tolerance.
    assert err < 5e-2, f"max abs err vs f32 reference too large: {err}"

    # TODO(synk): training-mode dropout (p=0.3) not implemented; forward here
    # matches eval()/inference semantics where Dropout is identity.
    print("KERNEL_OK")
</pallas_src>

<mosaic_0001>
module attributes {stable_mosaic.version = 11 : i64} {
  func.func @gnn_kernel(%arg0: i32, %arg1: memref<128x16xbf16, #tpu.memory_space<vmem>>, %arg2: memref<128x128xbf16, #tpu.memory_space<vmem>>, %arg3: memref<304x144xbf16, #tpu.memory_space<vmem>>, %arg4: memref<4x128xf32, #tpu.memory_space<vmem>>, %arg5: memref<128x8xf32, #tpu.memory_space<vmem>>, %arg6: memref<128x128xbf16, #tpu.memory_space<vmem>>, %arg7: memref<128x128xbf16, #tpu.memory_space<vmem>>) attributes {dimension_semantics = [#tpu.dimension_semantics<arbitrary>], iteration_bounds = array<i64: 1>, scalar_prefetch = 0 : i64, scratch_operands = 2 : i64, tpu.core_type = #tpu.core_type<tc>, window_params = [{pipeline_mode = #tpu.pipeline_mode<synchronous>, transform_indices = @transform_0, window_bounds = array<i64: 128, 16>}, {pipeline_mode = #tpu.pipeline_mode<synchronous>, transform_indices = @transform_1, window_bounds = array<i64: 128, 128>}, {pipeline_mode = #tpu.pipeline_mode<synchronous>, transform_indices = @transform_2, window_bounds = array<i64: 304, 144>}, {pipeline_mode = #tpu.pipeline_mode<synchronous>, transform_indices = @transform_3, window_bounds = array<i64: 4, 128>}, {pipeline_mode = #tpu.pipeline_mode<synchronous>, transform_indices = @transform_4, window_bounds = array<i64: 128, 8>}]} {
    %c0 = arith.constant 0 : index
    %c0_0 = arith.constant 0 : index
    %0 = vector.load %arg1[%c0, %c0_0] : memref<128x16xbf16, #tpu.memory_space<vmem>>, vector<128x16xbf16>
    %c0_1 = arith.constant 0 : index
    %c0_2 = arith.constant 0 : index
    %1 = vector.load %arg3[%c0_1, %c0_2] : memref<304x144xbf16, #tpu.memory_space<vmem>>, vector<16x144xbf16>
    %cst = arith.constant dense<0.000000e+00> : vector<128x144xf32>
    %2 = tpu.matmul %0, %1, %cst {dimension_numbers = #tpu.dot_dimension_numbers<[1], [0], [0], [1], [0, 0, 1, 1], [], []>} : vector<128x16xbf16>, vector<16x144xbf16>, vector<128x144xf32> -> vector<128x144xf32>
    %3 = vector.extract_strided_slice %2 {offsets = [0, 0], sizes = [128, 128], strides = [1, 1]} : vector<128x144xf32> to vector<128x128xf32>
    %4 = arith.truncf %3 : vector<128x128xf32> to vector<128x128xbf16>
    %5 = vector.extract_strided_slice %2 {offsets = [0, 128], sizes = [128, 4], strides = [1, 1]} : vector<128x144xf32> to vector<128x4xf32>
    %6 = tpu.iota {dimensions = array<i32: 0>} : vector<4x8xi32>
    %7 = tpu.iota {dimensions = array<i32: 1>} : vector<4x8xi32>
    %8 = arith.cmpi eq, %6, %7 : vector<4x8xi32>
    %9 = arith.extui %8 : vector<4x8xi1> to vector<4x8xi32>
    %10 = arith.sitofp %9 : vector<4x8xi32> to vector<4x8xf32>
    %11 = vector.extract_strided_slice %2 {offsets = [0, 136], sizes = [128, 8], strides = [1, 1]} : vector<128x144xf32> to vector<128x8xf32>
    %cst_3 = arith.constant dense<0.000000e+00> : vector<4x128xf32>
    %12 = tpu.matmul %10, %11, %cst_3 {dimension_numbers = #tpu.dot_dimension_numbers<[1], [1], [0], [0], [0, 0, 1, 0], [], []>} : vector<4x8xf32>, vector<128x8xf32>, vector<4x128xf32> -> vector<4x128xf32>
    %cst_4 = arith.constant 1.000000e+00 : bf16
    %13 = vector.broadcast %cst_4 : bf16 to vector<128x8xbf16>
    %14 = vector.extract_strided_slice %5 {offsets = [0, 0], sizes = [128, 1], strides = [1, 1]} : vector<128x4xf32> to vector<128x1xf32>
    %15 = vector.extract_strided_slice %12 {offsets = [0, 0], sizes = [1, 128], strides = [1, 1]} : vector<4x128xf32> to vector<1x128xf32>
    %16 = vector.broadcast %14 : vector<128x1xf32> to vector<128x128xf32>
    %17 = vector.broadcast %15 : vector<1x128xf32> to vector<128x128xf32>
    %18 = arith.addf %16, %17 : vector<128x128xf32>
    %cst_5 = arith.constant 0.000000e+00 : f32
    %19 = vector.broadcast %cst_5 : f32 to vector<128x128xf32>
    %20 = arith.cmpf ogt, %18, %19 : vector<128x128xf32>
    %cst_6 = arith.constant 2.000000e-01 : f32
    %21 = vector.broadcast %cst_6 : f32 to vector<128x128xf32>
    %22 = arith.mulf %21, %18 : vector<128x128xf32>
    %23 = arith.select %20, %18, %22 : vector<128x128xi1>, vector<128x128xf32>
    %c0_7 = arith.constant 0 : index
    %c0_8 = arith.constant 0 : index
    %24 = vector.load %arg2[%c0_7, %c0_8] : memref<128x128xbf16, #tpu.memory_space<vmem>>, vector<128x128xbf16>
    %25 = arith.extf %24 : vector<128x128xbf16> to vector<128x128xf32>
    %26 = arith.addf %23, %25 : vector<128x128xf32>
    %cst_9 = arith.constant dense<0xFF800000> : vector<128xf32>
    %27 = vector.multi_reduction <maximumf>, %26, %cst_9 [1] : vector<128x128xf32> to vector<128xf32>
    %28 = vector.shape_cast %27 : vector<128xf32> to vector<128x1xf32>
    %29 = vector.broadcast %28 : vector<128x1xf32> to vector<128x128xf32>
    %30 = arith.subf %26, %29 : vector<128x128xf32>
    %31 = math.exp %30 : vector<128x128xf32>
    %32 = arith.truncf %31 : vector<128x128xf32> to vector<128x128xbf16>
    %33 = vector.extract_strided_slice %4 {offsets = [0, 0], sizes = [128, 32], strides = [1, 1]} : vector<128x128xbf16> to vector<128x32xbf16>
    %cst_10 = arith.constant dense<0.000000e+00> : vector<128x32xf32>
    %34 = tpu.matmul %32, %33, %cst_10 {dimension_numbers = #tpu.dot_dimension_numbers<[1], [0], [0], [1], [0, 0, 1, 1], [], []>} : vector<128x128xbf16>, vector<128x32xbf16>, vector<128x32xf32> -> vector<128x32xf32>
    %cst_11 = arith.constant dense<0.000000e+00> : vector<128x8xf32>
    %35 = tpu.matmul %32, %13, %cst_11 {dimension_numbers = #tpu.dot_dimension_numbers<[1], [0], [0], [1], [0, 0, 1, 1], [], []>} : vector<128x128xbf16>, vector<128x8xbf16>, vector<128x8xf32> -> vector<128x8xf32>
    %36 = vector.extract_strided_slice %35 {offsets = [0, 0], sizes = [128, 1], strides = [1, 1]} : vector<128x8xf32> to vector<128x1xf32>
    %37 = tpu.reciprocal %36 {approx = true} : vector<128x1xf32> -> vector<128x1xf32>
    %38 = vector.broadcast %37 : vector<128x1xf32> to vector<128x32xf32>
    %39 = arith.mulf %34, %38 : vector<128x32xf32>
    %c0_12 = arith.constant 0 : index
    %c0_13 = arith.constant 0 : index
    %40 = vector.load %arg4[%c0_12, %c0_13] : memref<4x128xf32, #tpu.memory_space<vmem>>, vector<1x32xf32>
    %41 = vector.broadcast %40 : vector<1x32xf32> to vector<128x32xf32>
    %42 = arith.addf %39, %41 : vector<128x32xf32>
    %cst_14 = arith.constant 0.000000e+00 : f32
    %43 = vector.broadcast %cst_14 : f32 to vector<128x32xf32>
    %44 = arith.maximumf %42, %43 : vector<128x32xf32>
    %45 = arith.truncf %44 : vector<128x32xf32> to vector<128x32xbf16>
    %c0_15 = arith.constant 0 : index
    %c0_16 = arith.constant 0 : index
    %46 = vector.load %arg6[%c0_15, %c0_16] : memref<128x128xbf16, #tpu.memory_space<vmem>>, vector<128x32xbf16>
    tpu.vector_store %arg6[%c0_15, %c0_16], %45 {strides = array<i32>} : memref<128x128xbf16, #tpu.memory_space<vmem>>, vector<128x32xbf16>,
    %47 = vector.extract_strided_slice %5 {offsets = [0, 1], sizes = [128, 1], strides = [1, 1]} : vector<128x4xf32> to vector<128x1xf32>
    %48 = vector.extract_strided_slice %12 {offsets = [1, 0], sizes = [1, 128], strides = [1, 1]} : vector<4x128xf32> to vector<1x128xf32>
    %49 = vector.broadcast %47 : vector<128x1xf32> to vector<128x128xf32>
    %50 = vector.broadcast %48 : vector<1x128xf32> to vector<128x128xf32>
    %51 = arith.addf %49, %50 : vector<128x128xf32>
    %cst_17 = arith.constant 0.000000e+00 : f32
    %52 = vector.broadcast %cst_17 : f32 to vector<128x128xf32>
    %53 = arith.cmpf ogt, %51, %52 : vector<128x128xf32>
    %cst_18 = arith.constant 2.000000e-01 : f32
    %54 = vector.broadcast %cst_18 : f32 to vector<128x128xf32>
    %55 = arith.mulf %54, %51 : vector<128x128xf32>
    %56 = arith.select %53, %51, %55 : vector<128x128xi1>, vector<128x128xf32>
    %c0_19 = arith.constant 0 : index
    %c0_20 = arith.constant 0 : index
    %57 = vector.load %arg2[%c0_19, %c0_20] : memref<128x128xbf16, #tpu.memory_space<vmem>>, vector<128x128xbf16>
    %58 = arith.extf %57 : vector<128x128xbf16> to vector<128x128xf32>
    %59 = arith.addf %56, %58 : vector<128x128xf32>
    %cst_21 = arith.constant dense<0xFF800000> : vector<128xf32>
    %60 = vector.multi_reduction <maximumf>, %59, %cst_21 [1] : vector<128x128xf32> to vector<128xf32>
    %61 = vector.shape_cast %60 : vector<128xf32> to vector<128x1xf32>
    %62 = vector.broadcast %61 : vector<128x1xf32> to vector<128x128xf32>
    %63 = arith.subf %59, %62 : vector<128x128xf32>
    %64 = math.exp %63 : vector<128x128xf32>
    %65 = arith.truncf %64 : vector<128x128xf32> to vector<128x128xbf16>
    %66 = vector.extract_strided_slice %4 {offsets = [0, 32], sizes = [128, 32], strides = [1, 1]} : vector<128x128xbf16> to vector<128x32xbf16>
    %cst_22 = arith.constant dense<0.000000e+00> : vector<128x32xf32>
    %67 = tpu.matmul %65, %66, %cst_22 {dimension_numbers = #tpu.dot_dimension_numbers<[1], [0], [0], [1], [0, 0, 1, 1], [], []>} : vector<128x128xbf16>, vector<128x32xbf16>, vector<128x32xf32> -> vector<128x32xf32>
    %cst_23 = arith.constant dense<0.000000e+00> : vector<128x8xf32>
    %68 = tpu.matmul %65, %13, %cst_23 {dimension_numbers = #tpu.dot_dimension_numbers<[1], [0], [0], [1], [0, 0, 1, 1], [], []>} : vector<128x128xbf16>, vector<128x8xbf16>, vector<128x8xf32> -> vector<128x8xf32>
    %69 = vector.extract_strided_slice %68 {offsets = [0, 0], sizes = [128, 1], strides = [1, 1]} : vector<128x8xf32> to vector<128x1xf32>
    %70 = tpu.reciprocal %69 {approx = true} : vector<128x1xf32> -> vector<128x1xf32>
    %71 = vector.broadcast %70 : vector<128x1xf32> to vector<128x32xf32>
    %72 = arith.mulf %67, %71 : vector<128x32xf32>
    %c0_24 = arith.constant 0 : index
    %c32 = arith.constant 32 : index
    %73 = vector.load %arg4[%c0_24, %c32] : memref<4x128xf32, #tpu.memory_space<vmem>>, vector<1x32xf32>
    %74 = vector.broadcast %73 : vector<1x32xf32> to vector<128x32xf32>
    %75 = arith.addf %72, %74 : vector<128x32xf32>
    %cst_25 = arith.constant 0.000000e+00 : f32
    %76 = vector.broadcast %cst_25 : f32 to vector<128x32xf32>
    %77 = arith.maximumf %75, %76 : vector<128x32xf32>
    %78 = arith.truncf %77 : vector<128x32xf32> to vector<128x32xbf16>
    %c0_26 = arith.constant 0 : index
    %c32_27 = arith.constant 32 : index
    %79 = vector.load %arg6[%c0_26, %c32_27] : memref<128x128xbf16, #tpu.memory_space<vmem>>, vector<128x32xbf16>
    tpu.vector_store %arg6[%c0_26, %c32_27], %78 {strides = array<i32>} : memref<128x128xbf16, #tpu.memory_space<vmem>>, vector<128x32xbf16>,
    %80 = vector.extract_strided_slice %5 {offsets = [0, 2], sizes = [128, 1], strides = [1, 1]} : vector<128x4xf32> to vector<128x1xf32>
    %81 = vector.extract_strided_slice %12 {offsets = [2, 0], sizes = [1, 128], strides = [1, 1]} : vector<4x128xf32> to vector<1x128xf32>
    %82 = vector.broadcast %80 : vector<128x1xf32> to vector<128x128xf32>
    %83 = vector.broadcast %81 : vector<1x128xf32> to vector<128x128xf32>
    %84 = arith.addf %82, %83 : vector<128x128xf32>
    %cst_28 = arith.constant 0.000000e+00 : f32
    %85 = vector.broadcast %cst_28 : f32 to vector<128x128xf32>
    %86 = arith.cmpf ogt, %84, %85 : vector<128x128xf32>
    %cst_29 = arith.constant 2.000000e-01 : f32
    %87 = vector.broadcast %cst_29 : f32 to vector<128x128xf32>
    %88 = arith.mulf %87, %84 : vector<128x128xf32>
    %89 = arith.select %86, %84, %88 : vector<128x128xi1>, vector<128x128xf32>
    %c0_30 = arith.constant 0 : index
    %c0_31 = arith.constant 0 : index
    %90 = vector.load %arg2[%c0_30, %c0_31] : memref<128x128xbf16, #tpu.memory_space<vmem>>, vector<128x128xbf16>
    %91 = arith.extf %90 : vector<128x128xbf16> to vector<128x128xf32>
    %92 = arith.addf %89, %91 : vector<128x128xf32>
    %cst_32 = arith.constant dense<0xFF800000> : vector<128xf32>
    %93 = vector.multi_reduction <maximumf>, %92, %cst_32 [1] : vector<128x128xf32> to vector<128xf32>
    %94 = vector.shape_cast %93 : vector<128xf32> to vector<128x1xf32>
    %95 = vector.broadcast %94 : vector<128x1xf32> to vector<128x128xf32>
    %96 = arith.subf %92, %95 : vector<128x128xf32>
    %97 = math.exp %96 : vector<128x128xf32>
    %98 = arith.truncf %97 : vector<128x128xf32> to vector<128x128xbf16>
    %99 = vector.extract_strided_slice %4 {offsets = [0, 64], sizes = [128, 32], strides = [1, 1]} : vector<128x128xbf16> to vector<128x32xbf16>
    %cst_33 = arith.constant dense<0.000000e+00> : vector<128x32xf32>
    %100 = tpu.matmul %98, %99, %cst_33 {dimension_numbers = #tpu.dot_dimension_numbers<[1], [0], [0], [1], [0, 0, 1, 1], [], []>} : vector<128x128xbf16>, vector<128x32xbf16>, vector<128x32xf32> -> vector<128x32xf32>
    %cst_34 = arith.constant dense<0.000000e+00> : vector<128x8xf32>
    %101 = tpu.matmul %98, %13, %cst_34 {dimension_numbers = #tpu.dot_dimension_numbers<[1], [0], [0], [1], [0, 0, 1, 1], [], []>} : vector<128x128xbf16>, vector<128x8xbf16>, vector<128x8xf32> -> vector<128x8xf32>
    %102 = vector.extract_strided_slice %101 {offsets = [0, 0], sizes = [128, 1], strides = [1, 1]} : vector<128x8xf32> to vector<128x1xf32>
    %103 = tpu.reciprocal %102 {approx = true} : vector<128x1xf32> -> vector<128x1xf32>
    %104 = vector.broadcast %103 : vector<128x1xf32> to vector<128x32xf32>
    %105 = arith.mulf %100, %104 : vector<128x32xf32>
    %c0_35 = arith.constant 0 : index
    %c64 = arith.constant 64 : index
    %106 = vector.load %arg4[%c0_35, %c64] : memref<4x128xf32, #tpu.memory_space<vmem>>, vector<1x32xf32>
    %107 = vector.broadcast %106 : vector<1x32xf32> to vector<128x32xf32>
    %108 = arith.addf %105, %107 : vector<128x32xf32>
    %cst_36 = arith.constant 0.000000e+00 : f32
    %109 = vector.broadcast %cst_36 : f32 to vector<128x32xf32>
    %110 = arith.maximumf %108, %109 : vector<128x32xf32>
    %111 = arith.truncf %110 : vector<128x32xf32> to vector<128x32xbf16>
    %c0_37 = arith.constant 0 : index
    %c64_38 = arith.constant 64 : index
    %112 = vector.load %arg6[%c0_37, %c64_38] : memref<128x128xbf16, #tpu.memory_space<vmem>>, vector<128x32xbf16>
    tpu.vector_store %arg6[%c0_37, %c64_38], %111 {strides = array<i32>} : memref<128x128xbf16, #tpu.memory_space<vmem>>, vector<128x32xbf16>,
    %113 = vector.extract_strided_slice %5 {offsets = [0, 3], sizes = [128, 1], strides = [1, 1]} : vector<128x4xf32> to vector<128x1xf32>
    %114 = vector.extract_strided_slice %12 {offsets = [3, 0], sizes = [1, 128], strides = [1, 1]} : vector<4x128xf32> to vector<1x128xf32>
    %115 = vector.broadcast %113 : vector<128x1xf32> to vector<128x128xf32>
    %116 = vector.broadcast %114 : vector<1x128xf32> to vector<128x128xf32>
    %117 = arith.addf %115, %116 : vector<128x128xf32>
    %cst_39 = arith.constant 0.000000e+00 : f32
    %118 = vector.broadcast %cst_39 : f32 to vector<128x128xf32>
    %119 = arith.cmpf ogt, %117, %118 : vector<128x128xf32>
    %cst_40 = arith.constant 2.000000e-01 : f32
    %120 = vector.broadcast %cst_40 : f32 to vector<128x128xf32>
    %121 = arith.mulf %120, %117 : vector<128x128xf32>
    %122 = arith.select %119, %117, %121 : vector<128x128xi1>, vector<128x128xf32>
    %c0_41 = arith.constant 0 : index
    %c0_42 = arith.constant 0 : index
    %123 = vector.load %arg2[%c0_41, %c0_42] : memref<128x128xbf16, #tpu.memory_space<vmem>>, vector<128x128xbf16>
    %124 = arith.extf %123 : vector<128x128xbf16> to vector<128x128xf32>
    %125 = arith.addf %122, %124 : vector<128x128xf32>
    %cst_43 = arith.constant dense<0xFF800000> : vector<128xf32>
    %126 = vector.multi_reduction <maximumf>, %125, %cst_43 [1] : vector<128x128xf32> to vector<128xf32>
    %127 = vector.shape_cast %126 : vector<128xf32> to vector<128x1xf32>
    %128 = vector.broadcast %127 : vector<128x1xf32> to vector<128x128xf32>
    %129 = arith.subf %125, %128 : vector<128x128xf32>
    %130 = math.exp %129 : vector<128x128xf32>
    %131 = arith.truncf %130 : vector<128x128xf32> to vector<128x128xbf16>
    %132 = vector.extract_strided_slice %4 {offsets = [0, 96], sizes = [128, 32], strides = [1, 1]} : vector<128x128xbf16> to vector<128x32xbf16>
    %cst_44 = arith.constant dense<0.000000e+00> : vector<128x32xf32>
    %133 = tpu.matmul %131, %132, %cst_44 {dimension_numbers = #tpu.dot_dimension_numbers<[1], [0], [0], [1], [0, 0, 1, 1], [], []>} : vector<128x128xbf16>, vector<128x32xbf16>, vector<128x32xf32> -> vector<128x32xf32>
    %cst_45 = arith.constant dense<0.000000e+00> : vector<128x8xf32>
    %134 = tpu.matmul %131, %13, %cst_45 {dimension_numbers = #tpu.dot_dimension_numbers<[1], [0], [0], [1], [0, 0, 1, 1], [], []>} : vector<128x128xbf16>, vector<128x8xbf16>, vector<128x8xf32> -> vector<128x8xf32>
    %135 = vector.extract_strided_slice %134 {offsets = [0, 0], sizes = [128, 1], strides = [1, 1]} : vector<128x8xf32> to vector<128x1xf32>
    %136 = tpu.reciprocal %135 {approx = true} : vector<128x1xf32> -> vector<128x1xf32>
    %137 = vector.broadcast %136 : vector<128x1xf32> to vector<128x32xf32>
    %138 = arith.mulf %133, %137 : vector<128x32xf32>
    %c0_46 = arith.constant 0 : index
    %c96 = arith.constant 96 : index
    %139 = vector.load %arg4[%c0_46, %c96] : memref<4x128xf32, #tpu.memory_space<vmem>>, vector<1x32xf32>
    %140 = vector.broadcast %139 : vector<1x32xf32> to vector<128x32xf32>
    %141 = arith.addf %138, %140 : vector<128x32xf32>
    %cst_47 = arith.constant 0.000000e+00 : f32
    %142 = vector.broadcast %cst_47 : f32 to vector<128x32xf32>
    %143 = arith.maximumf %141, %142 : vector<128x32xf32>
    %144 = arith.truncf %143 : vector<128x32xf32> to vector<128x32xbf16>
    %c0_48 = arith.constant 0 : index
    %c96_49 = arith.constant 96 : index
    %145 = vector.load %arg6[%c0_48, %c96_49] : memref<128x128xbf16, #tpu.memory_space<vmem>>, vector<128x32xbf16>
    tpu.vector_store %arg6[%c0_48, %c96_49], %144 {strides = array<i32>} : memref<128x128xbf16, #tpu.memory_space<vmem>>, vector<128x32xbf16>,
    %c0_50 = arith.constant 0 : index
    %c0_51 = arith.constant 0 : index
    %146 = vector.load %arg6[%c0_50, %c0_51] : memref<128x128xbf16, #tpu.memory_space<vmem>>, vector<128x128xbf16>
    %c16 = arith.constant 16 : index
    %c0_52 = arith.constant 0 : index
    %147 = vector.load %arg3[%c16, %c0_52] : memref<304x144xbf16, #tpu.memory_space<vmem>>, vector<128x144xbf16>
    %cst_53 = arith.constant dense<0.000000e+00> : vector<128x144xf32>
    %148 = tpu.matmul %146, %147, %cst_53 {dimension_numbers = #tpu.dot_dimension_numbers<[1], [0], [0], [1], [0, 0, 1, 1], [], []>} : vector<128x128xbf16>, vector<128x144xbf16>, vector<128x144xf32> -> vector<128x144xf32>
    %149 = vector.extract_strided_slice %148 {offsets = [0, 0], sizes = [128, 128], strides = [1, 1]} : vector<128x144xf32> to vector<128x128xf32>
    %150 = arith.truncf %149 : vector<128x128xf32> to vector<128x128xbf16>
    %151 = vector.extract_strided_slice %148 {offsets = [0, 128], sizes = [128, 4], strides = [1, 1]} : vector<128x144xf32> to vector<128x4xf32>
    %152 = tpu.iota {dimensions = array<i32: 0>} : vector<4x8xi32>
    %153 = tpu.iota {dimensions = array<i32: 1>} : vector<4x8xi32>
    %154 = arith.cmpi eq, %152, %153 : vector<4x8xi32>
    %155 = arith.extui %154 : vector<4x8xi1> to vector<4x8xi32>
    %156 = arith.sitofp %155 : vector<4x8xi32> to vector<4x8xf32>
    %157 = vector.extract_strided_slice %148 {offsets = [0, 136], sizes = [128, 8], strides = [1, 1]} : vector<128x144xf32> to vector<128x8xf32>
    %cst_54 = arith.constant dense<0.000000e+00> : vector<4x128xf32>
    %158 = tpu.matmul %156, %157, %cst_54 {dimension_numbers = #tpu.dot_dimension_numbers<[1], [1], [0], [0], [0, 0, 1, 0], [], []>} : vector<4x8xf32>, vector<128x8xf32>, vector<4x128xf32> -> vector<4x128xf32>
    %cst_55 = arith.constant 1.000000e+00 : bf16
    %159 = vector.broadcast %cst_55 : bf16 to vector<128x8xbf16>
    %160 = vector.extract_strided_slice %151 {offsets = [0, 0], sizes = [128, 1], strides = [1, 1]} : vector<128x4xf32> to vector<128x1xf32>
    %161 = vector.extract_strided_slice %158 {offsets = [0, 0], sizes = [1, 128], strides = [1, 1]} : vector<4x128xf32> to vector<1x128xf32>
    %162 = vector.broadcast %160 : vector<128x1xf32> to vector<128x128xf32>
    %163 = vector.broadcast %161 : vector<1x128xf32> to vector<128x128xf32>
    %164 = arith.addf %162, %163 : vector<128x128xf32>
    %cst_56 = arith.constant 0.000000e+00 : f32
    %165 = vector.broadcast %cst_56 : f32 to vector<128x128xf32>
    %166 = arith.cmpf ogt, %164, %165 : vector<128x128xf32>
    %cst_57 = arith.constant 2.000000e-01 : f32
    %167 = vector.broadcast %cst_57 : f32 to vector<128x128xf32>
    %168 = arith.mulf %167, %164 : vector<128x128xf32>
    %169 = arith.select %166, %164, %168 : vector<128x128xi1>, vector<128x128xf32>
    %c0_58 = arith.constant 0 : index
    %c0_59 = arith.constant 0 : index
    %170 = vector.load %arg2[%c0_58, %c0_59] : memref<128x128xbf16, #tpu.memory_space<vmem>>, vector<128x128xbf16>
    %171 = arith.extf %170 : vector<128x128xbf16> to vector<128x128xf32>
    %172 = arith.addf %169, %171 : vector<128x128xf32>
    %cst_60 = arith.constant dense<0xFF800000> : vector<128xf32>
    %173 = vector.multi_reduction <maximumf>, %172, %cst_60 [1] : vector<128x128xf32> to vector<128xf32>
    %174 = vector.shape_cast %173 : vector<128xf32> to vector<128x1xf32>
    %175 = vector.broadcast %174 : vector<128x1xf32> to vector<128x128xf32>
    %176 = arith.subf %172, %175 : vector<128x128xf32>
    %177 = math.exp %176 : vector<128x128xf32>
    %178 = arith.truncf %177 : vector<128x128xf32> to vector<128x128xbf16>
    %179 = vector.extract_strided_slice %150 {offsets = [0, 0], sizes = [128, 32], strides = [1, 1]} : vector<128x128xbf16> to vector<128x32xbf16>
    %cst_61 = arith.constant dense<0.000000e+00> : vector<128x32xf32>
    %180 = tpu.matmul %178, %179, %cst_61 {dimension_numbers = #tpu.dot_dimension_numbers<[1], [0], [0], [1], [0, 0, 1, 1], [], []>} : vector<128x128xbf16>, vector<128x32xbf16>, vector<128x32xf32> -> vector<128x32xf32>
    %cst_62 = arith.constant dense<0.000000e+00> : vector<128x8xf32>
    %181 = tpu.matmul %178, %159, %cst_62 {dimension_numbers = #tpu.dot_dimension_numbers<[1], [0], [0], [1], [0, 0, 1, 1], [], []>} : vector<128x128xbf16>, vector<128x8xbf16>, vector<128x8xf32> -> vector<128x8xf32>
    %182 = vector.extract_strided_slice %181 {offsets = [0, 0], sizes = [128, 1], strides = [1, 1]} : vector<128x8xf32> to vector<128x1xf32>
    %183 = tpu.reciprocal %182 {approx = true} : vector<128x1xf32> -> vector<128x1xf32>
    %184 = vector.broadcast %183 : vector<128x1xf32> to vector<128x32xf32>
    %185 = arith.mulf %180, %184 : vector<128x32xf32>
    %c1 = arith.constant 1 : index
    %c0_63 = arith.constant 0 : index
    %186 = vector.load %arg4[%c1, %c0_63] : memref<4x128xf32, #tpu.memory_space<vmem>>, vector<1x32xf32>
    %187 = vector.broadcast %186 : vector<1x32xf32> to vector<128x32xf32>
    %188 = arith.addf %185, %187 : vector<128x32xf32>
    %cst_64 = arith.constant 0.000000e+00 : f32
    %189 = vector.broadcast %cst_64 : f32 to vector<128x32xf32>
    %190 = arith.maximumf %188, %189 : vector<128x32xf32>
    %191 = arith.truncf %190 : vector<128x32xf32> to vector<128x32xbf16>
    %c0_65 = arith.constant 0 : index
    %c0_66 = arith.constant 0 : index
    %192 = vector.load %arg7[%c0_65, %c0_66] : memref<128x128xbf16, #tpu.memory_space<vmem>>, vector<128x32xbf16>
    tpu.vector_store %arg7[%c0_65, %c0_66], %191 {strides = array<i32>} : memref<128x128xbf16, #tpu.memory_space<vmem>>, vector<128x32xbf16>,
    %193 = vector.extract_strided_slice %151 {offsets = [0, 1], sizes = [128, 1], strides = [1, 1]} : vector<128x4xf32> to vector<128x1xf32>
    %194 = vector.extract_strided_slice %158 {offsets = [1, 0], sizes = [1, 128], strides = [1, 1]} : vector<4x128xf32> to vector<1x128xf32>
    %195 = vector.broadcast %193 : vector<128x1xf32> to vector<128x128xf32>
    %196 = vector.broadcast %194 : vector<1x128xf32> to vector<128x128xf32>
    %197 = arith.addf %195, %196 : vector<128x128xf32>
    %cst_67 = arith.constant 0.000000e+00 : f32
    %198 = vector.broadcast %cst_67 : f32 to vector<128x128xf32>
    %199 = arith.cmpf ogt, %197, %198 : vector<128x128xf32>
    %cst_68 = arith.constant 2.000000e-01 : f32
    %200 = vector.broadcast %cst_68 : f32 to vector<128x128xf32>
    %201 = arith.mulf %200, %197 : vector<128x128xf32>
    %202 = arith.select %199, %197, %201 : vector<128x128xi1>, vector<128x128xf32>
    %c0_69 = arith.constant 0 : index
    %c0_70 = arith.constant 0 : index
    %203 = vector.load %arg2[%c0_69, %c0_70] : memref<128x128xbf16, #tpu.memory_space<vmem>>, vector<128x128xbf16>
    %204 = arith.extf %203 : vector<128x128xbf16> to vector<128x128xf32>
    %205 = arith.addf %202, %204 : vector<128x128xf32>
    %cst_71 = arith.constant dense<0xFF800000> : vector<128xf32>
    %206 = vector.multi_reduction <maximumf>, %205, %cst_71 [1] : vector<128x128xf32> to vector<128xf32>
    %207 = vector.shape_cast %206 : vector<128xf32> to vector<128x1xf32>
    %208 = vector.broadcast %207 : vector<128x1xf32> to vector<128x128xf32>
    %209 = arith.subf %205, %208 : vector<128x128xf32>
    %210 = math.exp %209 : vector<128x128xf32>
    %211 = arith.truncf %210 : vector<128x128xf32> to vector<128x128xbf16>
    %212 = vector.extract_strided_slice %150 {offsets = [0, 32], sizes = [128, 32], strides = [1, 1]} : vector<128x128xbf16> to vector<128x32xbf16>
    %cst_72 = arith.constant dense<0.000000e+00> : vector<128x32xf32>
    %213 = tpu.matmul %211, %212, %cst_72 {dimension_numbers = #tpu.dot_dimension_numbers<[1], [0], [0], [1], [0, 0, 1, 1], [], []>} : vector<128x128xbf16>, vector<128x32xbf16>, vector<128x32xf32> -> vector<128x32xf32>
    %cst_73 = arith.constant dense<0.000000e+00> : vector<128x8xf32>
    %214 = tpu.matmul %211, %159, %cst_73 {dimension_numbers = #tpu.dot_dimension_numbers<[1], [0], [0], [1], [0, 0, 1, 1], [], []>} : vector<128x128xbf16>, vector<128x8xbf16>, vector<128x8xf32> -> vector<128x8xf32>
    %215 = vector.extract_strided_slice %214 {offsets = [0, 0], sizes = [128, 1], strides = [1, 1]} : vector<128x8xf32> to vector<128x1xf32>
    %216 = tpu.reciprocal %215 {approx = true} : vector<128x1xf32> -> vector<128x1xf32>
    %217 = vector.broadcast %216 : vector<128x1xf32> to vector<128x32xf32>
    %218 = arith.mulf %213, %217 : vector<128x32xf32>
    %c1_74 = arith.constant 1 : index
    %c32_75 = arith.constant 32 : index
    %219 = vector.load %arg4[%c1_74, %c32_75] : memref<4x128xf32, #tpu.memory_space<vmem>>, vector<1x32xf32>
    %220 = vector.broadcast %219 : vector<1x32xf32> to vector<128x32xf32>
    %221 = arith.addf %218, %220 : vector<128x32xf32>
    %cst_76 = arith.constant 0.000000e+00 : f32
    %222 = vector.broadcast %cst_76 : f32 to vector<128x32xf32>
    %223 = arith.maximumf %221, %222 : vector<128x32xf32>
    %224 = arith.truncf %223 : vector<128x32xf32> to vector<128x32xbf16>
    %c0_77 = arith.constant 0 : index
    %c32_78 = arith.constant 32 : index
    %225 = vector.load %arg7[%c0_77, %c32_78] : memref<128x128xbf16, #tpu.memory_space<vmem>>, vector<128x32xbf16>
    tpu.vector_store %arg7[%c0_77, %c32_78], %224 {strides = array<i32>} : memref<128x128xbf16, #tpu.memory_space<vmem>>, vector<128x32xbf16>,
    %226 = vector.extract_strided_slice %151 {offsets = [0, 2], sizes = [128, 1], strides = [1, 1]} : vector<128x4xf32> to vector<128x1xf32>
    %227 = vector.extract_strided_slice %158 {offsets = [2, 0], sizes = [1, 128], strides = [1, 1]} : vector<4x128xf32> to vector<1x128xf32>
    %228 = vector.broadcast %226 : vector<128x1xf32> to vector<128x128xf32>
    %229 = vector.broadcast %227 : vector<1x128xf32> to vector<128x128xf32>
    %230 = arith.addf %228, %229 : vector<128x128xf32>
    %cst_79 = arith.constant 0.000000e+00 : f32
    %231 = vector.broadcast %cst_79 : f32 to vector<128x128xf32>
    %232 = arith.cmpf ogt, %230, %231 : vector<128x128xf32>
    %cst_80 = arith.constant 2.000000e-01 : f32
    %233 = vector.broadcast %cst_80 : f32 to vector<128x128xf32>
    %234 = arith.mulf %233, %230 : vector<128x128xf32>
    %235 = arith.select %232, %230, %234 : vector<128x128xi1>, vector<128x128xf32>
    %c0_81 = arith.constant 0 : index
    %c0_82 = arith.constant 0 : index
    %236 = vector.load %arg2[%c0_81, %c0_82] : memref<128x128xbf16, #tpu.memory_space<vmem>>, vector<128x128xbf16>
    %237 = arith.extf %236 : vector<128x128xbf16> to vector<128x128xf32>
    %238 = arith.addf %235, %237 : vector<128x128xf32>
    %cst_83 = arith.constant dense<0xFF800000> : vector<128xf32>
    %239 = vector.multi_reduction <maximumf>, %238, %cst_83 [1] : vector<128x128xf32> to vector<128xf32>
    %240 = vector.shape_cast %239 : vector<128xf32> to vector<128x1xf32>
    %241 = vector.broadcast %240 : vector<128x1xf32> to vector<128x128xf32>
    %242 = arith.subf %238, %241 : vector<128x128xf32>
    %243 = math.exp %242 : vector<128x128xf32>
    %244 = arith.truncf %243 : vector<128x128xf32> to vector<128x128xbf16>
    %245 = vector.extract_strided_slice %150 {offsets = [0, 64], sizes = [128, 32], strides = [1, 1]} : vector<128x128xbf16> to vector<128x32xbf16>
    %cst_84 = arith.constant dense<0.000000e+00> : vector<128x32xf32>
    %246 = tpu.matmul %244, %245, %cst_84 {dimension_numbers = #tpu.dot_dimension_numbers<[1], [0], [0], [1], [0, 0, 1, 1], [], []>} : vector<128x128xbf16>, vector<128x32xbf16>, vector<128x32xf32> -> vector<128x32xf32>
    %cst_85 = arith.constant dense<0.000000e+00> : vector<128x8xf32>
    %247 = tpu.matmul %244, %159, %cst_85 {dimension_numbers = #tpu.dot_dimension_numbers<[1], [0], [0], [1], [0, 0, 1, 1], [], []>} : vector<128x128xbf16>, vector<128x8xbf16>, vector<128x8xf32> -> vector<128x8xf32>
    %248 = vector.extract_strided_slice %247 {offsets = [0, 0], sizes = [128, 1], strides = [1, 1]} : vector<128x8xf32> to vector<128x1xf32>
    %249 = tpu.reciprocal %248 {approx = true} : vector<128x1xf32> -> vector<128x1xf32>
    %250 = vector.broadcast %249 : vector<128x1xf32> to vector<128x32xf32>
    %251 = arith.mulf %246, %250 : vector<128x32xf32>
    %c1_86 = arith.constant 1 : index
    %c64_87 = arith.constant 64 : index
    %252 = vector.load %arg4[%c1_86, %c64_87] : memref<4x128xf32, #tpu.memory_space<vmem>>, vector<1x32xf32>
    %253 = vector.broadcast %252 : vector<1x32xf32> to vector<128x32xf32>
    %254 = arith.addf %251, %253 : vector<128x32xf32>
    %cst_88 = arith.constant 0.000000e+00 : f32
    %255 = vector.broadcast %cst_88 : f32 to vector<128x32xf32>
    %256 = arith.maximumf %254, %255 : vector<128x32xf32>
    %257 = arith.truncf %256 : vector<128x32xf32> to vector<128x32xbf16>
    %c0_89 = arith.constant 0 : index
    %c64_90 = arith.constant 64 : index
    %258 = vector.load %arg7[%c0_89, %c64_90] : memref<128x128xbf16, #tpu.memory_space<vmem>>, vector<128x32xbf16>
    tpu.vector_store %arg7[%c0_89, %c64_90], %257 {strides = array<i32>} : memref<128x128xbf16, #tpu.memory_space<vmem>>, vector<128x32xbf16>,
    %259 = vector.extract_strided_slice %151 {offsets = [0, 3], sizes = [128, 1], strides = [1, 1]} : vector<128x4xf32> to vector<128x1xf32>
    %260 = vector.extract_strided_slice %158 {offsets = [3, 0], sizes = [1, 128], strides = [1, 1]} : vector<4x128xf32> to vector<1x128xf32>
    %261 = vector.broadcast %259 : vector<128x1xf32> to vector<128x128xf32>
    %262 = vector.broadcast %260 : vector<1x128xf32> to vector<128x128xf32>
    %263 = arith.addf %261, %262 : vector<128x128xf32>
    %cst_91 = arith.constant 0.000000e+00 : f32
    %264 = vector.broadcast %cst_91 : f32 to vector<128x128xf32>
    %265 = arith.cmpf ogt, %263, %264 : vector<128x128xf32>
    %cst_92 = arith.constant 2.000000e-01 : f32
    %266 = vector.broadcast %cst_92 : f32 to vector<128x128xf32>
    %267 = arith.mulf %266, %263 : vector<128x128xf32>
    %268 = arith.select %265, %263, %267 : vector<128x128xi1>, vector<128x128xf32>
    %c0_93 = arith.constant 0 : index
    %c0_94 = arith.constant 0 : index
    %269 = vector.load %arg2[%c0_93, %c0_94] : memref<128x128xbf16, #tpu.memory_space<vmem>>, vector<128x128xbf16>
    %270 = arith.extf %269 : vector<128x128xbf16> to vector<128x128xf32>
    %271 = arith.addf %268, %270 : vector<128x128xf32>
    %cst_95 = arith.constant dense<0xFF800000> : vector<128xf32>
    %272 = vector.multi_reduction <maximumf>, %271, %cst_95 [1] : vector<128x128xf32> to vector<128xf32>
    %273 = vector.shape_cast %272 : vector<128xf32> to vector<128x1xf32>
    %274 = vector.broadcast %273 : vector<128x1xf32> to vector<128x128xf32>
    %275 = arith.subf %271, %274 : vector<128x128xf32>
    %276 = math.exp %275 : vector<128x128xf32>
    %277 = arith.truncf %276 : vector<128x128xf32> to vector<128x128xbf16>
    %278 = vector.extract_strided_slice %150 {offsets = [0, 96], sizes = [128, 32], strides = [1, 1]} : vector<128x128xbf16> to vector<128x32xbf16>
    %cst_96 = arith.constant dense<0.000000e+00> : vector<128x32xf32>
    %279 = tpu.matmul %277, %278, %cst_96 {dimension_numbers = #tpu.dot_dimension_numbers<[1], [0], [0], [1], [0, 0, 1, 1], [], []>} : vector<128x128xbf16>, vector<128x32xbf16>, vector<128x32xf32> -> vector<128x32xf32>
    %cst_97 = arith.constant dense<0.000000e+00> : vector<128x8xf32>
    %280 = tpu.matmul %277, %159, %cst_97 {dimension_numbers = #tpu.dot_dimension_numbers<[1], [0], [0], [1], [0, 0, 1, 1], [], []>} : vector<128x128xbf16>, vector<128x8xbf16>, vector<128x8xf32> -> vector<128x8xf32>
    %281 = vector.extract_strided_slice %280 {offsets = [0, 0], sizes = [128, 1], strides = [1, 1]} : vector<128x8xf32> to vector<128x1xf32>
    %282 = tpu.reciprocal %281 {approx = true} : vector<128x1xf32> -> vector<128x1xf32>
    %283 = vector.broadcast %282 : vector<128x1xf32> to vector<128x32xf32>
    %284 = arith.mulf %279, %283 : vector<128x32xf32>
    %c1_98 = arith.constant 1 : index
    %c96_99 = arith.constant 96 : index
    %285 = vector.load %arg4[%c1_98, %c96_99] : memref<4x128xf32, #tpu.memory_space<vmem>>, vector<1x32xf32>
    %286 = vector.broadcast %285 : vector<1x32xf32> to vector<128x32xf32>
    %287 = arith.addf %284, %286 : vector<128x32xf32>
    %cst_100 = arith.constant 0.000000e+00 : f32
    %288 = vector.broadcast %cst_100 : f32 to vector<128x32xf32>
    %289 = arith.maximumf %287, %288 : vector<128x32xf32>
    %290 = arith.truncf %289 : vector<128x32xf32> to vector<128x32xbf16>
    %c0_101 = arith.constant 0 : index
    %c96_102 = arith.constant 96 : index
    %291 = vector.load %arg7[%c0_101, %c96_102] : memref<128x128xbf16, #tpu.memory_space<vmem>>, vector<128x32xbf16>
    tpu.vector_store %arg7[%c0_101, %c96_102], %290 {strides = array<i32>} : memref<128x128xbf16, #tpu.memory_space<vmem>>, vector<128x32xbf16>,
    %c0_103 = arith.constant 0 : index
    %c0_104 = arith.constant 0 : index
    %292 = vector.load %arg7[%c0_103, %c0_104] : memref<128x128xbf16, #tpu.memory_space<vmem>>, vector<128x128xbf16>
    %c144 = arith.constant 144 : index
    %c0_105 = arith.constant 0 : index
    %293 = vector.load %arg3[%c144, %c0_105] : memref<304x144xbf16, #tpu.memory_space<vmem>>, vector<128x48xbf16>
    %cst_106 = arith.constant dense<0.000000e+00> : vector<128x48xf32>
    %294 = tpu.matmul %292, %293, %cst_106 {dimension_numbers = #tpu.dot_dimension_numbers<[1], [0], [0], [1], [0, 0, 1, 1], [], []>} : vector<128x128xbf16>, vector<128x48xbf16>, vector<128x48xf32> -> vector<128x48xf32>
    %295 = vector.extract_strided_slice %294 {offsets = [0, 0], sizes = [128, 32], strides = [1, 1]} : vector<128x48xf32> to vector<128x32xf32>
    %296 = arith.truncf %295 : vector<128x32xf32> to vector<128x32xbf16>
    %297 = vector.extract_strided_slice %294 {offsets = [0, 32], sizes = [128, 1], strides = [1, 1]} : vector<128x48xf32> to vector<128x1xf32>
    %298 = tpu.iota {dimensions = array<i32: 0>} : vector<1x8xi32>
    %299 = tpu.iota {dimensions = array<i32: 1>} : vector<1x8xi32>
    %300 = arith.cmpi eq, %298, %299 : vector<1x8xi32>
    %301 = arith.extui %300 : vector<1x8xi1> to vector<1x8xi32>
    %302 = arith.sitofp %301 : vector<1x8xi32> to vector<1x8xf32>
    %303 = vector.extract_strided_slice %294 {offsets = [0, 40], sizes = [128, 8], strides = [1, 1]} : vector<128x48xf32> to vector<128x8xf32>
    %cst_107 = arith.constant dense<0.000000e+00> : vector<1x128xf32>
    %304 = tpu.matmul %302, %303, %cst_107 {dimension_numbers = #tpu.dot_dimension_numbers<[1], [1], [0], [0], [0, 0, 1, 0], [], []>} : vector<1x8xf32>, vector<128x8xf32>, vector<1x128xf32> -> vector<1x128xf32>
    %cst_108 = arith.constant 1.000000e+00 : bf16
    %305 = vector.broadcast %cst_108 : bf16 to vector<128x8xbf16>
    %306 = vector.broadcast %297 : vector<128x1xf32> to vector<128x128xf32>
    %307 = vector.broadcast %304 : vector<1x128xf32> to vector<128x128xf32>
    %308 = arith.addf %306, %307 : vector<128x128xf32>
    %cst_109 = arith.constant 0.000000e+00 : f32
    %309 = vector.broadcast %cst_109 : f32 to vector<128x128xf32>
    %310 = arith.cmpf ogt, %308, %309 : vector<128x128xf32>
    %cst_110 = arith.constant 2.000000e-01 : f32
    %311 = vector.broadcast %cst_110 : f32 to vector<128x128xf32>
    %312 = arith.mulf %311, %308 : vector<128x128xf32>
    %313 = arith.select %310, %308, %312 : vector<128x128xi1>, vector<128x128xf32>
    %c0_111 = arith.constant 0 : index
    %c0_112 = arith.constant 0 : index
    %314 = vector.load %arg2[%c0_111, %c0_112] : memref<128x128xbf16, #tpu.memory_space<vmem>>, vector<128x128xbf16>
    %315 = arith.extf %314 : vector<128x128xbf16> to vector<128x128xf32>
    %316 = arith.addf %313, %315 : vector<128x128xf32>
    %cst_113 = arith.constant dense<0xFF800000> : vector<128xf32>
    %317 = vector.multi_reduction <maximumf>, %316, %cst_113 [1] : vector<128x128xf32> to vector<128xf32>
    %318 = vector.shape_cast %317 : vector<128xf32> to vector<128x1xf32>
    %319 = vector.broadcast %318 : vector<128x1xf32> to vector<128x128xf32>
    %320 = arith.subf %316, %319 : vector<128x128xf32>
    %321 = math.exp %320 : vector<128x128xf32>
    %322 = arith.truncf %321 : vector<128x128xf32> to vector<128x128xbf16>
    %cst_114 = arith.constant dense<0.000000e+00> : vector<128x32xf32>
    %323 = tpu.matmul %322, %296, %cst_114 {dimension_numbers = #tpu.dot_dimension_numbers<[1], [0], [0], [1], [0, 0, 1, 1], [], []>} : vector<128x128xbf16>, vector<128x32xbf16>, vector<128x32xf32> -> vector<128x32xf32>
    %cst_115 = arith.constant dense<0.000000e+00> : vector<128x8xf32>
    %324 = tpu.matmul %322, %305, %cst_115 {dimension_numbers = #tpu.dot_dimension_numbers<[1], [0], [0], [1], [0, 0, 1, 1], [], []>} : vector<128x128xbf16>, vector<128x8xbf16>, vector<128x8xf32> -> vector<128x8xf32>
    %325 = vector.extract_strided_slice %324 {offsets = [0, 0], sizes = [128, 1], strides = [1, 1]} : vector<128x8xf32> to vector<128x1xf32>
    %326 = tpu.reciprocal %325 {approx = true} : vector<128x1xf32> -> vector<128x1xf32>
    %327 = vector.broadcast %326 : vector<128x1xf32> to vector<128x32xf32>
    %328 = arith.mulf %323, %327 : vector<128x32xf32>
    %c2 = arith.constant 2 : index
    %c0_116 = arith.constant 0 : index
    %329 = vector.load %arg4[%c2, %c0_116] : memref<4x128xf32, #tpu.memory_space<vmem>>, vector<1x32xf32>
    %330 = vector.broadcast %329 : vector<1x32xf32> to vector<128x32xf32>
    %331 = arith.addf %328, %330 : vector<128x32xf32>
    %cst_117 = arith.constant 0.000000e+00 : f32
    %332 = vector.broadcast %cst_117 : f32 to vector<128x32xf32>
    %333 = arith.maximumf %331, %332 : vector<128x32xf32>
    %334 = arith.truncf %333 : vector<128x32xf32> to vector<128x32xbf16>
    %c0_118 = arith.constant 0 : index
    %c0_119 = arith.constant 0 : index
    %335 = vector.load %arg6[%c0_118, %c0_119] : memref<128x128xbf16, #tpu.memory_space<vmem>>, vector<128x32xbf16>
    tpu.vector_store %arg6[%c0_118, %c0_119], %334 {strides = array<i32>} : memref<128x128xbf16, #tpu.memory_space<vmem>>, vector<128x32xbf16>,
    %c272 = arith.constant 272 : index
    %c0_120 = arith.constant 0 : index
    %336 = vector.load %arg3[%c272, %c0_120] : memref<304x144xbf16, #tpu.memory_space<vmem>>, vector<32x8xbf16>
    %c0_121 = arith.constant 0 : index
    %c0_122 = arith.constant 0 : index
    %337 = vector.load %arg6[%c0_121, %c0_122] : memref<128x128xbf16, #tpu.memory_space<vmem>>, vector<128x32xbf16>
    %cst_123 = arith.constant dense<0.000000e+00> : vector<128x8xf32>
    %338 = tpu.matmul %337, %336, %cst_123 {dimension_numbers = #tpu.dot_dimension_numbers<[1], [0], [0], [1], [0, 0, 1, 1], [], []>} : vector<128x32xbf16>, vector<32x8xbf16>, vector<128x8xf32> -> vector<128x8xf32>
    %c3 = arith.constant 3 : index
    %c0_124 = arith.constant 0 : index
    %339 = vector.load %arg4[%c3, %c0_124] : memref<4x128xf32, #tpu.memory_space<vmem>>, vector<1x8xf32>
    %340 = vector.broadcast %339 : vector<1x8xf32> to vector<128x8xf32>
    %341 = arith.addf %338, %340 : vector<128x8xf32>
    %c0_125 = arith.constant 0 : index
    %c0_126 = arith.constant 0 : index
    %342 = vector.load %arg5[%c0_125, %c0_126] : memref<128x8xf32, #tpu.memory_space<vmem>>, vector<128x8xf32>
    tpu.vector_store %arg5[%c0_125, %c0_126], %341 {strides = array<i32>} : memref<128x8xf32, #tpu.memory_space<vmem>>, vector<128x8xf32>,
    return
  }
  func.func @transform_0(%arg0: i32) -> (i32, i32) {
    %c0_i32 = arith.constant 0 : i32
    %c0_i32_0 = arith.constant 0 : i32
    %c0_i32_1 = arith.constant 0 : i32
    return %c0_i32, %c0_i32_0 : i32, i32
  }
  func.func @transform_1(%arg0: i32) -> (i32, i32) {
    %c0_i32 = arith.constant 0 : i32
    %c0_i32_0 = arith.constant 0 : i32
    %c0_i32_1 = arith.constant 0 : i32
    return %c0_i32, %c0_i32_0 : i32, i32
  }
  func.func @transform_2(%arg0: i32) -> (i32, i32) {
    %c0_i32 = arith.constant 0 : i32
    %c0_i32_0 = arith.constant 0 : i32
    %c0_i32_1 = arith.constant 0 : i32
    return %c0_i32, %c0_i32_0 : i32, i32
  }
  func.func @transform_3(%arg0: i32) -> (i32, i32) {
    %c0_i32 = arith.constant 0 : i32
    %c0_i32_0 = arith.constant 0 : i32
    %c0_i32_1 = arith.constant 0 : i32
    return %c0_i32, %c0_i32_0 : i32, i32
  }
  func.func @transform_4(%arg0: i32) -> (i32, i32) {
    %c0_i32 = arith.constant 0 : i32
    %c0_i32_0 = arith.constant 0 : i32
    %c0_i32_1 = arith.constant 0 : i32
    return %c0_i32, %c0_i32_0 : i32, i32
  }
}

</mosaic_0001>

<bundles_post_ra>
// kernel: gnn_forward.1
= control target key start
LH: loop header
LB: loop body
LE: loop exit
PB: predicated region body
PF: predicated region fallthrough
CT: control target
= control target key end

     0   :  { %vm87_vm0 = vcmask 130048   ;;  %s8114_s11 = smov 96   ;;  %v11511_v13 = vmov 0   ;;  %v11513_v15 = vmov 2   ;;  %s8117_s16 = smov 120   ;;  %v11509_v21 = vmov 1   ;;  %s11504_s2 = inlined_call_operand.vmem [shape: bf16[304,144], index: 2, kind: input, shape index: {}]   ;;  %s11505_s0 = inlined_call_operand.vmem [shape: bf16[128,16], index: 0, kind: input, shape index: {}]   ;;  %s11506_s3 = inlined_call_operand.vmem [shape: f32[4,128], index: 3, kind: input, shape index: {}]   ;;  %s11507_s1 = inlined_call_operand.vmem [shape: bf16[128,128], index: 1, kind: input, shape index: {}]   ;;  %s11508_s4 = inlined_call_operand.vmem [shape: f32[128,8], index: 4, kind: output, shape index: {}]  }
   0x1   :  { %v6719_v0 = vld [vmem:[%s11504_s2] sm:$0xf]  ;;  %v7010_v1 = vld [vmem:[%s11504_s2 + $0x4] sm:$0xf0]  ;;  %v7009_v2 = vld [vmem:[%s11504_s2 + $0x4] sm:$0xf]  ;;  %7428 = vset.pattern.permute.xlu2 %v11511_v13  ;;  %7424 = vset.pattern.permute.xlu1 %v11511_v13 }
   0x2   :  { %v6720_v3 = vor.u32 %v7010_v1, %v6719_v0  ;;  %v6721_v4 = vld [vmem:[%s11504_s2 + $0x8] sm:$0xf0]  ;;  %v7001_v6 = vld [vmem:[%s11505_s0] sm:$0xff]  ;;  %v7003_v8 = vld [vmem:[%s11505_s0 + $0x10] sm:$0xff]  ;;  %7426 = vset.pattern.permute.xlu0 %v11513_v15  ;;  %v11515_v23 = vmov 3   ;;  %s8121_s17 = smov 32  }
   0x3   :  { %v6724_v5 = vor.u32 %v7009_v2, %v6721_v4  ;;  %v7002_v7 = vld [vmem:[%s11505_s0 + $0x8] sm:$0xff]  ;;  %v7004_v9 = vld [vmem:[%s11505_s0 + $0x18] sm:$0xff]  ;;  %v7005_v10 = vld [vmem:[%s11505_s0 + $0x20] sm:$0xff]  ;;  %vm281_vm1 = vcmask 64512  }
   0x4   :  { %119 = vmatpush.bf16.msra.mxu0 %v6720_v3  ;;  %v7006_v11 = vld [vmem:[%s11505_s0 + $0x28] sm:$0xff]  ;;  %v7524_v12 = vld [vmem:[%s11506_s3] ss:$0 sm:$0xff]  ;;  %v7007_v14 = vld [vmem:[%s11505_s0 + $0x30] sm:$0xff] }
   0x5   :  { %168 = vmatpush.bf16.msra.mxu1 %v6724_v5  ;;  %1429 = vrot.lane.b32.xlu1 %v7524_v12, %s8114_s11  ;;  %v7008_v16 = vld [vmem:[%s11505_s0 + $0x38] sm:$0xff]  ;;  %s8120_s0 = smov 64  }
   0x7   :  { %6725 = vmatmul.msk.bf16.vlgmr.msra.gmra.mxu0 %vm87_vm0, %v7001_v6 }
   0x8   :  { %6733 = vmatmul.msk.bf16.vlgmr.msra.gmra.mxu1 %vm87_vm0, %v7001_v6 }
  0x17   :  { %6726 = vmatmul.msk.bf16.gmra.mxu0 %vm87_vm0, %v7002_v7 }
  0x18   :  { %6734 = vmatmul.msk.bf16.gmra.mxu1 %vm87_vm0, %v7002_v7 }
  0x27   :  { %6727 = vmatmul.msk.bf16.gmra.mxu0 %vm87_vm0, %v7003_v8 }
  0x28   :  { %6735 = vmatmul.msk.bf16.gmra.mxu1 %vm87_vm0, %v7003_v8 }
  0x37   :  { %6728 = vmatmul.msk.bf16.gmra.mxu0 %vm87_vm0, %v7004_v9 }
  0x38   :  { %6736 = vmatmul.msk.bf16.gmra.mxu1 %vm87_vm0, %v7004_v9 }
  0x47   :  { %6729 = vmatmul.msk.bf16.gmra.mxu0 %vm87_vm0, %v7005_v10 }
  0x48   :  { %6737 = vmatmul.msk.bf16.gmra.mxu1 %vm87_vm0, %v7005_v10 }
  0x57   :  { %6730 = vmatmul.msk.bf16.gmra.mxu0 %vm87_vm0, %v7006_v11 }
  0x58   :  { %6738 = vmatmul.msk.bf16.gmra.mxu1 %vm87_vm0, %v7006_v11 }
  0x67   :  { %6731 = vmatmul.msk.bf16.gmra.mxu0 %vm87_vm0, %v7007_v14 }
  0x68   :  { %6739 = vmatmul.msk.bf16.gmra.mxu1 %vm87_vm0, %v7007_v14 }
  0x77   :  { %6732 = vmatmul.msk.bf16.gmra.mxu0 %vm87_vm0, %v7008_v16  ;;  %v8266_v57 = vpop.permute.xlu1 %1429 }
  0x78   :  { %6740 = vmatmul.msk.bf16.gmra.mxu1 %vm87_vm0, %v7008_v16  ;;  %11616 = vst [vmem:[#allocation8_spill] sm:$0xff] %v8266_v57 }
  0x84   :  { %v121_v17 = vpop.f32.mrf.mxu0 }
  0x85   :  { %v170_v18 = vpop.f32.mrf.mxu1  ;;  %v210_v26 = vpack.c.bf16 %v121_v17, %v121_v17 }
  0x86   :  { %338 = vperm.xlu1 %7424, %v170_v18   ;;  %249 = vrot.lane.b32.xlu0 %v170_v18, %s8117_s16 }
  0x87   :  { %v618_v28 = vunpack.c.l.b16 %v210_v26 }
  0x8c   :  { %v123_v19 = vpop.f32.mrf.mxu0 }
  0x8d   :  { %v172_v20 = vpop.f32.mrf.mxu1  ;;  %v211_v27 = vpack.c.bf16 %v123_v19, %v123_v19 }
  0x8e   :  { %7425 = vset.pattern.permute.xlu1 %v11509_v21  ;;  %1562 = vperm.xlu0 %7426, %v170_v18  }
  0x8f   :  { %342 = vperm.xlu2 %7428, %v172_v20   ;;  %928 = vperm.xlu1 %7425, %v170_v18   ;;  %v619_v29 = vunpack.c.l.b16 %v211_v27 }
  0x91   :  { %v8219_v31 = vpack.c.b16 %v619_v29, %v618_v28 }
  0x93   :  { %11612 = vst [vmem:[#allocation4_spill] sm:$0xff] %v8219_v31 }
  0x94   :  { %v126_v22 = vpop.f32.mrf.mxu0 }
  0x95   :  { %v175_v25 = vpop.f32.mrf.mxu1  ;;  %v212_v33 = vpack.c.bf16 %v126_v22, %v126_v22 }
  0x96   :  { %251 = vrot.lane.b32.xlu0 %v172_v20, %s8117_s16 }
  0x97   :  { %7431 = vset.pattern.permute.xlu2 %v11515_v23  ;;  %7427 = vset.pattern.permute.xlu1 %v11515_v23  ;;  %v620_v36 = vunpack.c.l.b16 %v212_v33 }
  0x98   :  { %2200 = vperm.xlu2 %7431, %v172_v20   ;;  %2196 = vperm.xlu1 %7427, %v170_v18  }
  0x99   :  { %7429 = vset.pattern.permute.xlu0 %v11509_v21 }
  0x9c   :  { %v128_v24 = vpop.f32.mrf.mxu0 }
  0x9d   :  { %v213_v34 = vpack.c.bf16 %v128_v24, %v128_v24  ;;  %v177_v35 = vpop.f32.mrf.mxu1 }
  0x9e   :  { %932 = vperm.xlu0 %7429, %v172_v20  }
  0x9f   :  { %v621_v37 = vunpack.c.l.b16 %v213_v34 }
  0xa0   :  { %7433 = vset.pattern.permute.xlu2 %v11509_v21  ;;  %7430 = vset.pattern.permute.xlu1 %v11513_v15 }
  0xa1   :  { %936 = vperm.xlu2 %7433, %v175_v25   ;;  %1566 = vperm.xlu1 %7430, %v172_v20   ;;  %v8230_v39 = vpack.c.b16 %v621_v37, %v620_v36 }
  0xa3   :  { %11613 = vst [vmem:[#allocation5_spill] sm:$0xff] %v8230_v39 }
  0xa4   :  { %v131_v30 = vpop.f32.mrf.mxu0 }
  0xa5   :  { %v180_v40 = vpop.f32.mrf.mxu1  ;;  %v214_v47 = vpack.c.bf16 %v131_v30, %v131_v30 }
  0xa6   :  { %7432 = vset.pattern.permute.xlu0 %v11511_v13 }
  0xa7   :  { %346 = vperm.xlu0 %7432, %v175_v25   ;;  %v622_v50 = vunpack.c.l.b16 %v214_v47 }
  0xa9   :  { %7434 = vset.pattern.permute.xlu2 %v11513_v15  ;;  %1192 = vrot.lane.b32.xlu1 %v8219_v31, %s8114_s11 }
  0xaa   :  { %1570 = vperm.xlu2 %7434, %v175_v25   ;;  %7435 = vset.pattern.permute.xlu1 %v11515_v23 }
  0xac   :  { %v133_v32 = vpop.f32.mrf.mxu0 }
  0xad   :  { %v182_v43 = vpop.f32.mrf.mxu1  ;;  %v215_v48 = vpack.c.bf16 %v133_v32, %v133_v32 }
  0xaf   :  { %7438 = vset.pattern.permute.xlu0 %v11513_v15  ;;  %v623_v51 = vunpack.c.l.b16 %v215_v48 }
  0xb0   :  { %1574 = vperm.xlu0 %7438, %v177_v35  }
  0xb1   :  { %253 = vrot.lane.b32.xlu1 %v175_v25, %s8117_s16  ;;  %v8253_v52 = vpack.c.b16 %v623_v51, %v622_v50 }
  0xb2   :  { %7439 = vset.pattern.permute.xlu2 %v11515_v23 }
  0xb3   :  { %2208 = vperm.xlu2 %7439, %v177_v35   ;;  %11614 = vst [vmem:[#allocation6_spill] sm:$0xff] %v8253_v52 }
  0xb4   :  { %v8228_v38 = vpop.f32.mrf.mxu0 }
  0xb5   :  { %v185_v45 = vpop.f32.mrf.mxu1  ;;  %v216_v58 = vpack.c.bf16 %v8228_v38, %v8228_v38 }
  0xb7   :  { %v624_v63 = vunpack.c.l.b16 %v216_v58 }
  0xb8   :  { %1194 = vrot.lane.b32.xlu0 %v8230_v39, %s8114_s11 }
  0xb9   :  { %2204 = vperm.xlu1 %7435, %v175_v25  }
  0xbb   :  { %257 = vrot.lane.b32.xlu2 %v180_v40, %s8117_s16 }
  0xbc   :  { %v138_v41 = vpop.f32.mrf.mxu0  ;;  %7440 = vset.pattern.permute.xlu2 %v11511_v13 }
  0xbd   :  { %v8261_v55 = vpop.f32.mrf.mxu1  ;;  %v217_v59 = vpack.c.bf16 %v138_v41, %v138_v41 }
  0xbe   :  { %11615 = vst [vmem:[#allocation7_spill] sm:$0xff] %v8261_v55 }
  0xbf   :  { %v625_v0 = vunpack.c.l.b16 %v217_v59 }
  0xc0   :  { %1578 = vperm.xlu0 %7438, %v180_v40  }
  0xc1   :  { %255 = vrot.lane.b32.xlu1 %v177_v35, %s8117_s16  ;;  %v8284_v4 = vpack.c.b16 %v625_v0, %v624_v63 }
  0xc2   :  { %7436 = vset.pattern.permute.xlu1 %v11511_v13 }
  0xc3   :  { %354 = vperm.xlu2 %7440, %v180_v40   ;;  %11618 = vst [vmem:[#allocation10_spill] sm:$0xff] %v8284_v4 }
  0xc4   :  { %v8238_v42 = vpop.f32.mrf.mxu0 }
  0xc5   :  { %v8273_v61 = vpop.f32.mrf.mxu1  ;;  %v218_v24 = vpack.c.bf16 %v8238_v42, %v8238_v42 }
  0xc6   :  { %11617 = vst [vmem:[#allocation9_spill] sm:$0xff] %v8273_v61 }
  0xc7   :  { %v626_v30 = vunpack.c.l.b16 %v218_v24 }
  0xc8   :  { %7446 = vset.pattern.permute.xlu0 %v11515_v23 }
  0xc9   :  { %350 = vperm.xlu1 %7436, %v177_v35   ;;  %2216 = vperm.xlu0 %7446, %v182_v43  }
  0xcb   :  { %7441 = vset.pattern.permute.xlu2 %v11509_v21 }
  0xcc   :  { %944 = vperm.xlu2 %7441, %v180_v40   ;;  %v8242_v44 = vpop.f32.mrf.mxu0 }
  0xcd   :  { %v8294_v12 = vpop.f32.mrf.mxu1  ;;  %v219_v25 = vpack.c.bf16 %v8242_v44, %v8242_v44 }
  0xce   :  { %11619 = vst [vmem:[#allocation11_spill] sm:$0xff] %v8294_v12 }
  0xcf   :  { %v627_v32 = vunpack.c.l.b16 %v219_v25 }
  0xd1   :  { %7437 = vset.pattern.permute.xlu1 %v11509_v21  ;;  %261 = vrot.lane.b32.xlu0 %v185_v45, %s8117_s16  ;;  %v8327_v36 = vpack.c.b16 %v627_v32, %v626_v30 }
  0xd2   :  { %940 = vperm.xlu1 %7437, %v177_v35   ;;  %7448 = vset.pattern.permute.xlu0 %v11509_v21 }
  0xd3   :  { %11622 = vst [vmem:[#allocation14_spill] sm:$0xff] %v8327_v36 }
  0xd4   :  { %7442 = vset.pattern.permute.xlu2 %v11515_v23  ;;  %v8248_v46 = vpop.f32.mrf.mxu0 }
  0xd5   :  { %2212 = vperm.xlu2 %7442, %v180_v40   ;;  %v220_v11 = vpack.c.bf16 %v8248_v46, %v8248_v46  ;;  %v8322_v34 = vpop.f32.mrf.mxu1 }
  0xd6   :  { %11621 = vst [vmem:[#allocation13_spill] sm:$0xff] %v8322_v34 }
  0xd7   :  { %v628_v26 = vunpack.c.l.b16 %v220_v11 }
  0xd9   :  { %952 = vperm.xlu0 %7448, %v185_v45  }
  0xda   :  { %7443 = vset.pattern.permute.xlu1 %v11511_v13 }
  0xdb   :  { %358 = vperm.xlu1 %7443, %v182_v43  }
  0xdc   :  { %v148_v49 = vpop.f32.mrf.mxu0 }
  0xdd   :  { %259 = vrot.lane.b32.xlu2 %v182_v43, %s8117_s16  ;;  %v221_v14 = vpack.c.bf16 %v148_v49, %v148_v49  ;;  %v8342_v41 = vpop.f32.mrf.mxu1 }
  0xde   :  { %7447 = vset.pattern.permute.xlu2 %v11511_v13  ;;  %11624 = vst [vmem:[#allocation16_spill] sm:$0xff] %v8342_v41 }
  0xdf   :  { %v629_v27 = vunpack.c.l.b16 %v221_v14 }
  0xe1   :  { %7449 = vset.pattern.permute.xlu0 %v11513_v15  ;;  %v8317_v33 = vpack.c.b16 %v629_v27, %v628_v26 }
  0xe2   :  { %1586 = vperm.xlu0 %7449, %v185_v45  }
  0xe3   :  { %7444 = vset.pattern.permute.xlu1 %v11509_v21 }
  0xe4   :  { %948 = vperm.xlu1 %7444, %v182_v43   ;;  %v151_v53 = vpop.f32.mrf.mxu0 }
  0xe5   :  { %1196 = vrot.lane.b32.xlu2 %v8253_v52, %s8114_s11  ;;  %v222_v5 = vpack.c.bf16 %v151_v53, %v151_v53  ;;  %v8361_v46 = vpop.f32.mrf.mxu1 }
  0xe6   :  { %11625 = vst [vmem:[#allocation17_spill] sm:$0xff] %v8361_v46 }
  0xe7   :  { %v630_v16 = vunpack.c.l.b16 %v222_v5 }
  0xe9   :  { %v8259_v54 = vpop.permute.xlu2 %342 }
  0xea   :  { %7451 = vset.pattern.permute.xlu0 %v11511_v13 }
  0xeb   :  { %366 = vperm.xlu0 %7451, %v8261_v55  }
  0xec   :  { %7445 = vset.pattern.permute.xlu1 %v11513_v15  ;;  %v153_v56 = vpop.f32.mrf.mxu0 }
  0xed   :  { %362 = vperm.xlu2 %7447, %v185_v45   ;;  %1582 = vperm.xlu1 %7445, %v182_v43   ;;  %v223_v6 = vpack.c.bf16 %v153_v56, %v153_v56  ;;  %v8386_v53 = vpop.f32.mrf.mxu1 }
  0xee   :  { %11626 = vst [vmem:[#allocation18_spill] sm:$0xff] %v8386_v53 }
  0xef   :  { %v631_v17 = vunpack.c.l.b16 %v223_v6 }
  0xf1   :  { %v8308_v28 = vpack.c.b16 %v631_v17, %v630_v16 }
  0xf2   :  { %v8270_v60 = vpop.permute.xlu2 %2200 }
  0xf3   :  { %7453 = vset.pattern.permute.xlu0 %v11513_v15 }
  0xf4   :  { %1590 = vperm.xlu0 %7453, %v8261_v55   ;;  %v156_v62 = vpop.f32.mrf.mxu0 }
  0xf5   :  { %7450 = vset.pattern.permute.xlu2 %v11515_v23  ;;  %263 = vrot.lane.b32.xlu1 %v8261_v55, %s8117_s16  ;;  %v224_v3 = vpack.c.bf16 %v156_v62, %v156_v62  ;;  %v8400_v62 = vpop.f32.mrf.mxu1 }
  0xf6   :  { %2220 = vperm.xlu2 %7450, %v185_v45   ;;  %7454 = vset.pattern.permute.xlu1 %v11511_v13  ;;  %11628 = vst [vmem:[#allocation20_spill] sm:$0xff] %v8400_v62 }
  0xf7   :  { %v632_v9 = vunpack.c.l.b16 %v224_v3 }
  0xf8   :  { %v8280_v1 = vpop.permute.xlu1 %338  ;;  %v8282_v2 = vpop.permute.xlu0 %249 }
  0xfb   :  { %v8286_v7 = vpop.permute.xlu2 %936 }
  0xfc   :  { %1198 = vrot.lane.b32.xlu0 %v8284_v4, %s8114_s11  ;;  %v158_v8 = vpop.f32.mrf.mxu0 }
  0xfd   :  { %370 = vperm.xlu1 %7454, %v8273_v61   ;;  %v225_v10 = vpack.c.bf16 %v158_v8, %v158_v8  ;;  %7457 = vset.pattern.permute.xlu0 %v11509_v21  ;;  %v8416_v6 = vpop.f32.mrf.mxu1 }
  0xfe   :  { %7452 = vset.pattern.permute.xlu2 %v11509_v21  ;;  %11630 = vst [vmem:[#allocation22_spill] sm:$0xff] %v8416_v6 }
  0xff   :  { %v633_v18 = vunpack.c.l.b16 %v225_v10  ;;  %956 = vperm.xlu2 %7452, %v8261_v55  }
 0x100   :  { %v8298_v19 = vpop.permute.xlu0 %1562 }
 0x101   :  { %v8300_v20 = vpack.c.b16 %v633_v18, %v632_v9  ;;  %v8302_v22 = vpop.permute.xlu1 %928 }
 0x103   :  { %650 = vmatpush.bf16.msra.mxu3 %v8300_v20 }
 0x104   :  { %v8311_v29 = vpop.permute.xlu2 %1570  ;;  %267 = vrot.lane.b32.xlu0 %v8294_v12, %s8117_s16 }
 0x105   :  { %11620 = vst [vmem:[#allocation12_spill] sm:$0xff] %v8311_v29  ;;  %7455 = vset.pattern.permute.xlu1 %v11509_v21 }
 0x106   :  { %960 = vperm.xlu1 %7455, %v8273_v61  }
 0x107   :  { %265 = vrot.lane.b32.xlu2 %v8273_v61, %s8117_s16  ;;  %651 = vmatpush.bf16.msra.mxu3 %v8308_v28 }
 0x108   :  { %v8324_v35 = vpop.permute.xlu0 %251  ;;  %7456 = vset.pattern.permute.xlu2 %v11511_v13 }
 0x10a   :  { %v8329_v37 = vpop.permute.xlu1 %2196 }
 0x10b   :  { %652 = vmatpush.bf16.msra.mxu3 %v8317_v33 }
 0x10c   :  { %964 = vperm.xlu0 %7457, %v8294_v12  }
 0x10d   :  { %v8333_v38 = vpop.permute.xlu2 %2208 }
 0x10e   :  { %11623 = vst [vmem:[#allocation15_spill] sm:$0xff] %v8333_v38  ;;  %1200 = vrot.lane.b32.xlu1 %v8327_v36, %s8114_s11 }
 0x10f   :  { %374 = vperm.xlu2 %7456, %v8294_v12   ;;  %653 = vmatpush.bf16.msra.mxu3 %v8327_v36 }
 0x110   :  { %v8339_v40 = vpop.permute.xlu0 %932  ;;  %7460 = vset.pattern.permute.xlu1 %v11511_v13 }
 0x113   :  { %v8344_v42 = vpop.permute.xlu1 %1566  ;;  %654 = vmatpush.bf16.msra.mxu3 %v8284_v4 }
 0x114   :  { %7458 = vset.pattern.permute.xlu0 %v11511_v13 }
 0x115   :  { %v8348_v43 = vpop.permute.xlu2 %257  ;;  %378 = vperm.xlu0 %7458, %v8322_v34  }
 0x116   :  { %269 = vrot.lane.b32.xlu1 %v8322_v34, %s8117_s16 }
 0x117   :  { %7459 = vset.pattern.permute.xlu2 %v11509_v21  ;;  %655 = vmatpush.bf16.msra.mxu3 %v8253_v52 }
 0x118   :  { %968 = vperm.xlu2 %7459, %v8322_v34  }
 0x119   :  { %v8356_v44 = vpop.permute.xlu0 %346 }
 0x11b   :  { %v8358_v45 = vpop.permute.xlu1 %1192  ;;  %656 = vmatpush.bf16.msra.mxu3 %v8230_v39 }
 0x11d   :  { %273 = vrot.lane.b32.xlu0 %v8361_v46, %s8117_s16  ;;  %v8365_v47 = vpop.permute.xlu2 %354 }
 0x11e   :  { %382 = vperm.xlu1 %7460, %v8342_v41   ;;  %7463 = vset.pattern.permute.xlu0 %v11509_v21 }
 0x11f   :  { %657 = vmatpush.bf16.msra.mxu3 %v8219_v31 }
 0x120   :  { %271 = vrot.lane.b32.xlu2 %v8342_v41, %s8117_s16 }
 0x121   :  { %7462 = vset.pattern.permute.xlu2 %v11511_v13 }
 0x122   :  { %v8373_v48 = vpop.permute.xlu0 %1574 }
 0x123   :  { %v8375_v49 = vpop.permute.xlu1 %253 }
 0x125   :  { %976 = vperm.xlu0 %7463, %v8361_v46  }
 0x126   :  { %7461 = vset.pattern.permute.xlu1 %v11509_v21  ;;  %v8380_v50 = vpop.permute.xlu2 %944 }
 0x127   :  { %972 = vperm.xlu1 %7461, %v8342_v41  }
 0x128   :  { %1202 = vrot.lane.b32.xlu2 %v8317_v33, %s8114_s11 }
 0x12a   :  { %v8384_v51 = vpop.permute.xlu0 %1194 }
 0x12b   :  { %v8388_v56 = vpop.permute.xlu1 %2204 }
 0x12d   :  { %7464 = vset.pattern.permute.xlu0 %v11511_v13 }
 0x12e   :  { %390 = vperm.xlu0 %7464, %v8386_v53  }
 0x12f   :  { %275 = vrot.lane.b32.xlu1 %v8386_v53, %s8117_s16  ;;  %v8396_v58 = vpop.permute.xlu2 %2212 }
 0x130   :  { %386 = vperm.xlu2 %7462, %v8361_v46   ;;  %7466 = vset.pattern.permute.xlu1 %v11511_v13 }
 0x132   :  { %v8398_v59 = vpop.permute.xlu0 %1578 }
 0x133   :  { %11627 = vst [vmem:[#allocation19_spill] sm:$0xff] %v8398_v59  ;;  %v8402_v63 = vpop.permute.xlu1 %255 }
 0x136   :  { %1204 = vrot.lane.b32.xlu0 %v8308_v28, %s8114_s11 }
 0x137   :  { %394 = vperm.xlu1 %7466, %v8400_v62   ;;  %7469 = vset.pattern.permute.xlu0 %v11509_v21  ;;  %v8414_v5 = vpop.permute.xlu2 %259 }
 0x138   :  { %7465 = vset.pattern.permute.xlu2 %v11509_v21 }
 0x139   :  { %980 = vperm.xlu2 %7465, %v8386_v53  }
 0x13b   :  { %v8410_v0 = vpop.permute.xlu1 %350  ;;  %v8412_v3 = vpop.permute.xlu0 %2216 }
 0x13c   :  { %11629 = vst [vmem:[#allocation21_spill] sm:$0xff] %v8412_v3 }
 0x13e   :  { %279 = vrot.lane.b32.xlu0 %v8416_v6, %s8117_s16 }
 0x13f   :  { %7467 = vset.pattern.permute.xlu1 %v11509_v21  ;;  %v8429_v10 = vpop.permute.xlu2 %1196 }
 0x140   :  { %984 = vperm.xlu1 %7467, %v8400_v62  }
 0x141   :  { %277 = vrot.lane.b32.xlu2 %v8400_v62, %s8117_s16 }
 0x142   :  { %7468 = vset.pattern.permute.xlu2 %v11511_v13 }
 0x143   :  { %v8425_v8 = vpop.permute.xlu0 %261 }
 0x144   :  { %v8427_v9 = vpop.permute.xlu1 %940 }
 0x146   :  { %988 = vperm.xlu0 %7469, %v8416_v6  }
 0x147   :  { %v8442_v16 = vpop.permute.xlu2 %362 }
 0x148   :  { %1838 = vrot.lane.b32.xlu1 %v8308_v28, %s8120_s0 }
 0x149   :  { %398 = vperm.xlu2 %7468, %v8416_v6   ;;  %7471 = vset.pattern.permute.xlu1 %v11513_v15 }
 0x14b   :  { %v8436_v11 = vpop.permute.xlu0 %952 }
 0x14d   :  { %v8438_v14 = vpop.permute.xlu1 %358 }
 0x14e   :  { %7470 = vset.pattern.permute.xlu0 %v11513_v15 }
 0x14f   :  { %1594 = vperm.xlu0 %7470, %v8273_v61  }
 0x150   :  { %1606 = vperm.xlu1 %7471, %v8342_v41   ;;  %v8458_v24 = vpop.permute.xlu2 %2220 }
 0x151   :  { %2472 = vrot.lane.b32.xlu2 %v8308_v28, %s8121_s17  ;;  %11632 = vst [vmem:[#allocation24_spill] sm:$0xff] %v8458_v24 }
 0x152   :  { %7473 = vset.pattern.permute.xlu2 %v11513_v15 }
 0x154   :  { %v8448_v17 = vpop.permute.xlu0 %1586 }
 0x155   :  { %11631 = vst [vmem:[#allocation23_spill] sm:$0xff] %v8448_v17 }
 0x156   :  { %v8450_v18 = vpop.permute.xlu1 %948 }
 0x157   :  { %1598 = vperm.xlu0 %7470, %v8294_v12  }
 0x158   :  { %1836 = vrot.lane.b32.xlu1 %v8317_v33, %s8120_s0 }
 0x159   :  { %1834 = vrot.lane.b32.xlu2 %v8327_v36, %s8120_s0  ;;  %7472 = vset.pattern.permute.xlu1 %v11515_v23  ;;  %v8469_v27 = vpop.permute.xlu2 %956 }
 0x15d   :  { %v8460_v25 = vpop.permute.xlu0 %366 }
 0x15f   :  { %v8462_v26 = vpop.permute.xlu1 %1582  ;;  %1602 = vperm.xlu0 %7470, %v8322_v34  }
 0x160   :  { %1206 = vrot.lane.b32.xlu1 %v8300_v20, %s8114_s11 }
 0x161   :  { %2470 = vrot.lane.b32.xlu2 %v8317_v33, %s8121_s17  ;;  %v266_v32 = vpop.permute.xlu2 %265 }
 0x166   :  { %v8471_v28 = vpop.permute.xlu0 %1590 }
 0x167   :  { %11633 = vst [vmem:[#allocation25_spill] sm:$0xff] %v8471_v28  ;;  %v264_v30 = vpop.permute.xlu1 %263 }
 0x168   :  { %1840 = vrot.lane.b32.xlu1 %v8300_v20, %s8120_s0 }
 0x169   :  { %v8479_v23 = vpop.permute.xlu2 %374 }
 0x16e   :  { %v1199_v21 = vpop.permute.xlu0 %1198 }
 0x16f   :  { %v8475_v13 = vpop.permute.xlu1 %370 }
 0x170   :  { %2474 = vrot.lane.b32.xlu1 %v8300_v20, %s8121_s17 }
 0x172   :  { %v8487_v6 = vpop.permute.xlu2 %968 }
 0x176   :  { %v268_v15 = vpop.permute.xlu0 %267 }
 0x178   :  { %v8481_v57 = vpop.permute.xlu1 %960  ;;  %1832 = vrot.lane.b32.xlu1 %v8284_v4, %s8120_s0 }
 0x17a   :  { %v272_v34 = vpop.permute.xlu2 %271 }
 0x17e   :  { %v8485_v33 = vpop.permute.xlu0 %964 }
 0x180   :  { %v1201_v41 = vpop.permute.xlu1 %1200 }
 0x182   :  { %v1203_v20 = vpop.permute.xlu2 %1202 }
 0x187   :  { %v8489_v62 = vpop.permute.xlu0 %378 }
 0x188   :  { %v270_v61 = vpop.permute.xlu1 %269 }
 0x18a   :  { %v8497_v39 = vpop.permute.xlu2 %386 }
 0x18f   :  { %v274_v12 = vpop.permute.xlu0 %273 }
 0x190   :  { %v8491_v24 = vpop.permute.xlu1 %382 }
 0x193   :  { %v8503_v36 = vpop.permute.xlu2 %980 }
 0x197   :  { %v8493_v31 = vpop.permute.xlu0 %976 }
 0x199   :  { %v8495_v46 = vpop.permute.xlu1 %972 }
 0x19b   :  { %v278_v28 = vpop.permute.xlu2 %277 }
 0x1a0   :  { %v8499_v4 = vpop.permute.xlu0 %390 }
 0x1a1   :  { %v276_v53 = vpop.permute.xlu1 %275 }
 0x1a8   :  { %v1205_v55 = vpop.permute.xlu0 %1204 }
 0x1a9   :  { %v8501_v52 = vpop.permute.xlu1 %394 }
 0x1b0   :  { %v280_v17 = vpop.permute.xlu0 %279 }
 0x1b1   :  { %6742 = vmatpush.xpose.msk.msrb.mxu1 %vm281_vm1, %v280_v17  ;;  %v8518_v17 = vpop.permute.xlu2 %398 }
 0x1b2   :  { %v8506_v59 = vpop.permute.xlu1 %984 }
 0x1b5   :  { %6743 = vmatpush.xpose.msk.msrb.mxu1 %vm281_vm1, %v278_v28 }
 0x1b9   :  { %6744 = vmatpush.xpose.msk.msrb.mxu1 %vm281_vm1, %v276_v53 }
 0x1ba   :  { %v1839_v38 = vpop.permute.xlu1 %1838 }
 0x1bd   :  { %6745 = vmatpush.xpose.msk.msrb.mxu1 %vm281_vm1, %v274_v12 }
 0x1c1   :  { %6746 = vmatpush.xpose.msk.msrb.mxu1 %vm281_vm1, %v272_v34  ;;  %v226_v34 = vlaneseq }
 0x1c2   :  { %v8512_v3 = vpop.permute.xlu1 %1606 }
 0x1c3   :  { %11634 = vst [vmem:[#allocation26_spill] sm:$0xff] %v8512_v3  ;;  %v227_v53 = vshrl.u32 %v226_v34, 7 }
 0x1c5   :  { %6747 = vmatpush.xpose.msk.msrb.mxu1 %vm281_vm1, %v270_v61 }
 0x1c9   :  { %6748 = vmatpush.xpose.msk.msrb.mxu1 %vm281_vm1, %v268_v15  ;;  %v2473_v15 = vpop.permute.xlu2 %2472 }
 0x1ca   :  { %v1837_v29 = vpop.permute.xlu1 %1836 }
 0x1cd   :  { %6749 = vmatpush.xpose.msk.msrb.mxu1 %vm281_vm1, %v266_v32 }
 0x1d1   :  { %6750 = vmatpush.xpose.msk.msrb.mxu1 %vm281_vm1, %v264_v30 }
 0x1d2   :  { %v1207_v28 = vpop.permute.xlu1 %1206 }
 0x1d3   :  { %1216 = vmatpush.bf16.msrb.mxu0 %v1207_v28 }
 0x1d5   :  { %6751 = vmatpush.xpose.msk.msrb.mxu1 %vm281_vm1, %v8425_v8 }
 0x1d7   :  { %1217 = vmatpush.bf16.msrb.mxu0 %v1205_v55  ;;  %v1835_v55 = vpop.permute.xlu2 %1834 }
 0x1d9   :  { %6752 = vmatpush.xpose.msk.msrb.mxu1 %vm281_vm1, %v8414_v5  ;;  %v229_v5 = vand.u32 127, %v226_v34 }
 0x1da   :  { %v1841_v12 = vpop.permute.xlu1 %1840 }
 0x1db   :  { %1218 = vmatpush.bf16.msrb.mxu0 %v1203_v20  ;;  %1850 = vmatpush.bf16.msrb.mxu3 %v1841_v12  ;;  %vm230_vm2 = vcmp.eq.s32.totalorder %v227_v53, %v229_v5  ;;  %v7350_v5 = vld [vmem:[%s11507_s1 + $0x10] sm:$0xff]  }
 0x1dd   :  { %6753 = vmatpush.xpose.msk.msrb.mxu1 %vm281_vm1, %v8348_v43  ;;  %v7349_v43 = vld [vmem:[%s11507_s1 + $0x8] sm:$0xff]  }
 0x1df   :  { %1219 = vmatpush.bf16.msrb.mxu0 %v1201_v41  ;;  %1851 = vmatpush.bf16.msrb.mxu3 %v1839_v38  ;;  %v2471_v41 = vpop.permute.xlu2 %2470 }
 0x1e1   :  { %6754 = vmatpush.xpose.msk.msrb.mxu1 %vm281_vm1, %v8402_v63 }
 0x1e2   :  { %v2475_v61 = vpop.permute.xlu1 %2474 }
 0x1e3   :  { %1220 = vmatpush.bf16.msrb.mxu0 %v1199_v21  ;;  %1852 = vmatpush.bf16.msrb.mxu3 %v1837_v29  ;;  %v8122_v21 = vmov 0.0  }
 0x1e4   :  { %v8536_v29 = vsel %vm230_vm2, 1.0, %v8122_v21  ;;  %v8587_v21 = vunpack.c.l.bf16 %v7350_v5 }
 0x1e5   :  { %6755 = vmatpush.xpose.msk.msrb.mxu1 %vm281_vm1, %v8375_v49  ;;  %11635 = vst [vmem:[#allocation27_spill] sm:$0xff] %v8536_v29 }
 0x1e7   :  { %1221 = vmatpush.bf16.msrb.mxu0 %v8429_v10  ;;  %1853 = vmatpush.bf16.msrb.mxu3 %v1835_v55 }
 0x1e9   :  { %6756 = vmatpush.xpose.msk.msrb.mxu1 %vm281_vm1, %v8324_v35 }
 0x1ea   :  { %v1833_v38 = vpop.permute.xlu1 %1832 }
 0x1eb   :  { %1222 = vmatpush.bf16.msrb.mxu0 %v8384_v51  ;;  %1854 = vmatpush.bf16.msrb.mxu3 %v1833_v38  ;;  %v8554_v51 = vunpack.c.l.bf16 %v7349_v43  ;;  %v8585_v38 = vunpack.c.h.bf16 %v7349_v43 }
 0x1ed   :  { %6757 = vmatpush.xpose.msk.msrb.mxu1 %vm281_vm1, %v8282_v2 }
 0x1ef   :  { %1223 = vmatpush.bf16.msrb.mxu0 %v8358_v45  ;;  %v7062_v45 = vld [vmem:[%s11507_s1] sm:$0xff]  }
 0x1f0   :  { %6758 = vmatmul.msk.f32.vlgmr.msrb.gmra.mxu1 %vm281_vm1, %v8536_v29  ;;  %v8560_v10 = vunpack.c.l.bf16 %v7062_v45  ;;  %v8562_v30 = vunpack.c.h.bf16 %v7062_v45 }
 0x1f3   :  { %2484 = vmatpush.bf16.msra.mxu0 %v2475_v61 }
 0x1f7   :  { %2485 = vmatpush.bf16.msra.mxu0 %v2473_v15 }
 0x1fb   :  { %2486 = vmatpush.bf16.msra.mxu0 %v2471_v41  ;;  %v8589_v41 = vunpack.c.h.bf16 %v7350_v5 }
 0x26d   :  { %v8541_v35 = vpop.f32.mrf.mxu1 }
 0x26e   :  { %v8547_v2 = vperm.slane %v8541_v35, 0 }
 0x270   :  { %v404_v49 = vadd.f32 %v8547_v2, %v8356_v44  ;;  %v402_v63 = vadd.f32 %v8547_v2, %v8280_v1  ;;  %v403_v8 = vadd.f32 %v8547_v2, %v8259_v54  ;;  %v405_v32 = vadd.f32 %v8547_v2, %v8410_v0 }
 0x271   :  { %v406_v20 = vadd.f32 %v8547_v2, %v8365_v47  ;;  %v407_v1 = vadd.f32 %v8547_v2, %v8438_v14  ;;  %v411_v5 = vadd.f32 %v8547_v2, %v8479_v23  ;;  %v8641_v23 = vld [vmem:[%s11507_s1 + $0x28] sm:$0xff]   ;;  %v416_v29 = vadd.f32 %v8547_v2, %v8501_v52 }
 0x272   :  { %vm420_vm3 = vcmp.gt.f32.partialorder %v404_v49, 0.0  ;;  %v436_v44 = vmul.f32 0.2, %v404_v49  ;;  %vm418_vm4 = vcmp.gt.f32.partialorder %v402_v63, 0.0  ;;  %v434_v28 = vmul.f32 0.2, %v402_v63 }
 0x273   :  { %vm419_vm5 = vcmp.gt.f32.partialorder %v403_v8, 0.0  ;;  %v435_v12 = vmul.f32 0.2, %v403_v8  ;;  %v437_v55 = vmul.f32 0.2, %v405_v32  ;;  %vm421_vm6 = vcmp.gt.f32.partialorder %v405_v32, 0.0 }
 0x274   :  { %v452_v54 = vsel %vm420_vm3, %v404_v49, %v436_v44  ;;  %v450_v15 = vsel %vm418_vm4, %v402_v63, %v434_v28  ;;  %v438_v53 = vmul.f32 0.2, %v406_v20  ;;  %vm422_vm7 = vcmp.gt.f32.partialorder %v406_v20, 0.0 }
 0x275   :  { %v8571_v61 = vadd.f32 %v8554_v51, %v452_v54  ;;  %v8574_v34 = vadd.f32 %v8560_v10, %v450_v15  ;;  %v451_v0 = vsel %vm419_vm5, %v403_v8, %v435_v12  ;;  %v439_v14 = vmul.f32 0.2, %v407_v1 }
 0x276   :  { %v8577_v47 = vadd.f32 %v8562_v30, %v451_v0  ;;  %vm423_vm8 = vcmp.gt.f32.partialorder %v407_v1, 0.0  ;;  %v453_v45 = vsel %vm421_vm6, %v405_v32, %v437_v55  ;;  %v454_v49 = vsel %vm422_vm7, %v406_v20, %v438_v53 }
 0x277   :  { %518 = vmax.xlane.f32.xlu2 %v8571_v61  ;;  %514 = vmax.xlane.f32.xlu0 %v8574_v34  ;;  %v408_v63 = vadd.f32 %v8547_v2, %v8442_v16  ;;  %v409_v8 = vadd.f32 %v8547_v2, %v8460_v25  ;;  %v455_v44 = vsel %vm423_vm8, %v407_v1, %v439_v14  ;;  %v7351_v16 = vld [vmem:[%s11507_s1 + $0x18] sm:$0xff]   ;;  %v8612_v25 = vld [vmem:[%s11507_s1 + $0x20] sm:$0xff]   ;;  %vm427_vm12 = vcmp.gt.f32.partialorder %v411_v5, 0.0 }
 0x278   :  { %516 = vmax.xlane.f32.xlu1 %v8577_v47  ;;  %v410_v28 = vadd.f32 %v8547_v2, %v8475_v13  ;;  %v8598_v12 = vadd.f32 %v8585_v38, %v453_v45  ;;  %v8601_v43 = vadd.f32 %v8587_v21, %v454_v49  ;;  %v8604_v54 = vadd.f32 %v8589_v41, %v455_v44 }
 0x279   :  { %v440_v32 = vmul.f32 0.2, %v408_v63  ;;  %v441_v20 = vmul.f32 0.2, %v409_v8  ;;  %vm424_vm9 = vcmp.gt.f32.partialorder %v408_v63, 0.0  ;;  %vm425_vm10 = vcmp.gt.f32.partialorder %v409_v8, 0.0 }
 0x27a   :  { %v442_v13 = vmul.f32 0.2, %v410_v28  ;;  %vm426_vm11 = vcmp.gt.f32.partialorder %v410_v28, 0.0  ;;  %v8617_v1 = vunpack.c.l.bf16 %v7351_v16  ;;  %v8619_v15 = vunpack.c.h.bf16 %v7351_v16 }
 0x27b   :  { %v11539_v0 = vunpack.c.l.bf16 %v8612_v25  ;;  %v456_v55 = vsel %vm424_vm9, %v408_v63, %v440_v32  ;;  %v457_v53 = vsel %vm425_vm10, %v409_v8, %v441_v20  ;;  %v412_v14 = vadd.f32 %v8547_v2, %v8489_v62 }
 0x27c   :  { %v458_v45 = vsel %vm426_vm11, %v410_v28, %v442_v13  ;;  %v413_v49 = vadd.f32 %v8547_v2, %v8491_v24  ;;  %v8629_v44 = vadd.f32 %v8617_v1, %v456_v55  ;;  %v8632_v16 = vadd.f32 %v8619_v15, %v457_v53 }
 0x27d   :  { %v8636_v63 = vadd.f32 %v11539_v0, %v458_v45  ;;  %v443_v8 = vmul.f32 0.2, %v411_v5  ;;  %v444_v32 = vmul.f32 0.2, %v412_v14  ;;  %vm428_vm13 = vcmp.gt.f32.partialorder %v412_v14, 0.0 }
 0x27e   :  { %11636 = vst [vmem:[#allocation28_spill] sm:$0xff] %v8632_v16  ;;  %v445_v62 = vmul.f32 0.2, %v413_v49  ;;  %vm429_vm14 = vcmp.gt.f32.partialorder %v413_v49, 0.0  ;;  %v8647_v24 = vunpack.c.h.bf16 %v8612_v25  ;;  %v11543_v28 = vunpack.c.l.bf16 %v8641_v23 }
 0x27f   :  { %520 = vmax.xlane.f32.xlu2 %v8598_v12  ;;  %522 = vmax.xlane.f32.xlu0 %v8601_v43  ;;  %11637 = vst [vmem:[#allocation29_spill] sm:$0xff] %v8636_v63  ;;  %v11544_v20 = vunpack.c.h.bf16 %v8641_v23  ;;  %v459_v13 = vsel %vm427_vm12, %v411_v5, %v443_v8  ;;  %v460_v55 = vsel %vm428_vm13, %v412_v14, %v444_v32  ;;  %v8667_v5 = vld [vmem:[%s11507_s1 + $0x30] sm:$0xff]   ;;  %v448_v8 = vmul.f32 0.2, %v416_v29 }
 0x280   :  { %524 = vmax.xlane.f32.xlu1 %v8604_v54  ;;  %v414_v53 = vadd.f32 %v8547_v2, %v8497_v39  ;;  %v415_v45 = vadd.f32 %v8547_v2, %v8499_v4  ;;  %v461_v0 = vsel %vm429_vm14, %v413_v49, %v445_v62  ;;  %v8658_v3 = vadd.f32 %v8647_v24, %v459_v13  ;;  %v8679_v49 = vld [vmem:[%s11507_s1 + $0x38] sm:$0xff]  }
 0x281   :  { %v8670_v39 = vperm.slane %v8541_v35, 1  ;;  %v8674_v4 = vadd.f32 %v11544_v20, %v461_v0  ;;  %vm432_vm2 = vcmp.gt.f32.partialorder %v416_v29, 0.0  ;;  %v7087_v0 = vunpack.c.l.bf16 %v8667_v5 }
 0x282   :  { %11638 = vst [vmem:[#allocation30_spill] sm:$0xff] %v8658_v3  ;;  %v446_v52 = vmul.f32 0.2, %v414_v53  ;;  %v447_v14 = vmul.f32 0.2, %v415_v45  ;;  %vm430_vm15 = vcmp.gt.f32.partialorder %v414_v53, 0.0  ;;  %v7088_v32 = vunpack.c.h.bf16 %v8667_v5 }
 0x283   :  { %11640 = vst [vmem:[#allocation32_spill] sm:$0xff] %v8674_v4  ;;  %vm431_vm0 = vcmp.gt.f32.partialorder %v415_v45, 0.0  ;;  %v7091_v62 = vunpack.c.l.bf16 %v8679_v49  ;;  %v994_v20 = vadd.f32 %v8670_v39, %v8286_v7 }
 0x284   :  { %v462_v13 = vsel %vm430_vm15, %v414_v53, %v446_v52  ;;  %v997_v52 = vadd.f32 %v8670_v39, %v8450_v18  ;;  %v995_v18 = vadd.f32 %v8670_v39, %v8427_v9 }
 0x285   :  { %vm1010_vm4 = vcmp.gt.f32.partialorder %v994_v20, 0.0 }
 0x286   :  { %vm1013_vm7 = vcmp.gt.f32.partialorder %v997_v52, 0.0  ;;  %vm1011_vm9 = vcmp.gt.f32.partialorder %v995_v18, 0.0 }
 0x287   :  { %526 = vmax.xlane.f32.xlu2 %v8629_v44  ;;  %528 = vmax.xlane.f32.xlu0 %v8632_v16 }
 0x288   :  { %530 = vmax.xlane.f32.xlu1 %v8636_v63  ;;  %v8662_v63 = vadd.f32 %v11543_v28, %v460_v55  ;;  %v463_v55 = vsel %vm431_vm0, %v415_v45, %v447_v14  ;;  %v417_v28 = vadd.f32 %v8547_v2, %v8518_v17  ;;  %v1026_v2 = vmul.f32 0.2, %v994_v20 }
 0x289   :  { %v8699_v16 = vadd.f32 %v7088_v32, %v463_v55 }
 0x28a   :  { %11639 = vst [vmem:[#allocation31_spill] sm:$0xff] %v8662_v63  ;;  %v449_v17 = vmul.f32 0.2, %v417_v28  ;;  %vm433_vm3 = vcmp.gt.f32.partialorder %v417_v28, 0.0  ;;  %v1042_v45 = vsel %vm1010_vm4, %v994_v20, %v1026_v2  ;;  %v1000_v2 = vadd.f32 %v8670_v39, %v8481_v57 }
 0x28b   :  { %v8720_v55 = vadd.f32 %v8554_v51, %v1042_v45 }
 0x28c   :  { %vm1016_vm10 = vcmp.gt.f32.partialorder %v1000_v2, 0.0 }
 0x28f   :  { %532 = vmax.xlane.f32.xlu2 %v8658_v3  ;;  %534 = vmax.xlane.f32.xlu0 %v8662_v63  ;;  %v464_v63 = vsel %vm432_vm2, %v416_v29, %v448_v8  ;;  %v993_v3 = vadd.f32 %v8670_v39, %v8339_v40  ;;  %v11549_v40 = vunpack.c.h.bf16 %v8679_v49  ;;  %v465_v29 = vsel %vm433_vm3, %v417_v28, %v449_v17 }
 0x290   :  { %536 = vmax.xlane.f32.xlu1 %v8674_v4  ;;  %v8695_v4 = vadd.f32 %v7087_v0, %v462_v13  ;;  %v8703_v53 = vadd.f32 %v7091_v62, %v464_v63  ;;  %v992_v63 = vadd.f32 %v8670_v39, %v8302_v22  ;;  %v996_v8 = vadd.f32 %v8670_v39, %v8380_v50 }
 0x291   :  { %v1025_v7 = vmul.f32 0.2, %v993_v3  ;;  %vm1009_vm5 = vcmp.gt.f32.partialorder %v993_v3, 0.0  ;;  %v8717_v13 = vadd.f32 %v11549_v40, %v465_v29  ;;  %v1029_v17 = vmul.f32 0.2, %v997_v52 }
 0x292   :  { %v1024_v20 = vmul.f32 0.2, %v992_v63  ;;  %vm1008_vm6 = vcmp.gt.f32.partialorder %v992_v63, 0.0  ;;  %v1028_v22 = vmul.f32 0.2, %v996_v8  ;;  %vm1012_vm8 = vcmp.gt.f32.partialorder %v996_v8, 0.0 }
 0x293   :  { %v1041_v14 = vsel %vm1009_vm5, %v993_v3, %v1025_v7  ;;  %v1045_v3 = vsel %vm1013_vm7, %v997_v52, %v1029_v17  ;;  %v999_v29 = vadd.f32 %v8670_v39, %v8469_v27  ;;  %v1032_v52 = vmul.f32 0.2, %v1000_v2 }
 0x294   :  { %v8723_v28 = vadd.f32 %v8562_v30, %v1041_v14  ;;  %v1040_v50 = vsel %vm1008_vm6, %v992_v63, %v1024_v20  ;;  %v1044_v7 = vsel %vm1012_vm8, %v996_v8, %v1028_v22  ;;  %v8738_v14 = vadd.f32 %v8589_v41, %v1045_v3 }
 0x295   :  { %v8735_v45 = vadd.f32 %v8560_v10, %v1040_v50  ;;  %v8741_v40 = vadd.f32 %v8587_v21, %v1044_v7  ;;  %v1027_v63 = vmul.f32 0.2, %v995_v18  ;;  %v1031_v57 = vmul.f32 0.2, %v999_v29 }
 0x296   :  { %vm1015_vm11 = vcmp.gt.f32.partialorder %v999_v29, 0.0  ;;  %v1048_v27 = vsel %vm1016_vm10, %v1000_v2, %v1032_v52  ;;  %v998_v8 = vadd.f32 %v8670_v39, %v8436_v11  ;;  %v1003_v20 = vadd.f32 %v8670_v39, %v8495_v46 }
 0x297   :  { %538 = vmax.xlane.f32.xlu2 %v8695_v4  ;;  %540 = vmax.xlane.f32.xlu0 %v8699_v16  ;;  %v1043_v9 = vsel %vm1011_vm9, %v995_v18, %v1027_v63  ;;  %v1047_v17 = vsel %vm1015_vm11, %v999_v29, %v1031_v57  ;;  %v1002_v22 = vadd.f32 %v8670_v39, %v8487_v6  ;;  %v11641_v3 = vunpack.c.l.bf16 %v8612_v25 }
 0x298   :  { %542 = vmax.xlane.f32.xlu1 %v8703_v53  ;;  %v8753_v50 = vadd.f32 %v8585_v38, %v1043_v9  ;;  %v8760_v18 = vadd.f32 %v8619_v15, %v1047_v17  ;;  %v1030_v2 = vmul.f32 0.2, %v998_v8  ;;  %v1035_v63 = vmul.f32 0.2, %v1003_v20 }
 0x299   :  { %v8757_v7 = vadd.f32 %v11641_v3, %v1048_v27  ;;  %vm1014_vm12 = vcmp.gt.f32.partialorder %v998_v8, 0.0  ;;  %vm1019_vm13 = vcmp.gt.f32.partialorder %v1003_v20, 0.0  ;;  %v1034_v46 = vmul.f32 0.2, %v1002_v22 }
 0x29a   :  { %vm1018_vm14 = vcmp.gt.f32.partialorder %v1002_v22, 0.0  ;;  %v1046_v6 = vsel %vm1014_vm12, %v998_v8, %v1030_v2  ;;  %v1051_v11 = vsel %vm1019_vm13, %v1003_v20, %v1035_v63  ;;  %v1001_v25 = vadd.f32 %v8670_v39, %v8485_v33 }
 0x29b   :  { %v1006_v29 = vadd.f32 %v8670_v39, %v8506_v59  ;;  %v1050_v52 = vsel %vm1018_vm14, %v1002_v22, %v1034_v46  ;;  %v1005_v57 = vadd.f32 %v8670_v39, %v8503_v36  ;;  %v8772_v9 = vadd.f32 %v8617_v1, %v1046_v6 }
 0x29c   :  { %v11642_v27 = vunpack.c.h.bf16 %v8641_v23  ;;  %v8779_v8 = vperm.slane %v8541_v35, 3  ;;  %v11643_v20 = vunpack.c.l.bf16 %v8641_v23  ;;  %v1033_v3 = vmul.f32 0.2, %v1001_v25 }
 0x29d   :  { %v1038_v59 = vmul.f32 0.2, %v1006_v29  ;;  %v8786_v22 = vperm.slane %v8541_v35, 2  ;;  %vm1017_vm15 = vcmp.gt.f32.partialorder %v1001_v25, 0.0  ;;  %vm1022_vm0 = vcmp.gt.f32.partialorder %v1006_v29, 0.0 }
 0x29e   :  { %v8776_v17 = vadd.f32 %v11642_v27, %v1051_v11  ;;  %v8783_v33 = vadd.f32 %v11643_v20, %v1050_v52  ;;  %v1037_v36 = vmul.f32 0.2, %v1005_v57  ;;  %vm1021_vm2 = vcmp.gt.f32.partialorder %v1005_v57, 0.0 }
 0x29f   :  { %544 = vmax.xlane.f32.xlu2 %v8717_v13  ;;  %1108 = vmax.xlane.f32.xlu0 %v8720_v55  ;;  %v11550_v2 = vmov 1065369472   ;;  %v1049_v23 = vsel %vm1017_vm15, %v1001_v25, %v1033_v3  ;;  %v1054_v63 = vsel %vm1022_vm0, %v1006_v29, %v1038_v59  ;;  %v1004_v35 = vadd.f32 %v8670_v39, %v8493_v31 }
 0x2a0   :  { %1106 = vmax.xlane.f32.xlu1 %v8723_v28  ;;  %699 = vmatpush.bf16.msra.mxu2 %v11550_v2  ;;  %v2260_v46 = vadd.f32 %v8779_v8, %v8329_v37  ;;  %v1053_v6 = vsel %vm1021_vm2, %v1005_v57, %v1037_v36  ;;  %v1626_v11 = vadd.f32 %v8786_v22, %v8298_v19 }
 0x2a1   :  { %1265 = vmatpush.bf16.msra.mxu1 %v11550_v2  ;;  %v8800_v52 = vadd.f32 %v8647_v24, %v1049_v23  ;;  %v8804_v27 = vadd.f32 %v7091_v62, %v1054_v63  ;;  %v8810_v31 = vadd.f32 %v7088_v32, %v1053_v6  ;;  %v1036_v37 = vmul.f32 0.2, %v1004_v35  ;;  %v989_v62 = vpop.permute.xlu0 %988 }
 0x2a2   :  { %v2292_v25 = vmul.f32 0.2, %v2260_v46  ;;  %vm1020_vm3 = vcmp.gt.f32.partialorder %v1004_v35, 0.0  ;;  %vm2276_vm4 = vcmp.gt.f32.partialorder %v2260_v46, 0.0  ;;  %v1658_v19 = vmul.f32 0.2, %v1626_v11 }
 0x2a3   :  { %vm1642_vm5 = vcmp.gt.f32.partialorder %v1626_v11, 0.0  ;;  %v1052_v29 = vsel %vm1020_vm3, %v1004_v35, %v1036_v37  ;;  %v2262_v57 = vadd.f32 %v8779_v8, %v8388_v56  ;;  %v1007_v20 = vadd.f32 %v8670_v39, %v989_v62 }
 0x2a4   :  { %700 = vmatpush.bf16.msra.mxu2 %v11550_v2  ;;  %v2308_v32 = vsel %vm2276_vm4, %v2260_v46, %v2292_v25  ;;  %v1674_v3 = vsel %vm1642_vm5, %v1626_v11, %v1658_v19  ;;  %v2261_v59 = vadd.f32 %v8779_v8, %v8270_v60  ;;  %v8824_v36 = vadd.f32 %v7087_v0, %v1052_v29 }
 0x2a5   :  { %1266 = vmatpush.bf16.msra.mxu1 %v11550_v2  ;;  %v8827_v23 = vadd.f32 %v8560_v10, %v2308_v32  ;;  %v8832_v63 = vadd.f32 %v8560_v10, %v1674_v3  ;;  %v2294_v56 = vmul.f32 0.2, %v2262_v57  ;;  %v1039_v39 = vmul.f32 0.2, %v1007_v20 }
 0x2a6   :  { %vm2278_vm6 = vcmp.gt.f32.partialorder %v2262_v57, 0.0  ;;  %vm1023_vm7 = vcmp.gt.f32.partialorder %v1007_v20, 0.0  ;;  %v2293_v60 = vmul.f32 0.2, %v2261_v59  ;;  %vm2277_vm8 = vcmp.gt.f32.partialorder %v2261_v59, 0.0 }
 0x2a7   :  { %1104 = vmax.xlane.f32.xlu2 %v8735_v45  ;;  %1114 = vmax.xlane.f32.xlu0 %v8738_v14  ;;  %11644 = vst [vmem:[#allocation33_spill] sm:$0xff] %v8827_v23  ;;  %v2310_v5 = vsel %vm2278_vm6, %v2262_v57, %v2294_v56  ;;  %v1055_v0 = vsel %vm1023_vm7, %v1007_v20, %v1039_v39  ;;  %v11646_v37 = vunpack.c.h.bf16 %v8679_v49  ;;  %v11647_v57 = vld [vmem:[#allocation12_spill] sm:$0xff] }
 0x2a8   :  { %1112 = vmax.xlane.f32.xlu1 %v8741_v40  ;;  %701 = vmatpush.bf16.msra.mxu2 %v11550_v2  ;;  %v1631_v10 = vadd.f32 %v8786_v22, %v8462_v26  ;;  %v1627_v35 = vadd.f32 %v8786_v22, %v8344_v42  ;;  %v2309_v46 = vsel %vm2277_vm8, %v2261_v59, %v2293_v60  ;;  %v11648_v59 = vld [vmem:[#allocation21_spill] sm:$0xff] }
 0x2a9   :  { %1267 = vmatpush.bf16.msra.mxu1 %v11550_v2  ;;  %v1629_v6 = vadd.f32 %v8786_v22, %v8373_v48  ;;  %v8846_v11 = vadd.f32 %v8554_v51, %v2310_v5  ;;  %v8850_v25 = vadd.f32 %v11646_v37, %v1055_v0  ;;  %v8854_v19 = vpop.permute.xlu0 %1594  ;;  %v8857_v26 = vadd.f32 %v8562_v30, %v2309_v46 }
 0x2aa   :  { %v1663_v42 = vmul.f32 0.2, %v1631_v10  ;;  %v1659_v62 = vmul.f32 0.2, %v1627_v35  ;;  %vm1647_vm9 = vcmp.gt.f32.partialorder %v1631_v10, 0.0  ;;  %vm1643_vm10 = vcmp.gt.f32.partialorder %v1627_v35, 0.0 }
 0x2ab   :  { %11645 = vst [vmem:[#allocation34_spill] sm:$0xff] %v8846_v11  ;;  %v1661_v48 = vmul.f32 0.2, %v1629_v6  ;;  %vm1645_vm11 = vcmp.gt.f32.partialorder %v1629_v6, 0.0  ;;  %v2264_v32 = vadd.f32 %v8779_v8, %v8396_v58  ;;  %v1628_v20 = vadd.f32 %v8786_v22, %v11647_v57 }
 0x2ac   :  { %702 = vmatpush.bf16.msra.mxu2 %v11550_v2  ;;  %v1679_v49 = vsel %vm1647_vm9, %v1631_v10, %v1663_v42  ;;  %v1675_v29 = vsel %vm1643_vm10, %v1627_v35, %v1659_v62  ;;  %v2265_v56 = vadd.f32 %v8779_v8, %v11648_v59  ;;  %v11650_v62 = vld [vmem:[#allocation25_spill] sm:$0xff]  ;;  %v11653_v59 = vld [vmem:[#allocation19_spill] sm:$0xff] }
 0x2ad   :  { %1268 = vmatpush.bf16.msra.mxu1 %v11550_v2  ;;  %v1677_v3 = vsel %vm1645_vm11, %v1629_v6, %v1661_v48  ;;  %v8871_v39 = vadd.f32 %v8589_v41, %v1679_v49  ;;  %v8874_v60 = vadd.f32 %v8562_v30, %v1675_v29  ;;  %v2296_v58 = vmul.f32 0.2, %v2264_v32  ;;  %v11649_v6 = vld [vmem:[#allocation15_spill] sm:$0xff] }
 0x2ae   :  { %v8879_v5 = vadd.f32 %v8585_v38, %v1677_v3  ;;  %v1660_v0 = vmul.f32 0.2, %v1628_v20  ;;  %vm2280_vm12 = vcmp.gt.f32.partialorder %v2264_v32, 0.0  ;;  %vm1644_vm13 = vcmp.gt.f32.partialorder %v1628_v20, 0.0 }
 0x2af   :  { %1110 = vmax.xlane.f32.xlu2 %v8753_v50  ;;  %1120 = vmax.xlane.f32.xlu0 %v8757_v7  ;;  %v2297_v30 = vmul.f32 0.2, %v2265_v56  ;;  %vm2281_vm14 = vcmp.gt.f32.partialorder %v2265_v56, 0.0  ;;  %v2312_v35 = vsel %vm2280_vm12, %v2264_v32, %v2296_v58  ;;  %v2263_v37 = vadd.f32 %v8779_v8, %v11649_v6 }
 0x2b0   :  { %1118 = vmax.xlane.f32.xlu1 %v8760_v18  ;;  %703 = vmatpush.bf16.msra.mxu2 %v11550_v2  ;;  %v1676_v46 = vsel %vm1644_vm13, %v1628_v20, %v1660_v0  ;;  %v1633_v48 = vadd.f32 %v8786_v22, %v11650_v62  ;;  %v8895_v49 = vadd.f32 %v8587_v21, %v2312_v35 }
 0x2b1   :  { %1269 = vmatpush.bf16.msra.mxu1 %v11550_v2  ;;  %v8885_v10 = vpop.permute.xlu0 %1598  ;;  %v2313_v42 = vsel %vm2281_vm14, %v2265_v56, %v2297_v30  ;;  %v8898_v29 = vadd.f32 %v8554_v51, %v1676_v46  ;;  %v2295_v57 = vmul.f32 0.2, %v2263_v37  ;;  %vm2279_vm15 = vcmp.gt.f32.partialorder %v2263_v37, 0.0 }
 0x2b2   :  { %11651 = vst [vmem:[#allocation12_spill] sm:$0xff] %v8895_v49  ;;  %v8901_v32 = vadd.f32 %v8589_v41, %v2313_v42  ;;  %v1665_v20 = vmul.f32 0.2, %v1633_v48  ;;  %vm1649_vm0 = vcmp.gt.f32.partialorder %v1633_v48, 0.0  ;;  %v1630_v41 = vadd.f32 %v8786_v22, %v11653_v59 }
 0x2b3   :  { %v2311_v51 = vsel %vm2279_vm15, %v2263_v37, %v2295_v57  ;;  %v11656_v37 = vld [vmem:[#allocation23_spill] sm:$0xff] }
 0x2b4   :  { %704 = vmatpush.bf16.msra.mxu2 %v11550_v2  ;;  %11652 = vst [vmem:[#allocation21_spill] sm:$0xff] %v8901_v32  ;;  %v1681_v56 = vsel %vm1649_vm0, %v1633_v48, %v1665_v20  ;;  %v8915_v58 = vadd.f32 %v8585_v38, %v2311_v51  ;;  %v1662_v30 = vmul.f32 0.2, %v1630_v41  ;;  %vm1646_vm2 = vcmp.gt.f32.partialorder %v1630_v41, 0.0 }
 0x2b5   :  { %1270 = vmatpush.bf16.msra.mxu1 %v11550_v2  ;;  %v8918_v0 = vadd.f32 %v8619_v15, %v1681_v56  ;;  %v1632_v38 = vadd.f32 %v8786_v22, %v11656_v37 }
 0x2b6   :  { %11654 = vst [vmem:[#allocation15_spill] sm:$0xff] %v8915_v58  ;;  %v1678_v6 = vsel %vm1646_vm2, %v1630_v41, %v1662_v30 }
 0x2b7   :  { %1116 = vmax.xlane.f32.xlu2 %v8772_v9  ;;  %1126 = vmax.xlane.f32.xlu0 %v8776_v17  ;;  %11655 = vst [vmem:[#allocation25_spill] sm:$0xff] %v8918_v0  ;;  %v8931_v57 = vadd.f32 %v8587_v21, %v1678_v6  ;;  %v1664_v51 = vmul.f32 0.2, %v1632_v38  ;;  %vm1648_vm3 = vcmp.gt.f32.partialorder %v1632_v38, 0.0  ;;  %v11657_v21 = vld [vmem:[#allocation14_spill] sm:$0xff] }
 0x2b8   :  { %1124 = vmax.xlane.f32.xlu1 %v8783_v33  ;;  %705 = vmatpush.bf16.msra.mxu2 %v11550_v2 }
 0x2b9   :  { %1271 = vmatpush.bf16.msra.mxu1 %v11550_v2  ;;  %v8908_v3 = vpop.permute.xlu0 %1602  ;;  %v1680_v41 = vsel %vm1648_vm3, %v1632_v38, %v1664_v51 }
 0x2ba   :  { %v8941_v56 = vadd.f32 %v8617_v1, %v1680_v41  ;;  %v11660_v41 = vld [vmem:[#allocation7_spill] sm:$0xff] }
 0x2bc   :  { %706 = vmatpush.bf16.msra.mxu2 %v11550_v2  ;;  %11658 = vst [vmem:[#allocation19_spill] sm:$0xff] %v8941_v56 }
 0x2bd   :  { %1272 = vmatpush.bf16.msra.mxu1 %v11550_v2 }
 0x2bf   :  { %1122 = vmax.xlane.f32.xlu2 %v8800_v52  ;;  %1132 = vmax.xlane.f32.xlu0 %v8804_v27 }
 0x2c0   :  { %1130 = vmax.xlane.f32.xlu1 %v8810_v31  ;;  %1899 = vmatpush.bf16.msrb.mxu2 %v11550_v2 }
 0x2c1   :  { %2533 = vmatpush.bf16.msrb.mxu1 %v11550_v2 }
 0x2c4   :  { %1900 = vmatpush.bf16.msrb.mxu2 %v11550_v2 }
 0x2c5   :  { %2534 = vmatpush.bf16.msrb.mxu1 %v11550_v2 }
 0x2c7   :  { %1128 = vmax.xlane.f32.xlu2 %v8824_v36  ;;  %2372 = vmax.xlane.f32.xlu0 %v8827_v23 }
 0x2c8   :  { %1738 = vmax.xlane.f32.xlu1 %v8832_v63  ;;  %1901 = vmatpush.bf16.msrb.mxu2 %v11550_v2 }
 0x2c9   :  { %2535 = vmatpush.bf16.msrb.mxu1 %v11550_v2 }
 0x2cc   :  { %1902 = vmatpush.bf16.msrb.mxu2 %v11550_v2 }
 0x2cd   :  { %2536 = vmatpush.bf16.msrb.mxu1 %v11550_v2 }
 0x2cf   :  { %2376 = vmax.xlane.f32.xlu0 %v8846_v11  ;;  %1134 = vmax.xlane.f32.xlu2 %v8850_v25 }
 0x2d0   :  { %2374 = vmax.xlane.f32.xlu1 %v8857_v26  ;;  %1903 = vmatpush.bf16.msrb.mxu2 %v11550_v2 }
 0x2d1   :  { %2537 = vmatpush.bf16.msrb.mxu1 %v11550_v2 }
 0x2d4   :  { %1904 = vmatpush.bf16.msrb.mxu2 %v11550_v2 }
 0x2d5   :  { %2538 = vmatpush.bf16.msrb.mxu1 %v11550_v2 }
 0x2d7   :  { %1748 = vmax.xlane.f32.xlu0 %v8871_v39  ;;  %1740 = vmax.xlane.f32.xlu2 %v8874_v60 }
 0x2d8   :  { %1744 = vmax.xlane.f32.xlu1 %v8879_v5  ;;  %1905 = vmatpush.bf16.msrb.mxu2 %v11550_v2 }
 0x2d9   :  { %2539 = vmatpush.bf16.msrb.mxu1 %v11550_v2 }
 0x2dc   :  { %1906 = vmatpush.bf16.msrb.mxu2 %v11550_v2 }
 0x2dd   :  { %2540 = vmatpush.bf16.msrb.mxu1 %v11550_v2 }
 0x2df   :  { %2380 = vmax.xlane.f32.xlu0 %v8895_v49  ;;  %1742 = vmax.xlane.f32.xlu2 %v8898_v29  ;;  %v11663_v49 = vld [vmem:[#allocation5_spill] sm:$0xff] }
 0x2e0   :  { %2382 = vmax.xlane.f32.xlu1 %v8901_v32 }
 0x2e7   :  { %2378 = vmax.xlane.f32.xlu2 %v8915_v58 }
 0x2e8   :  { %1752 = vmax.xlane.f32.xlu1 %v8918_v0  ;;  %v11667_v0 = vld [vmem:[#allocation4_spill] sm:$0xff] }
 0x2ea   :  { %v519_v35 = vpop.xlane.xlu2 %518  ;;  %v515_v46 = vpop.xlane.xlu0 %514 }
 0x2eb   :  { %v546_v15 = vsub.f32 %v8574_v34, %v515_v46  ;;  %v517_v42 = vpop.xlane.xlu1 %516  ;;  %v548_v38 = vsub.f32 %v8571_v61, %v519_v35  ;;  %v11661_v35 = vld [vmem:[#allocation18_spill] sm:$0xff] }
 0x2ec   :  { %v547_v62 = vsub.f32 %v8577_v47, %v517_v42 }
 0x2ed   :  { %v562_v48 = vmul.f32 1.442695, %v546_v15  ;;  %v566_v51 = vmul.f32 1.442695, %v548_v38  ;;  %v11662_v38 = vld [vmem:[#allocation10_spill] sm:$0xff] }
 0x2ee   :  { %v564_v20 = vmul.f32 1.442695, %v547_v62 }
 0x2ef   :  { %1746 = vmax.xlane.f32.xlu2 %v8931_v57  ;;  %7534 = vpow2.f32 %v562_v48 }
 0x2f0   :  { %7536 = vpow2.f32 %v564_v20  ;;  %v11659_v20 = vld [vmem:[#allocation6_spill] sm:$0xff] }
 0x2f2   :  { %v521_v59 = vpop.xlane.xlu2 %520  ;;  %v523_v34 = vpop.xlane.xlu0 %522 }
 0x2f3   :  { %v525_v47 = vpop.xlane.xlu1 %524  ;;  %2468 = vrot.lane.b32.xlu0 %v11657_v21, %s8121_s17  ;;  %v549_v6 = vsub.f32 %v8598_v12, %v521_v59 }
 0x2f5   :  { %v7535_v30 = vpop.eup %7534  ;;  %v568_v62 = vmul.f32 1.442695, %v549_v6  ;;  %v551_v6 = vsub.f32 %v8604_v54, %v525_v47  ;;  %v11665_v54 = vld [vmem:[#allocation17_spill] sm:$0xff] }
 0x2f6   :  { %v7537_v46 = vpop.eup %7536 }
 0x2f7   :  { %1750 = vmax.xlane.f32.xlu2 %v8941_v56  ;;  %v594_v37 = vpack.c.bf16 %v7537_v46, %v7535_v30  ;;  %7538 = vpow2.f32 %v568_v62  ;;  %v550_v30 = vsub.f32 %v8601_v43, %v523_v34  ;;  %v572_v2 = vmul.f32 1.442695, %v551_v6 }
 0x2f8   :  { %7540 = vpow2.f32 %v566_v51  ;;  %v11664_v43 = vmov 3  }
 0x2f9   :  { %658 = vmatmul.bf16.vlgmr.msra.gmra.mxu3 %v594_v37  ;;  %707 = vmatmul.bf16.vlgmr.msra.gmra.mxu2 %v594_v37  ;;  %v570_v62 = vmul.f32 1.442695, %v550_v30 }
 0x2fa   :  { %v527_v15 = vpop.xlane.xlu2 %526  ;;  %v529_v42 = vpop.xlane.xlu0 %528 }
 0x2fb   :  { %v8946_v48 = vpop.xlane.xlu1 %530  ;;  %1830 = vrot.lane.b32.xlu0 %v11659_v20, %s8120_s0  ;;  %7542 = vpow2.f32 %v570_v62 }
 0x2fc   :  { %7544 = vpow2.f32 %v572_v2 }
 0x2fd   :  { %v7539_v21 = vpop.eup %7538 }
 0x2fe   :  { %v7541_v46 = vpop.eup %7540 }
 0x2ff   :  { %v595_v37 = vpack.c.bf16 %v7539_v21, %v7541_v46  ;;  %v552_v46 = vsub.f32 %v8629_v44, %v527_v15 }
 0x301   :  { %2224 = vperm.xlu1 %7472, %v11660_v41   ;;  %v7543_v30 = vpop.eup %7542  ;;  %v574_v2 = vmul.f32 1.442695, %v552_v46 }
 0x302   :  { %v8951_v12 = vpop.xlane.xlu2 %532  ;;  %v8953_v59 = vpop.xlane.xlu0 %534 }
 0x303   :  { %v8955_v61 = vpop.xlane.xlu1 %536  ;;  %1614 = vperm.xlu0 %7470, %v11661_v35   ;;  %v7545_v6 = vpop.eup %7544  ;;  %7546 = vpow2.f32 %v574_v2 }
 0x304   :  { %v596_v62 = vpack.c.bf16 %v7545_v6, %v7543_v30 }
 0x309   :  { %2466 = vrot.lane.b32.xlu1 %v11662_v38, %s8121_s17  ;;  %663 = vmatmul.bf16.gmra.mxu3 %v595_v37 }
 0x30a   :  { %712 = vmatmul.bf16.gmra.mxu2 %v595_v37  ;;  %v8962_v51 = vpop.xlane.xlu2 %538  ;;  %v8964_v41 = vpop.xlane.xlu0 %540  ;;  %v11666_v37 = vld [vmem:[#allocation28_spill] sm:$0xff] }
 0x30b   :  { %v8966_v32 = vpop.xlane.xlu1 %542  ;;  %1828 = vrot.lane.b32.xlu0 %v11663_v49, %s8120_s0  ;;  %v553_v38 = vsub.f32 %v11666_v37, %v529_v42 }
 0x30c   :  { %7476 = vset.pattern.permute.xlu0 %v11664_v43 }
 0x30d   :  { %v576_v58 = vmul.f32 1.442695, %v553_v38 }
 0x30f   :  { %1610 = vperm.xlu2 %7473, %v11665_v54   ;;  %7548 = vpow2.f32 %v576_v58 }
 0x311   :  { %2464 = vrot.lane.b32.xlu1 %v11659_v20, %s8121_s17 }
 0x312   :  { %v8974_v34 = vpop.xlane.xlu2 %544  ;;  %v1109_v47 = vpop.xlane.xlu0 %1108 }
 0x313   :  { %v1107_v21 = vpop.xlane.xlu1 %1106  ;;  %v1138_v2 = vsub.f32 %v8720_v55, %v1109_v47 }
 0x314   :  { %v1137_v11 = vsub.f32 %v8723_v28, %v1107_v21  ;;  %v7547_v28 = vpop.eup %7546 }
 0x316   :  { %v1154_v20 = vmul.f32 1.442695, %v1137_v11  ;;  %v7549_v11 = vpop.eup %7548 }
 0x317   :  { %7474 = vset.pattern.permute.xlu2 %v11664_v43  ;;  %v1156_v43 = vmul.f32 1.442695, %v1138_v2 }
 0x318   :  { %7550 = vpow2.f32 %v1154_v20 }
 0x319   :  { %1826 = vrot.lane.b32.xlu1 %v11667_v0, %s8120_s0  ;;  %668 = vmatmul.bf16.gmra.mxu3 %v596_v62 }
 0x31a   :  { %717 = vmatmul.bf16.gmra.mxu2 %v596_v62  ;;  %v1105_v23 = vpop.xlane.xlu2 %1104  ;;  %v1115_v56 = vpop.xlane.xlu0 %1114  ;;  %v597_v62 = vpack.c.bf16 %v7549_v11, %v7547_v28 }
 0x31b   :  { %v1136_v44 = vsub.f32 %v8735_v45, %v1105_v23  ;;  %v1113_v15 = vpop.xlane.xlu1 %1112  ;;  %v11668_v45 = vld [vmem:[#allocation30_spill] sm:$0xff] }
 0x31c   :  { %v555_v23 = vsub.f32 %v11668_v45, %v8951_v12 }
 0x31d   :  { %v1152_v42 = vmul.f32 1.442695, %v1136_v44 }
 0x31e   :  { %v7551_v46 = vpop.eup %7550 }
 0x31f   :  { %7552 = vpow2.f32 %v1152_v42  ;;  %v580_v42 = vmul.f32 1.442695, %v555_v23  ;;  %v11671_v23 = vld [vmem:[#allocation31_spill] sm:$0xff] }
 0x321   :  { %2462 = vrot.lane.b32.xlu1 %v11663_v49, %s8121_s17  ;;  %v11669_v49 = vld [vmem:[#allocation29_spill] sm:$0xff] }
 0x322   :  { %v1111_v21 = vpop.xlane.xlu2 %1110  ;;  %v8985_v30 = vpop.xlane.xlu0 %1120  ;;  %v554_v20 = vsub.f32 %v11669_v49, %v8946_v48  ;;  %v11672_v49 = vld [vmem:[#allocation32_spill] sm:$0xff] }
 0x323   :  { %v1139_v37 = vsub.f32 %v8753_v50, %v1111_v21  ;;  %v8988_v38 = vpop.xlane.xlu1 %1118  ;;  %v11670_v21 = vld [vmem:[#allocation24_spill] sm:$0xff] }
 0x324   :  { %v2266_v0 = vadd.f32 %v8779_v8, %v11670_v21  ;;  %v578_v12 = vmul.f32 1.442695, %v554_v20  ;;  %v557_v20 = vsub.f32 %v11672_v49, %v8955_v61  ;;  %v1635_v61 = vadd.f32 %v8786_v22, %v8885_v10 }
 0x325   :  { %v7553_v6 = vpop.eup %7552  ;;  %v1158_v44 = vmul.f32 1.442695, %v1139_v37  ;;  %v1140_v37 = vsub.f32 %v8741_v40, %v1113_v15 }
 0x326   :  { %v1184_v58 = vpack.c.bf16 %v7551_v46, %v7553_v6  ;;  %v2298_v47 = vmul.f32 0.2, %v2266_v0  ;;  %vm2282_vm4 = vcmp.gt.f32.partialorder %v2266_v0, 0.0  ;;  %v1141_v46 = vsub.f32 %v8738_v14, %v1115_v56 }
 0x327   :  { %7554 = vpow2.f32 %v1158_v44  ;;  %v1160_v56 = vmul.f32 1.442695, %v1140_v37  ;;  %v1667_v21 = vmul.f32 0.2, %v1635_v61  ;;  %vm1651_vm5 = vcmp.gt.f32.partialorder %v1635_v61, 0.0 }
 0x328   :  { %1224 = vmatmul.bf16.vlgmr.msrb.gmra.mxu0 %v1184_v58  ;;  %1273 = vmatmul.bf16.vlgmr.msra.gmra.mxu1 %v1184_v58  ;;  %7556 = vpow2.f32 %v580_v42  ;;  %v2314_v28 = vsel %vm2282_vm4, %v2266_v0, %v2298_v47  ;;  %v556_v58 = vsub.f32 %v11671_v23, %v8953_v59  ;;  %v1162_v0 = vmul.f32 1.442695, %v1141_v46 }
 0x329   :  { %673 = vmatmul.bf16.gmra.mxu3 %v597_v62  ;;  %7558 = vpow2.f32 %v1156_v43  ;;  %v9008_v43 = vadd.f32 %v8617_v1, %v2314_v28  ;;  %v584_v59 = vmul.f32 1.442695, %v557_v20  ;;  %v558_v28 = vsub.f32 %v8695_v4, %v8962_v51 }
 0x32a   :  { %722 = vmatmul.bf16.gmra.mxu2 %v597_v62  ;;  %v8995_v50 = vpop.xlane.xlu0 %1126  ;;  %7560 = vpow2.f32 %v578_v12  ;;  %v582_v15 = vmul.f32 1.442695, %v556_v58  ;;  %v1117_v1 = vpop.xlane.xlu2 %1116  ;;  %v1683_v23 = vsel %vm1651_vm5, %v1635_v61, %v1667_v21  ;;  %v1143_v58 = vsub.f32 %v8760_v18, %v8988_v38  ;;  %v11674_v21 = vld [vmem:[#allocation13_spill] sm:$0xff] }
 0x32b   :  { %v8999_v55 = vpop.xlane.xlu1 %1124  ;;  %7562 = vpow2.f32 %v1162_v0  ;;  %v1142_v46 = vsub.f32 %v8772_v9, %v1117_v1  ;;  %v9031_v4 = vadd.f32 %v8647_v24, %v1683_v23  ;;  %v1144_v61 = vsub.f32 %v8757_v7, %v8985_v30 }
 0x32c   :  { %7564 = vpow2.f32 %v1160_v56  ;;  %v1146_v23 = vsub.f32 %v8783_v33, %v8999_v55 }
 0x32d   :  { %v7555_v48 = vpop.eup %7554  ;;  %7566 = vpow2.f32 %v582_v15  ;;  %v1164_v49 = vmul.f32 1.442695, %v1142_v46  ;;  %v1147_v46 = vsub.f32 %v8776_v17, %v8995_v50  ;;  %v11677_v50 = vld [vmem:[#allocation20_spill] sm:$0xff] }
 0x32e   :  { %v7557_v11 = vpop.eup %7556  ;;  %7568 = vpow2.f32 %v584_v59  ;;  %v561_v59 = vsub.f32 %v8717_v13, %v8974_v34  ;;  %v1168_v13 = vmul.f32 1.442695, %v1144_v61  ;;  %v8110_v61 = vld [vmem:[%s11507_s1 + $0x18] sm:$0xff]  }
 0x32f   :  { %v7559_v6 = vpop.eup %7558 }
 0x330   :  { %v1185_v2 = vpack.c.bf16 %v7555_v48, %v7559_v6  ;;  %v7561_v62 = vpop.eup %7560  ;;  %v559_v6 = vsub.f32 %v8699_v16, %v8964_v41  ;;  %v1166_v16 = vmul.f32 1.442695, %v1143_v58  ;;  %v11673_v41 = vld [vmem:[#allocation11_spill] sm:$0xff] }
 0x331   :  { %v598_v14 = vpack.c.bf16 %v7557_v11, %v7561_v62  ;;  %v7563_v42 = vpop.eup %7562 }
 0x332   :  { %v9003_v45 = vpop.xlane.xlu0 %1132  ;;  %v7565_v12 = vpop.eup %7564  ;;  %v588_v9 = vmul.f32 1.442695, %v559_v6 }
 0x333   :  { %v9013_v40 = vpop.xlane.xlu1 %1130  ;;  %v7567_v48 = vpop.eup %7566  ;;  %v1186_v37 = vpack.c.bf16 %v7563_v42, %v7565_v12 }
 0x334   :  { %v7569_v11 = vpop.eup %7568  ;;  %v1123_v10 = vpop.xlane.xlu2 %1122 }
 0x335   :  { %v599_v62 = vpack.c.bf16 %v7569_v11, %v7567_v48  ;;  %v1145_v15 = vsub.f32 %v8800_v52, %v1123_v10  ;;  %v560_v48 = vsub.f32 %v8703_v53, %v8966_v32  ;;  %v592_v11 = vmul.f32 1.442695, %v561_v59  ;;  %v11675_v10 = vld [vmem:[#allocation9_spill] sm:$0xff] }
 0x337   :  { %v590_v34 = vmul.f32 1.442695, %v560_v48  ;;  %v1149_v48 = vsub.f32 %v8810_v31, %v9013_v40 }
 0x338   :  { %2384 = vmax.xlane.f32.xlu2 %v9008_v43  ;;  %1229 = vmatmul.bf16.gmra.mxu0 %v1185_v2 }
 0x339   :  { %1278 = vmatmul.bf16.gmra.mxu1 %v1185_v2  ;;  %678 = vmatmul.bf16.gmra.mxu3 %v598_v14  ;;  %v586_v2 = vmul.f32 1.442695, %v558_v28  ;;  %v1170_v28 = vmul.f32 1.442695, %v1145_v15 }
 0x33a   :  { %727 = vmatmul.bf16.gmra.mxu2 %v598_v14  ;;  %v9017_v44 = vpop.xlane.xlu0 %2372 }
 0x33b   :  { %v9019_v47 = vpop.xlane.xlu1 %1738  ;;  %7570 = vpow2.f32 %v586_v2 }
 0x33c   :  { %7572 = vpow2.f32 %v1164_v49  ;;  %v9036_v18 = vpop.xlane.xlu2 %1128  ;;  %v1174_v49 = vmul.f32 1.442695, %v1147_v46  ;;  %v1770_v17 = vsub.f32 %v8832_v63, %v9019_v47 }
 0x33d   :  { %7574 = vpow2.f32 %v588_v9  ;;  %v11676_v9 = vmov 2  }
 0x33e   :  { %7576 = vpow2.f32 %v1166_v16 }
 0x33f   :  { %7578 = vpow2.f32 %v1170_v28 }
 0x340   :  { %7580 = vpow2.f32 %v592_v11 }
 0x341   :  { %v7571_v38 = vpop.eup %7570  ;;  %7582 = vpow2.f32 %v1168_v13 }
 0x342   :  { %v9028_v20 = vpop.xlane.xlu0 %2376  ;;  %v7573_v0 = vpop.eup %7572  ;;  %7584 = vpow2.f32 %v590_v34 }
 0x343   :  { %v9034_v51 = vpop.xlane.xlu1 %2374  ;;  %v7575_v14 = vpop.eup %7574  ;;  %7586 = vpow2.f32 %v1174_v49 }
 0x344   :  { %v7577_v56 = vpop.eup %7576  ;;  %v600_v12 = vpack.c.bf16 %v7575_v14, %v7571_v38  ;;  %v9051_v52 = vpop.xlane.xlu2 %1134  ;;  %v11678_v14 = vld [vmem:[#allocation22_spill] sm:$0xff] }
 0x345   :  { %v1187_v1 = vpack.c.bf16 %v7577_v56, %v7573_v0  ;;  %v7579_v53 = vpop.eup %7578 }
 0x346   :  { %v7581_v32 = vpop.eup %7580 }
 0x348   :  { %1234 = vmatmul.bf16.gmra.mxu0 %v1186_v37 }
 0x349   :  { %1283 = vmatmul.bf16.gmra.mxu1 %v1186_v37  ;;  %683 = vmatmul.bf16.gmra.mxu3 %v599_v62  ;;  %v7583_v37 = vpop.eup %7582 }
 0x34a   :  { %732 = vmatmul.bf16.gmra.mxu2 %v599_v62  ;;  %v9039_v24 = vpop.xlane.xlu0 %1748  ;;  %v1188_v2 = vpack.c.bf16 %v7579_v53, %v7583_v37  ;;  %v7585_v62 = vpop.eup %7584 }
 0x34b   :  { %1756 = vmax.xlane.f32.xlu1 %v9031_v4  ;;  %v9046_v42 = vpop.xlane.xlu1 %1744  ;;  %v601_v16 = vpack.c.bf16 %v7581_v32, %v7585_v62  ;;  %v7587_v63 = vpop.eup %7586 }
 0x34c   :  { %v1741_v6 = vpop.xlane.xlu2 %1740  ;;  %v1773_v32 = vsub.f32 %v8879_v5, %v9046_v42  ;;  %v8111_v42 = vld [vmem:[%s11507_s1 + $0x20] sm:$0xff]  }
 0x34d   :  { %v7143_v37 = vunpack.c.l.bf16 %v8111_v42 }
 0x34e   :  { %v1792_v5 = vmul.f32 1.442695, %v1773_v32 }
 0x350   :  { %2232 = vperm.xlu2 %7474, %v11673_v41   ;;  %v1172_v41 = vmul.f32 1.442695, %v1146_v23 }
 0x352   :  { %v9053_v7 = vpop.xlane.xlu0 %2380  ;;  %7588 = vpow2.f32 %v1172_v41 }
 0x353   :  { %v9056_v30 = vpop.xlane.xlu1 %2382 }
 0x354   :  { %v1743_v0 = vpop.xlane.xlu2 %1742 }
 0x355   :  { %v1772_v34 = vsub.f32 %v8898_v29, %v1743_v0 }
 0x358   :  { %2236 = vperm.xlu2 %7474, %v11674_v21   ;;  %1239 = vmatmul.bf16.gmra.mxu0 %v1187_v1  ;;  %v7589_v47 = vpop.eup %7588  ;;  %v7172_v21 = vunpack.c.h.bf16 %v8110_v61  ;;  %v9113_v61 = vld [vmem:[%s11507_s1 + $0x28] sm:$0xff]  }
 0x359   :  { %1288 = vmatmul.bf16.gmra.mxu1 %v1187_v1  ;;  %688 = vmatmul.bf16.gmra.mxu3 %v600_v12  ;;  %v1189_v11 = vpack.c.bf16 %v7587_v63, %v7589_v47  ;;  %v1775_v47 = vsub.f32 %v8871_v39, %v9039_v24 }
 0x35a   :  { %737 = vmatmul.bf16.gmra.mxu2 %v600_v12  ;;  %v1634_v12 = vadd.f32 %v8786_v22, %v8854_v19  ;;  %v11679_v19 = vmov 0  }
 0x35b   :  { %v9068_v55 = vpop.xlane.xlu1 %1752 }
 0x35c   :  { %v9091_v31 = vpop.xlane.xlu2 %2378  ;;  %v1666_v40 = vmul.f32 0.2, %v1634_v12  ;;  %vm1650_vm7 = vcmp.gt.f32.partialorder %v1634_v12, 0.0 }
 0x360   :  { %2248 = vperm.xlu2 %7474, %v11661_v35   ;;  %v1771_v35 = vsub.f32 %v8874_v60, %v1741_v6  ;;  %v1786_v60 = vmul.f32 1.442695, %v1770_v17  ;;  %v1178_v6 = vmul.f32 1.442695, %v1149_v48  ;;  %v1151_v17 = vsub.f32 %v8850_v25, %v9051_v52 }
 0x361   :  { %v1796_v25 = vmul.f32 1.442695, %v1775_v47 }
 0x362   :  { %v1788_v33 = vmul.f32 1.442695, %v1771_v35  ;;  %v1182_v63 = vmul.f32 1.442695, %v1151_v17 }
 0x364   :  { %2228 = vperm.xlu1 %7472, %v11675_v10   ;;  %7590 = vpow2.f32 %v1788_v33  ;;  %v1790_v10 = vmul.f32 1.442695, %v1772_v34 }
 0x365   :  { %v2469_v58 = vpop.permute.xlu0 %2468  ;;  %7592 = vpow2.f32 %v1786_v60 }
 0x366   :  { %2487 = vmatpush.bf16.msra.mxu0 %v2469_v58  ;;  %v1682_v58 = vsel %vm1650_vm7, %v1634_v12, %v1666_v40  ;;  %vm910_vm7 = vcmask 257024  }
 0x368   :  { %7475 = vset.pattern.permute.xlu2 %v11676_v9  ;;  %1244 = vmatmul.bf16.gmra.mxu0 %v1188_v2 }
 0x369   :  { %1293 = vmatmul.bf16.gmra.mxu1 %v1188_v2  ;;  %1618 = vperm.xlu2 %7475, %v11677_v50   ;;  %v9098_v2 = vadd.f32 %v7143_v37, %v1682_v58  ;;  %v11684_v37 = vld [vmem:[#allocation15_spill] sm:$0xff] }
 0x36a   :  { %693 = vmatmul.bf16.gmra.mxu3 %v601_v16  ;;  %742 = vmatmul.bf16.gmra.mxu2 %v601_v16  ;;  %v7591_v59 = vpop.eup %7590  ;;  %v1747_v16 = vpop.xlane.xlu2 %1746 }
 0x36b   :  { %v7593_v13 = vpop.eup %7592 }
 0x36c   :  { %2244 = vperm.xlu1 %7472, %v11665_v54   ;;  %v1148_v54 = vsub.f32 %v8824_v36, %v9036_v18  ;;  %v1818_v36 = vpack.c.bf16 %v7591_v59, %v7593_v13  ;;  %v11682_v13 = vld [vmem:[#allocation33_spill] sm:$0xff] }
 0x36d   :  { %v1831_v38 = vpop.permute.xlu0 %1830  ;;  %v2404_v34 = vsub.f32 %v11682_v13, %v9017_v44 }
 0x36e   :  { %1855 = vmatpush.bf16.msrb.mxu3 %v1831_v38  ;;  %v1176_v53 = vmul.f32 1.442695, %v1148_v54  ;;  %v1774_v38 = vsub.f32 %v8931_v57, %v1747_v16 }
 0x36f   :  { %v2420_v40 = vmul.f32 1.442695, %v2404_v34 }
 0x370   :  { %7594 = vpow2.f32 %v1176_v53  ;;  %v11683_v53 = vld [vmem:[#allocation25_spill] sm:$0xff] }
 0x371   :  { %1622 = vperm.xlu2 %7475, %v11678_v14   ;;  %7596 = vpow2.f32 %v1178_v6  ;;  %v1777_v32 = vsub.f32 %v11683_v53, %v9068_v55 }
 0x372   :  { %7598 = vpow2.f32 %v1790_v10  ;;  %v1751_v54 = vpop.xlane.xlu2 %1750 }
 0x373   :  { %v2225_v56 = vpop.permute.xlu1 %2224  ;;  %7600 = vpow2.f32 %v1792_v5 }
 0x374   :  { %v2267_v15 = vadd.f32 %v8779_v8, %v2225_v56  ;;  %2252 = vperm.xlu1 %7472, %v11677_v50   ;;  %v1150_v50 = vsub.f32 %v8804_v27, %v9003_v45  ;;  %7602 = vpow2.f32 %v1182_v63  ;;  %v1636_v27 = vadd.f32 %v8786_v22, %v8908_v3 }
 0x375   :  { %v9076_v1 = vpop.permute.xlu0 %1614 }
 0x376   :  { %v2299_v28 = vmul.f32 0.2, %v2267_v15  ;;  %vm2283_vm6 = vcmp.gt.f32.partialorder %v2267_v15, 0.0  ;;  %v7595_v62 = vpop.eup %7594  ;;  %v1180_v56 = vmul.f32 1.442695, %v1150_v50  ;;  %vm1652_vm8 = vcmp.gt.f32.partialorder %v1636_v27, 0.0 }
 0x377   :  { %v7597_v49 = vpop.eup %7596  ;;  %v1668_v24 = vmul.f32 0.2, %v1636_v27 }
 0x378   :  { %1249 = vmatmul.bf16.gmra.mxu0 %v1189_v11  ;;  %v2315_v18 = vsel %vm2283_vm6, %v2267_v15, %v2299_v28  ;;  %v7599_v41 = vpop.eup %7598  ;;  %v1190_v33 = vpack.c.bf16 %v7597_v49, %v7595_v62  ;;  %v1794_v15 = vmul.f32 1.442695, %v1774_v38  ;;  %7604 = vpow2.f32 %v1180_v56  ;;  %v11680_v28 = vld [vmem:[#allocation19_spill] sm:$0xff]  ;;  %v11686_v38 = vld [vmem:[#allocation12_spill] sm:$0xff]  ;;  %v11687_v56 = vld [vmem:[#allocation21_spill] sm:$0xff] }
 0x379   :  { %1298 = vmatmul.bf16.gmra.mxu1 %v1189_v11  ;;  %v9088_v46 = vadd.f32 %v7172_v21, %v2315_v18  ;;  %7478 = vset.pattern.permute.xlu2 %v11679_v19  ;;  %v7601_v60 = vpop.eup %7600  ;;  %v2405_v21 = vsub.f32 %v8857_v26, %v9034_v51  ;;  %v1776_v3 = vsub.f32 %v11680_v28, %v1751_v54  ;;  %v11681_v11 = vld [vmem:[#allocation4_spill] sm:$0xff]  ;;  %v7147_v18 = vunpack.c.l.bf16 %v9113_v61 }
 0x37a   :  { %1907 = vmatmul.bf16.vlgmr.msrb.gmra.mxu2 %v1818_v36  ;;  %v1819_v0 = vpack.c.bf16 %v7601_v60, %v7599_v41  ;;  %7606 = vpow2.f32 %v1794_v15  ;;  %v7603_v57 = vpop.eup %7602  ;;  %v1684_v26 = vsel %vm1652_vm8, %v1636_v27, %v1668_v24  ;;  %v9130_v44 = vpop.permute.xlu2 %1610  ;;  %v2409_v15 = vsub.f32 %v11687_v56, %v9056_v30 }
 0x37b   :  { %2386 = vmax.xlane.f32.xlu0 %v9088_v46  ;;  %v2467_v29 = vpop.permute.xlu1 %2466  ;;  %7608 = vpow2.f32 %v1796_v25  ;;  %v2422_v51 = vmul.f32 1.442695, %v2405_v21  ;;  %v1798_v6 = vmul.f32 1.442695, %v1776_v3  ;;  %v9127_v10 = vadd.f32 %v7147_v18, %v1684_v26  ;;  %v11688_v25 = vld [vmem:[#allocation26_spill] sm:$0xff] }
 0x37c   :  { %2488 = vmatpush.bf16.msra.mxu0 %v2467_v29  ;;  %7479 = vset.pattern.permute.xlu1 %v11679_v19  ;;  %v1800_v29 = vmul.f32 1.442695, %v1777_v32  ;;  %v1637_v27 = vadd.f32 %v8786_v22, %v11688_v25  ;;  %v7148_v30 = vunpack.c.h.bf16 %v9113_v61  ;;  %v9171_v32 = vld [vmem:[%s11507_s1 + $0x30] sm:$0xff]   ;;  %vm1544_vm8 = vcmask 519424  }
 0x37d   :  { %v1829_v23 = vpop.permute.xlu0 %1828  ;;  %7610 = vpow2.f32 %v2422_v51  ;;  %v7184_v51 = vunpack.c.h.bf16 %v9171_v32 }
 0x37e   :  { %1856 = vmatpush.bf16.msrb.mxu3 %v1829_v23  ;;  %v7605_v52 = vpop.eup %7604  ;;  %7612 = vpow2.f32 %v1798_v6  ;;  %v2407_v23 = vsub.f32 %v11684_v37, %v9091_v31  ;;  %v9144_v31 = vld [vmem:[%s11507_s1 + $0x20] sm:$0xff]   ;;  %vm1653_vm10 = vcmp.gt.f32.partialorder %v1637_v27, 0.0 }
 0x37f   :  { %v1191_v12 = vpack.c.bf16 %v7603_v57, %v7605_v52  ;;  %7614 = vpow2.f32 %v2420_v40  ;;  %v7176_v63 = vunpack.c.h.bf16 %v9144_v31 }
 0x380   :  { %v7607_v39 = vpop.eup %7606  ;;  %7616 = vpow2.f32 %v1800_v29  ;;  %v2426_v41 = vmul.f32 1.442695, %v2407_v23  ;;  %v9193_v23 = vld [vmem:[%s11507_s1 + $0x38] sm:$0xff]  }
 0x381   :  { %v7609_v48 = vpop.eup %7608 }
 0x382   :  { %7618 = vpow2.f32 %v2426_v41 }
 0x383   :  { %1754 = vmax.xlane.f32.xlu0 %v9098_v2  ;;  %v2465_v35 = vpop.permute.xlu1 %2464  ;;  %v7611_v55 = vpop.eup %7610 }
 0x384   :  { %2489 = vmatpush.bf16.msra.mxu0 %v2465_v35  ;;  %v7613_v5 = vpop.eup %7612  ;;  %v11685_v35 = vld [vmem:[#allocation34_spill] sm:$0xff] }
 0x385   :  { %v7615_v42 = vpop.eup %7614  ;;  %v2406_v49 = vsub.f32 %v11685_v35, %v9028_v20 }
 0x386   :  { %v7617_v58 = vpop.eup %7616  ;;  %v9134_v62 = vpack.c.bf16 %v7611_v55, %v7615_v42 }
 0x387   :  { %v1821_v16 = vpack.c.bf16 %v7617_v58, %v7613_v5  ;;  %v2424_v50 = vmul.f32 1.442695, %v2406_v49 }
 0x388   :  { %1254 = vmatmul.bf16.gmra.mxu0 %v1190_v33  ;;  %v7619_v60 = vpop.eup %7618 }
 0x389   :  { %1303 = vmatmul.bf16.gmra.mxu1 %v1190_v33  ;;  %7620 = vpow2.f32 %v2424_v50  ;;  %v7175_v50 = vunpack.c.l.bf16 %v9144_v31 }
 0x38a   :  { %1912 = vmatmul.bf16.gmra.mxu2 %v1819_v0 }
 0x38b   :  { %v1827_v59 = vpop.permute.xlu1 %1826 }
 0x38c   :  { %1857 = vmatpush.bf16.msrb.mxu3 %v1827_v59 }
 0x38f   :  { %1858 = vmatmul.bf16.vlgmr.msrb.gmra.mxu3 %v1818_v36  ;;  %v1820_v36 = vpack.c.bf16 %v7609_v48, %v7607_v39  ;;  %v7621_v47 = vpop.eup %7620  ;;  %v1669_v39 = vmul.f32 0.2, %v1637_v27 }
 0x390   :  { %v9154_v57 = vpack.c.bf16 %v7619_v60, %v7621_v47 }
 0x393   :  { %v2463_v45 = vpop.permute.xlu1 %2462 }
 0x394   :  { %2490 = vmatpush.bf16.msra.mxu0 %v2463_v45 }
 0x397   :  { %2460 = vrot.lane.b32.xlu0 %v11681_v11, %s8121_s17 }
 0x398   :  { %1259 = vmatmul.bf16.gmra.mxu0 %v1191_v12 }
 0x399   :  { %1308 = vmatmul.bf16.gmra.mxu1 %v1191_v12  ;;  %v1685_v12 = vsel %vm1653_vm10, %v1637_v27, %v1669_v39  ;;  %v11689_v27 = vld [vmem:[#allocation16_spill] sm:$0xff]  ;;  %vm2812_vm10 = vcmask 1044224  }
 0x39a   :  { %1917 = vmatmul.bf16.gmra.mxu2 %v1820_v36  ;;  %v9164_v48 = vadd.f32 %v7148_v30, %v1685_v12 }
 0x39e   :  { %1758 = vmax.xlane.f32.xlu1 %v9127_v10 }
 0x39f   :  { %1863 = vmatmul.bf16.gmra.mxu3 %v1819_v0  ;;  %v2408_v0 = vsub.f32 %v11686_v38, %v9053_v7  ;;  %v2430_v7 = vmul.f32 1.442695, %v2409_v15 }
 0x3a1   :  { %v2428_v52 = vmul.f32 1.442695, %v2408_v0  ;;  %v708_v0 = vpop.f32.mrf.mxu2 }
 0x3a3   :  { %7622 = vpow2.f32 %v2428_v52 }
 0x3a4   :  { %7624 = vpow2.f32 %v2430_v7 }
 0x3a5   :  { %v9206_v38 = vpop.f32.mrf.mxu1 }
 0x3a9   :  { %2541 = vmatmul.bf16.vlgmr.msrb.gmra.mxu1 %v9134_v62  ;;  %v7623_v3 = vpop.eup %7622 }
 0x3aa   :  { %1922 = vmatmul.bf16.gmra.mxu2 %v1821_v16  ;;  %v7625_v13 = vpop.eup %7624 }
 0x3ab   :  { %v9139_v17 = vpop.xlane.xlu2 %2384  ;;  %v9173_v26 = vpack.c.bf16 %v7625_v13, %v7623_v3 }
 0x3af   :  { %1868 = vmatmul.bf16.gmra.mxu3 %v1820_v36 }
 0x3b3   :  { %v2233_v33 = vpop.permute.xlu2 %2232 }
 0x3b4   :  { %v2269_v20 = vadd.f32 %v8779_v8, %v2233_v33 }
 0x3b6   :  { %vm2285_vm9 = vcmp.gt.f32.partialorder %v2269_v20, 0.0  ;;  %v2301_v59 = vmul.f32 0.2, %v2269_v20 }
 0x3b8   :  { %v2317_v45 = vsel %vm2285_vm9, %v2269_v20, %v2301_v59  ;;  %v9211_v59 = vpop.f32.mrf.mxu1  ;;  %vm2178_vm9 = vcmask 781824  }
 0x3b9   :  { %2546 = vmatmul.bf16.gmra.mxu1 %v9154_v57  ;;  %v9157_v54 = vadd.f32 %v7176_v63, %v2317_v45  ;;  %v2410_v63 = vsub.f32 %v9008_v43, %v9139_v17  ;;  %v9215_v45 = vpop.f32.mrf.mxu2 }
 0x3bb   :  { %2390 = vmax.xlane.f32.xlu2 %v9157_v54  ;;  %v2237_v24 = vpop.permute.xlu2 %2236  ;;  %v2432_v47 = vmul.f32 1.442695, %v2410_v63 }
 0x3bc   :  { %v2270_v21 = vadd.f32 %v8779_v8, %v2237_v24 }
 0x3bd   :  { %7626 = vpow2.f32 %v2432_v47 }
 0x3be   :  { %v2302_v28 = vmul.f32 0.2, %v2270_v21  ;;  %vm2286_vm11 = vcmp.gt.f32.partialorder %v2270_v21, 0.0  ;;  %v1757_v5 = vpop.xlane.xlu1 %1756 }
 0x3bf   :  { %1873 = vmatmul.bf16.gmra.mxu3 %v1821_v16  ;;  %v1779_v25 = vsub.f32 %v9031_v4, %v1757_v5 }
 0x3c0   :  { %v2318_v53 = vsel %vm2286_vm11, %v2270_v21, %v2302_v28  ;;  %v9218_v21 = vpop.f32.mrf.mxu3  ;;  %v9221_v4 = vpop.f32.mrf.mxu1 }
 0x3c1   :  { %v9179_v40 = vadd.f32 %v7147_v18, %v2318_v53  ;;  %v7156_v18 = vunpack.c.h.bf16 %v9193_v23  ;;  %v1804_v52 = vmul.f32 1.442695, %v1779_v25  ;;  %v9223_v12 = vpop.f32.mrf.mxu2 }
 0x3c3   :  { %1760 = vmax.xlane.f32.xlu2 %v9164_v48  ;;  %v2249_v11 = vpop.permute.xlu2 %2248  ;;  %v7627_v43 = vpop.eup %7626 }
 0x3c4   :  { %v2273_v34 = vadd.f32 %v8779_v8, %v2249_v11 }
 0x3c6   :  { %vm2289_vm12 = vcmp.gt.f32.partialorder %v2273_v34, 0.0  ;;  %v2305_v36 = vmul.f32 0.2, %v2273_v34 }
 0x3c8   :  { %v2321_v6 = vsel %vm2289_vm12, %v2273_v34, %v2305_v36  ;;  %v9228_v13 = vpop.f32.mrf.mxu1 }
 0x3c9   :  { %2551 = vmatmul.bf16.gmra.mxu1 %v9173_v26  ;;  %v9183_v29 = vadd.f32 %v7184_v51, %v2321_v6  ;;  %v715_v34 = vpop.f32.mrf.mxu2 }
 0x3cb   :  { %2392 = vmax.xlane.f32.xlu2 %v9179_v40  ;;  %v9186_v55 = vpop.permute.xlu2 %1618  ;;  %2398 = vmax.xlane.f32.xlu1 %v9183_v29 }
 0x3d0   :  { %v9231_v36 = vpop.f32.mrf.mxu1 }
 0x3d1   :  { %v9233_v53 = vpop.f32.mrf.mxu2 }
 0x3d3   :  { %v1623_v42 = vpop.permute.xlu2 %1622 }
 0x3d4   :  { %v1641_v37 = vadd.f32 %v8786_v22, %v1623_v42 }
 0x3d6   :  { %vm1657_vm13 = vcmp.gt.f32.partialorder %v1641_v37, 0.0  ;;  %v1673_v58 = vmul.f32 0.2, %v1641_v37  ;;  %v2229_v35 = vpop.permute.xlu1 %2228 }
 0x3d7   :  { %v2268_v49 = vadd.f32 %v8779_v8, %v2229_v35 }
 0x3d8   :  { %v1689_v16 = vsel %vm1657_vm13, %v1641_v37, %v1673_v58  ;;  %v9236_v42 = vpop.f32.mrf.mxu1 }
 0x3d9   :  { %v9199_v41 = vadd.f32 %v7156_v18, %v1689_v16  ;;  %v2300_v33 = vmul.f32 0.2, %v2268_v49  ;;  %vm2284_vm14 = vcmp.gt.f32.partialorder %v2268_v49, 0.0  ;;  %v720_v58 = vpop.f32.mrf.mxu2 }
 0x3db   :  { %1768 = vmax.xlane.f32.xlu1 %v9199_v41  ;;  %v2316_v60 = vsel %vm2284_vm14, %v2268_v49, %v2300_v33  ;;  %v7183_v49 = vunpack.c.l.bf16 %v9171_v32 }
 0x3dc   :  { %v9203_v20 = vadd.f32 %v7175_v50, %v2316_v60 }
 0x3de   :  { %2388 = vmax.xlane.f32.xlu0 %v9203_v20  ;;  %v2245_v6 = vpop.permute.xlu1 %2244 }
 0x3df   :  { %v2272_v5 = vadd.f32 %v8779_v8, %v2245_v6 }
 0x3e0   :  { %v1289_v16 = vpop.f32.mrf.mxu1 }
 0x3e1   :  { %v2304_v37 = vmul.f32 0.2, %v2272_v5  ;;  %vm2288_vm15 = vcmp.gt.f32.partialorder %v2272_v5, 0.0  ;;  %v9245_v50 = vpop.f32.mrf.mxu2 }
 0x3e3   :  { %v2320_v35 = vsel %vm2288_vm15, %v2272_v5, %v2304_v37 }
 0x3e6   :  { %v9247_v33 = vpop.permute.xlu1 %2252 }
 0x3e8   :  { %v9250_v63 = vpop.f32.mrf.mxu1 }
 0x3e9   :  { %v9252_v47 = vpop.f32.mrf.mxu2 }
 0x3ee   :  { %v2387_v56 = vpop.xlane.xlu0 %2386 }
 0x3ef   :  { %v2411_v15 = vsub.f32 %v9088_v46, %v2387_v56 }
 0x3f1   :  { %v2434_v31 = vmul.f32 1.442695, %v2411_v15 }
 0x3f2   :  { %2240 = vperm.xlu0 %7476, %v11689_v27  }
 0x3f3   :  { %7628 = vpow2.f32 %v2434_v31 }
 0x3f4   :  { %7630 = vpow2.f32 %v1804_v52  ;;  %v9256_v52 = vpop.f32.mrf.mxu1 }
 0x3f6   :  { %v1755_v7 = vpop.xlane.xlu0 %1754 }
 0x3f7   :  { %v1778_v39 = vsub.f32 %v9098_v2, %v1755_v7  ;;  %v9226_v2 = vpop.f32.mrf.mxu3 }
 0x3f9   :  { %v7629_v17 = vpop.eup %7628  ;;  %v1802_v24 = vmul.f32 1.442695, %v1778_v39  ;;  %v728_v39 = vpop.f32.mrf.mxu2 }
 0x3fa   :  { %2256 = vperm.xlu0 %7476, %v11678_v14   ;;  %v2455_v46 = vpack.c.bf16 %v7629_v17, %v7627_v43  ;;  %v7631_v28 = vpop.eup %7630 }
 0x3fb   :  { %7632 = vpow2.f32 %v1802_v24 }
 0x3fc   :  { %2556 = vmatmul.bf16.gmra.mxu1 %v2455_v46  ;;  %7634 = vrcp.f32 %v708_v0  ;;  %v1296_v24 = vpop.f32.mrf.mxu1 }
 0x3fd   :  { %7636 = vrcp.f32 %v715_v34 }
 0x401   :  { %v7633_v3 = vpop.eup %7632 }
 0x402   :  { %v1822_v11 = vpack.c.bf16 %v7631_v28, %v7633_v3  ;;  %7477 = vset.pattern.permute.xlu0 %v11679_v19  ;;  %v7635_v27 = vpop.eup %7634  ;;  %v9262_v28 = vpop.f32.mrf.mxu2 }
 0x403   :  { %v7637_v43 = vpop.eup %7636 }
 0x404   :  { %1878 = vmatmul.bf16.gmra.mxu3 %v1822_v11  ;;  %1927 = vmatmul.bf16.gmra.mxu2 %v1822_v11  ;;  %v9264_v11 = vpop.f32.mrf.mxu1 }
 0x409   :  { %v2461_v14 = vpop.permute.xlu0 %2460 }
 0x40a   :  { %2491 = vmatpush.bf16.msra.mxu0 %v2461_v14  ;;  %v9267_v34 = vpop.f32.mrf.mxu2 }
 0x40d   :  { %2492 = vmatmul.bf16.vlgmr.msra.gmra.mxu0 %v9134_v62  ;;  %v9242_v62 = vadd.f32 %v7183_v49, %v2320_v35  ;;  %v9271_v35 = vpop.f32.mrf.mxu0 }
 0x41d   :  { %2497 = vmatmul.bf16.gmra.mxu0 %v9154_v57  ;;  %v1759_v57 = vpop.xlane.xlu1 %1758 }
 0x41e   :  { %v1780_v56 = vsub.f32 %v9127_v10, %v1759_v57  ;;  %v9273_v57 = vpop.f32.mrf.mxu1 }
 0x420   :  { %v1806_v15 = vmul.f32 1.442695, %v1780_v56 }
 0x422   :  { %7638 = vpow2.f32 %v1806_v15  ;;  %v735_v15 = vpop.f32.mrf.mxu2 }
 0x424   :  { %2396 = vmax.xlane.f32.xlu0 %v9242_v62 }
 0x428   :  { %v7639_v0 = vpop.eup %7638 }
 0x42d   :  { %2502 = vmatmul.bf16.gmra.mxu0 %v9173_v26  ;;  %v9258_v26 = vpop.f32.mrf.mxu3 }
 0x42e   :  { %v2391_v60 = vpop.xlane.xlu2 %2390 }
 0x436   :  { %v1761_v31 = vpop.xlane.xlu2 %1760 }
 0x437   :  { %v1781_v25 = vsub.f32 %v9164_v48, %v1761_v31  ;;  %v9260_v48 = vpop.f32.mrf.mxu3 }
 0x438   :  { %766 = vperm.xlu0 %7477, %v7635_v27   ;;  %v9277_v27 = vpop.f32.mrf.mxu2 }
 0x439   :  { %v1808_v7 = vmul.f32 1.442695, %v1781_v25 }
 0x43b   :  { %7640 = vpow2.f32 %v1808_v7 }
 0x43c   :  { %7642 = vrcp.f32 %v720_v58 }
 0x43d   :  { %2507 = vmatmul.bf16.gmra.mxu0 %v2455_v46  ;;  %7644 = vrcp.f32 %v728_v39  ;;  %v2413_v46 = vsub.f32 %v9157_v54, %v2391_v60 }
 0x43e   :  { %7646 = vrcp.f32 %v9211_v59  ;;  %v9275_v59 = vpop.f32.mrf.mxu0 }
 0x43f   :  { %v2438_v6 = vmul.f32 1.442695, %v2413_v46 }
 0x440   :  { %781 = vperm.xlu0 %7477, %v7637_v43  }
 0x441   :  { %v7641_v17 = vpop.eup %7640  ;;  %7648 = vpow2.f32 %v2438_v6 }
 0x442   :  { %v1823_v10 = vpack.c.bf16 %v7641_v17, %v7639_v0  ;;  %v7643_v3 = vpop.eup %7642 }
 0x443   :  { %v7645_v14 = vpop.eup %7644 }
 0x444   :  { %1883 = vmatmul.bf16.gmra.mxu3 %v1823_v10  ;;  %1932 = vmatmul.bf16.gmra.mxu2 %v1823_v10  ;;  %v7647_v56 = vpop.eup %7646 }
 0x447   :  { %v7649_v54 = vpop.eup %7648 }
 0x448   :  { %791 = vperm.xlu0 %7477, %v7643_v3  }
 0x450   :  { %806 = vperm.xlu0 %7477, %v7645_v14   ;;  %v9288_v14 = vpop.f32.mrf.mxu2 }
 0x451   :  { %v2389_v5 = vpop.xlane.xlu0 %2388 }
 0x452   :  { %v2412_v37 = vsub.f32 %v9203_v20, %v2389_v5  ;;  %v1304_v20 = vpop.f32.mrf.mxu1 }
 0x454   :  { %v2436_v58 = vmul.f32 1.442695, %v2412_v37 }
 0x456   :  { %7650 = vpow2.f32 %v2436_v58 }
 0x457   :  { %7652 = vrcp.f32 %v1289_v16  ;;  %v1638_v16 = vadd.f32 %v8786_v22, %v9130_v44 }
 0x458   :  { %1337 = vperm.xlu0 %7477, %v7647_v56   ;;  %7654 = vrcp.f32 %v735_v15 }
 0x459   :  { %7656 = vrcp.f32 %v1296_v24  ;;  %v1670_v46 = vmul.f32 0.2, %v1638_v16  ;;  %vm1654_vm2 = vcmp.gt.f32.partialorder %v1638_v16, 0.0  ;;  %v1639_v24 = vadd.f32 %v8786_v22, %v9076_v1  ;;  %v743_v1 = vpop.f32.mrf.mxu2 }
 0x45a   :  { %v9282_v10 = vpop.f32.mrf.mxu1  ;;  %7658 = vrcp.f32 %v1304_v20 }
 0x45b   :  { %v1686_v58 = vsel %vm1654_vm2, %v1638_v16, %v1670_v46  ;;  %v1671_v15 = vmul.f32 0.2, %v1639_v24  ;;  %vm1655_vm4 = vcmp.gt.f32.partialorder %v1639_v24, 0.0  ;;  %7660 = vrcp.f32 %v743_v1 }
 0x45c   :  { %v7651_v60 = vpop.eup %7650 }
 0x45d   :  { %v2456_v31 = vpack.c.bf16 %v7649_v54, %v7651_v60  ;;  %v7653_v25 = vpop.eup %7652 }
 0x45e   :  { %v7655_v43 = vpop.eup %7654 }
 0x45f   :  { %2512 = vmatmul.bf16.gmra.mxu0 %v2456_v31  ;;  %2561 = vmatmul.bf16.gmra.mxu1 %v2456_v31  ;;  %v7657_v5 = vpop.eup %7656  ;;  %v1640_v31 = vadd.f32 %v8786_v22, %v9186_v55 }
 0x460   :  { %1362 = vperm.xlu0 %7477, %v7653_v25   ;;  %v7659_v60 = vpop.eup %7658  ;;  %v1687_v25 = vsel %vm1655_vm4, %v1639_v24, %v1671_v15 }
 0x461   :  { %vm1656_vm5 = vcmp.gt.f32.partialorder %v1640_v31, 0.0 }
 0x462   :  { %v9302_v54 = vpop.f32.mrf.mxu1 }
 0x464   :  { %v2241_v7 = vpop.permute.xlu0 %2240 }
 0x465   :  { %v2271_v39 = vadd.f32 %v8779_v8, %v2241_v7  ;;  %v7155_v7 = vunpack.c.l.bf16 %v9193_v23 }
 0x467   :  { %vm2287_vm0 = vcmp.gt.f32.partialorder %v2271_v39, 0.0  ;;  %v2303_v0 = vmul.f32 0.2, %v2271_v39 }
 0x468   :  { %821 = vperm.xlu0 %7477, %v7655_v43   ;;  %v2274_v43 = vadd.f32 %v8779_v8, %v9247_v33 }
 0x469   :  { %v2319_v17 = vsel %vm2287_vm0, %v2271_v39, %v2303_v0  ;;  %v7661_v39 = vpop.eup %7660 }
 0x46a   :  { %v9286_v3 = vadd.f32 %v7148_v30, %v2319_v17  ;;  %v9296_v30 = vadd.f32 %v7183_v49, %v1686_v58  ;;  %v1672_v49 = vmul.f32 0.2, %v1640_v31  ;;  %v1311_v20 = vpop.f32.mrf.mxu1  ;;  %v2306_v55 = vmul.f32 0.2, %v2274_v43  ;;  %v9322_v17 = vpop.f32.mrf.mxu3 }
 0x46b   :  { %7662 = vrcp.f32 %v1311_v20  ;;  %vm2290_vm6 = vcmp.gt.f32.partialorder %v2274_v43, 0.0 }
 0x46c   :  { %2394 = vmax.xlane.f32.xlu2 %v9286_v3  ;;  %v2257_v6 = vpop.permute.xlu0 %2256  ;;  %v1688_v16 = vsel %vm1656_vm5, %v1640_v31, %v1672_v49  ;;  %7664 = vrcp.f32 %v9215_v45 }
 0x46d   :  { %v2275_v44 = vadd.f32 %v8779_v8, %v2257_v6  ;;  %v9316_v22 = vadd.f32 %v7155_v7, %v1688_v16  ;;  %7666 = vrcp.f32 %v9233_v53 }
 0x46e   :  { %7668 = vrcp.f32 %v9252_v47 }
 0x46f   :  { %vm2291_vm3 = vcmp.gt.f32.partialorder %v2275_v44, 0.0  ;;  %v2307_v37 = vmul.f32 0.2, %v2275_v44  ;;  %7670 = vrcp.f32 %v9223_v12 }
 0x470   :  { %1377 = vperm.xlu0 %7477, %v7657_v5   ;;  %7672 = vrcp.f32 %v9267_v34 }
 0x471   :  { %v2323_v61 = vsel %vm2291_vm3, %v2275_v44, %v2307_v37  ;;  %v7663_v32 = vpop.eup %7662  ;;  %7674 = vrcp.f32 %v9245_v50 }
 0x472   :  { %v9300_v56 = vadd.f32 %v7156_v18, %v2323_v61  ;;  %v9310_v18 = vadd.f32 %v7184_v51, %v1687_v25  ;;  %v2322_v51 = vsel %vm2290_vm6, %v2274_v43, %v2306_v55  ;;  %v7665_v23 = vpop.eup %7664  ;;  %v671_v33 = vpop.f32.mrf.mxu3  ;;  %7676 = vrcp.f32 %v9221_v4 }
 0x473   :  { %v9320_v0 = vadd.f32 %v7155_v7, %v2322_v51  ;;  %v7667_v8 = vpop.eup %7666  ;;  %7678 = vrcp.f32 %v9262_v28 }
 0x474   :  { %1762 = vmax.xlane.f32.xlu2 %v9296_v30  ;;  %2402 = vmax.xlane.f32.xlu1 %v9300_v56  ;;  %v7669_v46 = vpop.eup %7668  ;;  %7680 = vrcp.f32 %v9231_v36  ;;  %v9348_v36 = vld [vmem:[%s11506_s3] ss:$0 sm:$0xff] }
 0x475   :  { %v7671_v44 = vpop.eup %7670  ;;  %7682 = vrcp.f32 %v9206_v38 }
 0x476   :  { %v7673_v5 = vpop.eup %7672  ;;  %7684 = vrcp.f32 %v9250_v63 }
 0x477   :  { %v7675_v24 = vpop.eup %7674  ;;  %7686 = vrcp.f32 %v9228_v13 }
 0x478   :  { %1392 = vperm.xlu0 %7477, %v7659_v60   ;;  %v7677_v12 = vpop.eup %7676  ;;  %7688 = vrcp.f32 %v9264_v11 }
 0x479   :  { %v7679_v37 = vpop.eup %7678  ;;  %7690 = vrcp.f32 %v9236_v42 }
 0x47a   :  { %v9329_v45 = vpop.f32.mrf.mxu3  ;;  %v7681_v58 = vpop.eup %7680  ;;  %7692 = vrcp.f32 %v9282_v10  ;;  %v11690_v10 = vld [vmem:[#allocation8_spill] sm:$0xff] }
 0x47b   :  { %v7683_v50 = vpop.eup %7682  ;;  %7694 = vrcp.f32 %v9256_v52 }
 0x47c   :  { %1764 = vmax.xlane.f32.xlu2 %v9310_v18  ;;  %v7685_v15 = vpop.eup %7684  ;;  %7696 = vrcp.f32 %v9288_v14  ;;  %v2393_v14 = vpop.xlane.xlu2 %2392 }
 0x47d   :  { %v7687_v31 = vpop.eup %7686  ;;  %7698 = vrcp.f32 %v9273_v57 }
 0x47e   :  { %v7689_v49 = vpop.eup %7688  ;;  %7700 = vrcp.f32 %v9277_v27 }
 0x480   :  { %836 = vperm.xlu0 %7477, %v7661_v39  }
 0x482   :  { %v9335_v53 = vpop.f32.mrf.mxu3 }
 0x484   :  { %1766 = vmax.xlane.f32.xlu2 %v9316_v22 }
 0x488   :  { %1407 = vperm.xlu0 %7477, %v7663_v32   ;;  %v7691_v32 = vpop.eup %7690 }
 0x48a   :  { %v679_v61 = vpop.f32.mrf.mxu3 }
 0x48c   :  { %2400 = vmax.xlane.f32.xlu2 %v9320_v0 }
 0x48d   :  { %771 = vperm.xlu1 %7479, %v7665_v23  }
 0x492   :  { %v9342_v28 = vpop.f32.mrf.mxu3 }
 0x495   :  { %786 = vperm.xlu1 %7479, %v7667_v8   ;;  %v7693_v8 = vpop.eup %7692 }
 0x496   :  { %v7695_v52 = vpop.eup %7694 }
 0x497   :  { %v9331_v6 = vpop.xlane.xlu0 %2396 }
 0x49a   :  { %v9358_v7 = vpop.f32.mrf.mxu3 }
 0x49d   :  { %801 = vperm.xlu1 %7479, %v7669_v46  }
 0x4a4   :  { %776 = vperm.xlu2 %7478, %v7671_v44  }
 0x4a5   :  { %816 = vperm.xlu1 %7479, %v7673_v5  }
 0x4aa   :  { %v767_v47 = vpop.permute.xlu0 %766 }
 0x4ab   :  { %v844_v38 = vmul.f32 %v767_v47, %v9218_v21 }
 0x4ac   :  { %796 = vperm.xlu2 %7478, %v7675_v24  }
 0x4ad   :  { %1342 = vperm.xlu1 %7479, %v7677_v12   ;;  %v862_v25 = vadd.f32 %v9348_v36, %v844_v38  ;;  %v7697_v12 = vpop.eup %7696 }
 0x4b2   :  { %v782_v34 = vpop.permute.xlu0 %781 }
 0x4b3   :  { %v847_v63 = vmul.f32 %v782_v34, %v9260_v48  ;;  %v878_v48 = vmax.f32 %v862_v25, 0.0 }
 0x4b4   :  { %811 = vperm.xlu2 %7478, %v7679_v37   ;;  %v7699_v37 = vpop.eup %7698 }
 0x4b5   :  { %1352 = vperm.xlu1 %7479, %v7681_v58   ;;  %v865_v20 = vadd.f32 %v9348_v36, %v847_v63  ;;  %v894_v51 = vpack.c.bf16 %v878_v48, %v878_v48  ;;  %v2414_v58 = vsub.f32 %v9179_v40, %v2393_v14  ;;  %v7701_v40 = vpop.eup %7700 }
 0x4b7   :  { %v881_v39 = vmax.f32 %v865_v20, 0.0  ;;  %911 = vst.msk [vmem:[#allocation2] sm:$0xf] %vm910_vm7, %v894_v51  ;;  %v2440_v38 = vmul.f32 1.442695, %v2414_v58 }
 0x4b9   :  { %v897_v42 = vpack.c.bf16 %v881_v39, %v881_v39  ;;  %7702 = vpow2.f32 %v2440_v38 }
 0x4ba   :  { %v792_v4 = vpop.permute.xlu0 %791 }
 0x4bb   :  { %v849_v1 = vmul.f32 %v792_v4, %v671_v33  ;;  %914 = vst.msk [vmem:[#allocation2 + $0xc] sm:$0xf] %vm910_vm7, %v897_v42  ;;  %v9373_v4 = vpop.f32.mrf.mxu0 }
 0x4bc   :  { %1332 = vperm.xlu2 %7478, %v7683_v50  }
 0x4bd   :  { %1367 = vperm.xlu1 %7479, %v7685_v15   ;;  %v867_v11 = vadd.f32 %v9348_v36, %v849_v1 }
 0x4bf   :  { %v883_v43 = vmax.f32 %v867_v11, 0.0  ;;  %v7703_v11 = vpop.eup %7702 }
 0x4c1   :  { %v899_v33 = vpack.c.bf16 %v883_v43, %v883_v43 }
 0x4c2   :  { %v807_v60 = vpop.permute.xlu0 %806 }
 0x4c3   :  { %v852_v13 = vmul.f32 %v807_v60, %v679_v61  ;;  %916 = vst.msk [vmem:[#allocation2 + $0x14] sm:$0xf] %vm910_vm7, %v899_v33  ;;  %v9384_v27 = vpop.f32.mrf.mxu0  ;;  %v9397_v33 = vpop.f32.mrf.mxu2 }
 0x4c4   :  { %1347 = vperm.xlu2 %7478, %v7687_v31  }
 0x4c5   :  { %1382 = vperm.xlu1 %7479, %v7689_v49   ;;  %v870_v21 = vadd.f32 %v9348_v36, %v852_v13  ;;  %v2399_v49 = vpop.xlane.xlu1 %2398 }
 0x4c7   :  { %v886_v16 = vmax.f32 %v870_v21, 0.0  ;;  %v2416_v21 = vsub.f32 %v9242_v62, %v9331_v6 }
 0x4c9   :  { %v902_v44 = vpack.c.bf16 %v886_v16, %v886_v16 }
 0x4ca   :  { %v1338_v55 = vpop.permute.xlu0 %1337 }
 0x4cb   :  { %v1411_v23 = vmul.f32 %v1338_v55, %v9275_v59  ;;  %v686_v59 = vpop.f32.mrf.mxu3  ;;  %919 = vst.msk [vmem:[#allocation2 + $0x20] sm:$0xf] %vm910_vm7, %v902_v44  ;;  %v2444_v55 = vmul.f32 1.442695, %v2416_v21 }
 0x4cc   :  { %1357 = vperm.xlu2 %7478, %v7691_v32  }
 0x4cd   :  { %v1433_v46 = vadd.f32 %v11690_v10, %v1411_v23  ;;  %1397 = vperm.xlu1 %7479, %v7693_v8   ;;  %v1769_v32 = vpop.xlane.xlu1 %1768  ;;  %v9394_v8 = vpop.f32.mrf.mxu0 }
 0x4cf   :  { %v1449_v5 = vmax.f32 %v1433_v46, 0.0 }
 0x4d1   :  { %v1465_v47 = vpack.c.bf16 %v1449_v5, %v1449_v5 }
 0x4d2   :  { %v9367_v24 = vpop.permute.xlu0 %1362 }
 0x4d3   :  { %1498 = vrot.lane.b32.xlu0 %v1465_v47, %s8121_s17  ;;  %v9375_v50 = vpop.f32.mrf.mxu3 }
 0x4d4   :  { %1372 = vperm.xlu2 %7478, %v7695_v52  }
 0x4d5   :  { %831 = vperm.xlu1 %7479, %v7697_v12  }
 0x4da   :  { %v822_v34 = vpop.permute.xlu0 %821 }
 0x4db   :  { %v855_v61 = vmul.f32 %v822_v34, %v686_v59  ;;  %v9386_v13 = vpop.f32.mrf.mxu3 }
 0x4dc   :  { %1387 = vperm.xlu2 %7478, %v7699_v37   ;;  %v9401_v37 = vpop.f32.mrf.mxu0 }
 0x4dd   :  { %v873_v15 = vadd.f32 %v9348_v36, %v855_v61 }
 0x4df   :  { %v889_v63 = vmax.f32 %v873_v15, 0.0  ;;  %v2395_v1 = vpop.xlane.xlu2 %2394 }
 0x4e0   :  { %v2415_v57 = vsub.f32 %v9286_v3, %v2395_v1 }
 0x4e1   :  { %v905_v60 = vpack.c.bf16 %v889_v63, %v889_v63  ;;  %v9406_v63 = vpop.f32.mrf.mxu2 }
 0x4e2   :  { %v2442_v31 = vmul.f32 1.442695, %v2415_v57  ;;  %v9380_v25 = vpop.permute.xlu0 %1377 }
 0x4e3   :  { %922 = vst.msk [vmem:[#allocation2 + $0x2c] sm:$0xf] %vm910_vm7, %v905_v60  ;;  %v694_v62 = vpop.f32.mrf.mxu3 }
 0x4e4   :  { %7704 = vpow2.f32 %v2442_v31  ;;  %826 = vperm.xlu2 %7478, %v7701_v40  }
 0x4e5   :  { %7706 = vrcp.f32 %v9302_v54  ;;  %v2417_v54 = vsub.f32 %v9183_v29, %v2399_v49 }
 0x4e6   :  { %7708 = vpow2.f32 %v2444_v55 }
 0x4e7   :  { %v1763_v20 = vpop.xlane.xlu2 %1762  ;;  %v2446_v6 = vmul.f32 1.442695, %v2417_v54  ;;  %v2403_v5 = vpop.xlane.xlu1 %2402 }
 0x4e8   :  { %v1782_v43 = vsub.f32 %v9296_v30, %v1763_v20  ;;  %v2419_v15 = vsub.f32 %v9300_v56, %v2403_v5 }
 0x4e9   :  { %v9413_v21 = vpop.f32.mrf.mxu2 }
 0x4ea   :  { %v7705_v3 = vpop.eup %7704  ;;  %v9390_v48 = vpop.permute.xlu0 %1392  ;;  %v1810_v51 = vmul.f32 1.442695, %v1782_v43 }
 0x4eb   :  { %v7707_v39 = vpop.eup %7706  ;;  %v2457_v16 = vpack.c.bf16 %v7705_v3, %v7703_v11  ;;  %v9411_v11 = vpop.f32.mrf.mxu0 }
 0x4ec   :  { %1402 = vperm.xlu2 %7478, %v7707_v39   ;;  %7710 = vpow2.f32 %v1810_v51  ;;  %v7709_v52 = vpop.eup %7708 }
 0x4ed   :  { %2517 = vmatmul.bf16.gmra.mxu0 %v2457_v16  ;;  %2566 = vmatmul.bf16.gmra.mxu1 %v2457_v16 }
 0x4ef   :  { %v1765_v23 = vpop.xlane.xlu2 %1764 }
 0x4f0   :  { %v1783_v42 = vsub.f32 %v9310_v18, %v1765_v23  ;;  %v1785_v18 = vsub.f32 %v9199_v41, %v1769_v32  ;;  %v2450_v41 = vmul.f32 1.442695, %v2419_v15  ;;  %v9418_v23 = vpop.f32.mrf.mxu1 }
 0x4f2   :  { %v1812_v30 = vmul.f32 1.442695, %v1783_v42  ;;  %v837_v46 = vpop.permute.xlu0 %836  ;;  %v7711_v12 = vpop.eup %7710  ;;  %v1816_v57 = vmul.f32 1.442695, %v1785_v18 }
 0x4f3   :  { %v858_v44 = vmul.f32 %v837_v46, %v694_v62 }
 0x4f4   :  { %7712 = vpow2.f32 %v1812_v30 }
 0x4f5   :  { %7714 = vpow2.f32 %v2446_v6  ;;  %v876_v29 = vadd.f32 %v9348_v36, %v858_v44 }
 0x4f6   :  { %7716 = vpow2.f32 %v1816_v57 }
 0x4f7   :  { %v892_v47 = vmax.f32 %v876_v29, 0.0  ;;  %v1767_v59 = vpop.xlane.xlu2 %1766  ;;  %v9422_v29 = vpop.f32.mrf.mxu0 }
 0x4f8   :  { %v1784_v58 = vsub.f32 %v9316_v22, %v1767_v59  ;;  %v9424_v59 = vpop.f32.mrf.mxu2 }
 0x4f9   :  { %v908_v14 = vpack.c.bf16 %v892_v47, %v892_v47 }
 0x4fa   :  { %v7713_v34 = vpop.eup %7712  ;;  %v1814_v60 = vmul.f32 1.442695, %v1784_v58 }
 0x4fb   :  { %v7715_v61 = vpop.eup %7714  ;;  %v1824_v38 = vpack.c.bf16 %v7713_v34, %v7711_v12  ;;  %925 = vst.msk [vmem:[#allocation2 + $0x38] sm:$0xf] %vm910_vm7, %v908_v14  ;;  %v9432_v34 = vpop.f32.mrf.mxu1 }
 0x4fc   :  { %v2458_v1 = vpack.c.bf16 %v7715_v61, %v7709_v52  ;;  %7718 = vpow2.f32 %v1814_v60  ;;  %v7717_v43 = vpop.eup %7716 }
 0x4fd   :  { %1888 = vmatmul.bf16.gmra.mxu3 %v1824_v38  ;;  %1937 = vmatmul.bf16.gmra.mxu2 %v1824_v38  ;;  %7720 = vpow2.f32 %v2450_v41 }
 0x4fe   :  { %2522 = vmatmul.bf16.gmra.mxu0 %v2458_v1  ;;  %2571 = vmatmul.bf16.gmra.mxu1 %v2458_v1 }
 0x4ff   :  { %v2401_v31 = vpop.xlane.xlu2 %2400  ;;  %v772_v40 = vpop.permute.xlu1 %771 }
 0x500   :  { %v2418_v22 = vsub.f32 %v9320_v0, %v2401_v31  ;;  %v845_v49 = vmul.f32 %v772_v40, %v9226_v2  ;;  %v9438_v60 = vpop.f32.mrf.mxu2 }
 0x502   :  { %v2448_v56 = vmul.f32 1.442695, %v2418_v22  ;;  %v863_v20 = vadd.f32 %v9348_v36, %v845_v49  ;;  %v7719_v55 = vpop.eup %7718 }
 0x503   :  { %v7721_v32 = vpop.eup %7720  ;;  %v1825_v6 = vpack.c.bf16 %v7717_v43, %v7719_v55  ;;  %v9442_v49 = vpop.f32.mrf.mxu1 }
 0x504   :  { %7722 = vpow2.f32 %v2448_v56  ;;  %v879_v3 = vmax.f32 %v863_v20, 0.0 }
 0x505   :  { %7724 = vrcp.f32 %v9397_v33 }
 0x506   :  { %v895_v39 = vpack.c.bf16 %v879_v3, %v879_v3  ;;  %7726 = vrcp.f32 %v9413_v21 }
 0x507   :  { %v777_v16 = vpop.permute.xlu2 %776  ;;  %v787_v54 = vpop.permute.xlu1 %786  ;;  %7728 = vrcp.f32 %v9406_v63 }
 0x508   :  { %v846_v0 = vmul.f32 %v777_v16, %v9258_v26  ;;  %v848_v2 = vmul.f32 %v787_v54, %v9322_v17  ;;  %912 = vst.msk [vmem:[#allocation2 + $0x4] sm:$0xf] %vm910_vm7, %v895_v39  ;;  %v9450_v54 = vpop.f32.mrf.mxu2  ;;  %7730 = vrcp.f32 %v9418_v23 }
 0x509   :  { %7732 = vrcp.f32 %v9424_v59 }
 0x50a   :  { %v7723_v51 = vpop.eup %7722  ;;  %v864_v42 = vadd.f32 %v9348_v36, %v846_v0  ;;  %v866_v62 = vadd.f32 %v9348_v36, %v848_v2 }
 0x50b   :  { %v2459_v30 = vpack.c.bf16 %v7721_v32, %v7723_v51 }
 0x50c   :  { %v880_v46 = vmax.f32 %v864_v42, 0.0  ;;  %v882_v44 = vmax.f32 %v866_v62, 0.0  ;;  %v9452_v62 = vpop.f32.mrf.mxu0 }
 0x50d   :  { %1893 = vmatmul.bf16.gmra.mxu3 %v1825_v6  ;;  %1942 = vmatmul.bf16.gmra.mxu2 %v1825_v6 }
 0x50e   :  { %v896_v26 = vpack.c.bf16 %v880_v46, %v880_v46  ;;  %v898_v17 = vpack.c.bf16 %v882_v44, %v882_v44  ;;  %2527 = vmatmul.bf16.gmra.mxu0 %v2459_v30  ;;  %2576 = vmatmul.bf16.gmra.mxu1 %v2459_v30  ;;  %v7725_v46 = vpop.eup %7724 }
 0x50f   :  { %v797_v5 = vpop.permute.xlu2 %796  ;;  %v802_v47 = vpop.permute.xlu1 %801 }
 0x510   :  { %v850_v52 = vmul.f32 %v797_v5, %v9329_v45  ;;  %v851_v12 = vmul.f32 %v802_v47, %v9335_v53  ;;  %913 = vst.msk [vmem:[#allocation2 + $0x8] sm:$0xf] %vm910_vm7, %v896_v26  ;;  %v9462_v44 = vpop.f32.mrf.mxu2 }
 0x511   :  { %915 = vst.msk [vmem:[#allocation2 + $0x10] sm:$0xf] %vm910_vm7, %v898_v17  ;;  %v7727_v17 = vpop.eup %7726 }
 0x512   :  { %v868_v18 = vadd.f32 %v9348_v36, %v850_v52  ;;  %v869_v14 = vadd.f32 %v9348_v36, %v851_v12 }
 0x514   :  { %v884_v58 = vmax.f32 %v868_v18, 0.0  ;;  %v885_v61 = vmax.f32 %v869_v14, 0.0  ;;  %v9468_v21 = vpop.f32.mrf.mxu0 }
 0x516   :  { %v900_v15 = vpack.c.bf16 %v884_v58, %v884_v58  ;;  %v901_v38 = vpack.c.bf16 %v885_v61, %v885_v61 }
 0x517   :  { %v812_v1 = vpop.permute.xlu2 %811  ;;  %v817_v57 = vpop.permute.xlu1 %816 }
 0x518   :  { %v853_v45 = vmul.f32 %v812_v1, %v9342_v28  ;;  %v854_v53 = vmul.f32 %v817_v57, %v9358_v7  ;;  %917 = vst.msk [vmem:[#allocation2 + $0x18] sm:$0xf] %vm910_vm7, %v900_v15  ;;  %v9475_v57 = vpop.f32.mrf.mxu2 }
 0x519   :  { %918 = vst.msk [vmem:[#allocation2 + $0x1c] sm:$0xf] %vm910_vm7, %v901_v38  ;;  %v7729_v38 = vpop.eup %7728 }
 0x51a   :  { %v871_v41 = vadd.f32 %v9348_v36, %v853_v45  ;;  %v872_v31 = vadd.f32 %v9348_v36, %v854_v53  ;;  %v7731_v23 = vpop.eup %7730 }
 0x51c   :  { %v887_v40 = vmax.f32 %v871_v41, 0.0  ;;  %v888_v22 = vmax.f32 %v872_v31, 0.0  ;;  %v1250_v53 = vpop.f32.mrf.mxu0  ;;  %v7529_v41 = vld [vmem:[%s11506_s3] ss:$0 sm:$0xff] }
 0x51e   :  { %v903_v56 = vpack.c.bf16 %v887_v40, %v887_v40  ;;  %v904_v20 = vpack.c.bf16 %v888_v22, %v888_v22  ;;  %v9486_v40 = vpop.permute.xlu0 %1407 }
 0x51f   :  { %v1333_v3 = vpop.permute.xlu2 %1332  ;;  %v1343_v28 = vpop.permute.xlu1 %1342 }
 0x520   :  { %v1410_v7 = vmul.f32 %v1333_v3, %v9271_v35  ;;  %v1412_v39 = vmul.f32 %v1343_v28, %v9373_v4  ;;  %920 = vst.msk [vmem:[#allocation2 + $0x24] sm:$0xf] %vm910_vm7, %v903_v56  ;;  %v9459_v4 = vpop.f32.mrf.mxu1 }
 0x521   :  { %921 = vst.msk [vmem:[#allocation2 + $0x28] sm:$0xf] %vm910_vm7, %v904_v20 }
 0x522   :  { %v1432_v43 = vadd.f32 %v11690_v10, %v1410_v7  ;;  %v1434_v16 = vadd.f32 %v11690_v10, %v1412_v39 }
 0x524   :  { %v1448_v55 = vmax.f32 %v1432_v43, 0.0  ;;  %v1450_v0 = vmax.f32 %v1434_v16, 0.0  ;;  %v1252_v43 = vpop.f32.mrf.mxu0 }
 0x526   :  { %v1464_v2 = vpack.c.bf16 %v1448_v55, %v1448_v55  ;;  %v1466_v32 = vpack.c.bf16 %v1450_v0, %v1450_v0  ;;  %v7733_v55 = vpop.eup %7732 }
 0x527   :  { %v1348_v51 = vpop.permute.xlu2 %1347  ;;  %v1353_v42 = vpop.permute.xlu1 %1352 }
 0x528   :  { %v1414_v35 = vmul.f32 %v1353_v42, %v9394_v8  ;;  %1496 = vrot.lane.b32.xlu2 %v1464_v2, %s8121_s17  ;;  %1500 = vrot.lane.b32.xlu1 %v1466_v32, %s8121_s17  ;;  %v1413_v52 = vmul.f32 %v1348_v51, %v9384_v27  ;;  %v2552_v14 = vpop.f32.mrf.mxu1  ;;  %v1416_v27 = vmul.f32 %v9367_v24, %v9411_v11  ;;  %v9494_v11 = vpop.f32.mrf.mxu2 }
 0x529   :  { %7734 = vrcp.f32 %v2552_v14 }
 0x52a   :  { %v1436_v6 = vadd.f32 %v11690_v10, %v1414_v35  ;;  %v1438_v22 = vadd.f32 %v11690_v10, %v1416_v27  ;;  %7736 = vrcp.f32 %v9432_v34 }
 0x52b   :  { %7738 = vrcp.f32 %v9442_v49 }
 0x52c   :  { %v1452_v30 = vmax.f32 %v1436_v6, 0.0  ;;  %v1454_v24 = vmax.f32 %v1438_v22, 0.0  ;;  %v9509_v49 = vpop.f32.mrf.mxu0 }
 0x52e   :  { %v1468_v26 = vpack.c.bf16 %v1452_v30, %v1452_v30  ;;  %v1470_v16 = vpack.c.bf16 %v1454_v24, %v1454_v24 }
 0x52f   :  { %v1358_v5 = vpop.permute.xlu2 %1357  ;;  %v1368_v33 = vpop.permute.xlu1 %1367 }
 0x530   :  { %v1415_v8 = vmul.f32 %v1358_v5, %v9401_v37  ;;  %v1417_v47 = vmul.f32 %v1368_v33, %v9422_v29  ;;  %841 = vperm.xlu2 %7478, %v7725_v46   ;;  %1971 = vperm.xlu1 %7479, %v7727_v17   ;;  %v1435_v37 = vadd.f32 %v11690_v10, %v1413_v52  ;;  %v9484_v31 = vpop.f32.mrf.mxu1  ;;  %v7735_v59 = vpop.eup %7734 }
 0x531   :  { %1504 = vrot.lane.b32.xlu0 %v1468_v26, %s8121_s17  ;;  %v1928_v46 = vpop.f32.mrf.mxu2  ;;  %v7737_v5 = vpop.eup %7736 }
 0x532   :  { %v1437_v12 = vadd.f32 %v11690_v10, %v1415_v8  ;;  %v1439_v18 = vadd.f32 %v11690_v10, %v1417_v47  ;;  %v1451_v45 = vmax.f32 %v1435_v37, 0.0  ;;  %v7739_v8 = vpop.eup %7738 }
 0x534   :  { %v1453_v58 = vmax.f32 %v1437_v12, 0.0  ;;  %v1455_v61 = vmax.f32 %v1439_v18, 0.0  ;;  %v1467_v56 = vpack.c.bf16 %v1451_v45, %v1451_v45  ;;  %v7530_v12 = vld [vmem:[%s11506_s3] ss:$0 sm:$0xff] }
 0x536   :  { %v1469_v29 = vpack.c.bf16 %v1453_v58, %v1453_v58  ;;  %v1471_v15 = vpack.c.bf16 %v1455_v61, %v1455_v61  ;;  %v1257_v61 = vpop.f32.mrf.mxu0 }
 0x537   :  { %v1373_v1 = vpop.permute.xlu2 %1372  ;;  %v1383_v63 = vpop.permute.xlu1 %1382 }
 0x538   :  { %1966 = vperm.xlu2 %7478, %v7729_v38   ;;  %1506 = vrot.lane.b32.xlu1 %v1469_v29, %s8121_s17  ;;  %v1420_v28 = vmul.f32 %v1383_v63, %v1250_v53  ;;  %v9496_v7 = vpop.f32.mrf.mxu1  ;;  %v1418_v35 = vmul.f32 %v1373_v1, %v9452_v62 }
 0x539   :  { %1510 = vrot.lane.b32.xlu0 %v1471_v15, %s8121_s17  ;;  %v1930_v18 = vpop.f32.mrf.mxu2 }
 0x53a   :  { %v1442_v0 = vadd.f32 %v11690_v10, %v1420_v28 }
 0x53c   :  { %v1458_v26 = vmax.f32 %v1442_v0, 0.0 }
 0x53e   :  { %v1474_v52 = vpack.c.bf16 %v1458_v26, %v1458_v26 }
 0x53f   :  { %v9489_v20 = vpop.permute.xlu2 %1387  ;;  %v1398_v3 = vpop.permute.xlu1 %1397 }
 0x540   :  { %1502 = vrot.lane.b32.xlu2 %v1467_v56, %s8121_s17  ;;  %2063 = vrot.lane.b32.xlu1 %v7529_v41, %s8120_s0  ;;  %v2559_v47 = vpop.f32.mrf.mxu1  ;;  %v1423_v37 = vmul.f32 %v1398_v3, %v1257_v61 }
 0x541   :  { %2600 = vperm.xlu0 %7477, %v7731_v23   ;;  %7740 = vrcp.f32 %v2559_v47  ;;  %v9521_v29 = vpop.f32.mrf.mxu2 }
 0x542   :  { %7742 = vrcp.f32 %v9438_v60  ;;  %v1445_v63 = vadd.f32 %v11690_v10, %v1423_v37  ;;  %v1421_v60 = vmul.f32 %v9489_v20, %v1252_v43 }
 0x543   :  { %7744 = vrcp.f32 %v9450_v54 }
 0x544   :  { %7746 = vrcp.f32 %v1928_v46  ;;  %v1461_v54 = vmax.f32 %v1445_v63, 0.0  ;;  %v1443_v53 = vadd.f32 %v11690_v10, %v1421_v60 }
 0x545   :  { %v1499_v39 = vpop.permute.xlu0 %1498  ;;  %7748 = vrcp.f32 %v9459_v4  ;;  %v1419_v4 = vmul.f32 %v9380_v25, %v9468_v21  ;;  %v1260_v25 = vpop.f32.mrf.mxu0 }
 0x546   :  { %1546 = vst.msk [vmem:[#allocation2 + $0x4] sm:$0xf] %vm1544_vm8, %v1499_v39  ;;  %7750 = vrcp.f32 %v9484_v31  ;;  %v1477_v3 = vpack.c.bf16 %v1461_v54, %v1461_v54  ;;  %v1459_v31 = vmax.f32 %v1443_v53, 0.0 }
 0x547   :  { %v827_v2 = vpop.permute.xlu2 %826  ;;  %v832_v32 = vpop.permute.xlu1 %831  ;;  %7752 = vrcp.f32 %v9462_v44  ;;  %v1441_v20 = vadd.f32 %v11690_v10, %v1419_v4 }
 0x548   :  { %v856_v51 = vmul.f32 %v827_v2, %v9375_v50  ;;  %v857_v42 = vmul.f32 %v832_v32, %v9386_v13  ;;  %1508 = vrot.lane.b32.xlu2 %v1470_v16, %s8121_s17  ;;  %1976 = vperm.xlu1 %7479, %v7733_v55   ;;  %v1440_v50 = vadd.f32 %v11690_v10, %v1418_v35  ;;  %v7741_v58 = vpop.eup %7740  ;;  %v9523_v15 = vpop.f32.mrf.mxu1 }
 0x549   :  { %2620 = vperm.xlu0 %7477, %v7735_v59   ;;  %v7743_v38 = vpop.eup %7742  ;;  %v1935_v22 = vpop.f32.mrf.mxu2  ;;  %v1475_v23 = vpack.c.bf16 %v1459_v31, %v1459_v31  ;;  %v1457_v44 = vmax.f32 %v1441_v20, 0.0 }
 0x54a   :  { %v874_v6 = vadd.f32 %v9348_v36, %v856_v51  ;;  %v875_v30 = vadd.f32 %v9348_v36, %v857_v42  ;;  %v1456_v62 = vmax.f32 %v1440_v50, 0.0  ;;  %v7745_v1 = vpop.eup %7744  ;;  %7754 = vrcp.f32 %v1935_v22  ;;  %v696_v2 = vpop.f32.mrf.mxu3 }
 0x54b   :  { %v7747_v27 = vpop.eup %7746  ;;  %7756 = vrcp.f32 %v9475_v57  ;;  %v1473_v43 = vpack.c.bf16 %v1457_v44, %v1457_v44  ;;  %v1422_v51 = vmul.f32 %v9390_v48, %v9509_v49 }
 0x54c   :  { %v890_v17 = vmax.f32 %v874_v6, 0.0  ;;  %v891_v34 = vmax.f32 %v875_v30, 0.0  ;;  %v1472_v14 = vpack.c.bf16 %v1456_v62, %v1456_v62  ;;  %v7749_v45 = vpop.eup %7748 }
 0x54d   :  { %v7751_v41 = vpop.eup %7750  ;;  %v1444_v6 = vadd.f32 %v11690_v10, %v1422_v51 }
 0x54e   :  { %v906_v13 = vpack.c.bf16 %v890_v17, %v890_v17  ;;  %v907_v33 = vpack.c.bf16 %v891_v34, %v891_v34  ;;  %v7753_v24 = vpop.eup %7752 }
 0x54f   :  { %v1403_v55 = vpop.permute.xlu2 %1402  ;;  %v1460_v26 = vmax.f32 %v1444_v6, 0.0 }
 0x550   :  { %923 = vst.msk [vmem:[#allocation2 + $0x30] sm:$0xf] %vm910_vm7, %v906_v13  ;;  %2605 = vperm.xlu2 %7478, %v7737_v5   ;;  %2610 = vperm.xlu1 %7479, %v7739_v8   ;;  %v2564_v56 = vpop.f32.mrf.mxu1  ;;  %v7755_v39 = vpop.eup %7754  ;;  %v1424_v21 = vmul.f32 %v1403_v55, %v1260_v25 }
 0x551   :  { %924 = vst.msk [vmem:[#allocation2 + $0x34] sm:$0xf] %vm910_vm7, %v907_v33  ;;  %1516 = vrot.lane.b32.xlu0 %v1474_v52, %s8121_s17  ;;  %v7757_v16 = vpop.eup %7756  ;;  %v1476_v50 = vpack.c.bf16 %v1460_v26, %v1460_v26 }
 0x552   :  { %v1446_v57 = vadd.f32 %v11690_v10, %v1424_v21  ;;  %v1859_v35 = vpop.f32.mrf.mxu3 }
 0x558   :  { %2697 = vrot.lane.b32.xlu2 %v7530_v12, %s8121_s17  ;;  %1512 = vrot.lane.b32.xlu1 %v1472_v14, %s8121_s17 }
 0x559   :  { %2635 = vperm.xlu0 %7477, %v7741_v58  }
 0x55a   :  { %v9547_v5 = vpop.f32.mrf.mxu3 }
 0x560   :  { %1981 = vperm.xlu2 %7478, %v7743_v38   ;;  %1986 = vperm.xlu1 %7479, %v7745_v1  }
 0x561   :  { %2006 = vperm.xlu0 %7477, %v7747_v27  }
 0x568   :  { %2615 = vperm.xlu2 %7478, %v7749_v45   ;;  %2625 = vperm.xlu1 %7479, %v7751_v41  }
 0x569   :  { %1522 = vrot.lane.b32.xlu0 %v1477_v3, %s8121_s17 }
 0x56a   :  { %v2567_v28 = vpop.f32.mrf.mxu1 }
 0x56b   :  { %7758 = vrcp.f32 %v2567_v28 }
 0x56c   :  { %7760 = vrcp.f32 %v9494_v11  ;;  %v1462_v11 = vmax.f32 %v1446_v57, 0.0 }
 0x56d   :  { %7762 = vrcp.f32 %v1930_v18  ;;  %v1864_v18 = vpop.f32.mrf.mxu3 }
 0x56e   :  { %7764 = vrcp.f32 %v9496_v7  ;;  %v1478_v30 = vpack.c.bf16 %v1462_v11, %v1462_v11  ;;  %v1262_v7 = vpop.f32.mrf.mxu0 }
 0x56f   :  { %7766 = vrcp.f32 %v9523_v15 }
 0x570   :  { %1991 = vperm.xlu2 %7478, %v7753_v24   ;;  %1518 = vrot.lane.b32.xlu1 %v1475_v23, %s8121_s17  ;;  %7768 = vrcp.f32 %v2564_v56 }
 0x571   :  { %2021 = vperm.xlu0 %7477, %v7755_v39   ;;  %v7759_v0 = vpop.eup %7758 }
 0x572   :  { %v7761_v32 = vpop.eup %7760  ;;  %v2569_v13 = vpop.f32.mrf.mxu1 }
 0x573   :  { %v7763_v59 = vpop.eup %7762  ;;  %7770 = vrcp.f32 %v2569_v13 }
 0x574   :  { %v7765_v46 = vpop.eup %7764  ;;  %7772 = vrcp.f32 %v9521_v29 }
 0x575   :  { %v7767_v33 = vpop.eup %7766  ;;  %v9557_v38 = vpop.f32.mrf.mxu3 }
 0x576   :  { %v2493_v49 = vpop.f32.mrf.mxu0  ;;  %v7769_v62 = vpop.eup %7768 }
 0x578   :  { %1514 = vrot.lane.b32.xlu2 %v1473_v43, %s8121_s17  ;;  %1996 = vperm.xlu1 %7479, %v7757_v16  }
 0x579   :  { %2650 = vperm.xlu0 %7477, %v7759_v0   ;;  %v7771_v12 = vpop.eup %7770 }
 0x57a   :  { %v7773_v15 = vpop.eup %7772 }
 0x57b   :  { %v2572_v55 = vpop.f32.mrf.mxu1 }
 0x57e   :  { %v2495_v61 = vpop.f32.mrf.mxu0 }
 0x580   :  { %2001 = vperm.xlu2 %7478, %v7761_v32   ;;  %2011 = vperm.xlu1 %7479, %v7763_v59   ;;  %v1938_v41 = vpop.f32.mrf.mxu2 }
 0x581   :  { %7774 = vrcp.f32 %v1938_v41 }
 0x582   :  { %v1497_v42 = vpop.permute.xlu2 %1496 }
 0x583   :  { %1545 = vst.msk [vmem:[#allocation2] sm:$0xf] %vm1544_vm8, %v1497_v42 }
 0x586   :  { %v2498_v60 = vpop.f32.mrf.mxu0 }
 0x588   :  { %2630 = vperm.xlu2 %7478, %v7765_v46   ;;  %1524 = vrot.lane.b32.xlu1 %v1478_v30, %s8121_s17  ;;  %v1940_v0 = vpop.f32.mrf.mxu2  ;;  %v7775_v46 = vpop.eup %7774 }
 0x589   :  { %7776 = vrcp.f32 %v1940_v0 }
 0x58a   :  { %v842_v17 = vpop.permute.xlu2 %841 }
 0x58b   :  { %v859_v34 = vmul.f32 %v842_v17, %v696_v2 }
 0x58d   :  { %v877_v48 = vadd.f32 %v9348_v36, %v859_v34  ;;  %v1425_v36 = vmul.f32 %v9486_v40, %v1262_v7  ;;  %v2574_v34 = vpop.f32.mrf.mxu1 }
 0x58e   :  { %v2500_v22 = vpop.f32.mrf.mxu0  ;;  %7778 = vrcp.f32 %v2574_v34 }
 0x58f   :  { %v893_v8 = vmax.f32 %v877_v48, 0.0  ;;  %v1447_v37 = vadd.f32 %v11690_v10, %v1425_v36  ;;  %v9563_v10 = vpop.f32.mrf.mxu3  ;;  %v7777_v17 = vpop.eup %7776  ;;  %7780 = vrcp.f32 %v2572_v55 }
 0x590   :  { %1520 = vrot.lane.b32.xlu2 %v1476_v50, %s8121_s17  ;;  %2640 = vperm.xlu1 %7479, %v7767_v33  }
 0x591   :  { %v909_v47 = vpack.c.bf16 %v893_v8, %v893_v8  ;;  %v1463_v1 = vmax.f32 %v1447_v37, 0.0 }
 0x592   :  { %v1967_v52 = vpop.permute.xlu2 %1966 }
 0x593   :  { %926 = vst.msk [vmem:[#allocation2 + $0x3c] sm:$0xf] %vm910_vm7, %v909_v47  ;;  %v1479_v40 = vpack.c.bf16 %v1463_v1, %v1463_v1  ;;  %v2044_v56 = vmul.f32 %v1967_v52, %v1859_v35 }
 0x594   :  { %v7779_v1 = vpop.eup %7778 }
 0x596   :  { %v2503_v42 = vpop.f32.mrf.mxu0 }
 0x597   :  { %v9572_v43 = vpop.f32.mrf.mxu3 }
 0x598   :  { %2645 = vperm.xlu2 %7478, %v7769_v62   ;;  %2655 = vperm.xlu1 %7479, %v7771_v12  }
 0x59a   :  { %v1503_v14 = vpop.permute.xlu2 %1502  ;;  %v1501_v58 = vpop.permute.xlu1 %1500 }
 0x59b   :  { %1548 = vst.msk [vmem:[#allocation2 + $0xc] sm:$0xf] %vm1544_vm8, %v1503_v14 }
 0x59c   :  { %1547 = vst.msk [vmem:[#allocation2 + $0x8] sm:$0xf] %vm1544_vm8, %v1501_v58 }
 0x59e   :  { %v2505_v52 = vpop.f32.mrf.mxu0 }
 0x59f   :  { %v9581_v7 = vpop.f32.mrf.mxu3 }
 0x5a0   :  { %2016 = vperm.xlu2 %7478, %v7773_v15  }
 0x5a2   :  { %v1509_v63 = vpop.permute.xlu2 %1508  ;;  %v1972_v27 = vpop.permute.xlu1 %1971 }
 0x5a3   :  { %1551 = vst.msk [vmem:[#allocation2 + $0x18] sm:$0xf] %vm1544_vm8, %v1509_v63  ;;  %v1505_v29 = vpop.permute.xlu0 %1504  ;;  %v2045_v2 = vmul.f32 %v1972_v27, %v9547_v5 }
 0x5a4   :  { %1549 = vst.msk [vmem:[#allocation2 + $0x10] sm:$0xf] %vm1544_vm8, %v1505_v29 }
 0x5a7   :  { %v1876_v29 = vpop.f32.mrf.mxu3 }
 0x5a8   :  { %1526 = vrot.lane.b32.xlu2 %v1479_v40, %s8121_s17 }
 0x5aa   :  { %v2606_v54 = vpop.permute.xlu2 %2605  ;;  %v1507_v45 = vpop.permute.xlu1 %1506 }
 0x5ab   :  { %v1511_v53 = vpop.permute.xlu0 %1510  ;;  %1550 = vst.msk [vmem:[#allocation2 + $0x14] sm:$0xf] %vm1544_vm8, %v1507_v45  ;;  %v2679_v3 = vmul.f32 %v2606_v54, %v2495_v61  ;;  %v2508_v54 = vpop.f32.mrf.mxu0 }
 0x5ac   :  { %1552 = vst.msk [vmem:[#allocation2 + $0x1c] sm:$0xf] %vm1544_vm8, %v1511_v53 }
 0x5b2   :  { %v9566_v4 = vpop.permute.xlu2 %2697  ;;  %v9568_v31 = vpop.permute.xlu1 %2063 }
 0x5b3   :  { %v2601_v20 = vpop.permute.xlu0 %2600  ;;  %v2701_v23 = vadd.f32 %v9566_v4, %v2679_v3  ;;  %v2066_v24 = vadd.f32 %v9568_v31, %v2044_v56  ;;  %v2067_v11 = vadd.f32 %v9568_v31, %v2045_v2  ;;  %v2510_v55 = vpop.f32.mrf.mxu0 }
 0x5b4   :  { %v2678_v28 = vmul.f32 %v2601_v20, %v2493_v49  ;;  %v1943_v49 = vpop.f32.mrf.mxu2 }
 0x5b5   :  { %v2717_v39 = vmax.f32 %v2701_v23, 0.0  ;;  %v2082_v44 = vmax.f32 %v2066_v24, 0.0  ;;  %v2083_v30 = vmax.f32 %v2067_v11, 0.0 }
 0x5b6   :  { %v2700_v16 = vadd.f32 %v9566_v4, %v2678_v28 }
 0x5b7   :  { %v2733_v25 = vpack.c.bf16 %v2717_v39, %v2717_v39  ;;  %v2098_v21 = vpack.c.bf16 %v2082_v44, %v2082_v44  ;;  %v2099_v50 = vpack.c.bf16 %v2083_v30, %v2083_v30 }
 0x5b8   :  { %v2716_v32 = vmax.f32 %v2700_v16, 0.0 }
 0x5b9   :  { %2766 = vrot.lane.b32.xlu1 %v2733_v25, %s8114_s11  ;;  %2130 = vrot.lane.b32.xlu2 %v2098_v21, %s8120_s0 }
 0x5ba   :  { %v2732_v57 = vpack.c.bf16 %v2716_v32, %v2716_v32  ;;  %v1982_v59 = vpop.permute.xlu2 %1981  ;;  %v1977_v51 = vpop.permute.xlu1 %1976 }
 0x5bb   :  { %v2621_v35 = vpop.permute.xlu0 %2620  ;;  %v2046_v6 = vmul.f32 %v1977_v51, %v1864_v18  ;;  %v2047_v40 = vmul.f32 %v1982_v59, %v9557_v38  ;;  %v1879_v38 = vpop.f32.mrf.mxu3 }
 0x5bc   :  { %2764 = vrot.lane.b32.xlu0 %v2732_v57, %s8114_s11  ;;  %v2682_v13 = vmul.f32 %v2621_v35, %v2503_v42  ;;  %v1945_v45 = vpop.f32.mrf.mxu2 }
 0x5bd   :  { %v2068_v26 = vadd.f32 %v9568_v31, %v2046_v6  ;;  %v2069_v41 = vadd.f32 %v9568_v31, %v2047_v40  ;;  %7782 = vrcp.f32 %v1945_v45 }
 0x5be   :  { %v2704_v18 = vadd.f32 %v9566_v4, %v2682_v13  ;;  %7784 = vrcp.f32 %v1943_v49  ;;  %v11691_v13 = vmov 1  }
 0x5bf   :  { %v2084_v33 = vmax.f32 %v2068_v26, 0.0  ;;  %v2085_v28 = vmax.f32 %v2069_v41, 0.0 }
 0x5c0   :  { %v2720_v63 = vmax.f32 %v2704_v18, 0.0 }
 0x5c1   :  { %2026 = vperm.xlu1 %7479, %v7775_v46   ;;  %2031 = vperm.xlu2 %7478, %v7777_v17   ;;  %v2100_v36 = vpack.c.bf16 %v2084_v33, %v2084_v33  ;;  %v2101_v0 = vpack.c.bf16 %v2085_v28, %v2085_v28 }
 0x5c2   :  { %v2616_v5 = vpop.permute.xlu2 %2615  ;;  %v2611_v48 = vpop.permute.xlu1 %2610  ;;  %v2736_v53 = vpack.c.bf16 %v2720_v63, %v2720_v63 }
 0x5c3   :  { %v1517_v8 = vpop.permute.xlu0 %1516  ;;  %v2680_v47 = vmul.f32 %v2611_v48, %v2498_v60  ;;  %v2681_v12 = vmul.f32 %v2616_v5, %v2500_v22  ;;  %v7781_v22 = vpop.eup %7780 }
 0x5c4   :  { %1555 = vst.msk [vmem:[#allocation2 + $0x28] sm:$0xf] %vm1544_vm8, %v1517_v8  ;;  %2132 = vrot.lane.b32.xlu0 %v2099_v50, %s8120_s0  ;;  %v7783_v16 = vpop.eup %7782  ;;  %v9603_v11 = vpop.f32.mrf.mxu3 }
 0x5c5   :  { %v2702_v62 = vadd.f32 %v9566_v4, %v2680_v47  ;;  %v2703_v61 = vadd.f32 %v9566_v4, %v2681_v12  ;;  %v7785_v2 = vpop.eup %7784  ;;  %v2513_v47 = vpop.f32.mrf.mxu0 }
 0x5c7   :  { %v2718_v14 = vmax.f32 %v2702_v62, 0.0  ;;  %v2719_v60 = vmax.f32 %v2703_v61, 0.0 }
 0x5c9   :  { %v2734_v58 = vpack.c.bf16 %v2718_v14, %v2718_v14  ;;  %2134 = vrot.lane.b32.xlu1 %v2100_v36, %s8120_s0  ;;  %v2735_v56 = vpack.c.bf16 %v2719_v60, %v2719_v60 }
 0x5ca   :  { %v1992_v37 = vpop.permute.xlu2 %1991  ;;  %v1513_v15 = vpop.permute.xlu1 %1512 }
 0x5cb   :  { %v2636_v27 = vpop.permute.xlu0 %2635  ;;  %1553 = vst.msk [vmem:[#allocation2 + $0x20] sm:$0xf] %vm1544_vm8, %v1513_v15  ;;  %2768 = vrot.lane.b32.xlu2 %v2734_v58, %s8114_s11  ;;  %v2049_v23 = vmul.f32 %v1992_v37, %v9572_v43 }
 0x5cc   :  { %2665 = vperm.xlu0 %7477, %v7779_v1   ;;  %v2685_v57 = vmul.f32 %v2636_v27, %v2510_v55  ;;  %v1884_v33 = vpop.f32.mrf.mxu3 }
 0x5cd   :  { %v2071_v44 = vadd.f32 %v9568_v31, %v2049_v23  ;;  %v2515_v60 = vpop.f32.mrf.mxu0 }
 0x5ce   :  { %v2707_v6 = vadd.f32 %v9566_v4, %v2685_v57 }
 0x5cf   :  { %v2087_v32 = vmax.f32 %v2071_v44, 0.0 }
 0x5d0   :  { %v2723_v5 = vmax.f32 %v2707_v6, 0.0 }
 0x5d1   :  { %2772 = vrot.lane.b32.xlu1 %v2736_v53, %s8114_s11  ;;  %v2103_v35 = vpack.c.bf16 %v2087_v32, %v2087_v32 }
 0x5d2   :  { %v1515_v3 = vpop.permute.xlu2 %1514  ;;  %v1987_v20 = vpop.permute.xlu1 %1986  ;;  %v2739_v49 = vpack.c.bf16 %v2723_v5, %v2723_v5  ;;  %v7032_v5 = vld [vmem:[%s11504_s2 + $0x74] sm:$0xf0] }
 0x5d3   :  { %1554 = vst.msk [vmem:[#allocation2 + $0x24] sm:$0xf] %vm1544_vm8, %v1515_v3  ;;  %v2007_v24 = vpop.permute.xlu0 %2006  ;;  %2660 = vperm.xlu2 %7478, %v7781_v22   ;;  %v2048_v39 = vmul.f32 %v1987_v20, %v9563_v10 }
 0x5d4   :  { %2770 = vrot.lane.b32.xlu0 %v2735_v56, %s8114_s11  ;;  %v2052_v58 = vmul.f32 %v2007_v24, %v1879_v38 }
 0x5d5   :  { %v2070_v25 = vadd.f32 %v9568_v31, %v2048_v39 }
 0x5d6   :  { %v2074_v1 = vadd.f32 %v9568_v31, %v2052_v58 }
 0x5d7   :  { %v2086_v42 = vmax.f32 %v2070_v25, 0.0 }
 0x5d8   :  { %v2090_v56 = vmax.f32 %v2074_v1, 0.0 }
 0x5d9   :  { %2041 = vperm.xlu1 %7479, %v7783_v16   ;;  %v2102_v26 = vpack.c.bf16 %v2086_v42, %v2086_v42  ;;  %v7033_v42 = vld [vmem:[%s11504_s2 + $0x84] sm:$0xf] }
 0x5da   :  { %v2002_v43 = vpop.permute.xlu2 %2001  ;;  %v2626_v21 = vpop.permute.xlu1 %2625  ;;  %v2106_v23 = vpack.c.bf16 %v2090_v56, %v2090_v56  ;;  %v7028_v56 = vld [vmem:[%s11504_s2 + $0x54] sm:$0xf0] }
 0x5db   :  { %v1523_v59 = vpop.permute.xlu0 %1522  ;;  %v2683_v51 = vmul.f32 %v2626_v21, %v2505_v52  ;;  %2136 = vrot.lane.b32.xlu2 %v2101_v0, %s8120_s0  ;;  %v2051_v8 = vmul.f32 %v2002_v43, %v1876_v29  ;;  %v2577_v52 = vpop.f32.mrf.mxu1 }
 0x5dc   :  { %1558 = vst.msk [vmem:[#allocation2 + $0x34] sm:$0xf] %vm1544_vm8, %v1523_v59  ;;  %2036 = vperm.xlu0 %7477, %v7785_v2   ;;  %7786 = vrcp.f32 %v2577_v52  ;;  %v1886_v29 = vpop.f32.mrf.mxu3  ;;  %v2518_v2 = vpop.f32.mrf.mxu0 }
 0x5dd   :  { %v2705_v10 = vadd.f32 %v9566_v4, %v2683_v51  ;;  %v2073_v18 = vadd.f32 %v9568_v31, %v2051_v8  ;;  %v6849_v51 = vld [vmem:[%s11504_s2 + $0x80] sm:$0xf]  ;;  %v7030_v8 = vld [vmem:[%s11504_s2 + $0x64] sm:$0xf0] }
 0x5df   :  { %v2721_v30 = vmax.f32 %v2705_v10, 0.0  ;;  %v2089_v15 = vmax.f32 %v2073_v18, 0.0  ;;  %v7034_v10 = vld [vmem:[%s11504_s2 + $0x84] sm:$0xf0] }
 0x5e0   :  { %v6850_v6 = vor.u32 %v7034_v10, %v6849_v51  ;;  %v6801_v10 = vld [vmem:[%s11504_s2 + $0x20] sm:$0xf] }
 0x5e1   :  { %v2737_v46 = vpack.c.bf16 %v2721_v30, %v2721_v30  ;;  %2140 = vrot.lane.b32.xlu1 %v2103_v35, %s8120_s0  ;;  %v2105_v53 = vpack.c.bf16 %v2089_v15, %v2089_v15  ;;  %v6851_v30 = vld [vmem:[%s11504_s2 + $0x88] sm:$0xf0] }
 0x5e2   :  { %v2631_v17 = vpop.permute.xlu2 %2630  ;;  %v1519_v34 = vpop.permute.xlu1 %1518  ;;  %2989 = vmatpush.bf16.msra.mxu3 %v6850_v6  ;;  %v6803_v6 = vld [vmem:[%s11504_s2 + $0x28] sm:$0xf0] }
 0x5e3   :  { %v2684_v48 = vmul.f32 %v2631_v17, %v2508_v54  ;;  %1556 = vst.msk [vmem:[#allocation2 + $0x2c] sm:$0xf] %vm1544_vm8, %v1519_v34  ;;  %2774 = vrot.lane.b32.xlu2 %v2737_v46, %s8114_s11  ;;  %v7787_v27 = vpop.eup %7786  ;;  %v2022_v40 = vpop.permute.xlu0 %2021  ;;  %v6854_v46 = vor.u32 %v7033_v42, %v6851_v30  ;;  %v6841_v34 = vld [vmem:[%s11504_s2 + $0x70] sm:$0xf]  ;;  %v7022_v42 = vld [vmem:[%s11504_s2 + $0x24] sm:$0xf0] }
 0x5e4   :  { %2138 = vrot.lane.b32.xlu0 %v2102_v26, %s8120_s0  ;;  %v2579_v54 = vpop.f32.mrf.mxu1  ;;  %v2520_v58 = vpop.f32.mrf.mxu0 }
 0x5e5   :  { %v2706_v50 = vadd.f32 %v9566_v4, %v2684_v48  ;;  %7480 = vset.pattern.permute.xlu0 %v11691_v13  ;;  %7788 = vrcp.f32 %v2579_v54  ;;  %v7031_v48 = vld [vmem:[%s11504_s2 + $0x74] sm:$0xf]  ;;  %3038 = vmatpush.bf16.msra.mxu2 %v6854_v46  ;;  %v6802_v46 = vor.u32 %v7022_v42, %v6801_v10 }
 0x5e7   :  { %v2722_v62 = vmax.f32 %v2706_v50, 0.0  ;;  %v6842_v50 = vor.u32 %v7032_v5, %v6841_v34 }
 0x5e9   :  { %v2738_v12 = vpack.c.bf16 %v2722_v62, %v2722_v62  ;;  %2778 = vrot.lane.b32.xlu1 %v2739_v49, %s8114_s11  ;;  %v7029_v49 = vld [vmem:[%s11504_s2 + $0x64] sm:$0xf]  ;;  %v6835_v62 = vld [vmem:[%s11504_s2 + $0x68] sm:$0xf0]  ;;  %2990 = vmatpush.bf16.msra.mxu3 %v6842_v50  ;;  %v7020_v50 = vld [vmem:[%s11504_s2 + $0x14] sm:$0xf0] }
 0x5ea   :  { %v1521_v36 = vpop.permute.xlu2 %1520  ;;  %v1997_v14 = vpop.permute.xlu1 %1996 }
 0x5eb   :  { %1557 = vst.msk [vmem:[#allocation2 + $0x30] sm:$0xf] %vm1544_vm8, %v1521_v36  ;;  %v2050_v61 = vmul.f32 %v1997_v14, %v9581_v7  ;;  %v2055_v7 = vmul.f32 %v2022_v40, %v1886_v29  ;;  %v7789_v39 = vpop.eup %7788 }
 0x5ec   :  { %2776 = vrot.lane.b32.xlu0 %v2738_v12, %s8114_s11  ;;  %v2651_v12 = vpop.permute.xlu0 %2650 }
 0x5ed   :  { %v2072_v37 = vadd.f32 %v9568_v31, %v2050_v61  ;;  %v2077_v24 = vadd.f32 %v9568_v31, %v2055_v7  ;;  %v2688_v15 = vmul.f32 %v2651_v12, %v2518_v2 }
 0x5ef   :  { %v2088_v63 = vmax.f32 %v2072_v37, 0.0  ;;  %v2093_v55 = vmax.f32 %v2077_v24, 0.0  ;;  %v6838_v37 = vor.u32 %v7029_v49, %v6835_v62  ;;  %v2710_v29 = vadd.f32 %v9566_v4, %v2688_v15  ;;  %v2523_v62 = vpop.f32.mrf.mxu0 }
 0x5f1   :  { %v2104_v45 = vpack.c.bf16 %v2088_v63, %v2088_v63  ;;  %2670 = vperm.xlu1 %7479, %v7787_v27   ;;  %v2109_v43 = vpack.c.bf16 %v2093_v55, %v2093_v55 }
 0x5f2   :  { %v2646_v41 = vpop.permute.xlu2 %2645  ;;  %v2012_v22 = vpop.permute.xlu1 %2011 }
 0x5f3   :  { %v2687_v3 = vmul.f32 %v2646_v41, %v2515_v60  ;;  %2142 = vrot.lane.b32.xlu2 %v2104_v45, %s8120_s0  ;;  %v2053_v26 = vmul.f32 %v2012_v22, %v9603_v11  ;;  %v6843_v11 = vld [vmem:[%s11504_s2 + $0x78] sm:$0xf0]  ;;  %v9672_v60 = vpop.f32.mrf.mxu3  ;;  %v6825_v22 = vld [vmem:[%s11504_s2 + $0x50] sm:$0xf] }
 0x5f4   :  { %2144 = vrot.lane.b32.xlu0 %v2105_v53, %s8120_s0  ;;  %v6846_v52 = vor.u32 %v7031_v48, %v6843_v11  ;;  %v2726_v53 = vmax.f32 %v2710_v29, 0.0  ;;  %v6826_v7 = vor.u32 %v7028_v56, %v6825_v22  ;;  %v6793_v48 = vld [vmem:[%s11504_s2 + $0x10] sm:$0xf]  ;;  %v7019_v11 = vld [vmem:[%s11504_s2 + $0x14] sm:$0xf] }
 0x5f5   :  { %v2709_v20 = vadd.f32 %v9566_v4, %v2687_v3  ;;  %v2075_v18 = vadd.f32 %v9568_v31, %v2053_v26  ;;  %v7027_v3 = vld [vmem:[%s11504_s2 + $0x54] sm:$0xf] }
 0x5f6   :  { %3039 = vmatpush.bf16.msra.mxu2 %v6846_v52  ;;  %v2742_v55 = vpack.c.bf16 %v2726_v53, %v2726_v53  ;;  %v11692_v52 = vmov 1065369472  }
 0x5f7   :  { %v2725_v38 = vmax.f32 %v2709_v20, 0.0  ;;  %v2091_v63 = vmax.f32 %v2075_v18, 0.0  ;;  %v6827_v20 = vld [vmem:[%s11504_s2 + $0x58] sm:$0xf0] }
 0x5f8   :  { %v6830_v24 = vor.u32 %v7027_v3, %v6827_v20 }
 0x5f9   :  { %v2741_v28 = vpack.c.bf16 %v2725_v38, %v2725_v38  ;;  %2146 = vrot.lane.b32.xlu1 %v2106_v23, %s8120_s0  ;;  %v2107_v54 = vpack.c.bf16 %v2091_v63, %v2091_v63  ;;  %v6817_v23 = vld [vmem:[%s11504_s2 + $0x40] sm:$0xf]  ;;  %v7026_v38 = vld [vmem:[%s11504_s2 + $0x44] sm:$0xf0] }
 0x5fa   :  { %v2017_v44 = vpop.permute.xlu2 %2016  ;;  %v1525_v16 = vpop.permute.xlu1 %1524  ;;  %3040 = vmatpush.bf16.msra.mxu2 %v6838_v37 }
 0x5fb   :  { %v2054_v0 = vmul.f32 %v2017_v44, %v1884_v33  ;;  %1559 = vst.msk [vmem:[#allocation2 + $0x38] sm:$0xf] %vm1544_vm8, %v1525_v16  ;;  %2675 = vperm.xlu2 %7478, %v7789_v39   ;;  %v6833_v33 = vld [vmem:[%s11504_s2 + $0x60] sm:$0xf]  ;;  %v6819_v39 = vld [vmem:[%s11504_s2 + $0x48] sm:$0xf0]  ;;  %v6818_v44 = vor.u32 %v7026_v38, %v6817_v23 }
 0x5fc   :  { %2782 = vrot.lane.b32.xlu0 %v2741_v28, %s8114_s11  ;;  %v6834_v14 = vor.u32 %v7030_v8, %v6833_v33  ;;  %v7025_v28 = vld [vmem:[%s11504_s2 + $0x44] sm:$0xf]  ;;  %v6794_v33 = vor.u32 %v7020_v50, %v6793_v48  ;;  %v6795_v8 = vld [vmem:[%s11504_s2 + $0x18] sm:$0xf0] }
 0x5fd   :  { %v2076_v25 = vadd.f32 %v9568_v31, %v2054_v0  ;;  %v6822_v16 = vor.u32 %v7025_v28, %v6819_v39  ;;  %v6809_v0 = vld [vmem:[%s11504_s2 + $0x30] sm:$0xf] }
 0x5fe   :  { %2991 = vmatpush.bf16.msra.mxu3 %v6834_v14  ;;  %3041 = vmatpush.bf16.msra.mxu2 %v6830_v24 }
 0x5ff   :  { %v2092_v21 = vmax.f32 %v2076_v25, 0.0  ;;  %v7024_v25 = vld [vmem:[%s11504_s2 + $0x34] sm:$0xf0] }
 0x601   :  { %v2108_v32 = vpack.c.bf16 %v2092_v21, %v2092_v21  ;;  %2152 = vrot.lane.b32.xlu1 %v2109_v43, %s8120_s0  ;;  %v7023_v43 = vld [vmem:[%s11504_s2 + $0x34] sm:$0xf]  ;;  %v1891_v21 = vpop.f32.mrf.mxu3 }
 0x602   :  { %v1527_v57 = vpop.permute.xlu2 %1526  ;;  %v2641_v59 = vpop.permute.xlu1 %2640  ;;  %2992 = vmatpush.bf16.msra.mxu3 %v6826_v7  ;;  %3042 = vmatpush.bf16.msra.mxu2 %v6822_v16 }
 0x603   :  { %1560 = vst.msk [vmem:[#allocation2 + $0x3c] sm:$0xf] %vm1544_vm8, %v1527_v57  ;;  %v2686_v35 = vmul.f32 %v2641_v59, %v2513_v47  ;;  %v6811_v57 = vld [vmem:[%s11504_s2 + $0x38] sm:$0xf0] }
 0x604   :  { %2150 = vrot.lane.b32.xlu0 %v2108_v32, %s8120_s0  ;;  %v6810_v32 = vor.u32 %v7024_v25, %v6809_v0  ;;  %v6814_v51 = vor.u32 %v7023_v43, %v6811_v57 }
 0x605   :  { %v2708_v17 = vadd.f32 %v9566_v4, %v2686_v35  ;;  %v7021_v35 = vld [vmem:[%s11504_s2 + $0x24] sm:$0xf] }
 0x606   :  { %2993 = vmatpush.bf16.msra.mxu3 %v6818_v44  ;;  %3043 = vmatpush.bf16.msra.mxu2 %v6814_v51 }
 0x607   :  { %v2724_v47 = vmax.f32 %v2708_v17, 0.0  ;;  %v6806_v17 = vor.u32 %v7021_v35, %v6803_v6 }
 0x609   :  { %v2740_v36 = vpack.c.bf16 %v2724_v47, %v2724_v47  ;;  %v6798_v47 = vor.u32 %v7019_v11, %v6795_v8  ;;  %v1894_v22 = vpop.f32.mrf.mxu3 }
 0x60a   :  { %v2656_v61 = vpop.permute.xlu1 %2655  ;;  %2994 = vmatpush.bf16.msra.mxu3 %v6810_v32  ;;  %3044 = vmatpush.bf16.msra.mxu2 %v6806_v17 }
 0x60b   :  { %v2689_v1 = vmul.f32 %v2656_v61, %v2520_v58  ;;  %2780 = vrot.lane.b32.xlu2 %v2740_v36, %s8114_s11 }
 0x60d   :  { %v2711_v27 = vadd.f32 %v9566_v4, %v2689_v1 }
 0x60e   :  { %2995 = vmatpush.bf16.msra.mxu3 %v6802_v46  ;;  %3045 = vmatpush.bf16.msra.mxu2 %v6798_v47 }
 0x60f   :  { %v2727_v40 = vmax.f32 %v2711_v27, 0.0 }
 0x611   :  { %v2743_v45 = vpack.c.bf16 %v2727_v40, %v2727_v40  ;;  %v1896_v28 = vpop.f32.mrf.mxu3 }
 0x612   :  { %2996 = vmatpush.bf16.msra.mxu3 %v6794_v33  ;;  %4130 = vmatpush.bf16.msrb.mxu2 %v11692_v52 }
 0x613   :  { %v2131_v41 = vpop.permute.xlu2 %2130  ;;  %2148 = vrot.lane.b32.xlu2 %v2107_v54, %s8120_s0  ;;  %2786 = vrot.lane.b32.xlu0 %v2743_v45, %s8114_s11  ;;  %v2525_v54 = vpop.f32.mrf.mxu0 }
 0x614   :  { %2179 = vst.msk [vmem:[#allocation2] sm:$0xf] %vm2178_vm9, %v2131_v41 }
 0x616   :  { %3565 = vmatpush.bf16.msrb.mxu3 %v11692_v52  ;;  %4131 = vmatpush.bf16.msrb.mxu2 %v11692_v52 }
 0x61a   :  { %3566 = vmatpush.bf16.msrb.mxu3 %v11692_v52  ;;  %4132 = vmatpush.bf16.msrb.mxu2 %v11692_v52 }
 0x61b   :  { %v2032_v2 = vpop.permute.xlu2 %2031  ;;  %2784 = vrot.lane.b32.xlu2 %v2742_v55, %s8114_s11  ;;  %v2528_v38 = vpop.f32.mrf.mxu0 }
 0x61c   :  { %v2057_v59 = vmul.f32 %v2032_v2, %v1891_v21 }
 0x61e   :  { %v2079_v30 = vadd.f32 %v9568_v31, %v2057_v59  ;;  %3567 = vmatpush.bf16.msrb.mxu3 %v11692_v52  ;;  %4133 = vmatpush.bf16.msrb.mxu2 %v11692_v52 }
 0x620   :  { %v2095_v26 = vmax.f32 %v2079_v30, 0.0 }
 0x622   :  { %v2111_v34 = vpack.c.bf16 %v2095_v26, %v2095_v26  ;;  %3568 = vmatpush.bf16.msrb.mxu3 %v11692_v52  ;;  %4134 = vmatpush.bf16.msrb.mxu2 %v11692_v52 }
 0x623   :  { %v2530_v51 = vpop.f32.mrf.mxu0 }
 0x624   :  { %2156 = vrot.lane.b32.xlu2 %v2111_v34, %s8120_s0 }
 0x625   :  { %v2769_v5 = vpop.permute.xlu2 %2768 }
 0x626   :  { %3569 = vmatpush.bf16.msrb.mxu3 %v11692_v52  ;;  %4135 = vmatpush.bf16.msrb.mxu2 %v11692_v52 }
 0x62a   :  { %3570 = vmatpush.bf16.msrb.mxu3 %v11692_v52  ;;  %4136 = vmatpush.bf16.msrb.mxu2 %v11692_v52 }
 0x62b   :  { %v2767_v49 = vpop.permute.xlu1 %2766 }
 0x62d   :  { %v2661_v12 = vpop.permute.xlu2 %2660 }
 0x62e   :  { %v2765_v18 = vpop.permute.xlu0 %2764  ;;  %v2690_v36 = vmul.f32 %v2661_v12, %v2523_v62  ;;  %3571 = vmatpush.bf16.msrb.mxu3 %v11692_v52  ;;  %4137 = vmatpush.bf16.msrb.mxu2 %v11692_v52 }
 0x62f   :  { %2813 = vst.msk [vmem:[#allocation2] sm:$0xf] %vm2812_vm10, %v2765_v18 }
 0x630   :  { %v2712_v14 = vadd.f32 %v9566_v4, %v2690_v36 }
 0x632   :  { %v2728_v58 = vmax.f32 %v2712_v14, 0.0  ;;  %3572 = vmatpush.bf16.msrb.mxu3 %v11692_v52 }
 0x633   :  { %v2027_v61 = vpop.permute.xlu1 %2026 }
 0x634   :  { %v2744_v37 = vpack.c.bf16 %v2728_v58, %v2728_v58  ;;  %v2056_v15 = vmul.f32 %v2027_v61, %v9672_v60 }
 0x635   :  { %v2137_v1 = vpop.permute.xlu2 %2136 }
 0x636   :  { %v2078_v63 = vadd.f32 %v9568_v31, %v2056_v15  ;;  %v2133_v27 = vpop.permute.xlu0 %2132  ;;  %2182 = vst.msk [vmem:[#allocation2 + $0xc] sm:$0xf] %vm2178_vm9, %v2137_v1  ;;  %2788 = vrot.lane.b32.xlu0 %v2744_v37, %s8114_s11 }
 0x637   :  { %2180 = vst.msk [vmem:[#allocation2 + $0x4] sm:$0xf] %vm2178_vm9, %v2133_v27 }
 0x638   :  { %v2094_v29 = vmax.f32 %v2078_v63, 0.0  ;;  %2814 = vst.msk [vmem:[#allocation2 + $0x4] sm:$0xf] %vm2812_vm10, %v2767_v49 }
 0x63a   :  { %v2110_v40 = vpack.c.bf16 %v2094_v29, %v2094_v29 }
 0x63b   :  { %v2135_v60 = vpop.permute.xlu1 %2134 }
 0x63c   :  { %2181 = vst.msk [vmem:[#allocation2 + $0x8] sm:$0xf] %vm2178_vm9, %v2135_v60  ;;  %2154 = vrot.lane.b32.xlu1 %v2110_v40, %s8120_s0 }
 0x63d   :  { %2815 = vst.msk [vmem:[#allocation2 + $0x8] sm:$0xf] %vm2812_vm10, %v2769_v5  ;;  %v2775_v23 = vpop.permute.xlu2 %2774 }
 0x63e   :  { %v2666_v45 = vpop.permute.xlu0 %2665 }
 0x63f   :  { %v2691_v53 = vmul.f32 %v2666_v45, %v2525_v54  ;;  %v7011_v41 = vld [vmem:[#allocation2] sm:$0xff] }
 0x640   :  { %2997 = vmatmul.bf16.vlgmr.msra.gmra.mxu3 %v7011_v41  ;;  %3046 = vmatmul.bf16.vlgmr.msra.gmra.mxu2 %v7011_v41 }
 0x641   :  { %v2713_v56 = vadd.f32 %v9566_v4, %v2691_v53  ;;  %4763 = vmatpush.bf16.msra.mxu3 %v11692_v52  ;;  %5396 = vmatpush.bf16.msra.mxu2 %v11692_v52 }
 0x643   :  { %v2729_v7 = vmax.f32 %v2713_v56, 0.0  ;;  %v2773_v3 = vpop.permute.xlu1 %2772 }
 0x645   :  { %v2745_v20 = vpack.c.bf16 %v2729_v7, %v2729_v7  ;;  %4764 = vmatpush.bf16.msra.mxu3 %v11692_v52  ;;  %5397 = vmatpush.bf16.msra.mxu2 %v11692_v52 }
 0x646   :  { %v2771_v24 = vpop.permute.xlu0 %2770 }
 0x647   :  { %2816 = vst.msk [vmem:[#allocation2 + $0xc] sm:$0xf] %vm2812_vm10, %v2771_v24  ;;  %2790 = vrot.lane.b32.xlu1 %v2745_v20, %s8114_s11  ;;  %v11693_v24 = vmov 3  }
 0x649   :  { %4765 = vmatpush.bf16.msra.mxu3 %v11692_v52  ;;  %5398 = vmatpush.bf16.msra.mxu2 %v11692_v52 }
 0x64b   :  { %v2042_v39 = vpop.permute.xlu1 %2041 }
 0x64c   :  { %v2059_v44 = vmul.f32 %v2042_v39, %v1896_v28 }
 0x64d   :  { %v2143_v16 = vpop.permute.xlu2 %2142  ;;  %4766 = vmatpush.bf16.msra.mxu3 %v11692_v52  ;;  %5399 = vmatpush.bf16.msra.mxu2 %v11692_v52 }
 0x64e   :  { %v2081_v55 = vadd.f32 %v9568_v31, %v2059_v44  ;;  %v2037_v0 = vpop.permute.xlu0 %2036  ;;  %2185 = vst.msk [vmem:[#allocation2 + $0x18] sm:$0xf] %vm2178_vm9, %v2143_v16  ;;  %v7012_v25 = vld [vmem:[#allocation2 + $0x8] sm:$0xff] }
 0x64f   :  { %v2058_v43 = vmul.f32 %v2037_v0, %v1894_v22 }
 0x650   :  { %v2097_v21 = vmax.f32 %v2081_v55, 0.0  ;;  %3002 = vmatmul.bf16.gmra.mxu3 %v7012_v25  ;;  %3051 = vmatmul.bf16.gmra.mxu2 %v7012_v25 }
 0x651   :  { %v2080_v2 = vadd.f32 %v9568_v31, %v2058_v43  ;;  %4767 = vmatpush.bf16.msra.mxu3 %v11692_v52  ;;  %5400 = vmatpush.bf16.msra.mxu2 %v11692_v52 }
 0x652   :  { %v2113_v32 = vpack.c.bf16 %v2097_v21, %v2097_v21 }
 0x653   :  { %v2096_v57 = vmax.f32 %v2080_v2, 0.0  ;;  %v2141_v59 = vpop.permute.xlu1 %2140 }
 0x654   :  { %2184 = vst.msk [vmem:[#allocation2 + $0x14] sm:$0xf] %vm2178_vm9, %v2141_v59  ;;  %2160 = vrot.lane.b32.xlu0 %v2113_v32, %s8120_s0 }
 0x655   :  { %v2112_v10 = vpack.c.bf16 %v2096_v57, %v2096_v57  ;;  %2818 = vst.msk [vmem:[#allocation2 + $0x14] sm:$0xf] %vm2812_vm10, %v2775_v23  ;;  %v2676_v42 = vpop.permute.xlu2 %2675  ;;  %4768 = vmatpush.bf16.msra.mxu3 %v11692_v52  ;;  %5401 = vmatpush.bf16.msra.mxu2 %v11692_v52 }
 0x656   :  { %v2139_v35 = vpop.permute.xlu0 %2138  ;;  %v2693_v31 = vmul.f32 %v2676_v42, %v2530_v51 }
 0x657   :  { %2183 = vst.msk [vmem:[#allocation2 + $0x10] sm:$0xf] %vm2178_vm9, %v2139_v35  ;;  %2158 = vrot.lane.b32.xlu2 %v2112_v10, %s8120_s0 }
 0x658   :  { %2817 = vst.msk [vmem:[#allocation2 + $0x10] sm:$0xf] %vm2812_vm10, %v2773_v3  ;;  %v2715_v6 = vadd.f32 %v9566_v4, %v2693_v31 }
 0x659   :  { %4769 = vmatpush.bf16.msra.mxu3 %v11692_v52  ;;  %5402 = vmatpush.bf16.msra.mxu2 %v11692_v52 }
 0x65a   :  { %v2731_v30 = vmax.f32 %v2715_v6, 0.0 }
 0x65b   :  { %v2779_v46 = vpop.permute.xlu1 %2778 }
 0x65c   :  { %v2747_v26 = vpack.c.bf16 %v2731_v30, %v2731_v30 }
 0x65d   :  { %4770 = vmatpush.bf16.msra.mxu3 %v11692_v52  ;;  %5403 = vmatpush.bf16.msra.mxu2 %v11692_v52 }
 0x65e   :  { %v2777_v17 = vpop.permute.xlu0 %2776 }
 0x65f   :  { %2819 = vst.msk [vmem:[#allocation2 + $0x18] sm:$0xf] %vm2812_vm10, %v2777_v17  ;;  %2794 = vrot.lane.b32.xlu2 %v2747_v26, %s8114_s11  ;;  %v7013_v34 = vld [vmem:[#allocation2 + $0x10] sm:$0xff] }
 0x660   :  { %3007 = vmatmul.bf16.gmra.mxu3 %v7013_v34  ;;  %3056 = vmatmul.bf16.gmra.mxu2 %v7013_v34 }
 0x663   :  { %v2671_v5 = vpop.permute.xlu1 %2670 }
 0x664   :  { %v2692_v48 = vmul.f32 %v2671_v5, %v2528_v38 }
 0x665   :  { %v2781_v50 = vpop.permute.xlu2 %2780 }
 0x666   :  { %v2714_v11 = vadd.f32 %v9566_v4, %v2692_v48  ;;  %v2145_v33 = vpop.permute.xlu0 %2144 }
 0x667   :  { %2186 = vst.msk [vmem:[#allocation2 + $0x1c] sm:$0xf] %vm2178_vm9, %v2145_v33 }
 0x668   :  { %v2730_v8 = vmax.f32 %v2714_v11, 0.0  ;;  %2820 = vst.msk [vmem:[#allocation2 + $0x1c] sm:$0xf] %vm2812_vm10, %v2779_v46 }
 0x66a   :  { %v2746_v47 = vpack.c.bf16 %v2730_v8, %v2730_v8 }
 0x66b   :  { %v2147_v49 = vpop.permute.xlu1 %2146 }
 0x66c   :  { %2187 = vst.msk [vmem:[#allocation2 + $0x20] sm:$0xf] %vm2178_vm9, %v2147_v49  ;;  %2792 = vrot.lane.b32.xlu1 %v2746_v47, %s8114_s11 }
 0x66d   :  { %2821 = vst.msk [vmem:[#allocation2 + $0x20] sm:$0xf] %vm2812_vm10, %v2781_v50  ;;  %v2149_v62 = vpop.permute.xlu2 %2148 }
 0x66e   :  { %v2783_v12 = vpop.permute.xlu0 %2782  ;;  %2188 = vst.msk [vmem:[#allocation2 + $0x24] sm:$0xf] %vm2178_vm9, %v2149_v62 }
 0x66f   :  { %2822 = vst.msk [vmem:[#allocation2 + $0x24] sm:$0xf] %vm2812_vm10, %v2783_v12  ;;  %v7014_v4 = vld [vmem:[#allocation2 + $0x18] sm:$0xff] }
 0x670   :  { %3012 = vmatmul.bf16.gmra.mxu3 %v7014_v4  ;;  %3061 = vmatmul.bf16.gmra.mxu2 %v7014_v4 }
 0x673   :  { %v2153_v18 = vpop.permute.xlu1 %2152 }
 0x674   :  { %2190 = vst.msk [vmem:[#allocation2 + $0x2c] sm:$0xf] %vm2178_vm9, %v2153_v18 }
 0x675   :  { %v2785_v36 = vpop.permute.xlu2 %2784 }
 0x676   :  { %v2151_v14 = vpop.permute.xlu0 %2150  ;;  %v7015_v61 = vld [vmem:[#allocation2 + $0x20] sm:$0xff] }
 0x677   :  { %2189 = vst.msk [vmem:[#allocation2 + $0x28] sm:$0xf] %vm2178_vm9, %v2151_v14 }
 0x678   :  { %2823 = vst.msk [vmem:[#allocation2 + $0x28] sm:$0xf] %vm2812_vm10, %v2785_v36 }
 0x67e   :  { %v2157_v58 = vpop.permute.xlu2 %2156 }
 0x67f   :  { %2192 = vst.msk [vmem:[#allocation2 + $0x34] sm:$0xf] %vm2178_vm9, %v2157_v58 }
 0x680   :  { %3017 = vmatmul.bf16.gmra.mxu3 %v7015_v61  ;;  %3066 = vmatmul.bf16.gmra.mxu2 %v7015_v61 }
 0x685   :  { %v2787_v37 = vpop.permute.xlu0 %2786 }
 0x686   :  { %2824 = vst.msk [vmem:[#allocation2 + $0x2c] sm:$0xf] %vm2812_vm10, %v2787_v37 }
 0x68d   :  { %v7016_v15 = vld [vmem:[#allocation2 + $0x28] sm:$0xff] }
 0x690   :  { %3022 = vmatmul.bf16.gmra.mxu3 %v7016_v15  ;;  %3071 = vmatmul.bf16.gmra.mxu2 %v7016_v15 }
 0x6a8   :  { %v2789_v63 = vpop.permute.xlu0 %2788 }
 0x6ae   :  { %v2155_v1 = vpop.permute.xlu1 %2154 }
 0x6af   :  { %2191 = vst.msk [vmem:[#allocation2 + $0x30] sm:$0xf] %vm2178_vm9, %v2155_v1 }
 0x6b0   :  { %2825 = vst.msk [vmem:[#allocation2 + $0x30] sm:$0xf] %vm2812_vm10, %v2789_v63 }
 0x6b1   :  { %v2159_v27 = vpop.permute.xlu2 %2158 }
 0x6b2   :  { %2193 = vst.msk [vmem:[#allocation2 + $0x38] sm:$0xf] %vm2178_vm9, %v2159_v27 }
 0x6b9   :  { %v2791_v29 = vpop.permute.xlu1 %2790  ;;  %v2795_v53 = vpop.permute.xlu2 %2794 }
 0x6ba   :  { %2826 = vst.msk [vmem:[#allocation2 + $0x34] sm:$0xf] %vm2812_vm10, %v2791_v29 }
 0x6c1   :  { %v7017_v40 = vld [vmem:[#allocation2 + $0x30] sm:$0xff] }
 0x6c2   :  { %3027 = vmatmul.bf16.gmra.mxu3 %v7017_v40  ;;  %3076 = vmatmul.bf16.gmra.mxu2 %v7017_v40 }
 0x6c3   :  { %v2998_v60 = vpop.f32.mrf.mxu3  ;;  %v9815_v54 = vpop.f32.mrf.mxu2 }
 0x6c4   :  { %3204 = vperm.xlu1 %7479, %v9815_v54   ;;  %3119 = vrot.lane.b32.xlu0 %v9815_v54, %s8117_s16  ;;  %v3087_v38 = vpack.c.bf16 %v2998_v60, %v2998_v60 }
 0x6c6   :  { %v2161_v45 = vpop.permute.xlu0 %2160  ;;  %v3484_v44 = vunpack.c.l.b16 %v3087_v38 }
 0x6c7   :  { %2194 = vst.msk [vmem:[#allocation2 + $0x3c] sm:$0xf] %vm2178_vm9, %v2161_v45 }
 0x6c8   :  { %2828 = vst.msk [vmem:[#allocation2 + $0x3c] sm:$0xf] %vm2812_vm10, %v2795_v53 }
 0x6cb   :  { %v3000_v41 = vpop.f32.mrf.mxu3  ;;  %v3049_v22 = vpop.f32.mrf.mxu2 }
 0x6cc   :  { %7481 = vset.pattern.permute.xlu1 %v11691_v13  ;;  %3121 = vrot.lane.b32.xlu2 %v3049_v22, %s8117_s16  ;;  %v3088_v3 = vpack.c.bf16 %v3000_v41, %v3000_v41 }
 0x6cd   :  { %3793 = vperm.xlu0 %7480, %v9815_v54   ;;  %3797 = vperm.xlu1 %7481, %v3049_v22  }
 0x6ce   :  { %v3485_v39 = vunpack.c.l.b16 %v3088_v3 }
 0x6d0   :  { %v9834_v16 = vpack.c.b16 %v3485_v39, %v3484_v44 }
 0x6d2   :  { %11694 = vst [vmem:[#allocation23_spill] sm:$0xff] %v9834_v16 }
 0x6d3   :  { %v3003_v56 = vpop.f32.mrf.mxu3  ;;  %v9825_v7 = vpop.f32.mrf.mxu2 }
 0x6d4   :  { %3208 = vperm.xlu2 %7478, %v3049_v22   ;;  %v3089_v35 = vpack.c.bf16 %v3003_v56, %v3003_v56 }
 0x6d5   :  { %7482 = vset.pattern.permute.xlu1 %v11676_v9 }
 0x6d6   :  { %4430 = vperm.xlu1 %7482, %v3049_v22   ;;  %v3486_v26 = vunpack.c.l.b16 %v3089_v35 }
 0x6db   :  { %v3005_v20 = vpop.f32.mrf.mxu3  ;;  %v3054_v23 = vpop.f32.mrf.mxu2 }
 0x6dc   :  { %7483 = vset.pattern.permute.xlu2 %v11693_v24  ;;  %3125 = vrot.lane.b32.xlu0 %v3054_v23, %s8117_s16  ;;  %v3090_v10 = vpack.c.bf16 %v3005_v20, %v3005_v20 }
 0x6dd   :  { %5063 = vperm.xlu2 %7483, %v3049_v22  }
 0x6de   :  { %v2793_v28 = vpop.permute.xlu1 %2792  ;;  %3123 = vrot.lane.b32.xlu1 %v9825_v7, %s8117_s16  ;;  %v3487_v30 = vunpack.c.l.b16 %v3090_v10 }
 0x6df   :  { %2827 = vst.msk [vmem:[#allocation2 + $0x38] sm:$0xf] %vm2812_vm10, %v2793_v28  ;;  %7486 = vset.pattern.permute.xlu1 %v11679_v19 }
 0x6e0   :  { %v9866_v34 = vpack.c.b16 %v3487_v30, %v3486_v26 }
 0x6e2   :  { %11698 = vst [vmem:[#allocation18_spill] sm:$0xff] %v9866_v34 }
 0x6e3   :  { %v3008_v55 = vpop.f32.mrf.mxu3  ;;  %v9836_v0 = vpop.f32.mrf.mxu2 }
 0x6e4   :  { %3805 = vperm.xlu0 %7480, %v3054_v23   ;;  %v3091_v48 = vpack.c.bf16 %v3008_v55, %v3008_v55 }
 0x6e5   :  { %4057 = vrot.lane.b32.xlu2 %v9834_v16, %s8114_s11 }
 0x6e6   :  { %v7018_v25 = vld [vmem:[#allocation2 + $0x38] sm:$0xff]  ;;  %3216 = vperm.xlu1 %7486, %v3054_v23   ;;  %7484 = vset.pattern.permute.xlu2 %v11679_v19  ;;  %v3488_v8 = vunpack.c.l.b16 %v3091_v48 }
 0x6e7   :  { %3032 = vmatmul.bf16.gmra.mxu3 %v7018_v25  ;;  %3081 = vmatmul.bf16.gmra.mxu2 %v7018_v25 }
 0x6eb   :  { %v3010_v43 = vpop.f32.mrf.mxu3  ;;  %v9841_v21 = vpop.f32.mrf.mxu2 }
 0x6ec   :  { %3809 = vperm.xlu0 %7480, %v9836_v0   ;;  %v3092_v5 = vpack.c.bf16 %v3010_v43, %v3010_v43 }
 0x6ed   :  { %3212 = vperm.xlu2 %7484, %v9825_v7  }
 0x6ee   :  { %7487 = vset.pattern.permute.xlu1 %v11676_v9  ;;  %v3489_v11 = vunpack.c.l.b16 %v3092_v5 }
 0x6ef   :  { %4438 = vperm.xlu1 %7487, %v3054_v23  }
 0x6f0   :  { %v9876_v47 = vpack.c.b16 %v3489_v11, %v3488_v8 }
 0x6f2   :  { %11700 = vst [vmem:[#allocation5_spill] sm:$0xff] %v9876_v47 }
 0x6f3   :  { %v3013_v2 = vpop.f32.mrf.mxu3  ;;  %v9846_v32 = vpop.f32.mrf.mxu2 }
 0x6f4   :  { %11695 = vst [vmem:[#allocation14_spill] sm:$0xff] %v9846_v32  ;;  %3131 = vrot.lane.b32.xlu0 %v9846_v32, %s8117_s16  ;;  %v3093_v59 = vpack.c.bf16 %v3013_v2, %v3013_v2 }
 0x6f5   :  { %7485 = vset.pattern.permute.xlu2 %v11691_v13  ;;  %7492 = vset.pattern.permute.xlu0 %v11679_v19 }
 0x6f6   :  { %3801 = vperm.xlu2 %7485, %v9825_v7   ;;  %v3490_v6 = vunpack.c.l.b16 %v3093_v59 }
 0x6f7   :  { %7489 = vset.pattern.permute.xlu1 %v11679_v19 }
 0x6f8   :  { %3220 = vperm.xlu1 %7489, %v9836_v0  }
 0x6fb   :  { %v3015_v57 = vpop.f32.mrf.mxu3  ;;  %v9857_v31 = vpop.f32.mrf.mxu2 }
 0x6fc   :  { %v3094_v51 = vpack.c.bf16 %v3015_v57, %v3015_v57  ;;  %3228 = vperm.xlu0 %7492, %v9846_v32   ;;  %11696 = vst [vmem:[#allocation6_spill] sm:$0xff] %v9857_v31 }
 0x6fe   :  { %v3491_v42 = vunpack.c.l.b16 %v3094_v51  ;;  %7488 = vset.pattern.permute.xlu2 %v11693_v24 }
 0x6ff   :  { %5071 = vperm.xlu2 %7488, %v3054_v23  }
 0x700   :  { %3129 = vrot.lane.b32.xlu1 %v9841_v21, %s8117_s16  ;;  %v9862_v46 = vpack.c.b16 %v3491_v42, %v3490_v6 }
 0x701   :  { %7491 = vset.pattern.permute.xlu1 %v11691_v13 }
 0x702   :  { %11697 = vst [vmem:[#allocation7_spill] sm:$0xff] %v9862_v46 }
 0x703   :  { %v3018_v17 = vpop.f32.mrf.mxu3  ;;  %v9873_v50 = vpop.f32.mrf.mxu2 }
 0x704   :  { %4063 = vrot.lane.b32.xlu0 %v9862_v46, %s8114_s11  ;;  %11699 = vst [vmem:[#allocation10_spill] sm:$0xff] %v9873_v50  ;;  %v3095_v12 = vpack.c.bf16 %v3018_v17, %v3018_v17 }
 0x705   :  { %7495 = vset.pattern.permute.xlu0 %v11691_v13 }
 0x706   :  { %v3492_v36 = vunpack.c.l.b16 %v3095_v12 }
 0x707   :  { %4059 = vrot.lane.b32.xlu2 %v9866_v34, %s8114_s11 }
 0x708   :  { %3813 = vperm.xlu1 %7491, %v9841_v21   ;;  %7490 = vset.pattern.permute.xlu2 %v11679_v19 }
 0x70b   :  { %v3020_v33 = vpop.f32.mrf.mxu3  ;;  %v9882_v62 = vpop.f32.mrf.mxu2 }
 0x70c   :  { %3825 = vperm.xlu0 %7495, %v9873_v50   ;;  %v3096_v49 = vpack.c.bf16 %v3020_v33, %v3020_v33  ;;  %11701 = vst [vmem:[#allocation17_spill] sm:$0xff] %v9882_v62 }
 0x70e   :  { %v3493_v18 = vunpack.c.l.b16 %v3096_v49 }
 0x70f   :  { %3127 = vrot.lane.b32.xlu2 %v9836_v0, %s8117_s16 }
 0x710   :  { %4061 = vrot.lane.b32.xlu1 %v9876_v47, %s8114_s11  ;;  %v9888_v14 = vpack.c.b16 %v3493_v18, %v3492_v36 }
 0x712   :  { %11702 = vst [vmem:[#allocation28_spill] sm:$0xff] %v9888_v14 }
 0x713   :  { %v3023_v4 = vpop.f32.mrf.mxu3  ;;  %v9897_v37 = vpop.f32.mrf.mxu2 }
 0x714   :  { %3137 = vrot.lane.b32.xlu0 %v9882_v62, %s8117_s16  ;;  %11703 = vst [vmem:[#allocation30_spill] sm:$0xff] %v9897_v37  ;;  %v3097_v15 = vpack.c.bf16 %v3023_v4, %v3023_v4 }
 0x716   :  { %v3494_v63 = vunpack.c.l.b16 %v3097_v15 }
 0x717   :  { %3224 = vperm.xlu2 %7490, %v9841_v21  }
 0x718   :  { %3817 = vperm.xlu1 %7491, %v9846_v32  }
 0x71b   :  { %v3025_v58 = vpop.f32.mrf.mxu3  ;;  %v9906_v29 = vpop.f32.mrf.mxu2 }
 0x71c   :  { %4065 = vrot.lane.b32.xlu0 %v9888_v14, %s8114_s11  ;;  %v3098_v61 = vpack.c.bf16 %v3025_v58, %v3025_v58  ;;  %11705 = vst [vmem:[#allocation24_spill] sm:$0xff] %v9906_v29 }
 0x71e   :  { %v3495_v1 = vunpack.c.l.b16 %v3098_v61 }
 0x71f   :  { %3133 = vrot.lane.b32.xlu2 %v9857_v31, %s8117_s16 }
 0x720   :  { %3135 = vrot.lane.b32.xlu1 %v9873_v50, %s8117_s16  ;;  %v9902_v27 = vpack.c.b16 %v3495_v1, %v3494_v63 }
 0x721   :  { %7496 = vset.pattern.permute.xlu1 %v11679_v19 }
 0x722   :  { %11704 = vst [vmem:[#allocation29_spill] sm:$0xff] %v9902_v27 }
 0x724   :  { %3833 = vperm.xlu0 %7495, %v9897_v37  }
 0x726   :  { %v9909_v40 = vpop.permute.xlu2 %3121 }
 0x727   :  { %3232 = vperm.xlu2 %7490, %v9857_v31  }
 0x728   :  { %3240 = vperm.xlu1 %7496, %v9882_v62  }
 0x72c   :  { %4067 = vrot.lane.b32.xlu0 %v9902_v27, %s8114_s11 }
 0x72e   :  { %v9917_v60 = vpop.permute.xlu2 %3208 }
 0x72f   :  { %7493 = vset.pattern.permute.xlu2 %v11691_v13 }
 0x730   :  { %3821 = vperm.xlu2 %7493, %v9857_v31   ;;  %3141 = vrot.lane.b32.xlu1 %v9906_v29, %s8117_s16 }
 0x736   :  { %v9930_v41 = vpop.permute.xlu1 %3204  ;;  %v9932_v22 = vpop.permute.xlu0 %3119 }
 0x737   :  { %v9921_v45 = vpop.permute.xlu2 %5063 }
 0x738   :  { %7494 = vset.pattern.permute.xlu2 %v11679_v19  ;;  %3248 = vperm.xlu1 %7496, %v9906_v29  }
 0x739   :  { %3236 = vperm.xlu2 %7494, %v9873_v50  }
 0x73f   :  { %v9936_v3 = vpop.permute.xlu2 %4057  ;;  %v9941_v20 = vpop.permute.xlu0 %3793 }
 0x740   :  { %v9943_v23 = vpop.permute.xlu1 %3797 }
 0x741   :  { %7497 = vset.pattern.permute.xlu2 %v11691_v13 }
 0x742   :  { %3829 = vperm.xlu2 %7497, %v9882_v62  }
 0x745   :  { %v9923_v53 = vpop.f32.mrf.mxu2  ;;  %v3028_v38 = vpop.f32.mrf.mxu3 }
 0x746   :  { %11706 = vst [vmem:[#allocation31_spill] sm:$0xff] %v9923_v53  ;;  %3143 = vrot.lane.b32.xlu0 %v9923_v53, %s8117_s16  ;;  %v3099_v26 = vpack.c.bf16 %v3028_v38, %v3028_v38 }
 0x747   :  { %v9945_v28 = vpop.permute.xlu2 %3212 }
 0x748   :  { %v9951_v44 = vpop.permute.xlu1 %4430  ;;  %v3496_v12 = vunpack.c.l.b16 %v3099_v26 }
 0x74a   :  { %3139 = vrot.lane.b32.xlu2 %v9897_v37, %s8117_s16 }
 0x74b   :  { %7498 = vset.pattern.permute.xlu2 %v11679_v19 }
 0x74d   :  { %v9934_v56 = vpop.f32.mrf.mxu2  ;;  %v3030_v55 = vpop.f32.mrf.mxu3 }
 0x74e   :  { %11707 = vst [vmem:[#allocation32_spill] sm:$0xff] %v9934_v56  ;;  %3256 = vperm.xlu1 %7496, %v9934_v56   ;;  %3841 = vperm.xlu0 %7495, %v9923_v53   ;;  %v9949_v39 = vpop.permute.xlu0 %3125  ;;  %v3100_v42 = vpack.c.bf16 %v3030_v55, %v3030_v55 }
 0x750   :  { %v9953_v25 = vpop.permute.xlu2 %3801  ;;  %v9961_v59 = vpop.permute.xlu1 %3123  ;;  %v3497_v11 = vunpack.c.l.b16 %v3100_v42 }
 0x752   :  { %3244 = vperm.xlu2 %7498, %v9897_v37   ;;  %v9987_v4 = vpack.c.b16 %v3497_v11, %v3496_v12 }
 0x754   :  { %11712 = vst [vmem:[#allocation22_spill] sm:$0xff] %v9987_v4 }
 0x756   :  { %v9957_v43 = vpop.permute.xlu0 %3805 }
 0x758   :  { %v9980_v33 = vpop.permute.xlu1 %3216 }
 0x759   :  { %v9963_v51 = vpop.permute.xlu2 %5071 }
 0x75a   :  { %7499 = vset.pattern.permute.xlu2 %v11691_v13  ;;  %11709 = vst [vmem:[#allocation13_spill] sm:$0xff] %v9963_v51 }
 0x75b   :  { %3837 = vperm.xlu2 %7499, %v9906_v29  }
 0x75e   :  { %v9973_v17 = vpop.permute.xlu0 %3809 }
 0x761   :  { %v9982_v8 = vpop.permute.xlu2 %4059  ;;  %v9995_v36 = vpop.permute.xlu1 %4438 }
 0x763   :  { %7500 = vset.pattern.permute.xlu2 %v11679_v19 }
 0x764   :  { %3252 = vperm.xlu2 %7500, %v9923_v53  }
 0x766   :  { %v3132_v18 = vpop.permute.xlu0 %3131 }
 0x769   :  { %v3128_v58 = vpop.permute.xlu2 %3127 }
 0x76a   :  { %v3033_v2 = vpop.f32.mrf.mxu3  ;;  %v9959_v57 = vpop.f32.mrf.mxu2 }
 0x76b   :  { %11708 = vst [vmem:[#allocation11_spill] sm:$0xff] %v9959_v57  ;;  %3849 = vperm.xlu0 %7495, %v9959_v57   ;;  %3147 = vrot.lane.b32.xlu1 %v9959_v57, %s8117_s16  ;;  %v3101_v10 = vpack.c.bf16 %v3033_v2, %v3033_v2  ;;  %v10006_v61 = vpop.permute.xlu1 %3220 }
 0x76c   :  { %3145 = vrot.lane.b32.xlu2 %v9934_v56, %s8117_s16 }
 0x76d   :  { %7501 = vset.pattern.permute.xlu2 %v11691_v13  ;;  %v3498_v5 = vunpack.c.l.b16 %v3101_v10 }
 0x771   :  { %v10008_v15 = vpop.permute.xlu2 %3224 }
 0x772   :  { %v3035_v35 = vpop.f32.mrf.mxu3  ;;  %v9971_v30 = vpop.f32.mrf.mxu2 }
 0x773   :  { %v3102_v6 = vpack.c.bf16 %v3035_v35, %v3035_v35  ;;  %11710 = vst [vmem:[#allocation9_spill] sm:$0xff] %v9971_v30  ;;  %3149 = vrot.lane.b32.xlu0 %v9971_v30, %s8117_s16  ;;  %3260 = vperm.xlu1 %7496, %v9959_v57   ;;  %v3130_v63 = vpop.permute.xlu1 %3129 }
 0x774   :  { %3845 = vperm.xlu2 %7501, %v9934_v56   ;;  %7505 = vset.pattern.permute.xlu0 %v11676_v9 }
 0x775   :  { %v3499_v48 = vunpack.c.l.b16 %v3102_v6 }
 0x777   :  { %v9984_v49 = vpack.c.b16 %v3499_v48, %v3498_v5 }
 0x779   :  { %11711 = vst [vmem:[#allocation20_spill] sm:$0xff] %v9984_v49  ;;  %3516 = vmatpush.bf16.msra.mxu1 %v9984_v49  ;;  %v3134_v38 = vpop.permute.xlu2 %3133 }
 0x77b   :  { %7503 = vset.pattern.permute.xlu1 %v11691_v13  ;;  %v10003_v13 = vpop.permute.xlu0 %3228  ;;  %v10016_v2 = vpop.permute.xlu1 %3813 }
 0x77c   :  { %4069 = vrot.lane.b32.xlu2 %v9987_v4, %s8114_s11  ;;  %3853 = vperm.xlu1 %7503, %v9971_v30  }
 0x77d   :  { %3517 = vmatpush.bf16.msra.mxu1 %v9987_v4  ;;  %7502 = vset.pattern.permute.xlu2 %v11679_v19 }
 0x781   :  { %3518 = vmatpush.bf16.msra.mxu1 %v9902_v27  ;;  %v10018_v10 = vpop.permute.xlu2 %3232 }
 0x783   :  { %v4064_v1 = vpop.permute.xlu0 %4063  ;;  %v4062_v35 = vpop.permute.xlu1 %4061 }
 0x784   :  { %3264 = vperm.xlu2 %7502, %v9971_v30   ;;  %4071 = vrot.lane.b32.xlu1 %v9984_v49, %s8114_s11 }
 0x785   :  { %3519 = vmatpush.bf16.msra.mxu1 %v9888_v14  ;;  %7508 = vset.pattern.permute.xlu1 %v11676_v9 }
 0x789   :  { %3520 = vmatpush.bf16.msra.mxu1 %v9862_v46 }
 0x78a   :  { %v10020_v6 = vpop.permute.xlu2 %3821 }
 0x78b   :  { %v10014_v55 = vpop.permute.xlu0 %3825  ;;  %v10022_v5 = vpop.permute.xlu1 %3817 }
 0x78c   :  { %7504 = vset.pattern.permute.xlu2 %v11676_v9 }
 0x78d   :  { %3521 = vmatpush.bf16.msra.mxu1 %v9876_v47 }
 0x791   :  { %3522 = vmatpush.bf16.msra.mxu1 %v9866_v34 }
 0x793   :  { %v3138_v42 = vpop.permute.xlu0 %3137  ;;  %v10024_v48 = vpop.permute.xlu2 %3236 }
 0x794   :  { %v3136_v12 = vpop.permute.xlu1 %3135 }
 0x795   :  { %3523 = vmatpush.bf16.msra.mxu1 %v9834_v16 }
 0x79b   :  { %v4066_v26 = vpop.permute.xlu0 %4065 }
 0x79c   :  { %v10028_v30 = vpop.permute.xlu2 %3829  ;;  %v10030_v57 = vpop.permute.xlu1 %3240 }
 0x7a3   :  { %v10026_v11 = vpop.permute.xlu0 %3833 }
 0x7a4   :  { %v3140_v46 = vpop.permute.xlu2 %3139  ;;  %v3142_v56 = vpop.permute.xlu1 %3141 }
 0x7ab   :  { %v4068_v19 = vpop.permute.xlu0 %4067 }
 0x7ac   :  { %v10032_v14 = vpop.permute.xlu2 %3244  ;;  %v10036_v34 = vpop.permute.xlu1 %3248 }
 0x7b5   :  { %v10038_v47 = vpop.permute.xlu2 %3837 }
 0x7b8   :  { %v3144_v16 = vpop.permute.xlu0 %3143 }
 0x7be   :  { %v10044_v62 = vpop.permute.xlu2 %3252 }
 0x7c0   :  { %v10034_v29 = vpop.permute.xlu0 %3841  ;;  %v10042_v37 = vpop.permute.xlu1 %3256 }
 0x7c6   :  { %v3146_v49 = vpop.permute.xlu2 %3145 }
 0x7dd   :  { %v10040_v53 = vpop.permute.xlu0 %3849  ;;  %v3148_v27 = vpop.permute.xlu1 %3147 }
 0x7e5   :  { %v3150_v4 = vpop.permute.xlu0 %3149 }
 0x7e6   :  { %6855 = vmatpush.xpose.msk.msrb.mxu0 %vm281_vm1, %v3150_v4  ;;  %v10056_v4 = vpop.permute.xlu1 %3260 }
 0x7ea   :  { %6856 = vmatpush.xpose.msk.msrb.mxu0 %vm281_vm1, %v3148_v27 }
 0x7ee   :  { %6857 = vmatpush.xpose.msk.msrb.mxu0 %vm281_vm1, %v3146_v49 }
 0x7f2   :  { %6858 = vmatpush.xpose.msk.msrb.mxu0 %vm281_vm1, %v3144_v16  ;;  %v10062_v16 = vpop.permute.xlu1 %3853 }
 0x7f6   :  { %6859 = vmatpush.xpose.msk.msrb.mxu0 %vm281_vm1, %v3142_v56  ;;  %v11713_v56 = vld [vmem:[#allocation27_spill] sm:$0xff] }
 0x7fa   :  { %6860 = vmatpush.xpose.msk.msrb.mxu0 %vm281_vm1, %v3140_v46  ;;  %v10066_v46 = vpop.permute.xlu2 %3845  ;;  %v4072_v27 = vpop.permute.xlu1 %4071 }
 0x7fe   :  { %6861 = vmatpush.xpose.msk.msrb.mxu0 %vm281_vm1, %v3138_v42 }
 0x802   :  { %6862 = vmatpush.xpose.msk.msrb.mxu0 %vm281_vm1, %v3136_v12  ;;  %v4070_v49 = vpop.permute.xlu2 %4069 }
 0x806   :  { %6863 = vmatpush.xpose.msk.msrb.mxu0 %vm281_vm1, %v3134_v38 }
 0x80a   :  { %6864 = vmatpush.xpose.msk.msrb.mxu0 %vm281_vm1, %v3132_v18 }
 0x80e   :  { %6865 = vmatpush.xpose.msk.msrb.mxu0 %vm281_vm1, %v3130_v63 }
 0x812   :  { %6866 = vmatpush.xpose.msk.msrb.mxu0 %vm281_vm1, %v3128_v58 }
 0x816   :  { %6867 = vmatpush.xpose.msk.msrb.mxu0 %vm281_vm1, %v9949_v39 }
 0x81a   :  { %6868 = vmatpush.xpose.msk.msrb.mxu0 %vm281_vm1, %v9961_v59  ;;  %v7190_v59 = vld [vmem:[%s11507_s1] sm:$0xff]  }
 0x81b   :  { %v10093_v18 = vunpack.c.h.bf16 %v7190_v59  ;;  %v10095_v58 = vunpack.c.l.bf16 %v7190_v59 }
 0x81d   :  { %11714 = vst [vmem:[#allocation19_spill] sm:$0xff] %v10095_v58 }
 0x81e   :  { %6869 = vmatpush.xpose.msk.msrb.mxu0 %vm281_vm1, %v9909_v40 }
 0x822   :  { %6870 = vmatpush.xpose.msk.msrb.mxu0 %vm281_vm1, %v9932_v22 }
 0x825   :  { %6871 = vmatmul.msk.f32.vlgmr.msrb.gmra.mxu0 %vm281_vm1, %v11713_v56 }
 0x826   :  { %4081 = vmatpush.bf16.msra.mxu0 %v4072_v27 }
 0x82a   :  { %4082 = vmatpush.bf16.msra.mxu0 %v4070_v49  ;;  %v7384_v49 = vld [vmem:[%s11507_s1 + $0x8] sm:$0xff]  }
 0x82e   :  { %4083 = vmatpush.bf16.msra.mxu0 %v4068_v19 }
 0x832   :  { %4084 = vmatpush.bf16.msra.mxu0 %v4066_v26 }
 0x836   :  { %4085 = vmatpush.bf16.msra.mxu0 %v4064_v1 }
 0x83a   :  { %4086 = vmatpush.bf16.msra.mxu0 %v4062_v35 }
 0x83e   :  { %4087 = vmatpush.bf16.msra.mxu0 %v9982_v8 }
 0x842   :  { %4088 = vmatpush.bf16.msra.mxu0 %v9936_v3 }
 0x8a2   :  { %v10076_v39 = vpop.f32.mrf.mxu0 }
 0x8a3   :  { %v10079_v40 = vperm.slane %v10076_v39, 0  ;;  %v10082_v22 = vperm.slane %v10076_v39, 1 }
 0x8a5   :  { %v3269_v19 = vadd.f32 %v10079_v40, %v9917_v60  ;;  %v3268_v8 = vadd.f32 %v10079_v40, %v9930_v41  ;;  %v3857_v3 = vadd.f32 %v10082_v22, %v9941_v20  ;;  %v3859_v1 = vadd.f32 %v10082_v22, %v9953_v25 }
 0x8a6   :  { %v3858_v63 = vadd.f32 %v10082_v22, %v9943_v23  ;;  %v3270_v41 = vadd.f32 %v10079_v40, %v9945_v28 }
 0x8a7   :  { %vm3285_vm11 = vcmp.gt.f32.partialorder %v3269_v19, 0.0  ;;  %v3301_v38 = vmul.f32 0.2, %v3269_v19  ;;  %vm3284_vm12 = vcmp.gt.f32.partialorder %v3268_v8, 0.0  ;;  %v3300_v60 = vmul.f32 0.2, %v3268_v8 }
 0x8a8   :  { %vm3873_vm13 = vcmp.gt.f32.partialorder %v3857_v3, 0.0  ;;  %v3889_v42 = vmul.f32 0.2, %v3857_v3  ;;  %v3891_v27 = vmul.f32 0.2, %v3859_v1  ;;  %vm3875_vm14 = vcmp.gt.f32.partialorder %v3859_v1, 0.0 }
 0x8a9   :  { %v3317_v20 = vsel %vm3285_vm11, %v3269_v19, %v3301_v38  ;;  %v3316_v35 = vsel %vm3284_vm12, %v3268_v8, %v3300_v60  ;;  %v3890_v59 = vmul.f32 0.2, %v3858_v63  ;;  %vm3874_vm15 = vcmp.gt.f32.partialorder %v3858_v63, 0.0 }
 0x8aa   :  { %v10104_v26 = vadd.f32 %v10093_v18, %v3317_v20  ;;  %v10107_v12 = vadd.f32 %v10095_v58, %v3316_v35  ;;  %v3905_v25 = vsel %vm3873_vm13, %v3857_v3, %v3889_v42  ;;  %v3302_v28 = vmul.f32 0.2, %v3270_v41 }
 0x8ab   :  { %v10110_v23 = vadd.f32 %v10095_v58, %v3905_v25  ;;  %vm3286_vm0 = vcmp.gt.f32.partialorder %v3270_v41, 0.0  ;;  %v10118_v19 = vunpack.c.l.bf16 %v7384_v49  ;;  %v3907_v8 = vsel %vm3875_vm14, %v3859_v1, %v3891_v27 }
 0x8ac   :  { %3382 = vmax.xlane.f32.xlu0 %v10104_v26  ;;  %3380 = vmax.xlane.f32.xlu2 %v10107_v12  ;;  %v3906_v3 = vsel %vm3874_vm15, %v3858_v63, %v3890_v59  ;;  %v3861_v38 = vadd.f32 %v10082_v22, %v9973_v17  ;;  %v3271_v60 = vadd.f32 %v10079_v40, %v9980_v33  ;;  %v7385_v17 = vld [vmem:[%s11507_s1 + $0x10] sm:$0xff]  }
 0x8ad   :  { %3969 = vmax.xlane.f32.xlu1 %v10110_v23  ;;  %11715 = vst [vmem:[#allocation4_spill] sm:$0xff] %v10118_v19  ;;  %v3318_v42 = vsel %vm3286_vm0, %v3270_v41, %v3302_v28  ;;  %v3860_v20 = vadd.f32 %v10082_v22, %v9957_v43  ;;  %v10127_v35 = vadd.f32 %v10118_v19, %v3907_v8  ;;  %v10141_v33 = vunpack.c.l.bf16 %v7385_v17 }
 0x8ae   :  { %v10130_v25 = vadd.f32 %v10093_v18, %v3906_v3  ;;  %v10133_v56 = vadd.f32 %v10118_v19, %v3318_v42  ;;  %v3893_v1 = vmul.f32 0.2, %v3861_v38  ;;  %v3303_v63 = vmul.f32 0.2, %v3271_v60 }
 0x8af   :  { %vm3877_vm2 = vcmp.gt.f32.partialorder %v3861_v38, 0.0  ;;  %vm3287_vm3 = vcmp.gt.f32.partialorder %v3271_v60, 0.0  ;;  %v3892_v43 = vmul.f32 0.2, %v3860_v20  ;;  %vm3876_vm4 = vcmp.gt.f32.partialorder %v3860_v20, 0.0  ;;  %11716 = vst [vmem:[#allocation33_spill] sm:$0xff] %v10141_v33 }
 0x8b0   :  { %v10143_v41 = vunpack.c.h.bf16 %v7384_v49  ;;  %v3909_v27 = vsel %vm3877_vm2, %v3861_v38, %v3893_v1  ;;  %v3319_v59 = vsel %vm3287_vm3, %v3271_v60, %v3303_v63  ;;  %v3863_v28 = vadd.f32 %v10082_v22, %v10022_v5  ;;  %v10163_v5 = vld [vmem:[%s11507_s1 + $0x18] sm:$0xff]  }
 0x8b1   :  { %v3273_v8 = vadd.f32 %v10079_v40, %v10008_v15  ;;  %v3908_v3 = vsel %vm3876_vm4, %v3860_v20, %v3892_v43  ;;  %v3272_v42 = vadd.f32 %v10079_v40, %v10006_v61  ;;  %v10152_v31 = vadd.f32 %v10141_v33, %v3909_v27 }
 0x8b2   :  { %11717 = vst [vmem:[#allocation25_spill] sm:$0xff] %v10143_v41  ;;  %v10155_v50 = vadd.f32 %v10143_v41, %v3319_v59  ;;  %v10158_v49 = vadd.f32 %v10143_v41, %v3908_v3  ;;  %v3895_v38 = vmul.f32 0.2, %v3863_v28  ;;  %vm3879_vm5 = vcmp.gt.f32.partialorder %v3863_v28, 0.0 }
 0x8b3   :  { %v3305_v15 = vmul.f32 0.2, %v3273_v8  ;;  %vm3289_vm6 = vcmp.gt.f32.partialorder %v3273_v8, 0.0  ;;  %v3304_v61 = vmul.f32 0.2, %v3272_v42  ;;  %vm3288_vm11 = vcmp.gt.f32.partialorder %v3272_v42, 0.0 }
 0x8b4   :  { %3973 = vmax.xlane.f32.xlu0 %v10127_v35  ;;  %3971 = vmax.xlane.f32.xlu2 %v10130_v25  ;;  %v7235_v60 = vunpack.c.l.bf16 %v10163_v5  ;;  %v10169_v20 = vunpack.c.h.bf16 %v7385_v17  ;;  %v3911_v1 = vsel %vm3879_vm5, %v3863_v28, %v3895_v38  ;;  %v3276_v43 = vadd.f32 %v10079_v40, %v10024_v48  ;;  %v10188_v48 = vld [vmem:[%s11507_s1 + $0x20] sm:$0xff]  }
 0x8b5   :  { %3384 = vmax.xlane.f32.xlu1 %v10133_v56  ;;  %v3321_v63 = vsel %vm3289_vm6, %v3273_v8, %v3305_v15  ;;  %v3275_v27 = vadd.f32 %v10079_v40, %v10018_v10  ;;  %v3320_v59 = vsel %vm3288_vm11, %v3272_v42, %v3304_v61  ;;  %v3862_v3 = vadd.f32 %v10082_v22, %v10016_v2 }
 0x8b6   :  { %11718 = vst [vmem:[#allocation15_spill] sm:$0xff] %v10169_v20  ;;  %v10177_v32 = vadd.f32 %v7235_v60, %v3911_v1  ;;  %v10180_v41 = vadd.f32 %v10169_v20, %v3321_v63  ;;  %v10183_v17 = vadd.f32 %v10141_v33, %v3320_v59  ;;  %v3308_v28 = vmul.f32 0.2, %v3276_v43 }
 0x8b7   :  { %v3307_v8 = vmul.f32 0.2, %v3275_v27  ;;  %vm3292_vm12 = vcmp.gt.f32.partialorder %v3276_v43, 0.0  ;;  %vm3291_vm13 = vcmp.gt.f32.partialorder %v3275_v27, 0.0  ;;  %v3894_v2 = vmul.f32 0.2, %v3862_v3 }
 0x8b8   :  { %vm3878_vm14 = vcmp.gt.f32.partialorder %v3862_v3, 0.0  ;;  %v7207_v10 = vunpack.c.l.bf16 %v10188_v48  ;;  %v7204_v42 = vunpack.c.h.bf16 %v10163_v5  ;;  %v3324_v38 = vsel %vm3292_vm12, %v3276_v43, %v3308_v28 }
 0x8b9   :  { %v3323_v15 = vsel %vm3291_vm13, %v3275_v27, %v3307_v8  ;;  %v3866_v61 = vadd.f32 %v10082_v22, %v10028_v30  ;;  %v3865_v1 = vadd.f32 %v10082_v22, %v10014_v55  ;;  %v3910_v63 = vsel %vm3878_vm14, %v3862_v3, %v3894_v2 }
 0x8ba   :  { %v3274_v59 = vadd.f32 %v10079_v40, %v10003_v13  ;;  %v10201_v33 = vadd.f32 %v7207_v10, %v3324_v38  ;;  %v10203_v19 = vadd.f32 %v7204_v42, %v3323_v15  ;;  %v10206_v51 = vadd.f32 %v10169_v20, %v3910_v63 }
 0x8bb   :  { %v3898_v5 = vmul.f32 0.2, %v3866_v61  ;;  %v3897_v43 = vmul.f32 0.2, %v3865_v1  ;;  %vm3882_vm15 = vcmp.gt.f32.partialorder %v3866_v61, 0.0  ;;  %vm3881_vm0 = vcmp.gt.f32.partialorder %v3865_v1, 0.0 }
 0x8bc   :  { %3977 = vmax.xlane.f32.xlu0 %v10152_v31  ;;  %3386 = vmax.xlane.f32.xlu2 %v10155_v50  ;;  %v3306_v30 = vmul.f32 0.2, %v3274_v59  ;;  %vm3290_vm2 = vcmp.gt.f32.partialorder %v3274_v59, 0.0  ;;  %v7240_v13 = vunpack.c.h.bf16 %v10188_v48  ;;  %v3278_v3 = vadd.f32 %v10079_v40, %v10032_v14  ;;  %v7381_v48 = vld [vmem:[%s11507_s1 + $0x28] sm:$0xff]  }
 0x8bd   :  { %3975 = vmax.xlane.f32.xlu1 %v10158_v49  ;;  %v3914_v55 = vsel %vm3882_vm15, %v3866_v61, %v3898_v5  ;;  %v3913_v27 = vsel %vm3881_vm0, %v3865_v1, %v3897_v43  ;;  %v3279_v28 = vadd.f32 %v10079_v40, %v10036_v34  ;;  %v3864_v2 = vadd.f32 %v10082_v22, %v10020_v6 }
 0x8be   :  { %v3322_v8 = vsel %vm3290_vm2, %v3274_v59, %v3306_v30  ;;  %v10218_v38 = vadd.f32 %v7240_v13, %v3914_v55  ;;  %v10220_v15 = vadd.f32 %v7207_v10, %v3913_v27  ;;  %v3310_v20 = vmul.f32 0.2, %v3278_v3 }
 0x8bf   :  { %v10222_v63 = vadd.f32 %v7235_v60, %v3322_v8  ;;  %v3311_v61 = vmul.f32 0.2, %v3279_v28  ;;  %vm3294_vm3 = vcmp.gt.f32.partialorder %v3278_v3, 0.0  ;;  %vm3295_vm4 = vcmp.gt.f32.partialorder %v3279_v28, 0.0 }
 0x8c0   :  { %v3896_v34 = vmul.f32 0.2, %v3864_v2  ;;  %vm3880_vm5 = vcmp.gt.f32.partialorder %v3864_v2, 0.0  ;;  %v7211_v14 = vunpack.c.l.bf16 %v7381_v48  ;;  %v7212_v6 = vunpack.c.h.bf16 %v7381_v48 }
 0x8c1   :  { %v3326_v60 = vsel %vm3294_vm3, %v3278_v3, %v3310_v20  ;;  %v3327_v10 = vsel %vm3295_vm4, %v3279_v28, %v3311_v61  ;;  %v3868_v1 = vadd.f32 %v10082_v22, %v10038_v47  ;;  %v3281_v59 = vadd.f32 %v10079_v40, %v10042_v37  ;;  %v7382_v20 = vld [vmem:[%s11507_s1 + $0x30] sm:$0xff]   ;;  %v3265_v37 = vpop.permute.xlu2 %3264 }
 0x8c2   :  { %v3912_v5 = vsel %vm3880_vm5, %v3864_v2, %v3896_v34  ;;  %v3277_v43 = vadd.f32 %v10079_v40, %v10030_v57  ;;  %v10236_v30 = vadd.f32 %v7211_v14, %v3326_v60  ;;  %v10238_v55 = vadd.f32 %v7212_v6, %v3327_v10 }
 0x8c3   :  { %v10240_v27 = vadd.f32 %v7204_v42, %v3912_v5  ;;  %v3900_v8 = vmul.f32 0.2, %v3868_v1  ;;  %v3313_v48 = vmul.f32 0.2, %v3281_v59  ;;  %vm3884_vm6 = vcmp.gt.f32.partialorder %v3868_v1, 0.0 }
 0x8c4   :  { %3981 = vmax.xlane.f32.xlu0 %v10177_v32  ;;  %3390 = vmax.xlane.f32.xlu2 %v10180_v41  ;;  %11719 = vst [vmem:[#allocation34_spill] sm:$0xff] %v10238_v55  ;;  %vm3297_vm11 = vcmp.gt.f32.partialorder %v3281_v59, 0.0  ;;  %v3309_v47 = vmul.f32 0.2, %v3277_v43  ;;  %vm3293_vm12 = vcmp.gt.f32.partialorder %v3277_v43, 0.0  ;;  %v7216_v57 = vunpack.c.h.bf16 %v7382_v20 }
 0x8c5   :  { %3388 = vmax.xlane.f32.xlu1 %v10183_v17  ;;  %v3916_v42 = vsel %vm3884_vm6, %v3868_v1, %v3900_v8  ;;  %v3329_v3 = vsel %vm3297_vm11, %v3281_v59, %v3313_v48  ;;  %v3869_v28 = vadd.f32 %v10082_v22, %v10034_v29  ;;  %v3283_v2 = vadd.f32 %v10079_v40, %v3265_v37  ;;  %v7383_v1 = vld [vmem:[%s11507_s1 + $0x38] sm:$0xff]  }
 0x8c6   :  { %v3325_v61 = vsel %vm3293_vm12, %v3277_v43, %v3309_v47  ;;  %v3867_v34 = vadd.f32 %v10082_v22, %v10026_v11  ;;  %v10253_v60 = vadd.f32 %v7212_v6, %v3916_v42  ;;  %v10255_v10 = vadd.f32 %v7216_v57, %v3329_v3 }
 0x8c7   :  { %v10257_v5 = vadd.f32 %v7240_v13, %v3325_v61  ;;  %v3901_v58 = vmul.f32 0.2, %v3869_v28  ;;  %vm3885_vm13 = vcmp.gt.f32.partialorder %v3869_v28, 0.0  ;;  %vm3299_vm14 = vcmp.gt.f32.partialorder %v3283_v2, 0.0 }
 0x8c8   :  { %v3899_v29 = vmul.f32 0.2, %v3867_v34  ;;  %vm3883_vm15 = vcmp.gt.f32.partialorder %v3867_v34, 0.0  ;;  %v7247_v11 = vunpack.c.l.bf16 %v7382_v20  ;;  %v7220_v6 = vunpack.c.h.bf16 %v7383_v1 }
 0x8c9   :  { %v3917_v13 = vsel %vm3885_vm13, %v3869_v28, %v3901_v58  ;;  %v3871_v43 = vadd.f32 %v10082_v22, %v10040_v53  ;;  %v3280_v48 = vadd.f32 %v10079_v40, %v10044_v62  ;;  %v7251_v53 = vunpack.c.l.bf16 %v7383_v1 }
 0x8ca   :  { %v3915_v8 = vsel %vm3883_vm15, %v3867_v34, %v3899_v29  ;;  %v10269_v47 = vadd.f32 %v7247_v11, %v3917_v13  ;;  %v3870_v62 = vadd.f32 %v10082_v22, %v10066_v46  ;;  %v3282_v34 = vadd.f32 %v10079_v40, %v10056_v4 }
 0x8cb   :  { %v10273_v42 = vadd.f32 %v7211_v14, %v3915_v8  ;;  %v3903_v3 = vmul.f32 0.2, %v3871_v43  ;;  %vm3887_vm0 = vcmp.gt.f32.partialorder %v3871_v43, 0.0  ;;  %v3312_v58 = vmul.f32 0.2, %v3280_v48 }
 0x8cc   :  { %3396 = vmax.xlane.f32.xlu0 %v10201_v33  ;;  %3394 = vmax.xlane.f32.xlu2 %v10203_v19  ;;  %vm3296_vm2 = vcmp.gt.f32.partialorder %v3280_v48, 0.0  ;;  %vm3886_vm3 = vcmp.gt.f32.partialorder %v3870_v62, 0.0  ;;  %v3314_v29 = vmul.f32 0.2, %v3282_v34  ;;  %vm3298_vm4 = vcmp.gt.f32.partialorder %v3282_v34, 0.0 }
 0x8cd   :  { %3979 = vmax.xlane.f32.xlu1 %v10206_v51  ;;  %v3328_v20 = vsel %vm3296_vm2, %v3280_v48, %v3312_v58 }
 0x8ce   :  { %v10282_v14 = vadd.f32 %v7247_v11, %v3328_v20  ;;  %v3330_v46 = vsel %vm3298_vm4, %v3282_v34, %v3314_v29  ;;  %v3872_v11 = vadd.f32 %v10082_v22, %v10062_v16 }
 0x8cf   :  { %v10293_v13 = vadd.f32 %v7251_v53, %v3330_v46 }
 0x8d0   :  { %vm3888_vm5 = vcmp.gt.f32.partialorder %v3872_v11, 0.0 }
 0x8d4   :  { %3987 = vmax.xlane.f32.xlu0 %v10218_v38  ;;  %3985 = vmax.xlane.f32.xlu2 %v10220_v15 }
 0x8d5   :  { %3392 = vmax.xlane.f32.xlu1 %v10222_v63 }
 0x8dc   :  { %3400 = vmax.xlane.f32.xlu0 %v10236_v30  ;;  %3402 = vmax.xlane.f32.xlu2 %v10238_v55  ;;  %v3315_v55 = vmul.f32 0.2, %v3283_v2 }
 0x8dd   :  { %3983 = vmax.xlane.f32.xlu1 %v10240_v27 }
 0x8de   :  { %v3331_v59 = vsel %vm3299_vm14, %v3283_v2, %v3315_v55  ;;  %v3919_v55 = vsel %vm3887_vm0, %v3871_v43, %v3903_v3  ;;  %v3902_v2 = vmul.f32 0.2, %v3870_v62 }
 0x8df   :  { %v10271_v37 = vadd.f32 %v7220_v6, %v3331_v59  ;;  %v10280_v28 = vadd.f32 %v7251_v53, %v3919_v55  ;;  %v3904_v59 = vmul.f32 0.2, %v3872_v11 }
 0x8e0   :  { %v3918_v61 = vsel %vm3886_vm3, %v3870_v62, %v3902_v2 }
 0x8e1   :  { %v10288_v1 = vadd.f32 %v7216_v57, %v3918_v61  ;;  %v3920_v4 = vsel %vm3888_vm5, %v3872_v11, %v3904_v59 }
 0x8e2   :  { %v10298_v40 = vadd.f32 %v7220_v6, %v3920_v4 }
 0x8e4   :  { %3991 = vmax.xlane.f32.xlu0 %v10253_v60  ;;  %3406 = vmax.xlane.f32.xlu2 %v10255_v10 }
 0x8e5   :  { %3398 = vmax.xlane.f32.xlu1 %v10257_v5 }
 0x8ec   :  { %3993 = vmax.xlane.f32.xlu0 %v10269_v47  ;;  %3410 = vmax.xlane.f32.xlu2 %v10271_v37 }
 0x8ed   :  { %3989 = vmax.xlane.f32.xlu1 %v10273_v42 }
 0x8f4   :  { %3997 = vmax.xlane.f32.xlu0 %v10280_v28 }
 0x8f5   :  { %3404 = vmax.xlane.f32.xlu1 %v10282_v14 }
 0x8fd   :  { %3995 = vmax.xlane.f32.xlu1 %v10288_v1 }
 0x904   :  { %4426 = vperm.xlu2 %7504, %v9815_v54  }
 0x905   :  { %3408 = vmax.xlane.f32.xlu1 %v10293_v13 }
 0x908   :  { %4446 = vperm.xlu0 %7505, %v9841_v21  }
 0x90c   :  { %4434 = vperm.xlu2 %7504, %v9825_v7  }
 0x90d   :  { %3999 = vmax.xlane.f32.xlu1 %v10298_v40 }
 0x910   :  { %7506 = vset.pattern.permute.xlu0 %v11693_v24 }
 0x911   :  { %5059 = vperm.xlu0 %7506, %v9815_v54  }
 0x914   :  { %4442 = vperm.xlu2 %7504, %v9836_v0  }
 0x919   :  { %5067 = vperm.xlu0 %7506, %v9825_v7  }
 0x91c   :  { %7507 = vset.pattern.permute.xlu2 %v11693_v24 }
 0x91d   :  { %5079 = vperm.xlu2 %7507, %v9841_v21  }
 0x91f   :  { %v3383_v16 = vpop.xlane.xlu0 %3382  ;;  %v3381_v22 = vpop.xlane.xlu2 %3380 }
 0x920   :  { %v3413_v57 = vsub.f32 %v10104_v26, %v3383_v16  ;;  %v3412_v6 = vsub.f32 %v10107_v12, %v3381_v22  ;;  %v3970_v43 = vpop.xlane.xlu1 %3969  ;;  %v10322_v16 = vperm.slane %v10076_v39, 2 }
 0x921   :  { %v4001_v54 = vsub.f32 %v10110_v23, %v3970_v43 }
 0x922   :  { %v3430_v8 = vmul.f32 1.442695, %v3413_v57  ;;  %v3428_v48 = vmul.f32 1.442695, %v3412_v6 }
 0x923   :  { %v4017_v58 = vmul.f32 1.442695, %v4001_v54 }
 0x924   :  { %7790 = vpow2.f32 %v3430_v8 }
 0x925   :  { %7792 = vpow2.f32 %v3428_v48  ;;  %7510 = vset.pattern.permute.xlu2 %v11676_v9 }
 0x926   :  { %7794 = vpow2.f32 %v4017_v58 }
 0x927   :  { %v3974_v7 = vpop.xlane.xlu0 %3973  ;;  %v3972_v3 = vpop.xlane.xlu2 %3971 }
 0x928   :  { %v4002_v21 = vsub.f32 %v10130_v25, %v3972_v3  ;;  %v3385_v53 = vpop.xlane.xlu1 %3384  ;;  %v4003_v4 = vsub.f32 %v10127_v35, %v3974_v7  ;;  %v4491_v35 = vadd.f32 %v10322_v16, %v9951_v44  ;;  %v10333_v3 = vperm.slane %v10076_v39, 3 }
 0x929   :  { %v3414_v12 = vsub.f32 %v10133_v56, %v3385_v53 }
 0x92a   :  { %v7791_v55 = vpop.eup %7790  ;;  %v4019_v20 = vmul.f32 1.442695, %v4002_v21  ;;  %v4523_v21 = vmul.f32 0.2, %v4491_v35  ;;  %vm4507_vm6 = vcmp.gt.f32.partialorder %v4491_v35, 0.0 }
 0x92b   :  { %v7793_v26 = vpop.eup %7792  ;;  %v3432_v61 = vmul.f32 1.442695, %v3414_v12 }
 0x92c   :  { %v3460_v62 = vpack.c.bf16 %v7791_v55, %v7793_v26  ;;  %7796 = vpow2.f32 %v4019_v20  ;;  %v7795_v29 = vpop.eup %7794  ;;  %v4539_v20 = vsel %vm4507_vm6, %v4491_v35, %v4523_v21  ;;  %v5124_v26 = vadd.f32 %v10333_v3, %v9921_v45 }
 0x92d   :  { %7798 = vpow2.f32 %v3432_v61  ;;  %v10345_v61 = vadd.f32 %v10093_v18, %v4539_v20 }
 0x92e   :  { %3524 = vmatmul.bf16.vlgmr.msra.gmra.mxu1 %v3460_v62  ;;  %3573 = vmatmul.bf16.vlgmr.msrb.gmra.mxu3 %v3460_v62  ;;  %vm5140_vm11 = vcmp.gt.f32.partialorder %v5124_v26, 0.0 }
 0x92f   :  { %v10314_v23 = vpop.xlane.xlu0 %3977  ;;  %v3387_v2 = vpop.xlane.xlu2 %3386  ;;  %6290 = vmatpush.bf16.msrb.mxu3 %v11692_v52 }
 0x930   :  { %v3415_v34 = vsub.f32 %v10155_v50, %v3387_v2  ;;  %v3976_v25 = vpop.xlane.xlu1 %3975  ;;  %v4005_v2 = vsub.f32 %v10152_v31, %v10314_v23 }
 0x931   :  { %v4004_v59 = vsub.f32 %v10158_v49, %v3976_v25  ;;  %v4021_v49 = vmul.f32 1.442695, %v4003_v4 }
 0x932   :  { %v3434_v46 = vmul.f32 1.442695, %v3415_v34  ;;  %v7797_v11 = vpop.eup %7796  ;;  %v5156_v34 = vmul.f32 0.2, %v5124_v26 }
 0x933   :  { %6291 = vmatpush.bf16.msrb.mxu3 %v11692_v52  ;;  %v4049_v56 = vpack.c.bf16 %v7797_v11, %v7795_v29  ;;  %v4023_v22 = vmul.f32 1.442695, %v4004_v59  ;;  %v7799_v43 = vpop.eup %7798  ;;  %v4025_v11 = vmul.f32 1.442695, %v4005_v2 }
 0x934   :  { %7800 = vpow2.f32 %v3434_v46 }
 0x935   :  { %4089 = vmatmul.bf16.vlgmr.msra.gmra.mxu0 %v4049_v56  ;;  %4138 = vmatmul.bf16.vlgmr.msrb.gmra.mxu2 %v4049_v56  ;;  %7802 = vpow2.f32 %v4023_v22  ;;  %v5172_v56 = vsel %vm5140_vm11, %v5124_v26, %v5156_v34 }
 0x936   :  { %7804 = vpow2.f32 %v4021_v49  ;;  %v10353_v22 = vadd.f32 %v10093_v18, %v5172_v56 }
 0x937   :  { %v10324_v50 = vpop.xlane.xlu0 %3981  ;;  %v3391_v57 = vpop.xlane.xlu2 %3390  ;;  %6292 = vmatpush.bf16.msrb.mxu3 %v11692_v52 }
 0x938   :  { %v3389_v6 = vpop.xlane.xlu1 %3388  ;;  %v3417_v8 = vsub.f32 %v10180_v41, %v3391_v57 }
 0x939   :  { %v3416_v54 = vsub.f32 %v10183_v17, %v3389_v6 }
 0x93a   :  { %v7801_v48 = vpop.eup %7800  ;;  %v3438_v58 = vmul.f32 1.442695, %v3417_v8 }
 0x93b   :  { %6293 = vmatpush.bf16.msrb.mxu3 %v11692_v52  ;;  %v3461_v7 = vpack.c.bf16 %v7801_v48, %v7799_v43  ;;  %v3436_v53 = vmul.f32 1.442695, %v3416_v54  ;;  %v7803_v17 = vpop.eup %7802 }
 0x93c   :  { %7806 = vpow2.f32 %v3438_v58  ;;  %v7805_v39 = vpop.eup %7804 }
 0x93d   :  { %7808 = vpow2.f32 %v3436_v53  ;;  %v4050_v12 = vpack.c.bf16 %v7803_v17, %v7805_v39 }
 0x93e   :  { %3529 = vmatmul.bf16.gmra.mxu1 %v3461_v7  ;;  %3578 = vmatmul.bf16.gmra.mxu3 %v3461_v7 }
 0x93f   :  { %v3395_v41 = vpop.xlane.xlu2 %3394  ;;  %6294 = vmatpush.bf16.msrb.mxu3 %v11692_v52  ;;  %v10336_v44 = vpop.xlane.xlu0 %3396 }
 0x940   :  { %v3980_v55 = vpop.xlane.xlu1 %3979  ;;  %v3419_v4 = vsub.f32 %v10203_v19, %v3395_v41  ;;  %v4007_v19 = vsub.f32 %v10177_v32, %v10324_v50 }
 0x941   :  { %v4006_v62 = vsub.f32 %v10206_v51, %v3980_v55 }
 0x942   :  { %v7807_v51 = vpop.eup %7806  ;;  %v3442_v8 = vmul.f32 1.442695, %v3419_v4  ;;  %v4029_v21 = vmul.f32 1.442695, %v4007_v19 }
 0x943   :  { %6295 = vmatpush.bf16.msrb.mxu3 %v11692_v52  ;;  %v4027_v25 = vmul.f32 1.442695, %v4006_v62  ;;  %v7809_v46 = vpop.eup %7808 }
 0x944   :  { %v3462_v23 = vpack.c.bf16 %v7807_v51, %v7809_v46 }
 0x945   :  { %4094 = vmatmul.bf16.gmra.mxu0 %v4050_v12  ;;  %4143 = vmatmul.bf16.gmra.mxu2 %v4050_v12  ;;  %7810 = vpow2.f32 %v4027_v25 }
 0x946   :  { %4604 = vmax.xlane.f32.xlu2 %v10345_v61  ;;  %7812 = vpow2.f32 %v4025_v11  ;;  %v11720_v11 = vld [vmem:[#allocation34_spill] sm:$0xff] }
 0x947   :  { %v3986_v45 = vpop.xlane.xlu2 %3985  ;;  %6296 = vmatpush.bf16.msrb.mxu3 %v11692_v52  ;;  %v3988_v59 = vpop.xlane.xlu0 %3987 }
 0x948   :  { %v3393_v29 = vpop.xlane.xlu1 %3392  ;;  %v4010_v39 = vsub.f32 %v10218_v38, %v3988_v59  ;;  %v4009_v12 = vsub.f32 %v10220_v15, %v3986_v45  ;;  %v4493_v38 = vadd.f32 %v10322_v16, %v9995_v36 }
 0x949   :  { %v3418_v31 = vsub.f32 %v10222_v63, %v3393_v29 }
 0x94a   :  { %v4035_v2 = vmul.f32 1.442695, %v4010_v39  ;;  %vm4509_vm13 = vcmp.gt.f32.partialorder %v4493_v38, 0.0 }
 0x94b   :  { %6297 = vmatpush.bf16.msrb.mxu3 %v11692_v52  ;;  %v3440_v57 = vmul.f32 1.442695, %v3418_v31  ;;  %v7811_v43 = vpop.eup %7810 }
 0x94c   :  { %v7813_v35 = vpop.eup %7812 }
 0x94d   :  { %7814 = vpow2.f32 %v3440_v57  ;;  %v4051_v48 = vpack.c.bf16 %v7811_v43, %v7813_v35 }
 0x94e   :  { %3534 = vmatmul.bf16.gmra.mxu1 %v3462_v23  ;;  %3583 = vmatmul.bf16.gmra.mxu3 %v3462_v23  ;;  %7816 = vpow2.f32 %v3442_v8  ;;  %v11721_v23 = vld [vmem:[#allocation19_spill] sm:$0xff] }
 0x94f   :  { %5237 = vmax.xlane.f32.xlu2 %v10353_v22  ;;  %v3403_v6 = vpop.xlane.xlu2 %3402  ;;  %v3401_v63 = vpop.xlane.xlu0 %3400 }
 0x950   :  { %v3984_v49 = vpop.xlane.xlu1 %3983  ;;  %v3422_v15 = vsub.f32 %v10236_v30, %v3401_v63  ;;  %v3423_v59 = vsub.f32 %v11720_v11, %v3403_v6 }
 0x951   :  { %v4008_v52 = vsub.f32 %v10240_v27, %v3984_v49  ;;  %v3420_v27 = vsub.f32 %v10201_v33, %v10336_v44  ;;  %v4033_v33 = vmul.f32 1.442695, %v4009_v12  ;;  %v4525_v49 = vmul.f32 0.2, %v4493_v38 }
 0x952   :  { %v3448_v57 = vmul.f32 1.442695, %v3422_v15  ;;  %v3450_v43 = vmul.f32 1.442695, %v3423_v59 }
 0x953   :  { %v4031_v18 = vmul.f32 1.442695, %v4008_v52  ;;  %v7815_v58 = vpop.eup %7814  ;;  %v3444_v26 = vmul.f32 1.442695, %v3420_v27  ;;  %v11722_v52 = vld [vmem:[#allocation13_spill] sm:$0xff] }
 0x954   :  { %v7817_v53 = vpop.eup %7816  ;;  %v5126_v6 = vadd.f32 %v10333_v3, %v11722_v52  ;;  %v11724_v27 = vld [vmem:[#allocation25_spill] sm:$0xff] }
 0x955   :  { %4099 = vmatmul.bf16.gmra.mxu0 %v4051_v48  ;;  %4148 = vmatmul.bf16.gmra.mxu2 %v4051_v48  ;;  %7818 = vpow2.f32 %v4031_v18  ;;  %v3463_v55 = vpack.c.bf16 %v7817_v53, %v7815_v58  ;;  %v4541_v18 = vsel %vm4509_vm13, %v4493_v38, %v4525_v49  ;;  %v11725_v49 = vld [vmem:[#allocation33_spill] sm:$0xff] }
 0x956   :  { %7820 = vpow2.f32 %v4029_v21  ;;  %vm5142_vm15 = vcmp.gt.f32.partialorder %v5126_v6, 0.0 }
 0x957   :  { %v10359_v54 = vpop.xlane.xlu2 %3406  ;;  %v10364_v17 = vpop.xlane.xlu0 %3991 }
 0x958   :  { %v3399_v7 = vpop.xlane.xlu1 %3398  ;;  %v4012_v53 = vsub.f32 %v10253_v60, %v10364_v17 }
 0x959   :  { %v3421_v41 = vsub.f32 %v10257_v5, %v3399_v7 }
 0x95a   :  { %v4039_v12 = vmul.f32 1.442695, %v4012_v53  ;;  %v11726_v53 = vld [vmem:[#allocation15_spill] sm:$0xff] }
 0x95b   :  { %v3446_v32 = vmul.f32 1.442695, %v3421_v41  ;;  %v7819_v20 = vpop.eup %7818  ;;  %v11723_v41 = vld [vmem:[#allocation4_spill] sm:$0xff] }
 0x95c   :  { %v7821_v62 = vpop.eup %7820 }
 0x95d   :  { %7822 = vpow2.f32 %v3446_v32  ;;  %v4052_v5 = vpack.c.bf16 %v7819_v20, %v7821_v62  ;;  %v10393_v32 = vadd.f32 %v11724_v27, %v4541_v18  ;;  %v5158_v20 = vmul.f32 0.2, %v5126_v6 }
 0x95e   :  { %3539 = vmatmul.bf16.gmra.mxu1 %v3463_v55  ;;  %3588 = vmatmul.bf16.gmra.mxu3 %v3463_v55  ;;  %7824 = vpow2.f32 %v3444_v26 }
 0x95f   :  { %v10366_v50 = vpop.xlane.xlu2 %3410  ;;  %v10370_v34 = vpop.xlane.xlu0 %3993  ;;  %7826 = vpow2.f32 %v4035_v2 }
 0x960   :  { %v3990_v25 = vpop.xlane.xlu1 %3989  ;;  %7828 = vpow2.f32 %v4033_v33 }
 0x961   :  { %7830 = vpow2.f32 %v3448_v57  ;;  %v4011_v7 = vsub.f32 %v10273_v42, %v3990_v25  ;;  %v3425_v25 = vsub.f32 %v10255_v10, %v10359_v54  ;;  %v4013_v57 = vsub.f32 %v10269_v47, %v10370_v34 }
 0x962   :  { %7832 = vpow2.f32 %v3450_v43 }
 0x963   :  { %v7823_v29 = vpop.eup %7822  ;;  %v4037_v26 = vmul.f32 1.442695, %v4011_v7 }
 0x964   :  { %v7825_v46 = vpop.eup %7824 }
 0x965   :  { %4104 = vmatmul.bf16.gmra.mxu0 %v4052_v5  ;;  %4153 = vmatmul.bf16.gmra.mxu2 %v4052_v5  ;;  %v3464_v56 = vpack.c.bf16 %v7823_v29, %v7825_v46  ;;  %v7827_v30 = vpop.eup %7826  ;;  %v5174_v5 = vsel %vm5142_vm15, %v5126_v6, %v5158_v20  ;;  %7834 = vpow2.f32 %v4037_v26  ;;  %v3454_v46 = vmul.f32 1.442695, %v3425_v25  ;;  %v11727_v26 = vld [vmem:[#allocation14_spill] sm:$0xff] }
 0x966   :  { %v7829_v35 = vpop.eup %7828  ;;  %7836 = vpow2.f32 %v4039_v12  ;;  %v4041_v6 = vmul.f32 1.442695, %v4013_v57 }
 0x967   :  { %v4427_v44 = vpop.permute.xlu2 %4426  ;;  %v10384_v63 = vpop.xlane.xlu0 %3997  ;;  %v4053_v58 = vpack.c.bf16 %v7827_v30, %v7829_v35 }
 0x968   :  { %v4490_v51 = vadd.f32 %v10322_v16, %v4427_v44  ;;  %v3405_v48 = vpop.xlane.xlu1 %3404  ;;  %v7831_v42 = vpop.eup %7830 }
 0x969   :  { %v7833_v62 = vpop.eup %7832  ;;  %v3424_v2 = vsub.f32 %v10282_v14, %v3405_v48 }
 0x96a   :  { %vm4506_vm12 = vcmp.gt.f32.partialorder %v4490_v51, 0.0  ;;  %v4522_v45 = vmul.f32 0.2, %v4490_v51  ;;  %v3465_v44 = vpack.c.bf16 %v7833_v62, %v7831_v42 }
 0x96b   :  { %v3452_v38 = vmul.f32 1.442695, %v3424_v2 }
 0x96c   :  { %v4538_v31 = vsel %vm4506_vm12, %v4490_v51, %v4522_v45  ;;  %v10404_v51 = vadd.f32 %v11724_v27, %v5174_v5  ;;  %v7835_v45 = vpop.eup %7834  ;;  %v4015_v5 = vsub.f32 %v10280_v28, %v10384_v63  ;;  %v11729_v28 = vld [vmem:[#allocation6_spill] sm:$0xff]  ;;  %v11730_v63 = vld [vmem:[#allocation20_spill] sm:$0xff] }
 0x96d   :  { %v10378_v4 = vadd.f32 %v11721_v23, %v4538_v31  ;;  %v7837_v59 = vpop.eup %7836  ;;  %7838 = vpow2.f32 %v3452_v38 }
 0x96e   :  { %3544 = vmatmul.bf16.gmra.mxu1 %v3464_v56  ;;  %3593 = vmatmul.bf16.gmra.mxu3 %v3464_v56  ;;  %v4054_v31 = vpack.c.bf16 %v7837_v59, %v7835_v45  ;;  %7840 = vpow2.f32 %v3454_v46  ;;  %v4045_v25 = vmul.f32 1.442695, %v4015_v5  ;;  %v11731_v46 = vld [vmem:[#allocation29_spill] sm:$0xff] }
 0x96f   :  { %v4435_v36 = vpop.permute.xlu2 %4434  ;;  %4602 = vmax.xlane.f32.xlu1 %v10378_v4 }
 0x970   :  { %v4492_v8 = vadd.f32 %v10322_v16, %v4435_v36  ;;  %v3996_v33 = vpop.xlane.xlu1 %3995 }
 0x971   :  { %v4014_v10 = vsub.f32 %v10288_v1, %v3996_v33  ;;  %v11728_v33 = vld [vmem:[#allocation10_spill] sm:$0xff] }
 0x972   :  { %vm4508_vm14 = vcmp.gt.f32.partialorder %v4492_v8, 0.0  ;;  %v4524_v19 = vmul.f32 0.2, %v4492_v8 }
 0x973   :  { %v4043_v35 = vmul.f32 1.442695, %v4014_v10  ;;  %v7839_v52 = vpop.eup %7838 }
 0x974   :  { %v4540_v21 = vsel %vm4508_vm14, %v4492_v8, %v4524_v19  ;;  %v7841_v34 = vpop.eup %7840 }
 0x975   :  { %v10390_v55 = vadd.f32 %v11723_v41, %v4540_v21  ;;  %4109 = vmatmul.bf16.gmra.mxu0 %v4053_v58  ;;  %4158 = vmatmul.bf16.gmra.mxu2 %v4053_v58  ;;  %7842 = vpow2.f32 %v4043_v35  ;;  %v3466_v58 = vpack.c.bf16 %v7841_v34, %v7839_v52  ;;  %v3427_v21 = vsub.f32 %v10271_v37, %v10366_v50 }
 0x976   :  { %7844 = vpow2.f32 %v4041_v6 }
 0x977   :  { %4606 = vmax.xlane.f32.xlu2 %v10390_v55  ;;  %v4443_v39 = vpop.permute.xlu2 %4442  ;;  %4608 = vmax.xlane.f32.xlu1 %v10393_v32  ;;  %v3458_v62 = vmul.f32 1.442695, %v3427_v21 }
 0x978   :  { %v4494_v60 = vadd.f32 %v10322_v16, %v4443_v39  ;;  %v3409_v36 = vpop.xlane.xlu1 %3408 }
 0x979   :  { %v3426_v19 = vsub.f32 %v10293_v13, %v3409_v36 }
 0x97a   :  { %v10398_v17 = vpop.permute.xlu0 %4446  ;;  %v4526_v29 = vmul.f32 0.2, %v4494_v60  ;;  %vm4510_vm0 = vcmp.gt.f32.partialorder %v4494_v60, 0.0 }
 0x97b   :  { %v3456_v20 = vmul.f32 1.442695, %v3426_v19  ;;  %v7843_v42 = vpop.eup %7842  ;;  %v4495_v45 = vadd.f32 %v10322_v16, %v10398_v17 }
 0x97c   :  { %v4542_v11 = vsel %vm4510_vm0, %v4494_v60, %v4526_v29  ;;  %v7845_v37 = vpop.eup %7844 }
 0x97d   :  { %v10413_v43 = vadd.f32 %v11725_v49, %v4542_v11  ;;  %7846 = vpow2.f32 %v3456_v20  ;;  %v4055_v60 = vpack.c.bf16 %v7843_v42, %v7845_v37  ;;  %vm4511_vm5 = vcmp.gt.f32.partialorder %v4495_v45, 0.0  ;;  %v11732_v49 = vld [vmem:[#allocation22_spill] sm:$0xff] }
 0x97e   :  { %3549 = vmatmul.bf16.gmra.mxu1 %v3465_v44  ;;  %3598 = vmatmul.bf16.gmra.mxu3 %v3465_v44  ;;  %7848 = vpow2.f32 %v3458_v62 }
 0x97f   :  { %5241 = vmax.xlane.f32.xlu2 %v10404_v51  ;;  %v5080_v15 = vpop.permute.xlu2 %5079 }
 0x980   :  { %v5128_v14 = vadd.f32 %v10333_v3, %v5080_v15  ;;  %v4000_v13 = vpop.xlane.xlu1 %3999 }
 0x981   :  { %v4016_v50 = vsub.f32 %v10298_v40, %v4000_v13 }
 0x982   :  { %v5160_v30 = vmul.f32 0.2, %v5128_v14  ;;  %vm5144_vm3 = vcmp.gt.f32.partialorder %v5128_v14, 0.0 }
 0x983   :  { %v5060_v54 = vpop.permute.xlu0 %5059  ;;  %v4047_v2 = vmul.f32 1.442695, %v4016_v50  ;;  %v7847_v44 = vpop.eup %7846 }
 0x984   :  { %v5123_v56 = vadd.f32 %v10333_v3, %v5060_v54  ;;  %v5176_v47 = vsel %vm5144_vm3, %v5128_v14, %v5160_v30  ;;  %v4527_v14 = vmul.f32 0.2, %v4495_v45 }
 0x985   :  { %4114 = vmatmul.bf16.gmra.mxu0 %v4054_v31  ;;  %4163 = vmatmul.bf16.gmra.mxu2 %v4054_v31  ;;  %v10425_v27 = vadd.f32 %v11726_v53, %v5176_v47  ;;  %7850 = vpow2.f32 %v4047_v2 }
 0x986   :  { %vm5139_vm2 = vcmp.gt.f32.partialorder %v5123_v56, 0.0  ;;  %v5155_v8 = vmul.f32 0.2, %v5123_v56  ;;  %7852 = vpow2.f32 %v4045_v25  ;;  %v4543_v11 = vsel %vm4511_vm5, %v4495_v45, %v4527_v14 }
 0x987   :  { %4610 = vmax.xlane.f32.xlu2 %v10413_v43  ;;  %v10446_v59 = vadd.f32 %v11726_v53, %v4543_v11 }
 0x988   :  { %v5171_v1 = vsel %vm5139_vm2, %v5123_v56, %v5155_v8 }
 0x989   :  { %v10417_v48 = vadd.f32 %v11721_v23, %v5171_v1 }
 0x98b   :  { %5235 = vmax.xlane.f32.xlu0 %v10417_v48  ;;  %v5068_v18 = vpop.permute.xlu0 %5067 }
 0x98c   :  { %v5125_v7 = vadd.f32 %v10333_v3, %v5068_v18 }
 0x98e   :  { %vm5141_vm4 = vcmp.gt.f32.partialorder %v5125_v7, 0.0  ;;  %v5157_v23 = vmul.f32 0.2, %v5125_v7  ;;  %3554 = vmatmul.bf16.gmra.mxu1 %v3466_v58  ;;  %3603 = vmatmul.bf16.gmra.mxu3 %v3466_v58 }
 0x98f   :  { %5245 = vmax.xlane.f32.xlu2 %v10425_v27 }
 0x990   :  { %4450 = vperm.xlu1 %7508, %v11727_v26   ;;  %v5173_v39 = vsel %vm5141_vm4, %v5125_v7, %v5157_v23  ;;  %v10469_v23 = vld [vmem:[%s11507_s1 + $0x18] sm:$0xff]  }
 0x991   :  { %v10430_v12 = vadd.f32 %v11723_v41, %v5173_v39  ;;  %v7849_v41 = vpop.eup %7848  ;;  %v7267_v39 = vunpack.c.l.bf16 %v10469_v23 }
 0x992   :  { %v3467_v29 = vpack.c.bf16 %v7849_v41, %v7847_v44  ;;  %v7851_v40 = vpop.eup %7850 }
 0x993   :  { %5239 = vmax.xlane.f32.xlu0 %v10430_v12  ;;  %v7853_v38 = vpop.eup %7852 }
 0x994   :  { %v4056_v15 = vpack.c.bf16 %v7851_v40, %v7853_v38 }
 0x995   :  { %4119 = vmatmul.bf16.gmra.mxu0 %v4055_v60  ;;  %4168 = vmatmul.bf16.gmra.mxu2 %v4055_v60 }
 0x998   :  { %4458 = vperm.xlu1 %7508, %v11728_v33  }
 0x99e   :  { %3559 = vmatmul.bf16.gmra.mxu1 %v3467_v29  ;;  %3608 = vmatmul.bf16.gmra.mxu3 %v3467_v29 }
 0x9a0   :  { %7509 = vset.pattern.permute.xlu1 %v11693_v24 }
 0x9a5   :  { %4124 = vmatmul.bf16.gmra.mxu0 %v4056_v15  ;;  %4173 = vmatmul.bf16.gmra.mxu2 %v4056_v15  ;;  %v7268_v15 = vunpack.c.h.bf16 %v10469_v23 }
 0x9a7   :  { %4454 = vperm.xlu2 %7510, %v11729_v28  }
 0x9af   :  { %5337 = vrot.lane.b32.xlu2 %v11730_v63, %s8121_s17 }
 0x9b1   :  { %v10557_v23 = vpop.f32.mrf.mxu3 }
 0x9b7   :  { %4700 = vrot.lane.b32.xlu2 %v11731_v46, %s8120_s0 }
 0x9b9   :  { %v4605_v10 = vpop.xlane.xlu2 %4604 }
 0x9ba   :  { %v4635_v54 = vsub.f32 %v10345_v61, %v4605_v10 }
 0x9bc   :  { %v4652_v56 = vmul.f32 1.442695, %v4635_v54 }
 0x9be   :  { %7854 = vpow2.f32 %v4652_v56 }
 0x9c2   :  { %4612 = vmax.xlane.f32.xlu1 %v10446_v59  ;;  %v5238_v31 = vpop.xlane.xlu2 %5237 }
 0x9c3   :  { %v5268_v19 = vsub.f32 %v10353_v22, %v5238_v31 }
 0x9c4   :  { %v7855_v35 = vpop.eup %7854 }
 0x9c5   :  { %v5285_v58 = vmul.f32 1.442695, %v5268_v19  ;;  %v11737_v19 = vld [vmem:[#allocation18_spill] sm:$0xff] }
 0x9db   :  { %5075 = vperm.xlu1 %7509, %v9836_v0  }
 0x9e2   :  { %v4603_v57 = vpop.xlane.xlu1 %4602 }
 0x9e3   :  { %v4634_v17 = vsub.f32 %v10378_v4, %v4603_v57  ;;  %4702 = vrot.lane.b32.xlu1 %v11732_v49, %s8120_s0 }
 0x9e5   :  { %v4650_v36 = vmul.f32 1.442695, %v4634_v17  ;;  %v11733_v17 = vld [vmem:[#allocation17_spill] sm:$0xff] }
 0x9e7   :  { %7856 = vpow2.f32 %v4650_v36 }
 0x9ea   :  { %v4607_v30 = vpop.xlane.xlu2 %4606  ;;  %v4609_v8 = vpop.xlane.xlu1 %4608 }
 0x9eb   :  { %5333 = vrot.lane.b32.xlu1 %v11731_v46, %s8121_s17  ;;  %v4636_v0 = vsub.f32 %v10390_v55, %v4607_v30  ;;  %v4637_v1 = vsub.f32 %v10393_v32, %v4609_v8  ;;  %v11734_v30 = vld [vmem:[#allocation30_spill] sm:$0xff] }
 0x9ed   :  { %v7857_v61 = vpop.eup %7856  ;;  %v4654_v4 = vmul.f32 1.442695, %v4636_v0  ;;  %v4656_v6 = vmul.f32 1.442695, %v4637_v1  ;;  %v8112_v1 = vld [vmem:[%s11507_s1 + $0x10] sm:$0xff]  }
 0x9ee   :  { %v10458_v52 = vpack.c.bf16 %v7855_v35, %v7857_v61 }
 0x9ef   :  { %7858 = vpow2.f32 %v4654_v4  ;;  %v7295_v4 = vunpack.c.l.bf16 %v8112_v1 }
 0x9f0   :  { %4771 = vmatmul.bf16.vlgmr.msra.gmra.mxu3 %v10458_v52  ;;  %7860 = vpow2.f32 %v4656_v6 }
 0x9f1   :  { %7862 = vpow2.f32 %v5285_v58 }
 0x9f2   :  { %v5242_v47 = vpop.xlane.xlu2 %5241 }
 0x9f3   :  { %v5270_v25 = vsub.f32 %v10404_v51, %v5242_v47 }
 0x9f5   :  { %v7859_v34 = vpop.eup %7858  ;;  %v5289_v38 = vmul.f32 1.442695, %v5270_v25 }
 0x9f6   :  { %v7861_v7 = vpop.eup %7860 }
 0x9f7   :  { %v10462_v55 = vpack.c.bf16 %v7861_v7, %v7859_v34  ;;  %v7863_v37 = vpop.eup %7862 }
 0x9fa   :  { %v4611_v18 = vpop.xlane.xlu2 %4610 }
 0x9fb   :  { %v4638_v54 = vsub.f32 %v10413_v43, %v4611_v18 }
 0x9fd   :  { %v4658_v56 = vmul.f32 1.442695, %v4638_v54 }
 0x9fe   :  { %v5236_v21 = vpop.xlane.xlu0 %5235 }
 0x9ff   :  { %v5267_v32 = vsub.f32 %v10417_v48, %v5236_v21 }
 0xa00   :  { %4776 = vmatmul.bf16.gmra.mxu3 %v10462_v55 }
 0xa01   :  { %v5283_v53 = vmul.f32 1.442695, %v5267_v32  ;;  %v11738_v32 = vld [vmem:[#allocation24_spill] sm:$0xff] }
 0xa02   :  { %v10471_v20 = vpop.xlane.xlu2 %5245  ;;  %v4451_v22 = vpop.permute.xlu1 %4450 }
 0xa03   :  { %7864 = vpow2.f32 %v5283_v53  ;;  %v4496_v13 = vadd.f32 %v10322_v16, %v4451_v22 }
 0xa05   :  { %vm4512_vm6 = vcmp.gt.f32.partialorder %v4496_v13, 0.0  ;;  %v4528_v42 = vmul.f32 0.2, %v4496_v13 }
 0xa06   :  { %v5240_v48 = vpop.xlane.xlu0 %5239 }
 0xa07   :  { %v4544_v62 = vsel %vm4512_vm6, %v4496_v13, %v4528_v42  ;;  %v5269_v5 = vsub.f32 %v10430_v12, %v5240_v48 }
 0xa08   :  { %v4592_v50 = vadd.f32 %v7267_v39, %v4544_v62 }
 0xa09   :  { %v7865_v60 = vpop.eup %7864  ;;  %v5287_v29 = vmul.f32 1.442695, %v5269_v5  ;;  %v5272_v5 = vsub.f32 %v10425_v27, %v10471_v20 }
 0xa0a   :  { %v10478_v2 = vpack.c.bf16 %v7863_v37, %v7865_v60  ;;  %v4455_v44 = vpop.permute.xlu2 %4454  ;;  %4614 = vmax.xlane.f32.xlu2 %v4592_v50  ;;  %v10489_v10 = vpop.permute.xlu1 %4458 }
 0xa0b   :  { %v4497_v41 = vadd.f32 %v10322_v16, %v4455_v44  ;;  %7866 = vpow2.f32 %v5287_v29  ;;  %v5293_v44 = vmul.f32 1.442695, %v5272_v5  ;;  %v11743_v5 = vld [vmem:[#allocation11_spill] sm:$0xff] }
 0xa0c   :  { %5404 = vmatmul.bf16.vlgmr.msra.gmra.mxu2 %v10478_v2  ;;  %7868 = vpow2.f32 %v5289_v38 }
 0xa0d   :  { %vm4513_vm11 = vcmp.gt.f32.partialorder %v4497_v41, 0.0  ;;  %v4529_v40 = vmul.f32 0.2, %v4497_v41  ;;  %7870 = vpow2.f32 %v4658_v56 }
 0xa0f   :  { %v4545_v45 = vsel %vm4513_vm11, %v4497_v41, %v4529_v40  ;;  %v11740_v40 = vld [vmem:[#allocation32_spill] sm:$0xff] }
 0xa10   :  { %v4593_v12 = vadd.f32 %v7268_v15, %v4545_v45 }
 0xa11   :  { %v7867_v51 = vpop.eup %7866 }
 0xa12   :  { %v5338_v46 = vpop.permute.xlu2 %5337  ;;  %v7869_v14 = vpop.eup %7868 }
 0xa13   :  { %5347 = vmatpush.bf16.msrb.mxu0 %v5338_v46  ;;  %v10486_v11 = vpack.c.bf16 %v7869_v14, %v7867_v51  ;;  %v7871_v8 = vpop.eup %7870 }
 0xa15   :  { %4616 = vmax.xlane.f32.xlu1 %v4593_v12 }
 0xa1a   :  { %v4701_v7 = vpop.permute.xlu2 %4700 }
 0xa1c   :  { %5409 = vmatmul.bf16.gmra.mxu2 %v10486_v11 }
 0xa2e   :  { %5087 = vperm.xlu1 %7509, %v11729_v28   ;;  %v11735_v28 = vld [vmem:[#allocation31_spill] sm:$0xff] }
 0xa35   :  { %v4613_v31 = vpop.xlane.xlu1 %4612 }
 0xa36   :  { %v4639_v57 = vsub.f32 %v10446_v59, %v4613_v31  ;;  %5095 = vperm.xlu1 %7509, %v11733_v17   ;;  %v11736_v59 = vld [vmem:[#allocation5_spill] sm:$0xff] }
 0xa38   :  { %v4660_v36 = vmul.f32 1.442695, %v4639_v57  ;;  %v11742_v57 = vld [vmem:[#allocation7_spill] sm:$0xff] }
 0xa3a   :  { %7872 = vpow2.f32 %v4660_v36 }
 0xa3e   :  { %5099 = vperm.xlu1 %7509, %v11734_v30  }
 0xa40   :  { %v7873_v35 = vpop.eup %7872 }
 0xa41   :  { %v10496_v0 = vpack.c.bf16 %v7873_v35, %v7871_v8 }
 0xa43   :  { %4781 = vmatmul.bf16.gmra.mxu3 %v10496_v0 }
 0xa46   :  { %5107 = vperm.xlu1 %7509, %v11735_v28  }
 0xa4d   :  { %v5076_v43 = vpop.permute.xlu1 %5075 }
 0xa4e   :  { %v5127_v61 = vadd.f32 %v10333_v3, %v5076_v43  ;;  %4694 = vrot.lane.b32.xlu1 %v11736_v59, %s8120_s0  ;;  %v10564_v43 = vpop.f32.mrf.mxu3 }
 0xa4f   :  { %7511 = vset.pattern.permute.xlu1 %v11676_v9 }
 0xa50   :  { %vm5143_vm12 = vcmp.gt.f32.partialorder %v5127_v61, 0.0  ;;  %v5159_v6 = vmul.f32 0.2, %v5127_v61 }
 0xa52   :  { %v5175_v47 = vsel %vm5143_vm12, %v5127_v61, %v5159_v6 }
 0xa53   :  { %v5223_v34 = vadd.f32 %v7295_v4, %v5175_v47 }
 0xa55   :  { %5243 = vmax.xlane.f32.xlu0 %v5223_v34  ;;  %v4703_v18 = vpop.permute.xlu1 %4702 }
 0xa56   :  { %5325 = vrot.lane.b32.xlu1 %v11737_v19, %s8121_s17 }
 0xa5d   :  { %v5334_v58 = vpop.permute.xlu1 %5333 }
 0xa69   :  { %5083 = vperm.xlu0 %7506, %v11727_v26  }
 0xa71   :  { %5091 = vperm.xlu0 %7506, %v11728_v33   ;;  %v11739_v33 = vld [vmem:[#allocation28_spill] sm:$0xff] }
 0xa79   :  { %4704 = vrot.lane.b32.xlu0 %v11730_v63, %s8120_s0 }
 0xa7d   :  { %v4615_v21 = vpop.xlane.xlu2 %4614 }
 0xa7e   :  { %v4640_v53 = vsub.f32 %v4592_v50, %v4615_v21 }
 0xa80   :  { %v4662_v22 = vmul.f32 1.442695, %v4640_v53 }
 0xa81   :  { %5103 = vperm.xlu0 %7506, %v11738_v32  }
 0xa82   :  { %7874 = vpow2.f32 %v4662_v22 }
 0xa88   :  { %v4617_v13 = vpop.xlane.xlu1 %4616  ;;  %v7875_v63 = vpop.eup %7874 }
 0xa89   :  { %v4641_v42 = vsub.f32 %v4593_v12, %v4617_v13  ;;  %5335 = vrot.lane.b32.xlu0 %v11732_v49, %s8121_s17  ;;  %v11741_v12 = vld [vmem:[#allocation23_spill] sm:$0xff] }
 0xa8a   :  { %7513 = vset.pattern.permute.xlu0 %v11676_v9 }
 0xa8b   :  { %v4664_v26 = vmul.f32 1.442695, %v4641_v42 }
 0xa8d   :  { %7876 = vpow2.f32 %v4664_v26 }
 0xa8e   :  { %7878 = vpow2.f32 %v5293_v44 }
 0xa91   :  { %4698 = vrot.lane.b32.xlu0 %v11739_v33, %s8120_s0 }
 0xa93   :  { %v7877_v48 = vpop.eup %7876 }
 0xa94   :  { %v10519_v62 = vpack.c.bf16 %v7877_v48, %v7875_v63  ;;  %v7879_v38 = vpop.eup %7878 }
 0xa96   :  { %4786 = vmatmul.bf16.gmra.mxu3 %v10519_v62 }
 0xa99   :  { %5331 = vrot.lane.b32.xlu0 %v11739_v33, %s8121_s17 }
 0xaa0   :  { %v5088_v37 = vpop.permute.xlu1 %5087 }
 0xaa1   :  { %v5130_v49 = vadd.f32 %v10333_v3, %v5088_v37 }
 0xaa3   :  { %vm5146_vm13 = vcmp.gt.f32.partialorder %v5130_v49, 0.0  ;;  %v5162_v9 = vmul.f32 0.2, %v5130_v49 }
 0xaa5   :  { %v5178_v50 = vsel %vm5146_vm13, %v5130_v49, %v5162_v9 }
 0xaa6   :  { %v10527_v60 = vadd.f32 %v7268_v15, %v5178_v50 }
 0xaa8   :  { %5249 = vmax.xlane.f32.xlu2 %v10527_v60  ;;  %v5096_v48 = vpop.permute.xlu1 %5095 }
 0xac0   :  { %4462 = vperm.xlu2 %7510, %v11733_v17  }
 0xac8   :  { %v5244_v25 = vpop.xlane.xlu0 %5243  ;;  %4470 = vperm.xlu2 %7510, %v11738_v32   ;;  %v4498_v32 = vadd.f32 %v10322_v16, %v10489_v10  ;;  %v5132_v10 = vadd.f32 %v10333_v3, %v5096_v48 }
 0xac9   :  { %v5271_v41 = vsub.f32 %v5223_v34, %v5244_v25  ;;  %v10574_v34 = vpop.f32.mrf.mxu3 }
 0xaca   :  { %v4530_v33 = vmul.f32 0.2, %v4498_v32  ;;  %vm4514_vm2 = vcmp.gt.f32.partialorder %v4498_v32, 0.0  ;;  %v5164_v50 = vmul.f32 0.2, %v5132_v10  ;;  %vm5148_vm3 = vcmp.gt.f32.partialorder %v5132_v10, 0.0 }
 0xacb   :  { %v5291_v29 = vmul.f32 1.442695, %v5271_v41 }
 0xacc   :  { %v4546_v49 = vsel %vm4514_vm2, %v4498_v32, %v4530_v33  ;;  %v5180_v41 = vsel %vm5148_vm3, %v5132_v10, %v5164_v50 }
 0xacd   :  { %7880 = vpow2.f32 %v5291_v29 }
 0xad0   :  { %4478 = vperm.xlu2 %7510, %v11740_v40  }
 0xad3   :  { %v7881_v15 = vpop.eup %7880 }
 0xad4   :  { %v10535_v45 = vpack.c.bf16 %v7879_v38, %v7881_v15 }
 0xad6   :  { %5414 = vmatmul.bf16.gmra.mxu2 %v10535_v45 }
 0xad8   :  { %5327 = vrot.lane.b32.xlu2 %v11736_v59, %s8121_s17  ;;  %v7401_v59 = vld [vmem:[%s11507_s1 + $0x20] sm:$0xff]  }
 0xad9   :  { %7512 = vset.pattern.permute.xlu2 %v11693_v24  ;;  %v7303_v6 = vunpack.c.l.bf16 %v7401_v59  ;;  %v7272_v13 = vunpack.c.h.bf16 %v7401_v59 }
 0xadb   :  { %v5084_v27 = vpop.permute.xlu0 %5083  ;;  %v10594_v9 = vadd.f32 %v7303_v6, %v4546_v49  ;;  %v10602_v29 = vadd.f32 %v7272_v13, %v5180_v41 }
 0xadc   :  { %v5129_v20 = vadd.f32 %v10333_v3, %v5084_v27 }
 0xade   :  { %vm5145_vm14 = vcmp.gt.f32.partialorder %v5129_v20, 0.0  ;;  %v5161_v46 = vmul.f32 0.2, %v5129_v20 }
 0xae0   :  { %4690 = vrot.lane.b32.xlu2 %v11741_v12, %s8120_s0  ;;  %v5177_v51 = vsel %vm5145_vm14, %v5129_v20, %v5161_v46  ;;  %v11745_v46 = vld [vmem:[#allocation9_spill] sm:$0xff] }
 0xae1   :  { %v10546_v14 = vadd.f32 %v7267_v39, %v5177_v51  ;;  %v10559_v39 = vpop.f32.mrf.mxu2 }
 0xae3   :  { %5247 = vmax.xlane.f32.xlu0 %v10546_v14  ;;  %v5092_v54 = vpop.permute.xlu0 %5091 }
 0xae4   :  { %v5131_v8 = vadd.f32 %v10333_v3, %v5092_v54 }
 0xae6   :  { %v5163_v35 = vmul.f32 0.2, %v5131_v8  ;;  %vm5147_vm15 = vcmp.gt.f32.partialorder %v5131_v8, 0.0 }
 0xae8   :  { %5323 = vrot.lane.b32.xlu2 %v11741_v12, %s8121_s17  ;;  %v5179_v4 = vsel %vm5147_vm15, %v5131_v8, %v5163_v35 }
 0xae9   :  { %v10566_v61 = vpop.f32.mrf.mxu2  ;;  %v10571_v47 = vadd.f32 %v7303_v6, %v5179_v4 }
 0xaeb   :  { %v4705_v56 = vpop.permute.xlu0 %4704 }
 0xaec   :  { %4714 = vmatpush.bf16.msrb.mxu1 %v4705_v56 }
 0xaf0   :  { %4715 = vmatpush.bf16.msrb.mxu1 %v4703_v18 }
 0xaf3   :  { %v10551_v31 = vpop.permute.xlu0 %5103 }
 0xaf4   :  { %4716 = vmatpush.bf16.msrb.mxu1 %v4701_v7  ;;  %v10578_v7 = vpop.f32.mrf.mxu3 }
 0xaf7   :  { %4696 = vrot.lane.b32.xlu0 %v11742_v57, %s8120_s0 }
 0xafb   :  { %v5336_v17 = vpop.permute.xlu0 %5335 }
 0xafc   :  { %5348 = vmatpush.bf16.msrb.mxu0 %v5336_v17  ;;  %v10585_v42 = vpop.f32.mrf.mxu3 }
 0xaff   :  { %5329 = vrot.lane.b32.xlu0 %v11742_v57, %s8121_s17 }
 0xb00   :  { %5349 = vmatpush.bf16.msrb.mxu0 %v5334_v58 }
 0xb03   :  { %v4699_v36 = vpop.permute.xlu0 %4698 }
 0xb04   :  { %4717 = vmatpush.bf16.msrb.mxu1 %v4699_v36  ;;  %v10598_v44 = vpop.f32.mrf.mxu3  ;;  %v5100_v36 = vpop.permute.xlu1 %5099 }
 0xb05   :  { %v5133_v32 = vadd.f32 %v10333_v3, %v5100_v36 }
 0xb07   :  { %4692 = vrot.lane.b32.xlu0 %v11737_v19, %s8120_s0  ;;  %v10576_v19 = vpop.f32.mrf.mxu2  ;;  %v5165_v33 = vmul.f32 0.2, %v5133_v32  ;;  %vm5149_vm4 = vcmp.gt.f32.partialorder %v5133_v32, 0.0 }
 0xb09   :  { %v5181_v50 = vsel %vm5149_vm4, %v5133_v32, %v5165_v33 }
 0xb0b   :  { %v5332_v1 = vpop.permute.xlu0 %5331 }
 0xb0c   :  { %5350 = vmatpush.bf16.msrb.mxu0 %v5332_v1  ;;  %v10606_v38 = vpop.f32.mrf.mxu3  ;;  %v10635_v6 = vpop.permute.xlu1 %5107 }
 0xb0f   :  { %v10580_v58 = vpop.f32.mrf.mxu2 }
 0xb11   :  { %5251 = vmax.xlane.f32.xlu2 %v10571_v47 }
 0xb14   :  { %v10611_v27 = vpop.f32.mrf.mxu3 }
 0xb17   :  { %v10587_v26 = vpop.f32.mrf.mxu2 }
 0xb1b   :  { %v5250_v18 = vpop.xlane.xlu2 %5249 }
 0xb1c   :  { %v10617_v12 = vpop.f32.mrf.mxu3  ;;  %v5274_v54 = vsub.f32 %v10527_v60, %v5250_v18 }
 0xb1d   :  { %11746 = vst [vmem:[#allocation12_spill] sm:$0xff] %v10617_v12 }
 0xb1f   :  { %v10600_v25 = vpop.f32.mrf.mxu2 }
 0xb23   :  { %v4463_v21 = vpop.permute.xlu2 %4462 }
 0xb24   :  { %v4499_v53 = vadd.f32 %v10322_v16, %v4463_v21 }
 0xb26   :  { %vm4515_vm0 = vcmp.gt.f32.partialorder %v4499_v53, 0.0  ;;  %v4531_v22 = vmul.f32 0.2, %v4499_v53 }
 0xb27   :  { %v10608_v15 = vpop.f32.mrf.mxu2 }
 0xb28   :  { %v4547_v63 = vsel %vm4515_vm0, %v4499_v53, %v4531_v22  ;;  %v4695_v53 = vpop.permute.xlu1 %4694 }
 0xb29   :  { %5111 = vperm.xlu2 %7512, %v11740_v40   ;;  %v10590_v37 = vadd.f32 %v7272_v13, %v4547_v63  ;;  %v11744_v40 = vmov 0   ;;  %v10651_v63 = vld [vmem:[%s11507_s1 + $0x28] sm:$0xff]  }
 0xb2a   :  { %v11609_v10 = vunpack.c.l.bf16 %v10651_v63 }
 0xb2b   :  { %4620 = vmax.xlane.f32.xlu1 %v10590_v37  ;;  %v4471_v56 = vpop.permute.xlu2 %4470 }
 0xb2f   :  { %v10613_v20 = vpop.f32.mrf.mxu2 }
 0xb31   :  { %4618 = vmax.xlane.f32.xlu0 %v10594_v9  ;;  %5115 = vperm.xlu2 %7512, %v11743_v5  }
 0xb33   :  { %v10631_v60 = vpop.permute.xlu2 %4478 }
 0xb37   :  { %v10619_v51 = vpop.f32.mrf.mxu2 }
 0xb39   :  { %5253 = vmax.xlane.f32.xlu0 %v10602_v29  ;;  %7517 = vset.pattern.permute.xlu2 %v11744_v40 }
 0xb3b   :  { %v5328_v21 = vpop.permute.xlu2 %5327 }
 0xb3f   :  { %v10627_v35 = vpop.f32.mrf.mxu2 }
 0xb43   :  { %v4691_v49 = vpop.permute.xlu2 %4690 }
 0xb44   :  { %4466 = vperm.xlu1 %7511, %v11734_v30   ;;  %v5297_v30 = vmul.f32 1.442695, %v5274_v54  ;;  %v5326_v54 = vpop.permute.xlu1 %5325 }
 0xb46   :  { %7882 = vpow2.f32 %v5297_v30 }
 0xb47   :  { %v10639_v18 = vpop.f32.mrf.mxu2 }
 0xb4c   :  { %4474 = vperm.xlu1 %7511, %v11735_v28   ;;  %v10625_v28 = vpop.f32.mrf.mxu3  ;;  %v7883_v59 = vpop.eup %7882 }
 0xb4d   :  { %4486 = vperm.xlu0 %7513, %v11745_v46  }
 0xb4f   :  { %v10646_v13 = vpop.f32.mrf.mxu2 }
 0xb54   :  { %4482 = vperm.xlu1 %7511, %v11743_v5   ;;  %v10656_v5 = vadd.f32 %v11609_v10, %v5181_v50 }
 0xb55   :  { %7516 = vset.pattern.permute.xlu0 %v11744_v40 }
 0xb56   :  { %v5248_v57 = vpop.xlane.xlu0 %5247 }
 0xb57   :  { %v5273_v17 = vsub.f32 %v10546_v14, %v5248_v57  ;;  %v10637_v14 = vpop.f32.mrf.mxu3  ;;  %v4501_v57 = vadd.f32 %v10322_v16, %v4471_v56 }
 0xb58   :  { %11747 = vst [vmem:[#allocation21_spill] sm:$0xff] %v10637_v14 }
 0xb59   :  { %v5295_v8 = vmul.f32 1.442695, %v5273_v17  ;;  %v5324_v17 = vpop.permute.xlu2 %5323  ;;  %v4533_v36 = vmul.f32 0.2, %v4501_v57  ;;  %vm4517_vm5 = vcmp.gt.f32.partialorder %v4501_v57, 0.0 }
 0xb5b   :  { %7884 = vpow2.f32 %v5295_v8 }
 0xb5c   :  { %7514 = vset.pattern.permute.xlu1 %v11693_v24  ;;  %7886 = vrcp.f32 %v10566_v61 }
 0xb5d   :  { %5119 = vperm.xlu1 %7514, %v11745_v46   ;;  %v10661_v46 = vpop.f32.mrf.mxu2 }
 0xb5f   :  { %v10644_v22 = vpop.f32.mrf.mxu3 }
 0xb60   :  { %11748 = vst [vmem:[#allocation26_spill] sm:$0xff] %v10644_v22 }
 0xb61   :  { %v7885_v1 = vpop.eup %7884 }
 0xb62   :  { %v10633_v4 = vpack.c.bf16 %v7883_v59, %v7885_v1  ;;  %v4549_v59 = vsel %vm4517_vm5, %v4501_v57, %v4533_v36 }
 0xb64   :  { %5419 = vmatmul.bf16.gmra.mxu2 %v10633_v4 }
 0xb65   :  { %7515 = vset.pattern.permute.xlu1 %v11744_v40  ;;  %v10666_v8 = vpop.f32.mrf.mxu2 }
 0xb67   :  { %v10659_v41 = vpop.f32.mrf.mxu3 }
 0xb68   :  { %11749 = vst [vmem:[#allocation16_spill] sm:$0xff] %v10659_v41 }
 0xb69   :  { %v4697_v24 = vpop.permute.xlu0 %4696 }
 0xb6a   :  { %4718 = vmatpush.bf16.msrb.mxu1 %v4697_v24 }
 0xb6d   :  { %v10676_v32 = vpop.f32.mrf.mxu2 }
 0xb6e   :  { %4719 = vmatpush.bf16.msrb.mxu1 %v4695_v53  ;;  %11751 = vst [vmem:[#allocation34_spill] sm:$0xff] %v10676_v32 }
 0xb6f   :  { %v10668_v1 = vpop.f32.mrf.mxu3 }
 0xb70   :  { %11750 = vst [vmem:[#allocation8_spill] sm:$0xff] %v10668_v1 }
 0xb71   :  { %v5330_v48 = vpop.permute.xlu0 %5329 }
 0xb72   :  { %5351 = vmatpush.bf16.msrb.mxu0 %v5330_v48  ;;  %v10684_v48 = vld [vmem:[%s11507_s1 + $0x30] sm:$0xff]  }
 0xb75   :  { %v10700_v36 = vpop.f32.mrf.mxu2 }
 0xb76   :  { %5352 = vmatpush.bf16.msrb.mxu0 %v5328_v21  ;;  %v11608_v21 = vunpack.c.h.bf16 %v10651_v63  ;;  %11753 = vst [vmem:[#allocation13_spill] sm:$0xff] %v10700_v36 }
 0xb77   :  { %5255 = vmax.xlane.f32.xlu0 %v10656_v5 }
 0xb78   :  { %v10673_v56 = vadd.f32 %v11608_v21, %v4549_v59 }
 0xb79   :  { %v4693_v30 = vpop.permute.xlu0 %4692 }
 0xb7a   :  { %4720 = vmatpush.bf16.msrb.mxu1 %v4693_v30  ;;  %5353 = vmatpush.bf16.msrb.mxu0 %v5326_v54  ;;  %v10696_v30 = vld [vmem:[%s11507_s1 + $0x38] sm:$0xff]  }
 0xb7e   :  { %4721 = vmatpush.bf16.msrb.mxu1 %v4691_v49  ;;  %5354 = vmatpush.bf16.msrb.mxu0 %v5324_v17  ;;  %v11607_v49 = vunpack.c.h.bf16 %v10684_v48 }
 0xb81   :  { %4722 = vmatmul.bf16.vlgmr.msrb.gmra.mxu1 %v10458_v52  ;;  %5355 = vmatmul.bf16.vlgmr.msrb.gmra.mxu0 %v10478_v2  ;;  %v10678_v52 = vpop.f32.mrf.mxu3 }
 0xb82   :  { %11752 = vst [vmem:[#allocation19_spill] sm:$0xff] %v10678_v52 }
 0xb84   :  { %v5252_v24 = vpop.xlane.xlu2 %5251 }
 0xb87   :  { %4624 = vmax.xlane.f32.xlu1 %v10673_v56 }
 0xb8c   :  { %v5112_v53 = vpop.permute.xlu2 %5111 }
 0xb8d   :  { %v5136_v2 = vadd.f32 %v10333_v3, %v5112_v53 }
 0xb8f   :  { %vm5152_vm6 = vcmp.gt.f32.partialorder %v5136_v2, 0.0  ;;  %v5168_v33 = vmul.f32 0.2, %v5136_v2 }
 0xb91   :  { %4727 = vmatmul.bf16.gmra.mxu1 %v10462_v55  ;;  %5360 = vmatmul.bf16.gmra.mxu0 %v10486_v11  ;;  %v5184_v50 = vsel %vm5152_vm6, %v5136_v2, %v5168_v33  ;;  %v11610_v55 = vunpack.c.l.bf16 %v10696_v30  ;;  %v10703_v11 = vpop.f32.mrf.mxu3  ;;  %v10710_v33 = vpop.f32.mrf.mxu2 }
 0xb92   :  { %v10691_v54 = vadd.f32 %v11607_v49, %v5184_v50  ;;  %11754 = vst [vmem:[#allocation4_spill] sm:$0xff] %v10703_v11 }
 0xb94   :  { %v5116_v57 = vpop.permute.xlu2 %5115  ;;  %5261 = vmax.xlane.f32.xlu0 %v10691_v54 }
 0xb95   :  { %v5137_v17 = vadd.f32 %v10333_v3, %v5116_v57 }
 0xb97   :  { %vm5153_vm11 = vcmp.gt.f32.partialorder %v5137_v17, 0.0  ;;  %v5169_v59 = vmul.f32 0.2, %v5137_v17 }
 0xb99   :  { %v5185_v53 = vsel %vm5153_vm11, %v5137_v17, %v5169_v59  ;;  %v10712_v49 = vpop.f32.mrf.mxu3 }
 0xb9a   :  { %v10707_v2 = vadd.f32 %v11610_v55, %v5185_v53  ;;  %v10719_v53 = vpop.f32.mrf.mxu2  ;;  %v5275_v55 = vsub.f32 %v10571_v47, %v5252_v24 }
 0xb9c   :  { %5263 = vmax.xlane.f32.xlu0 %v10707_v2 }
 0xb9e   :  { %v4621_v50 = vpop.xlane.xlu1 %4620 }
 0xb9f   :  { %v4643_v57 = vsub.f32 %v10590_v37, %v4621_v50  ;;  %v5299_v37 = vmul.f32 1.442695, %v5275_v55  ;;  %v10732_v55 = vpop.f32.mrf.mxu1 }
 0xba1   :  { %4732 = vmatmul.bf16.gmra.mxu1 %v10496_v0  ;;  %5365 = vmatmul.bf16.gmra.mxu0 %v10535_v45  ;;  %v4668_v21 = vmul.f32 1.442695, %v4643_v57  ;;  %v10722_v40 = vpop.f32.mrf.mxu3  ;;  %v7887_v0 = vpop.eup %7886 }
 0xba2   :  { %v10727_v47 = vpop.f32.mrf.mxu2 }
 0xba3   :  { %7888 = vpow2.f32 %v4668_v21 }
 0xba4   :  { %v4619_v10 = vpop.xlane.xlu0 %4618 }
 0xba5   :  { %v4642_v17 = vsub.f32 %v10594_v9, %v4619_v10  ;;  %v7531_v10 = vld [vmem:[%s11506_s3 + $0x1] ss:$0 sm:$0xff] }
 0xba7   :  { %v4666_v59 = vmul.f32 1.442695, %v4642_v17  ;;  %v10734_v17 = vpop.f32.mrf.mxu0 }
 0xba9   :  { %7890 = vpow2.f32 %v4666_v59  ;;  %v7889_v57 = vpop.eup %7888  ;;  %v4777_v9 = vpop.f32.mrf.mxu3 }
 0xbaa   :  { %7892 = vpow2.f32 %v5299_v37  ;;  %v5412_v37 = vpop.f32.mrf.mxu2 }
 0xbac   :  { %v5254_v50 = vpop.xlane.xlu0 %5253 }
 0xbad   :  { %v5276_v45 = vsub.f32 %v10602_v29, %v5254_v50  ;;  %v11755_v50 = vunpack.c.l.bf16 %v10651_v63 }
 0xbaf   :  { %v7891_v11 = vpop.eup %7890  ;;  %v5301_v52 = vmul.f32 1.442695, %v5276_v45 }
 0xbb0   :  { %4202 = vperm.xlu0 %7516, %v7887_v0   ;;  %v4686_v61 = vpack.c.bf16 %v7889_v57, %v7891_v11  ;;  %v7893_v29 = vpop.eup %7892 }
 0xbb1   :  { %7894 = vpow2.f32 %v5301_v52  ;;  %4737 = vmatmul.bf16.gmra.mxu1 %v10519_v62  ;;  %5370 = vmatmul.bf16.gmra.mxu0 %v10633_v4  ;;  %v5134_v4 = vadd.f32 %v10333_v3, %v10551_v31  ;;  %v10744_v45 = vpop.f32.mrf.mxu3  ;;  %v5135_v31 = vadd.f32 %v10333_v3, %v10635_v6  ;;  %v11756_v6 = vunpack.c.h.bf16 %v10651_v63 }
 0xbb2   :  { %4791 = vmatmul.bf16.gmra.mxu3 %v4686_v61  ;;  %7896 = vrcp.f32 %v4777_v9 }
 0xbb3   :  { %v5166_v57 = vmul.f32 0.2, %v5134_v4  ;;  %vm5150_vm13 = vcmp.gt.f32.partialorder %v5134_v4, 0.0  ;;  %7898 = vrcp.f32 %v5412_v37  ;;  %v10757_v37 = vpop.f32.mrf.mxu2  ;;  %v5167_v41 = vmul.f32 0.2, %v5135_v31 }
 0xbb4   :  { %vm5151_vm15 = vcmp.gt.f32.partialorder %v5135_v31, 0.0 }
 0xbb6   :  { %v4467_v21 = vpop.permute.xlu1 %4466 }
 0xbb7   :  { %v7895_v24 = vpop.eup %7894  ;;  %v4500_v52 = vadd.f32 %v10322_v16, %v4467_v21  ;;  %v10750_v21 = vpop.f32.mrf.mxu1 }
 0xbb8   :  { %5560 = vrot.lane.b32.xlu0 %v7531_v10, %s8121_s17  ;;  %v5319_v62 = vpack.c.bf16 %v7895_v24, %v7893_v29  ;;  %v7897_v9 = vpop.eup %7896  ;;  %v10752_v24 = vpop.f32.mrf.mxu0 }
 0xbb9   :  { %vm4516_vm12 = vcmp.gt.f32.partialorder %v4500_v52, 0.0  ;;  %v4532_v11 = vmul.f32 0.2, %v4500_v52  ;;  %v4782_v22 = vpop.f32.mrf.mxu3 }
 0xbba   :  { %5424 = vmatmul.bf16.gmra.mxu2 %v5319_v62  ;;  %7900 = vrcp.f32 %v4782_v22 }
 0xbbb   :  { %v4548_v59 = vsel %vm4516_vm12, %v4500_v52, %v4532_v11  ;;  %v4503_v52 = vadd.f32 %v10322_v16, %v10631_v60  ;;  %v7899_v60 = vpop.eup %7898  ;;  %v5417_v36 = vpop.f32.mrf.mxu2 }
 0xbbc   :  { %v10742_v0 = vadd.f32 %v11755_v50, %v4548_v59  ;;  %v5182_v59 = vsel %vm5150_vm13, %v5134_v4, %v5166_v57  ;;  %v7279_v50 = vunpack.c.l.bf16 %v10684_v48  ;;  %7902 = vrcp.f32 %v5417_v36 }
 0xbbd   :  { %v4535_v14 = vmul.f32 0.2, %v4503_v52  ;;  %vm4519_vm0 = vcmp.gt.f32.partialorder %v4503_v52, 0.0  ;;  %7904 = vrcp.f32 %v10559_v39  ;;  %v7532_v39 = vld [vmem:[%s11506_s3 + $0x1] ss:$0 sm:$0xff] }
 0xbbe   :  { %4622 = vmax.xlane.f32.xlu2 %v10742_v0  ;;  %v4475_v10 = vpop.permute.xlu1 %4474  ;;  %7906 = vrcp.f32 %v10712_v49 }
 0xbbf   :  { %v4502_v29 = vadd.f32 %v10322_v16, %v4475_v10  ;;  %v4551_v57 = vsel %vm4519_vm0, %v4503_v52, %v4535_v14  ;;  %v11758_v52 = vunpack.c.l.bf16 %v10696_v30  ;;  %7908 = vrcp.f32 %v10722_v40 }
 0xbc0   :  { %4840 = vperm.xlu0 %7516, %v7897_v9   ;;  %v10761_v9 = vadd.f32 %v11756_v6, %v5182_v59  ;;  %v7901_v12 = vpop.eup %7900  ;;  %7910 = vrcp.f32 %v10710_v33 }
 0xbc1   :  { %vm4518_vm14 = vcmp.gt.f32.partialorder %v4502_v29, 0.0  ;;  %v4534_v11 = vmul.f32 0.2, %v4502_v29  ;;  %4742 = vmatmul.bf16.gmra.mxu1 %v4686_v61  ;;  %5375 = vmatmul.bf16.gmra.mxu0 %v5319_v62  ;;  %v4487_v61 = vpop.permute.xlu0 %4486  ;;  %7912 = vrcp.f32 %v10719_v53 }
 0xbc2   :  { %v4505_v63 = vadd.f32 %v10322_v16, %v4487_v61  ;;  %7914 = vrcp.f32 %v10576_v19 }
 0xbc3   :  { %v4550_v10 = vsel %vm4518_vm14, %v4502_v29, %v4534_v11  ;;  %v5183_v29 = vsel %vm5151_vm15, %v5135_v31, %v5167_v41  ;;  %v11757_v11 = vunpack.c.h.bf16 %v10684_v48  ;;  %7916 = vrcp.f32 %v10580_v58 }
 0xbc4   :  { %v10763_v1 = vadd.f32 %v7279_v50, %v4550_v10  ;;  %v10773_v10 = vadd.f32 %v7279_v50, %v5183_v29  ;;  %v4537_v6 = vmul.f32 0.2, %v4505_v63  ;;  %vm4521_vm2 = vcmp.gt.f32.partialorder %v4505_v63, 0.0 }
 0xbc5   :  { %v10771_v59 = vadd.f32 %v11757_v11, %v4551_v57  ;;  %7918 = vrcp.f32 %v10744_v45 }
 0xbc6   :  { %5257 = vmax.xlane.f32.xlu2 %v10761_v9  ;;  %4626 = vmax.xlane.f32.xlu1 %v10763_v1  ;;  %v4483_v62 = vpop.permute.xlu1 %4482  ;;  %v4553_v41 = vsel %vm4521_vm2, %v4505_v63, %v4537_v6  ;;  %7920 = vrcp.f32 %v10727_v47 }
 0xbc7   :  { %v4504_v4 = vadd.f32 %v10322_v16, %v4483_v62  ;;  %v7284_v16 = vunpack.c.h.bf16 %v10696_v30  ;;  %7922 = vrcp.f32 %v10587_v26 }
 0xbc8   :  { %5478 = vperm.xlu0 %7516, %v7899_v60   ;;  %7924 = vrcp.f32 %v10600_v25 }
 0xbc9   :  { %v4536_v32 = vmul.f32 0.2, %v4504_v4  ;;  %vm4520_vm3 = vcmp.gt.f32.partialorder %v4504_v4, 0.0  ;;  %v10779_v31 = vadd.f32 %v7284_v16, %v4553_v41 }
 0xbcb   :  { %v4552_v48 = vsel %vm4520_vm3, %v4504_v4, %v4536_v32  ;;  %v10792_v32 = vpop.f32.mrf.mxu1 }
 0xbcc   :  { %v10783_v50 = vadd.f32 %v11758_v52, %v4552_v48 }
 0xbce   :  { %4628 = vmax.xlane.f32.xlu2 %v10771_v59  ;;  %5259 = vmax.xlane.f32.xlu1 %v10773_v10 }
 0xbcf   :  { %v5120_v22 = vpop.permute.xlu1 %5119 }
 0xbd0   :  { %4850 = vperm.xlu0 %7516, %v7901_v12   ;;  %v5138_v14 = vadd.f32 %v10333_v3, %v5120_v22  ;;  %v7903_v12 = vpop.eup %7902  ;;  %v10789_v3 = vpop.f32.mrf.mxu0  ;;  %v7533_v22 = vld [vmem:[%s11506_s3 + $0x1] ss:$0 sm:$0xff] }
 0xbd1   :  { %v7905_v63 = vpop.eup %7904 }
 0xbd2   :  { %v5170_v60 = vmul.f32 0.2, %v5138_v14  ;;  %vm5154_vm4 = vcmp.gt.f32.partialorder %v5138_v14, 0.0  ;;  %v7907_v57 = vpop.eup %7906 }
 0xbd3   :  { %v10797_v62 = vpop.f32.mrf.mxu1  ;;  %v7909_v29 = vpop.eup %7908 }
 0xbd4   :  { %v5186_v61 = vsel %vm5154_vm4, %v5138_v14, %v5170_v60  ;;  %v7911_v49 = vpop.eup %7910 }
 0xbd5   :  { %v10787_v36 = vadd.f32 %v7284_v16, %v5186_v61  ;;  %v7913_v16 = vpop.eup %7912 }
 0xbd6   :  { %4632 = vmax.xlane.f32.xlu1 %v10779_v31  ;;  %4630 = vmax.xlane.f32.xlu2 %v10783_v50  ;;  %v7915_v53 = vpop.eup %7914 }
 0xbd7   :  { %v7917_v41 = vpop.eup %7916 }
 0xbd8   :  { %5488 = vperm.xlu0 %7516, %v7903_v12   ;;  %v10795_v30 = vpop.f32.mrf.mxu0  ;;  %v7919_v52 = vpop.eup %7918 }
 0xbd9   :  { %v7921_v19 = vpop.eup %7920  ;;  %v4784_v12 = vpop.f32.mrf.mxu3 }
 0xbda   :  { %v7923_v61 = vpop.eup %7922  ;;  %7926 = vrcp.f32 %v4784_v12 }
 0xbdb   :  { %v10803_v11 = vpop.f32.mrf.mxu1  ;;  %v7925_v45 = vpop.eup %7924  ;;  %7928 = vrcp.f32 %v10757_v37 }
 0xbdc   :  { %7930 = vrcp.f32 %v10557_v23 }
 0xbdd   :  { %7932 = vrcp.f32 %v10564_v43 }
 0xbde   :  { %5265 = vmax.xlane.f32.xlu2 %v10787_v36  ;;  %7934 = vrcp.f32 %v10608_v15 }
 0xbe0   :  { %v10801_v4 = vpop.f32.mrf.mxu0 }
 0xbe3   :  { %v10813_v40 = vpop.f32.mrf.mxu1 }
 0xbe8   :  { %v10809_v6 = vpop.f32.mrf.mxu0 }
 0xbeb   :  { %v10823_v14 = vpop.f32.mrf.mxu1 }
 0xbef   :  { %4197 = vperm.xlu1 %7515, %v7905_v63  }
 0xbf0   :  { %v10818_v33 = vpop.f32.mrf.mxu0 }
 0xbf3   :  { %v10829_v60 = vpop.f32.mrf.mxu1 }
 0xbf6   :  { %4830 = vperm.xlu2 %7517, %v7907_v57   ;;  %v7927_v57 = vpop.eup %7926 }
 0xbf7   :  { %4835 = vperm.xlu1 %7515, %v7909_v29   ;;  %v7929_v29 = vpop.eup %7928 }
 0xbf8   :  { %v10826_v48 = vpop.f32.mrf.mxu0 }
 0xbfa   :  { %v4625_v25 = vpop.xlane.xlu1 %4624 }
 0xbfb   :  { %v10835_v63 = vpop.f32.mrf.mxu1 }
 0xbfe   :  { %4294 = vrot.lane.b32.xlu2 %v7532_v39, %s8114_s11  ;;  %v7931_v39 = vpop.eup %7930 }
 0xbff   :  { %5463 = vperm.xlu1 %7515, %v7911_v49   ;;  %v4645_v49 = vsub.f32 %v10673_v56, %v4625_v25 }
 0xc00   :  { %v10833_v58 = vpop.f32.mrf.mxu0 }
 0xc01   :  { %v4672_v37 = vmul.f32 1.442695, %v4645_v49 }
 0xc03   :  { %v10842_v26 = vpop.f32.mrf.mxu1  ;;  %7936 = vpow2.f32 %v4672_v37 }
 0xc06   :  { %5468 = vperm.xlu2 %7517, %v7913_v16  }
 0xc07   :  { %4927 = vrot.lane.b32.xlu1 %v7533_v22, %s8120_s0  ;;  %v7933_v22 = vpop.eup %7932 }
 0xc08   :  { %v10838_v47 = vpop.f32.mrf.mxu0  ;;  %v7935_v12 = vpop.eup %7934 }
 0xc0e   :  { %4207 = vperm.xlu2 %7517, %v7915_v53  }
 0xc0f   :  { %4212 = vperm.xlu1 %7515, %v7917_v41   ;;  %v5256_v41 = vpop.xlane.xlu0 %5255 }
 0xc10   :  { %v10845_v16 = vpop.f32.mrf.mxu0 }
 0xc16   :  { %4845 = vperm.xlu2 %7517, %v7919_v52   ;;  %v10849_v52 = vpop.f32.mrf.mxu1 }
 0xc17   :  { %5473 = vperm.xlu1 %7515, %v7921_v19   ;;  %v5277_v19 = vsub.f32 %v10656_v5, %v5256_v41 }
 0xc18   :  { %v10852_v56 = vpop.f32.mrf.mxu0 }
 0xc1e   :  { %4217 = vperm.xlu2 %7517, %v7923_v61   ;;  %v5303_v61 = vmul.f32 1.442695, %v5277_v19 }
 0xc1f   :  { %4222 = vperm.xlu1 %7515, %v7925_v45  }
 0xc20   :  { %v10858_v41 = vpop.f32.mrf.mxu0 }
 0xc26   :  { %4855 = vperm.xlu2 %7517, %v7927_v57  }
 0xc27   :  { %5483 = vperm.xlu1 %7515, %v7929_v29   ;;  %v7937_v29 = vpop.eup %7936 }
 0xc2e   :  { %3632 = vperm.xlu2 %7517, %v7931_v39  }
 0xc2f   :  { %3637 = vperm.xlu1 %7515, %v7933_v22  }
 0xc31   :  { %v4623_v53 = vpop.xlane.xlu2 %4622 }
 0xc32   :  { %v4644_v23 = vsub.f32 %v10742_v0, %v4623_v53  ;;  %v10855_v0 = vpop.f32.mrf.mxu1 }
 0xc34   :  { %v4670_v43 = vmul.f32 1.442695, %v4644_v23 }
 0xc36   :  { %7938 = vpow2.f32 %v4670_v43  ;;  %v5262_v43 = vpop.xlane.xlu0 %5261 }
 0xc37   :  { %4227 = vperm.xlu1 %7515, %v7935_v12   ;;  %7940 = vpow2.f32 %v5303_v61 }
 0xc39   :  { %v5258_v45 = vpop.xlane.xlu2 %5257  ;;  %v4627_v57 = vpop.xlane.xlu1 %4626 }
 0xc3a   :  { %v5278_v15 = vsub.f32 %v10761_v9, %v5258_v45  ;;  %v4646_v49 = vsub.f32 %v10763_v1, %v4627_v57  ;;  %v5280_v1 = vsub.f32 %v10691_v54, %v5262_v43  ;;  %v10863_v57 = vpop.f32.mrf.mxu1 }
 0xc3c   :  { %v7939_v25 = vpop.eup %7938  ;;  %v5305_v39 = vmul.f32 1.442695, %v5278_v15  ;;  %v4674_v22 = vmul.f32 1.442695, %v4646_v49 }
 0xc3d   :  { %v4687_v5 = vpack.c.bf16 %v7937_v29, %v7939_v25  ;;  %v7941_v9 = vpop.eup %7940 }
 0xc3e   :  { %7942 = vpow2.f32 %v5305_v39  ;;  %v5309_v39 = vmul.f32 1.442695, %v5280_v1 }
 0xc3f   :  { %4747 = vmatmul.bf16.gmra.mxu1 %v4687_v5  ;;  %4796 = vmatmul.bf16.gmra.mxu3 %v4687_v5  ;;  %7944 = vpow2.f32 %v4674_v22 }
 0xc41   :  { %v4629_v37 = vpop.xlane.xlu2 %4628  ;;  %v5260_v53 = vpop.xlane.xlu1 %5259 }
 0xc42   :  { %v4647_v23 = vsub.f32 %v10771_v59, %v4629_v37  ;;  %v5279_v45 = vsub.f32 %v10773_v10, %v5260_v53  ;;  %v10866_v37 = vpop.f32.mrf.mxu0 }
 0xc44   :  { %v7943_v19 = vpop.eup %7942  ;;  %v4676_v12 = vmul.f32 1.442695, %v4647_v23  ;;  %v5307_v15 = vmul.f32 1.442695, %v5279_v45  ;;  %v10869_v23 = vpop.f32.mrf.mxu1 }
 0xc45   :  { %v5320_v61 = vpack.c.bf16 %v7943_v19, %v7941_v9  ;;  %v7945_v59 = vpop.eup %7944  ;;  %11759 = vst [vmem:[#allocation25_spill] sm:$0xff] %v10869_v23  ;;  %v5264_v19 = vpop.xlane.xlu0 %5263 }
 0xc46   :  { %7946 = vpow2.f32 %v4676_v12 }
 0xc47   :  { %5380 = vmatmul.bf16.gmra.mxu0 %v5320_v61  ;;  %5429 = vmatmul.bf16.gmra.mxu2 %v5320_v61  ;;  %7948 = vpow2.f32 %v5307_v15 }
 0xc48   :  { %7950 = vpow2.f32 %v5309_v39 }
 0xc49   :  { %v4631_v29 = vpop.xlane.xlu2 %4630  ;;  %v4633_v25 = vpop.xlane.xlu1 %4632 }
 0xc4a   :  { %v4648_v49 = vsub.f32 %v10783_v50, %v4631_v29  ;;  %v4649_v10 = vsub.f32 %v10779_v31, %v4633_v25  ;;  %v10872_v61 = vpop.f32.mrf.mxu0  ;;  %v5281_v31 = vsub.f32 %v10707_v2, %v5264_v19 }
 0xc4c   :  { %v7947_v5 = vpop.eup %7946  ;;  %v4678_v54 = vmul.f32 1.442695, %v4648_v49  ;;  %v4680_v53 = vmul.f32 1.442695, %v4649_v10  ;;  %v5311_v39 = vmul.f32 1.442695, %v5281_v31 }
 0xc4d   :  { %v4688_v22 = vpack.c.bf16 %v7947_v5, %v7945_v59  ;;  %v7949_v43 = vpop.eup %7948  ;;  %v10875_v59 = vpop.f32.mrf.mxu1 }
 0xc4e   :  { %7952 = vpow2.f32 %v4678_v54  ;;  %v7951_v12 = vpop.eup %7950  ;;  %11760 = vst [vmem:[#allocation33_spill] sm:$0xff] %v10875_v59  ;;  %v4203_v49 = vpop.permute.xlu0 %4202 }
 0xc4f   :  { %4752 = vmatmul.bf16.gmra.mxu1 %v4688_v22  ;;  %4801 = vmatmul.bf16.gmra.mxu3 %v4688_v22  ;;  %7954 = vpow2.f32 %v4680_v53  ;;  %v5321_v45 = vpack.c.bf16 %v7951_v12, %v7949_v43  ;;  %v4276_v10 = vmul.f32 %v4203_v49, %v10752_v24  ;;  %v4787_v49 = vpop.f32.mrf.mxu3 }
 0xc51   :  { %v5266_v9 = vpop.xlane.xlu2 %5265 }
 0xc52   :  { %v5282_v50 = vsub.f32 %v10787_v36, %v5266_v9  ;;  %v10877_v36 = vpop.f32.mrf.mxu0 }
 0xc54   :  { %v5313_v1 = vmul.f32 1.442695, %v5282_v50  ;;  %v7953_v15 = vpop.eup %7952 }
 0xc55   :  { %v7955_v25 = vpop.eup %7954  ;;  %v10885_v50 = vpop.f32.mrf.mxu1 }
 0xc56   :  { %7956 = vpow2.f32 %v5313_v1  ;;  %v4689_v5 = vpack.c.bf16 %v7955_v25, %v7953_v15  ;;  %11761 = vst [vmem:[#allocation15_spill] sm:$0xff] %v10885_v50 }
 0xc57   :  { %5385 = vmatmul.bf16.gmra.mxu0 %v5321_v45  ;;  %5434 = vmatmul.bf16.gmra.mxu2 %v5321_v45  ;;  %7958 = vpow2.f32 %v5311_v39  ;;  %v4789_v23 = vpop.f32.mrf.mxu3 }
 0xc58   :  { %7960 = vrcp.f32 %v10613_v20 }
 0xc59   :  { %v4831_v29 = vpop.permute.xlu2 %4830  ;;  %7962 = vrcp.f32 %v4787_v49 }
 0xc5a   :  { %v5356_v24 = vpop.f32.mrf.mxu0  ;;  %7964 = vrcp.f32 %v4789_v23 }
 0xc5b   :  { %7966 = vrcp.f32 %v10574_v34 }
 0xc5c   :  { %v7957_v54 = vpop.eup %7956 }
 0xc5d   :  { %v7959_v43 = vpop.eup %7958 }
 0xc5e   :  { %v5322_v45 = vpack.c.bf16 %v7957_v54, %v7959_v43  ;;  %v10890_v43 = vpop.permute.xlu0 %5560 }
 0xc5f   :  { %4757 = vmatmul.bf16.gmra.mxu1 %v4689_v5  ;;  %4806 = vmatmul.bf16.gmra.mxu3 %v4689_v5  ;;  %v7961_v5 = vpop.eup %7960 }
 0xc61   :  { %v10880_v2 = vpop.permute.xlu2 %4294  ;;  %v4198_v22 = vpop.permute.xlu1 %4197 }
 0xc62   :  { %v4275_v53 = vmul.f32 %v4198_v22, %v10734_v17  ;;  %v4298_v9 = vadd.f32 %v10880_v2, %v4276_v10  ;;  %v4723_v17 = vpop.f32.mrf.mxu1  ;;  %v5358_v54 = vpop.f32.mrf.mxu0 }
 0xc64   :  { %v4297_v19 = vadd.f32 %v10880_v2, %v4275_v53  ;;  %v4314_v12 = vmax.f32 %v4298_v9, 0.0 }
 0xc66   :  { %v4313_v31 = vmax.f32 %v4297_v19, 0.0  ;;  %v4330_v1 = vpack.c.bf16 %v4314_v12, %v4314_v12  ;;  %v4908_v19 = vmul.f32 %v4831_v29, %v4723_v17  ;;  %v4841_v34 = vpop.permute.xlu0 %4840 }
 0xc67   :  { %5390 = vmatmul.bf16.gmra.mxu0 %v5322_v45  ;;  %5439 = vmatmul.bf16.gmra.mxu2 %v5322_v45 }
 0xc68   :  { %v4329_v15 = vpack.c.bf16 %v4313_v31, %v4313_v31  ;;  %4363 = vrot.lane.b32.xlu2 %v4330_v1, %s8121_s17  ;;  %v7963_v31 = vpop.eup %7962 }
 0xc69   :  { %v5469_v25 = vpop.permute.xlu2 %5468  ;;  %v4836_v39 = vpop.permute.xlu1 %4835 }
 0xc6a   :  { %4361 = vrot.lane.b32.xlu0 %v4329_v15, %s8121_s17  ;;  %v5542_v53 = vmul.f32 %v5469_v25, %v5358_v54  ;;  %v4725_v9 = vpop.f32.mrf.mxu1 }
 0xc6b   :  { %v4909_v45 = vmul.f32 %v4836_v39, %v4725_v9 }
 0xc6c   :  { %v5564_v12 = vadd.f32 %v10890_v43, %v5542_v53 }
 0xc6e   :  { %v5580_v25 = vmax.f32 %v5564_v12, 0.0 }
 0xc70   :  { %v5596_v53 = vpack.c.bf16 %v5580_v25, %v5580_v25 }
 0xc71   :  { %v4208_v10 = vpop.permute.xlu2 %4207  ;;  %v5464_v22 = vpop.permute.xlu1 %5463 }
 0xc72   :  { %4232 = vperm.xlu0 %7516, %v7961_v5   ;;  %v5541_v15 = vmul.f32 %v5464_v22, %v5356_v24  ;;  %v5420_v5 = vpop.f32.mrf.mxu2 }
 0xc73   :  { %7968 = vrcp.f32 %v5420_v5 }
 0xc74   :  { %v5563_v29 = vadd.f32 %v10890_v43, %v5541_v15 }
 0xc76   :  { %v5579_v9 = vmax.f32 %v5563_v29, 0.0 }
 0xc78   :  { %v5595_v12 = vpack.c.bf16 %v5579_v9, %v5579_v9 }
 0xc79   :  { %v10893_v1 = vpop.permute.xlu2 %4845  ;;  %v10895_v20 = vpop.permute.xlu1 %4927 }
 0xc7a   :  { %4860 = vperm.xlu0 %7516, %v7963_v31   ;;  %v4930_v59 = vadd.f32 %v10895_v20, %v4908_v19  ;;  %v4931_v49 = vadd.f32 %v10895_v20, %v4909_v45  ;;  %v5422_v19 = vpop.f32.mrf.mxu2  ;;  %v7965_v45 = vpop.eup %7964 }
 0xc7b   :  { %v7967_v23 = vpop.eup %7966  ;;  %7970 = vrcp.f32 %v5422_v19 }
 0xc7c   :  { %v4946_v54 = vmax.f32 %v4930_v59, 0.0  ;;  %v4947_v50 = vmax.f32 %v4931_v49, 0.0  ;;  %v4277_v49 = vmul.f32 %v4208_v10, %v10789_v3  ;;  %7972 = vrcp.f32 %v10578_v7 }
 0xc7d   :  { %7974 = vrcp.f32 %v10619_v51 }
 0xc7e   :  { %v4962_v17 = vpack.c.bf16 %v4946_v54, %v4946_v54  ;;  %v4963_v39 = vpack.c.bf16 %v4947_v50, %v4947_v50  ;;  %v7969_v54 = vpop.eup %7968  ;;  %v4299_v5 = vadd.f32 %v10880_v2, %v4277_v49  ;;  %7976 = vrcp.f32 %v10627_v35 }
 0xc80   :  { %4994 = vrot.lane.b32.xlu2 %v4962_v17, %s8120_s0  ;;  %4996 = vrot.lane.b32.xlu1 %v4963_v39, %s8120_s0  ;;  %v4792_v17 = vpop.f32.mrf.mxu3 }
 0xc81   :  { %v10902_v24 = vpop.permute.xlu2 %4217  ;;  %v4213_v22 = vpop.permute.xlu1 %4212 }
 0xc82   :  { %5629 = vrot.lane.b32.xlu0 %v5596_v53, %s8114_s11  ;;  %v4278_v59 = vmul.f32 %v4213_v22, %v10795_v30  ;;  %v4728_v30 = vpop.f32.mrf.mxu1  ;;  %v7971_v39 = vpop.eup %7970  ;;  %v10916_v53 = vld [vmem:[%s11506_s3 + $0x1] ss:$0 sm:$0xff] }
 0xc83   :  { %v4910_v29 = vmul.f32 %v4841_v34, %v4728_v30  ;;  %v7973_v49 = vpop.eup %7972  ;;  %v5361_v34 = vpop.f32.mrf.mxu0 }
 0xc84   :  { %v4300_v50 = vadd.f32 %v10880_v2, %v4278_v59  ;;  %v4315_v59 = vmax.f32 %v4299_v5, 0.0  ;;  %v7975_v5 = vpop.eup %7974 }
 0xc85   :  { %v4932_v3 = vadd.f32 %v10895_v20, %v4910_v29 }
 0xc86   :  { %v4316_v25 = vmax.f32 %v4300_v50, 0.0  ;;  %v4331_v50 = vpack.c.bf16 %v4315_v59, %v4315_v59 }
 0xc88   :  { %4865 = vperm.xlu2 %7517, %v7965_v45   ;;  %5627 = vrot.lane.b32.xlu1 %v5595_v12, %s8114_s11  ;;  %v4332_v22 = vpack.c.bf16 %v4316_v25, %v4316_v25  ;;  %v4948_v45 = vmax.f32 %v4932_v3, 0.0  ;;  %v4794_v25 = vpop.f32.mrf.mxu3  ;;  %v5425_v3 = vpop.f32.mrf.mxu2 }
 0xc89   :  { %v10909_v31 = vpop.permute.xlu2 %4855  ;;  %v5474_v15 = vpop.permute.xlu1 %5473  ;;  %7978 = vrcp.f32 %v4794_v25 }
 0xc8a   :  { %3642 = vperm.xlu0 %7516, %v7967_v23   ;;  %v4964_v7 = vpack.c.bf16 %v4948_v45, %v4948_v45  ;;  %7980 = vrcp.f32 %v4792_v17 }
 0xc8b   :  { %v5363_v35 = vpop.f32.mrf.mxu0  ;;  %7982 = vrcp.f32 %v5425_v3 }
 0xc8c   :  { %7984 = vrcp.f32 %v10598_v44 }
 0xc8d   :  { %7986 = vrcp.f32 %v10585_v42 }
 0xc90   :  { %5493 = vperm.xlu2 %7517, %v7969_v54   ;;  %5498 = vperm.xlu1 %7515, %v7971_v39   ;;  %v7977_v39 = vpop.eup %7976 }
 0xc91   :  { %v3633_v10 = vpop.permute.xlu2 %3632  ;;  %v10920_v9 = vpop.permute.xlu1 %4222 }
 0xc92   :  { %v3710_v19 = vmul.f32 %v3633_v10, %v10732_v55  ;;  %4367 = vrot.lane.b32.xlu0 %v4332_v22, %s8121_s17  ;;  %v4730_v55 = vpop.f32.mrf.mxu1  ;;  %v5479_v22 = vpop.permute.xlu0 %5478  ;;  %v4280_v3 = vmul.f32 %v10920_v9, %v10809_v6 }
 0xc93   :  { %v4911_v29 = vmul.f32 %v10893_v1, %v4730_v55  ;;  %v7979_v10 = vpop.eup %7978  ;;  %v5366_v9 = vpop.f32.mrf.mxu0 }
 0xc94   :  { %v3728_v12 = vadd.f32 %v10916_v53, %v3710_v19  ;;  %v5544_v19 = vmul.f32 %v5479_v22, %v5363_v35  ;;  %v4279_v22 = vmul.f32 %v10902_v24, %v10801_v4 }
 0xc95   :  { %v4933_v51 = vadd.f32 %v10895_v20, %v4911_v29 }
 0xc96   :  { %v3744_v23 = vmax.f32 %v3728_v12, 0.0  ;;  %v5543_v12 = vmul.f32 %v5474_v15, %v5361_v34  ;;  %v4301_v42 = vadd.f32 %v10880_v2, %v4279_v22  ;;  %v6934_v22 = vld [vmem:[%s11504_s2 + $0x100] sm:$0xf] }
 0xc97   :  { %v4949_v45 = vmax.f32 %v4933_v51, 0.0 }
 0xc98   :  { %v3760_v30 = vpack.c.bf16 %v3744_v23, %v3744_v23  ;;  %3647 = vperm.xlu2 %7517, %v7973_v49   ;;  %4365 = vrot.lane.b32.xlu1 %v4331_v50, %s8121_s17  ;;  %v5566_v23 = vadd.f32 %v10890_v43, %v5544_v19  ;;  %v5565_v49 = vadd.f32 %v10890_v43, %v5543_v12 }
 0xc99   :  { %v10928_v54 = vpop.permute.xlu1 %5483 }
 0xc9a   :  { %3776 = vst.msk [vmem:[#allocation3] sm:$0xf] %vm910_vm7, %v3760_v30  ;;  %4998 = vrot.lane.b32.xlu0 %v4964_v7, %s8120_s0  ;;  %v4965_v30 = vpack.c.bf16 %v4949_v45, %v4949_v45  ;;  %v7981_v7 = vpop.eup %7980  ;;  %v4733_v15 = vpop.f32.mrf.mxu1  ;;  %v5582_v34 = vmax.f32 %v5566_v23, 0.0 }
 0xc9b   :  { %v7983_v17 = vpop.eup %7982  ;;  %v4851_v24 = vpop.permute.xlu0 %4850 }
 0xc9c   :  { %v5598_v29 = vpack.c.bf16 %v5582_v34, %v5582_v34 }
 0xca0   :  { %4237 = vperm.xlu2 %7517, %v7975_v5   ;;  %4242 = vperm.xlu1 %7515, %v7977_v39   ;;  %v5427_v5 = vpop.f32.mrf.mxu2  ;;  %v7985_v39 = vpop.eup %7984 }
 0xca1   :  { %v3638_v59 = vpop.permute.xlu1 %3637  ;;  %7988 = vrcp.f32 %v5427_v5  ;;  %v7987_v35 = vpop.eup %7986 }
 0xca2   :  { %v3711_v1 = vmul.f32 %v3638_v59, %v10750_v21  ;;  %4875 = vperm.xlu0 %7516, %v7979_v10   ;;  %v5581_v21 = vmax.f32 %v5565_v49, 0.0  ;;  %7990 = vrcp.f32 %v10639_v18  ;;  %v4735_v44 = vpop.f32.mrf.mxu1  ;;  %v4302_v59 = vadd.f32 %v10880_v2, %v4280_v3  ;;  %v5368_v5 = vpop.f32.mrf.mxu0  ;;  %v7050_v3 = vld [vmem:[%s11504_s2 + $0x104] sm:$0xf0] }
 0xca3   :  { %v4913_v10 = vmul.f32 %v10909_v31, %v4735_v44  ;;  %v4912_v18 = vmul.f32 %v4851_v24, %v4733_v15  ;;  %v5545_v31 = vmul.f32 %v10928_v54, %v5366_v9  ;;  %7992 = vrcp.f32 %v10646_v13  ;;  %v7048_v9 = vld [vmem:[%s11504_s2 + $0xe4] sm:$0xf0] }
 0xca4   :  { %v3729_v50 = vadd.f32 %v10916_v53, %v3711_v1  ;;  %v5597_v51 = vpack.c.bf16 %v5581_v21, %v5581_v21  ;;  %v4317_v1 = vmax.f32 %v4301_v42, 0.0  ;;  %v4318_v6 = vmax.f32 %v4302_v59, 0.0  ;;  %v5489_v21 = vpop.permute.xlu0 %5488 }
 0xca5   :  { %v4935_v12 = vadd.f32 %v10895_v20, %v4913_v10  ;;  %v4934_v49 = vadd.f32 %v10895_v20, %v4912_v18  ;;  %v6935_v44 = vor.u32 %v7050_v3, %v6934_v22  ;;  %v6930_v10 = vld [vmem:[%s11504_s2 + $0xf0] sm:$0xf] }
 0xca6   :  { %v3745_v25 = vmax.f32 %v3729_v50, 0.0  ;;  %v4333_v50 = vpack.c.bf16 %v4317_v1, %v4317_v1  ;;  %v4334_v23 = vpack.c.bf16 %v4318_v6, %v4318_v6  ;;  %v6926_v6 = vld [vmem:[%s11504_s2 + $0xe0] sm:$0xf]  ;;  %v6922_v18 = vld [vmem:[%s11504_s2 + $0xd0] sm:$0xf] }
 0xca7   :  { %v7989_v19 = vpop.eup %7988  ;;  %v4951_v45 = vmax.f32 %v4935_v12, 0.0  ;;  %5819 = vmatpush.bf16.msra.mxu1 %v6935_v44 }
 0xca8   :  { %v3761_v55 = vpack.c.bf16 %v3745_v25, %v3745_v25  ;;  %4870 = vperm.xlu1 %7515, %v7981_v7   ;;  %5000 = vrot.lane.b32.xlu2 %v4965_v30, %s8120_s0  ;;  %v7991_v4 = vpop.eup %7990  ;;  %v5567_v30 = vadd.f32 %v10890_v43, %v5545_v31  ;;  %v7047_v31 = vld [vmem:[%s11504_s2 + $0xd4] sm:$0xf0] }
 0xca9   :  { %v4967_v25 = vpack.c.bf16 %v4951_v45, %v4951_v45  ;;  %v7993_v34 = vpop.eup %7992  ;;  %v4228_v24 = vpop.permute.xlu1 %4227  ;;  %v6927_v45 = vor.u32 %v7048_v9, %v6926_v6 }
 0xcaa   :  { %3777 = vst.msk [vmem:[#allocation3 + $0x4] sm:$0xf] %vm910_vm7, %v3761_v55  ;;  %5503 = vperm.xlu0 %7516, %v7983_v17   ;;  %v4950_v17 = vmax.f32 %v4934_v49, 0.0  ;;  %v5583_v54 = vmax.f32 %v5567_v30, 0.0  ;;  %v6923_v49 = vor.u32 %v7047_v31, %v6922_v18  ;;  %v4738_v30 = vpop.f32.mrf.mxu1  ;;  %v5371_v9 = vpop.f32.mrf.mxu0 }
 0xcac   :  { %v4966_v15 = vpack.c.bf16 %v4950_v17, %v4950_v17 }
 0xcb0   :  { %5633 = vrot.lane.b32.xlu1 %v5598_v29, %s8114_s11  ;;  %5631 = vrot.lane.b32.xlu2 %v5597_v51, %s8114_s11  ;;  %v5599_v29 = vpack.c.bf16 %v5583_v54, %v5583_v54  ;;  %v5546_v51 = vmul.f32 %v5489_v21, %v5368_v5 }
 0xcb2   :  { %3657 = vperm.xlu0 %7516, %v7985_v39   ;;  %v5568_v42 = vadd.f32 %v10890_v43, %v5546_v51 }
 0xcb8   :  { %3652 = vperm.xlu1 %7515, %v7987_v35   ;;  %5508 = vperm.xlu2 %7517, %v7989_v19   ;;  %v7049_v35 = vld [vmem:[%s11504_s2 + $0xf4] sm:$0xf0] }
 0xcb9   :  { %v6931_v59 = vor.u32 %v7049_v35, %v6930_v10  ;;  %v6910_v35 = vld [vmem:[%s11504_s2 + $0xa0] sm:$0xf] }
 0xcba   :  { %4247 = vperm.xlu0 %7516, %v7991_v4   ;;  %v5584_v4 = vmax.f32 %v5568_v42, 0.0  ;;  %v7044_v42 = vld [vmem:[%s11504_s2 + $0xa4] sm:$0xf0] }
 0xcbb   :  { %5820 = vmatpush.bf16.msra.mxu1 %v6931_v59  ;;  %v6911_v59 = vor.u32 %v7044_v42, %v6910_v35 }
 0xcbf   :  { %5821 = vmatpush.bf16.msra.mxu1 %v6927_v45 }
 0xcc0   :  { %4371 = vrot.lane.b32.xlu1 %v4334_v23, %s8121_s17  ;;  %4369 = vrot.lane.b32.xlu2 %v4333_v50, %s8121_s17  ;;  %v4281_v50 = vmul.f32 %v4228_v24, %v10818_v33  ;;  %v5600_v23 = vpack.c.bf16 %v5584_v4, %v5584_v4  ;;  %v6918_v33 = vld [vmem:[%s11504_s2 + $0xc0] sm:$0xf] }
 0xcc2   :  { %v4364_v7 = vpop.permute.xlu2 %4363  ;;  %v4797_v55 = vpop.f32.mrf.mxu3  ;;  %5004 = vrot.lane.b32.xlu0 %v4967_v25, %s8120_s0 }
 0xcc3   :  { %4410 = vst.msk [vmem:[#allocation3 + $0x4] sm:$0xf] %vm1544_vm8, %v4364_v7  ;;  %7994 = vrcp.f32 %v4797_v55  ;;  %v4303_v7 = vadd.f32 %v10880_v2, %v4281_v50  ;;  %5822 = vmatpush.bf16.msra.mxu1 %v6923_v49 }
 0xcc8   :  { %4252 = vperm.xlu2 %7517, %v7993_v34   ;;  %5002 = vrot.lane.b32.xlu1 %v4966_v15, %s8120_s0  ;;  %v7046_v15 = vld [vmem:[%s11504_s2 + $0xc4] sm:$0xf0]  ;;  %v4319_v34 = vmax.f32 %v4303_v7, 0.0 }
 0xcc9   :  { %v7995_v19 = vpop.eup %7994  ;;  %v6919_v21 = vor.u32 %v7046_v15, %v6918_v33 }
 0xcca   :  { %v4799_v39 = vpop.f32.mrf.mxu3  ;;  %v5430_v13 = vpop.f32.mrf.mxu2  ;;  %5635 = vrot.lane.b32.xlu0 %v5599_v29, %s8114_s11 }
 0xccb   :  { %7996 = vrcp.f32 %v4799_v39  ;;  %5823 = vmatpush.bf16.msra.mxu1 %v6919_v21  ;;  %v4335_v39 = vpack.c.bf16 %v4319_v34, %v4319_v34 }
 0xccc   :  { %7998 = vrcp.f32 %v5430_v13  ;;  %v4740_v13 = vpop.f32.mrf.mxu1 }
 0xcd0   :  { %4880 = vperm.xlu2 %7517, %v7995_v19  }
 0xcd1   :  { %v7997_v12 = vpop.eup %7996 }
 0xcd2   :  { %v5432_v1 = vpop.f32.mrf.mxu2  ;;  %4885 = vperm.xlu1 %7515, %v7997_v12   ;;  %v7999_v25 = vpop.eup %7998 }
 0xcd3   :  { %8000 = vrcp.f32 %v5432_v1  ;;  %v4802_v24 = vpop.f32.mrf.mxu3 }
 0xcd4   :  { %8002 = vrcp.f32 %v10606_v38  ;;  %v6914_v38 = vld [vmem:[%s11504_s2 + $0xb0] sm:$0xf] }
 0xcd5   :  { %8004 = vrcp.f32 %v10611_v27  ;;  %v7045_v27 = vld [vmem:[%s11504_s2 + $0xb4] sm:$0xf0] }
 0xcd6   :  { %v6915_v5 = vor.u32 %v7045_v27, %v6914_v38  ;;  %8006 = vrcp.f32 %v10661_v46  ;;  %v6906_v46 = vld [vmem:[%s11504_s2 + $0x90] sm:$0xf] }
 0xcd7   :  { %8008 = vrcp.f32 %v10666_v8  ;;  %v7043_v8 = vld [vmem:[%s11504_s2 + $0x94] sm:$0xf0] }
 0xcd8   :  { %5637 = vrot.lane.b32.xlu2 %v5600_v23, %s8114_s11  ;;  %5824 = vmatpush.bf16.msra.mxu1 %v6915_v5  ;;  %v6907_v12 = vor.u32 %v7043_v8, %v6906_v46  ;;  %8010 = vrcp.f32 %v4802_v24  ;;  %v5373_v46 = vpop.f32.mrf.mxu0 }
 0xcd9   :  { %v8001_v55 = vpop.eup %8000 }
 0xcda   :  { %5513 = vperm.xlu1 %7515, %v7999_v25   ;;  %v4995_v17 = vpop.permute.xlu2 %4994  ;;  %5518 = vperm.xlu0 %7516, %v8001_v55   ;;  %v8003_v29 = vpop.eup %8002 }
 0xcdb   :  { %v8005_v51 = vpop.eup %8004  ;;  %v5435_v25 = vpop.f32.mrf.mxu2 }
 0xcdc   :  { %v4362_v54 = vpop.permute.xlu0 %4361  ;;  %5825 = vmatpush.bf16.msra.mxu1 %v6911_v59  ;;  %v8007_v4 = vpop.eup %8006 }
 0xcdd   :  { %4409 = vst.msk [vmem:[#allocation3] sm:$0xf] %vm1544_vm8, %v4362_v54  ;;  %v8009_v6 = vpop.eup %8008  ;;  %v4804_v38 = vpop.f32.mrf.mxu3 }
 0xcde   :  { %5042 = vst.msk [vmem:[#allocation3] sm:$0xf] %vm2178_vm9, %v4995_v17  ;;  %v8011_v33 = vpop.eup %8010  ;;  %8012 = vrcp.f32 %v4804_v38 }
 0xce0   :  { %3662 = vperm.xlu2 %7517, %v8003_v29   ;;  %5826 = vmatpush.bf16.msra.mxu1 %v6907_v12 }
 0xce2   :  { %3667 = vperm.xlu1 %7515, %v8005_v51   ;;  %v4866_v22 = vpop.permute.xlu2 %4865  ;;  %4373 = vrot.lane.b32.xlu0 %v4335_v39, %s8121_s17 }
 0xce3   :  { %v4915_v3 = vmul.f32 %v4866_v22, %v4740_v13  ;;  %v5437_v51 = vpop.f32.mrf.mxu2 }
 0xce4   :  { %v4233_v44 = vpop.permute.xlu0 %4232  ;;  %8014 = vrcp.f32 %v5437_v51 }
 0xce5   :  { %v4282_v10 = vmul.f32 %v4233_v44, %v10826_v48  ;;  %v4937_v48 = vadd.f32 %v10895_v20, %v4915_v3  ;;  %8016 = vrcp.f32 %v5435_v25 }
 0xce6   :  { %8018 = vrcp.f32 %v10625_v28 }
 0xce7   :  { %v4304_v19 = vadd.f32 %v10880_v2, %v4282_v10  ;;  %v4953_v31 = vmax.f32 %v4937_v48, 0.0 }
 0xce9   :  { %v4320_v1 = vmax.f32 %v4304_v19, 0.0  ;;  %v4969_v55 = vpack.c.bf16 %v4953_v31, %v4953_v31 }
 0xcea   :  { %4257 = vperm.xlu1 %7515, %v8007_v4   ;;  %v5494_v45 = vpop.permute.xlu2 %5493  ;;  %4262 = vperm.xlu0 %7516, %v8009_v6  }
 0xceb   :  { %v4336_v18 = vpack.c.bf16 %v4320_v1, %v4320_v1  ;;  %v5547_v50 = vmul.f32 %v5494_v45, %v5371_v9 }
 0xcec   :  { %v4861_v23 = vpop.permute.xlu0 %4860 }
 0xced   :  { %v4914_v49 = vmul.f32 %v4861_v23, %v4738_v30  ;;  %4375 = vrot.lane.b32.xlu2 %v4336_v18, %s8121_s17  ;;  %v5569_v17 = vadd.f32 %v10890_v43, %v5547_v50  ;;  %v5376_v50 = vpop.f32.mrf.mxu0 }
 0xcef   :  { %v4936_v7 = vadd.f32 %v10895_v20, %v4914_v49  ;;  %v5585_v30 = vmax.f32 %v5569_v17, 0.0  ;;  %v4743_v49 = vpop.f32.mrf.mxu1  ;;  %v11763_v17 = vld [vmem:[#allocation12_spill] sm:$0xff] }
 0xcf1   :  { %v4952_v54 = vmax.f32 %v4936_v7, 0.0  ;;  %v5601_v39 = vpack.c.bf16 %v5585_v30, %v5585_v30  ;;  %v11762_v7 = vld [vmem:[#allocation13_spill] sm:$0xff] }
 0xcf2   :  { %v4997_v15 = vpop.permute.xlu1 %4996  ;;  %5008 = vrot.lane.b32.xlu1 %v4969_v55, %s8120_s0  ;;  %v3648_v21 = vpop.permute.xlu2 %3647  ;;  %4890 = vperm.xlu0 %7516, %v8011_v33   ;;  %8020 = vrcp.f32 %v11762_v7  ;;  %v11764_v33 = vld [vmem:[#allocation34_spill] sm:$0xff] }
 0xcf3   :  { %v4968_v34 = vpack.c.bf16 %v4952_v54, %v4952_v54  ;;  %5043 = vst.msk [vmem:[#allocation3 + $0x4] sm:$0xf] %vm2178_vm9, %v4997_v15  ;;  %v3713_v27 = vmul.f32 %v3648_v21, %v10797_v62  ;;  %v8013_v62 = vpop.eup %8012  ;;  %8022 = vrcp.f32 %v11763_v17  ;;  %v4807_v15 = vpop.f32.mrf.mxu3 }
 0xcf4   :  { %v5630_v29 = vpop.permute.xlu0 %5629  ;;  %v8015_v19 = vpop.eup %8014  ;;  %8024 = vrcp.f32 %v11764_v33 }
 0xcf5   :  { %5676 = vst.msk [vmem:[#allocation3 + $0x4] sm:$0xf] %vm2812_vm10, %v5630_v29  ;;  %5006 = vrot.lane.b32.xlu2 %v4968_v34, %s8120_s0  ;;  %v3731_v5 = vadd.f32 %v10916_v53, %v3713_v27  ;;  %v8017_v9 = vpop.eup %8016  ;;  %v5378_v30 = vpop.f32.mrf.mxu0  ;;  %8026 = vrcp.f32 %v4807_v15 }
 0xcf6   :  { %v8019_v28 = vpop.eup %8018 }
 0xcf7   :  { %v3747_v13 = vmax.f32 %v3731_v5, 0.0  ;;  %v4745_v51 = vpop.f32.mrf.mxu1 }
 0xcf8   :  { %v8021_v38 = vpop.eup %8020 }
 0xcf9   :  { %v3763_v22 = vpack.c.bf16 %v3747_v13, %v3747_v13  ;;  %v8023_v34 = vpop.eup %8022 }
 0xcfa   :  { %v5628_v3 = vpop.permute.xlu1 %5627  ;;  %5639 = vrot.lane.b32.xlu1 %v5601_v39, %s8114_s11  ;;  %v4238_v44 = vpop.permute.xlu2 %4237 }
 0xcfb   :  { %5675 = vst.msk [vmem:[#allocation3] sm:$0xf] %vm2812_vm10, %v5628_v3  ;;  %v4283_v10 = vmul.f32 %v4238_v44, %v10833_v58  ;;  %v8025_v5 = vpop.eup %8024 }
 0xcfc   :  { %3779 = vst.msk [vmem:[#allocation3 + $0xc] sm:$0xf] %vm910_vm7, %v3763_v22  ;;  %v3643_v35 = vpop.permute.xlu0 %3642 }
 0xcfd   :  { %v3712_v42 = vmul.f32 %v3643_v35, %v10792_v32  ;;  %4895 = vperm.xlu2 %7517, %v8013_v62   ;;  %v4305_v8 = vadd.f32 %v10880_v2, %v4283_v10  ;;  %v8027_v35 = vpop.eup %8026 }
 0xcff   :  { %v3730_v59 = vadd.f32 %v10916_v53, %v3712_v42  ;;  %v4321_v58 = vmax.f32 %v4305_v8, 0.0  ;;  %v5440_v42 = vpop.f32.mrf.mxu2 }
 0xd01   :  { %v3746_v48 = vmax.f32 %v3730_v59, 0.0  ;;  %v4337_v31 = vpack.c.bf16 %v4321_v58, %v4321_v58 }
 0xd02   :  { %v5499_v12 = vpop.permute.xlu1 %5498  ;;  %5528 = vperm.xlu1 %7515, %v8015_v19   ;;  %v7035_v4 = vld [vmem:[#allocation3] sm:$0xff]  ;;  %v5001_v6 = vpop.permute.xlu2 %5000 }
 0xd03   :  { %v3762_v24 = vpack.c.bf16 %v3746_v48, %v3746_v48  ;;  %v5548_v1 = vmul.f32 %v5499_v12, %v5373_v46  ;;  %5827 = vmatmul.bf16.vlgmr.msra.gmra.mxu1 %v7035_v4 }
 0xd04   :  { %v4368_v18 = vpop.permute.xlu0 %4367 }
 0xd05   :  { %3778 = vst.msk [vmem:[#allocation3 + $0x8] sm:$0xf] %vm910_vm7, %v3762_v24  ;;  %v5570_v32 = vadd.f32 %v10890_v43, %v5548_v1  ;;  %5523 = vperm.xlu2 %7517, %v8017_v9  }
 0xd06   :  { %4412 = vst.msk [vmem:[#allocation3 + $0xc] sm:$0xf] %vm1544_vm8, %v4368_v18  ;;  %v4809_v18 = vpop.f32.mrf.mxu3 }
 0xd07   :  { %v5586_v45 = vmax.f32 %v5570_v32, 0.0  ;;  %5045 = vst.msk [vmem:[#allocation3 + $0xc] sm:$0xf] %vm2178_vm9, %v5001_v6 }
 0xd09   :  { %v5602_v23 = vpack.c.bf16 %v5586_v45, %v5586_v45 }
 0xd0a   :  { %v4366_v25 = vpop.permute.xlu1 %4365  ;;  %4377 = vrot.lane.b32.xlu1 %v4337_v31, %s8121_s17  ;;  %v5632_v55 = vpop.permute.xlu2 %5631 }
 0xd0b   :  { %4411 = vst.msk [vmem:[#allocation3 + $0x8] sm:$0xf] %vm1544_vm8, %v4366_v25  ;;  %5641 = vrot.lane.b32.xlu0 %v5602_v23, %s8114_s11  ;;  %v11765_v23 = vld [vmem:[#allocation21_spill] sm:$0xff] }
 0xd0c   :  { %v4999_v54 = vpop.permute.xlu0 %4998  ;;  %8028 = vrcp.f32 %v11765_v23 }
 0xd0d   :  { %5044 = vst.msk [vmem:[#allocation3 + $0x8] sm:$0xf] %vm2178_vm9, %v4999_v54  ;;  %3677 = vperm.xlu2 %7517, %v8019_v28   ;;  %8030 = vrcp.f32 %v4809_v18 }
 0xd0e   :  { %5677 = vst.msk [vmem:[#allocation3 + $0x8] sm:$0xf] %vm2812_vm10, %v5632_v55 }
 0xd12   :  { %v4243_v21 = vpop.permute.xlu1 %4242  ;;  %4272 = vperm.xlu1 %7515, %v8021_v38   ;;  %v5509_v29 = vpop.permute.xlu2 %5508 }
 0xd13   :  { %v4284_v27 = vmul.f32 %v4243_v21, %v10838_v47  ;;  %3672 = vperm.xlu0 %7516, %v8023_v34   ;;  %v5550_v39 = vmul.f32 %v5509_v29, %v5378_v30  ;;  %v8029_v33 = vpop.eup %8028 }
 0xd14   :  { %v4876_v13 = vpop.permute.xlu0 %4875  ;;  %v8031_v38 = vpop.eup %8030 }
 0xd15   :  { %v4306_v22 = vadd.f32 %v10880_v2, %v4284_v27  ;;  %v4917_v3 = vmul.f32 %v4876_v13, %v4745_v51  ;;  %4267 = vperm.xlu2 %7517, %v8025_v5   ;;  %v5572_v10 = vadd.f32 %v10890_v43, %v5550_v39 }
 0xd17   :  { %v4322_v44 = vmax.f32 %v4306_v22, 0.0  ;;  %v4939_v62 = vadd.f32 %v10895_v20, %v4917_v3  ;;  %v5588_v12 = vmax.f32 %v5572_v10, 0.0 }
 0xd19   :  { %v4338_v46 = vpack.c.bf16 %v4322_v44, %v4322_v44  ;;  %v4955_v59 = vmax.f32 %v4939_v62, 0.0  ;;  %v5604_v58 = vpack.c.bf16 %v5588_v12, %v5588_v12 }
 0xd1a   :  { %v4871_v47 = vpop.permute.xlu1 %4870  ;;  %4900 = vperm.xlu1 %7515, %v8027_v35   ;;  %v4370_v48 = vpop.permute.xlu2 %4369 }
 0xd1b   :  { %v4971_v8 = vpack.c.bf16 %v4955_v59, %v4955_v59  ;;  %v4916_v19 = vmul.f32 %v4871_v47, %v4743_v49  ;;  %4379 = vrot.lane.b32.xlu0 %v4338_v46, %s8121_s17  ;;  %v5442_v49 = vpop.f32.mrf.mxu2  ;;  %v11766_v46 = vld [vmem:[#allocation26_spill] sm:$0xff]  ;;  %v4748_v59 = vpop.f32.mrf.mxu1 }
 0xd1c   :  { %v5504_v4 = vpop.permute.xlu0 %5503  ;;  %8032 = vrcp.f32 %v5442_v49 }
 0xd1d   :  { %v4938_v24 = vadd.f32 %v10895_v20, %v4916_v19  ;;  %v5549_v1 = vmul.f32 %v5504_v4, %v5376_v50  ;;  %5012 = vrot.lane.b32.xlu2 %v4971_v8, %s8120_s0  ;;  %8034 = vrcp.f32 %v5440_v42 }
 0xd1e   :  { %8036 = vrcp.f32 %v11766_v46 }
 0xd1f   :  { %v4954_v6 = vmax.f32 %v4938_v24, 0.0  ;;  %v5571_v9 = vadd.f32 %v10890_v43, %v5549_v1 }
 0xd21   :  { %v4970_v32 = vpack.c.bf16 %v4954_v6, %v4954_v6  ;;  %v5587_v45 = vmax.f32 %v5571_v9, 0.0 }
 0xd22   :  { %v5634_v31 = vpop.permute.xlu1 %5633  ;;  %5645 = vrot.lane.b32.xlu1 %v5604_v58, %s8114_s11  ;;  %v4253_v7 = vpop.permute.xlu2 %4252 }
 0xd23   :  { %v5603_v25 = vpack.c.bf16 %v5587_v45, %v5587_v45  ;;  %5678 = vst.msk [vmem:[#allocation3 + $0xc] sm:$0xf] %vm2812_vm10, %v5634_v31  ;;  %5010 = vrot.lane.b32.xlu0 %v4970_v32, %s8120_s0  ;;  %v4286_v50 = vmul.f32 %v4253_v7, %v10852_v56  ;;  %v8033_v29 = vpop.eup %8032  ;;  %v5381_v32 = vpop.f32.mrf.mxu0 }
 0xd24   :  { %v3658_v55 = vpop.permute.xlu0 %3657  ;;  %v8035_v62 = vpop.eup %8034 }
 0xd25   :  { %v3715_v28 = vmul.f32 %v3658_v55, %v10813_v40  ;;  %5643 = vrot.lane.b32.xlu2 %v5603_v25, %s8114_s11  ;;  %v4308_v54 = vadd.f32 %v10880_v2, %v4286_v50  ;;  %v8037_v19 = vpop.eup %8036  ;;  %v4750_v45 = vpop.f32.mrf.mxu1 }
 0xd27   :  { %v3733_v17 = vadd.f32 %v10916_v53, %v3715_v28  ;;  %v4324_v40 = vmax.f32 %v4308_v54, 0.0 }
 0xd29   :  { %v3749_v15 = vmax.f32 %v3733_v17, 0.0  ;;  %v4340_v3 = vpack.c.bf16 %v4324_v40, %v4324_v40 }
 0xd2a   :  { %v3653_v34 = vpop.permute.xlu1 %3652  ;;  %3682 = vperm.xlu1 %7515, %v8029_v33   ;;  %v7036_v21 = vld [vmem:[#allocation3 + $0x8] sm:$0xff]  ;;  %v4881_v56 = vpop.permute.xlu2 %4880  ;;  %v11767_v33 = vld [vmem:[#allocation16_spill] sm:$0xff] }
 0xd2b   :  { %v3765_v30 = vpack.c.bf16 %v3749_v15, %v3749_v15  ;;  %v3714_v27 = vmul.f32 %v3653_v34, %v10803_v11  ;;  %4905 = vperm.xlu0 %7516, %v8031_v38   ;;  %5832 = vmatmul.bf16.gmra.mxu1 %v7036_v21  ;;  %v4918_v47 = vmul.f32 %v4881_v56, %v4748_v59  ;;  %v5383_v28 = vpop.f32.mrf.mxu0  ;;  %8038 = vrcp.f32 %v11767_v33 }
 0xd2c   :  { %v4248_v5 = vpop.permute.xlu0 %4247 }
 0xd2d   :  { %3781 = vst.msk [vmem:[#allocation3 + $0x14] sm:$0xf] %vm910_vm7, %v3765_v30  ;;  %v3732_v51 = vadd.f32 %v10916_v53, %v3714_v27  ;;  %v4285_v39 = vmul.f32 %v4248_v5, %v10845_v16  ;;  %5538 = vperm.xlu2 %7517, %v8033_v29   ;;  %v4940_v8 = vadd.f32 %v10895_v20, %v4918_v47  ;;  %v4753_v40 = vpop.f32.mrf.mxu1 }
 0xd2f   :  { %v3748_v13 = vmax.f32 %v3732_v51, 0.0  ;;  %v4307_v22 = vadd.f32 %v10880_v2, %v4285_v39  ;;  %v4956_v1 = vmax.f32 %v4940_v8, 0.0 }
 0xd31   :  { %v3764_v44 = vpack.c.bf16 %v3748_v13, %v3748_v13  ;;  %v4323_v11 = vmax.f32 %v4307_v22, 0.0  ;;  %v4972_v58 = vpack.c.bf16 %v4956_v1, %v4956_v1  ;;  %v8039_v29 = vpop.eup %8038  ;;  %v11768_v22 = vld [vmem:[#allocation8_spill] sm:$0xff] }
 0xd32   :  { %v4372_v10 = vpop.permute.xlu1 %4371  ;;  %4383 = vrot.lane.b32.xlu1 %v4340_v3, %s8121_s17  ;;  %v5638_v42 = vpop.permute.xlu2 %5637  ;;  %8040 = vrcp.f32 %v11768_v22 }
 0xd33   :  { %3780 = vst.msk [vmem:[#allocation3 + $0x10] sm:$0xf] %vm910_vm7, %v3764_v44  ;;  %v4339_v35 = vpack.c.bf16 %v4323_v11, %v4323_v11  ;;  %5533 = vperm.xlu0 %7516, %v8035_v62  }
 0xd34   :  { %4413 = vst.msk [vmem:[#allocation3 + $0x10] sm:$0xf] %vm1544_vm8, %v4370_v48  ;;  %v5005_v16 = vpop.permute.xlu0 %5004 }
 0xd35   :  { %4414 = vst.msk [vmem:[#allocation3 + $0x14] sm:$0xf] %vm1544_vm8, %v4372_v10  ;;  %4381 = vrot.lane.b32.xlu2 %v4339_v35, %s8121_s17  ;;  %v4755_v46 = vpop.f32.mrf.mxu1 }
 0xd36   :  { %5047 = vst.msk [vmem:[#allocation3 + $0x14] sm:$0xf] %vm2178_vm9, %v5005_v16  ;;  %v5386_v16 = vpop.f32.mrf.mxu0 }
 0xd37   :  { %5680 = vst.msk [vmem:[#allocation3 + $0x14] sm:$0xf] %vm2812_vm10, %v5638_v42 }
 0xd38   :  { %v8041_v10 = vpop.eup %8040 }
 0xd3a   :  { %v5003_v12 = vpop.permute.xlu1 %5002  ;;  %v3663_v4 = vpop.permute.xlu2 %3662 }
 0xd3b   :  { %5046 = vst.msk [vmem:[#allocation3 + $0x10] sm:$0xf] %vm2178_vm9, %v5003_v12  ;;  %3687 = vperm.xlu0 %7516, %v8037_v19   ;;  %v3716_v48 = vmul.f32 %v3663_v4, %v10823_v14 }
 0xd3c   :  { %v5636_v24 = vpop.permute.xlu0 %5635 }
 0xd3d   :  { %5679 = vst.msk [vmem:[#allocation3 + $0x10] sm:$0xf] %vm2812_vm10, %v5636_v24  ;;  %v3734_v6 = vadd.f32 %v10916_v53, %v3716_v48 }
 0xd3f   :  { %v3750_v9 = vmax.f32 %v3734_v6, 0.0 }
 0xd41   :  { %v3766_v18 = vpack.c.bf16 %v3750_v9, %v3750_v9 }
 0xd43   :  { %5014 = vrot.lane.b32.xlu0 %v4972_v58, %s8120_s0  ;;  %3782 = vst.msk [vmem:[#allocation3 + $0x18] sm:$0xf] %vm910_vm7, %v3766_v18 }
 0xd44   :  { %v4886_v31 = vpop.permute.xlu1 %4885  ;;  %v7037_v23 = vld [vmem:[#allocation3 + $0x10] sm:$0xff] }
 0xd45   :  { %v4919_v49 = vmul.f32 %v4886_v31, %v4750_v45  ;;  %5837 = vmatmul.bf16.gmra.mxu1 %v7037_v23 }
 0xd47   :  { %v4941_v14 = vadd.f32 %v10895_v20, %v4919_v49  ;;  %v4376_v25 = vpop.permute.xlu2 %4375 }
 0xd49   :  { %v4957_v7 = vmax.f32 %v4941_v14, 0.0 }
 0xd4b   :  { %v4973_v50 = vpack.c.bf16 %v4957_v7, %v4957_v7 }
 0xd4c   :  { %v5514_v55 = vpop.permute.xlu1 %5513  ;;  %v5519_v54 = vpop.permute.xlu0 %5518 }
 0xd4d   :  { %v5551_v17 = vmul.f32 %v5514_v55, %v5381_v32  ;;  %5016 = vrot.lane.b32.xlu2 %v4973_v50, %s8120_s0  ;;  %v5552_v15 = vmul.f32 %v5519_v54, %v5383_v28  ;;  %v11769_v54 = vld [vmem:[#allocation19_spill] sm:$0xff] }
 0xd4e   :  { %8042 = vrcp.f32 %v11769_v54 }
 0xd4f   :  { %v5573_v38 = vadd.f32 %v10890_v43, %v5551_v17  ;;  %v5007_v34 = vpop.permute.xlu2 %5006  ;;  %v5574_v21 = vadd.f32 %v10890_v43, %v5552_v15 }
 0xd51   :  { %v5589_v30 = vmax.f32 %v5573_v38, 0.0  ;;  %v5590_v27 = vmax.f32 %v5574_v21, 0.0  ;;  %v5388_v38 = vpop.f32.mrf.mxu0 }
 0xd53   :  { %v5605_v56 = vpack.c.bf16 %v5589_v30, %v5589_v30  ;;  %v5606_v5 = vpack.c.bf16 %v5590_v27, %v5590_v27 }
 0xd54   :  { %v3668_v51 = vpop.permute.xlu1 %3667  ;;  %v4374_v13 = vpop.permute.xlu0 %4373 }
 0xd55   :  { %v3717_v39 = vmul.f32 %v3668_v51, %v10829_v60  ;;  %5647 = vrot.lane.b32.xlu1 %v5605_v56, %s8114_s11  ;;  %3692 = vperm.xlu2 %7517, %v8039_v29   ;;  %4415 = vst.msk [vmem:[#allocation3 + $0x18] sm:$0xf] %vm1544_vm8, %v4374_v13 }
 0xd56   :  { %5649 = vrot.lane.b32.xlu0 %v5606_v5, %s8114_s11  ;;  %5048 = vst.msk [vmem:[#allocation3 + $0x18] sm:$0xf] %vm2178_vm9, %v5007_v34 }
 0xd57   :  { %v3735_v3 = vadd.f32 %v10916_v53, %v3717_v39  ;;  %v4896_v44 = vpop.permute.xlu2 %4895 }
 0xd58   :  { %v4921_v47 = vmul.f32 %v4896_v44, %v4755_v46  ;;  %v11136_v46 = vld [vmem:[%s11506_s3 + $0x1] ss:$0 sm:$0xff] }
 0xd59   :  { %v3751_v11 = vmax.f32 %v3735_v3, 0.0 }
 0xd5a   :  { %v4943_v1 = vadd.f32 %v10895_v20, %v4921_v47 }
 0xd5b   :  { %v3767_v62 = vpack.c.bf16 %v3751_v11, %v3751_v11  ;;  %v5391_v11 = vpop.f32.mrf.mxu0 }
 0xd5c   :  { %v4258_v35 = vpop.permute.xlu1 %4257  ;;  %v4263_v42 = vpop.permute.xlu0 %4262  ;;  %v4959_v32 = vmax.f32 %v4943_v1, 0.0 }
 0xd5d   :  { %3783 = vst.msk [vmem:[#allocation3 + $0x1c] sm:$0xf] %vm910_vm7, %v3767_v62  ;;  %v4287_v60 = vmul.f32 %v4258_v35, %v10858_v41  ;;  %3697 = vperm.xlu1 %7515, %v8041_v10   ;;  %v4288_v59 = vmul.f32 %v4263_v42, %v10866_v37 }
 0xd5e   :  { %4416 = vst.msk [vmem:[#allocation3 + $0x1c] sm:$0xf] %vm1544_vm8, %v4376_v25  ;;  %v4975_v7 = vpack.c.bf16 %v4959_v32, %v4959_v32 }
 0xd5f   :  { %v4309_v8 = vadd.f32 %v10880_v2, %v4287_v60  ;;  %v5524_v19 = vpop.permute.xlu2 %5523  ;;  %v4310_v12 = vadd.f32 %v10880_v2, %v4288_v59 }
 0xd60   :  { %v5553_v4 = vmul.f32 %v5524_v19, %v5386_v16 }
 0xd61   :  { %v4325_v48 = vmax.f32 %v4309_v8, 0.0  ;;  %v4326_v24 = vmax.f32 %v4310_v12, 0.0  ;;  %v4758_v8 = vpop.f32.mrf.mxu1 }
 0xd62   :  { %v5575_v9 = vadd.f32 %v10890_v43, %v5553_v4 }
 0xd63   :  { %v4341_v41 = vpack.c.bf16 %v4325_v48, %v4325_v48  ;;  %v4342_v6 = vpack.c.bf16 %v4326_v24, %v4326_v24 }
 0xd64   :  { %v5009_v58 = vpop.permute.xlu1 %5008  ;;  %v4891_v18 = vpop.permute.xlu0 %4890  ;;  %v5591_v31 = vmax.f32 %v5575_v9, 0.0 }
 0xd65   :  { %5049 = vst.msk [vmem:[#allocation3 + $0x1c] sm:$0xf] %vm2178_vm9, %v5009_v58  ;;  %4385 = vrot.lane.b32.xlu0 %v4341_v41, %s8121_s17  ;;  %v4920_v37 = vmul.f32 %v4891_v18, %v4753_v40  ;;  %4387 = vrot.lane.b32.xlu2 %v4342_v6, %s8121_s17 }
 0xd66   :  { %v5607_v50 = vpack.c.bf16 %v5591_v31, %v5591_v31 }
 0xd67   :  { %v3678_v45 = vpop.permute.xlu2 %3677  ;;  %v4942_v23 = vadd.f32 %v10895_v20, %v4920_v37 }
 0xd68   :  { %v3719_v49 = vmul.f32 %v3678_v45, %v10842_v26  ;;  %v11770_v26 = vld [vmem:[#allocation4_spill] sm:$0xff] }
 0xd69   :  { %v4958_v14 = vmax.f32 %v4942_v23, 0.0  ;;  %8044 = vrcp.f32 %v11770_v26  ;;  %v4760_v31 = vpop.f32.mrf.mxu1 }
 0xd6a   :  { %v3737_v25 = vadd.f32 %v10916_v53, %v3719_v49  ;;  %v8043_v53 = vpop.eup %8042 }
 0xd6b   :  { %v4974_v55 = vpack.c.bf16 %v4958_v14, %v4958_v14 }
 0xd6c   :  { %v3753_v28 = vmax.f32 %v3737_v25, 0.0  ;;  %v5640_v17 = vpop.permute.xlu1 %5639 }
 0xd6d   :  { %5681 = vst.msk [vmem:[#allocation3 + $0x18] sm:$0xf] %vm2812_vm10, %v5640_v17  ;;  %5020 = vrot.lane.b32.xlu0 %v4975_v7, %s8120_s0  ;;  %5651 = vrot.lane.b32.xlu2 %v5607_v50, %s8114_s11 }
 0xd6e   :  { %v3769_v33 = vpack.c.bf16 %v3753_v28, %v3753_v28  ;;  %5018 = vrot.lane.b32.xlu1 %v4974_v55, %s8120_s0 }
 0xd6f   :  { %v4268_v15 = vpop.permute.xlu2 %4267  ;;  %v8045_v21 = vpop.eup %8044 }
 0xd70   :  { %3785 = vst.msk [vmem:[#allocation3 + $0x24] sm:$0xf] %vm910_vm7, %v3769_v33  ;;  %v4289_v27 = vmul.f32 %v4268_v15, %v10872_v61 }
 0xd72   :  { %v4311_v5 = vadd.f32 %v10880_v2, %v4289_v27 }
 0xd74   :  { %v5529_v34 = vpop.permute.xlu1 %5528  ;;  %v4327_v22 = vmax.f32 %v4311_v5, 0.0 }
 0xd75   :  { %v5554_v30 = vmul.f32 %v5529_v34, %v5388_v38  ;;  %3702 = vperm.xlu0 %7516, %v8043_v53   ;;  %3707 = vperm.xlu2 %7517, %v8045_v21  }
 0xd76   :  { %v4343_v44 = vpack.c.bf16 %v4327_v22, %v4327_v22 }
 0xd77   :  { %v5576_v56 = vadd.f32 %v10890_v43, %v5554_v30  ;;  %v5013_v29 = vpop.permute.xlu2 %5012 }
 0xd79   :  { %v5592_v40 = vmax.f32 %v5576_v56, 0.0 }
 0xd7b   :  { %v5608_v51 = vpack.c.bf16 %v5592_v40, %v5592_v40 }
 0xd7c   :  { %v4378_v39 = vpop.permute.xlu1 %4377 }
 0xd7d   :  { %v5642_v13 = vpop.permute.xlu0 %5641  ;;  %5653 = vrot.lane.b32.xlu1 %v5608_v51, %s8114_s11 }
 0xd7e   :  { %5682 = vst.msk [vmem:[#allocation3 + $0x1c] sm:$0xf] %vm2812_vm10, %v5642_v13 }
 0xd7f   :  { %v5644_v3 = vpop.permute.xlu2 %5643 }
 0xd84   :  { %v4273_v62 = vpop.permute.xlu1 %4272 }
 0xd85   :  { %v4290_v61 = vmul.f32 %v4273_v62, %v10877_v36  ;;  %v3673_v10 = vpop.permute.xlu0 %3672  ;;  %4389 = vrot.lane.b32.xlu1 %v4343_v44, %s8121_s17  ;;  %v7038_v35 = vld [vmem:[#allocation3 + $0x18] sm:$0xff] }
 0xd86   :  { %v3718_v60 = vmul.f32 %v3673_v10, %v10835_v63  ;;  %5842 = vmatmul.bf16.gmra.mxu1 %v7038_v35  ;;  %v5393_v63 = vpop.f32.mrf.mxu0  ;;  %v11772_v35 = vld [vmem:[#allocation15_spill] sm:$0xff] }
 0xd87   :  { %v4312_v42 = vadd.f32 %v10880_v2, %v4290_v61  ;;  %v5539_v12 = vpop.permute.xlu2 %5538 }
 0xd88   :  { %v3736_v59 = vadd.f32 %v11136_v46, %v3718_v60  ;;  %v5556_v2 = vmul.f32 %v5539_v12, %v5393_v63 }
 0xd89   :  { %v4328_v16 = vmax.f32 %v4312_v42, 0.0 }
 0xd8a   :  { %v3752_v47 = vmax.f32 %v3736_v59, 0.0  ;;  %v5578_v6 = vadd.f32 %v10890_v43, %v5556_v2 }
 0xd8b   :  { %v4344_v36 = vpack.c.bf16 %v4328_v16, %v4328_v16 }
 0xd8c   :  { %v3768_v19 = vpack.c.bf16 %v3752_v47, %v3752_v47  ;;  %v4901_v4 = vpop.permute.xlu1 %4900  ;;  %v5594_v37 = vmax.f32 %v5578_v6, 0.0 }
 0xd8d   :  { %v4922_v48 = vmul.f32 %v4901_v4, %v4758_v8  ;;  %v4380_v24 = vpop.permute.xlu0 %4379  ;;  %4391 = vrot.lane.b32.xlu0 %v4344_v36, %s8121_s17 }
 0xd8e   :  { %3784 = vst.msk [vmem:[#allocation3 + $0x20] sm:$0xf] %vm910_vm7, %v3768_v19  ;;  %v5610_v32 = vpack.c.bf16 %v5594_v37, %v5594_v37 }
 0xd8f   :  { %4417 = vst.msk [vmem:[#allocation3 + $0x20] sm:$0xf] %vm1544_vm8, %v4378_v39  ;;  %v4944_v1 = vadd.f32 %v10895_v20, %v4922_v48  ;;  %v4382_v7 = vpop.permute.xlu2 %4381 }
 0xd90   :  { %4418 = vst.msk [vmem:[#allocation3 + $0x24] sm:$0xf] %vm1544_vm8, %v4380_v24  ;;  %v11773_v24 = vld [vmem:[#allocation33_spill] sm:$0xff] }
 0xd91   :  { %v4960_v41 = vmax.f32 %v4944_v1, 0.0  ;;  %5051 = vst.msk [vmem:[#allocation3 + $0x24] sm:$0xf] %vm2178_vm9, %v5013_v29 }
 0xd93   :  { %v4976_v9 = vpack.c.bf16 %v4960_v41, %v4960_v41 }
 0xd94   :  { %v5646_v58 = vpop.permute.xlu1 %5645 }
 0xd95   :  { %5684 = vst.msk [vmem:[#allocation3 + $0x24] sm:$0xf] %vm2812_vm10, %v5646_v58  ;;  %v5011_v18 = vpop.permute.xlu0 %5010  ;;  %5022 = vrot.lane.b32.xlu2 %v4976_v9, %s8120_s0 }
 0xd96   :  { %5050 = vst.msk [vmem:[#allocation3 + $0x20] sm:$0xf] %vm2178_vm9, %v5011_v18 }
 0xd97   :  { %5683 = vst.msk [vmem:[#allocation3 + $0x20] sm:$0xf] %vm2812_vm10, %v5644_v3 }
 0xd9c   :  { %v3683_v45 = vpop.permute.xlu1 %3682 }
 0xd9d   :  { %v3720_v23 = vmul.f32 %v3683_v45, %v10849_v52  ;;  %v4906_v49 = vpop.permute.xlu0 %4905  ;;  %5657 = vrot.lane.b32.xlu2 %v5610_v32, %s8114_s11  ;;  %v11188_v32 = vpop.f32.mrf.mxu1 }
 0xd9e   :  { %v4923_v14 = vmul.f32 %v4906_v49, %v4760_v31  ;;  %v7039_v25 = vld [vmem:[#allocation3 + $0x20] sm:$0xff] }
 0xd9f   :  { %v3738_v50 = vadd.f32 %v11136_v46, %v3720_v23  ;;  %5847 = vmatmul.bf16.gmra.mxu1 %v7039_v25 }
 0xda0   :  { %v4945_v55 = vadd.f32 %v10895_v20, %v4923_v14 }
 0xda1   :  { %v3754_v28 = vmax.f32 %v3738_v50, 0.0 }
 0xda2   :  { %v4961_v17 = vmax.f32 %v4945_v55, 0.0 }
 0xda3   :  { %v3770_v54 = vpack.c.bf16 %v3754_v28, %v3754_v28 }
 0xda4   :  { %v4977_v33 = vpack.c.bf16 %v4961_v17, %v4961_v17  ;;  %v4384_v39 = vpop.permute.xlu1 %4383 }
 0xda5   :  { %3786 = vst.msk [vmem:[#allocation3 + $0x28] sm:$0xf] %vm910_vm7, %v3770_v54  ;;  %v5534_v26 = vpop.permute.xlu0 %5533 }
 0xda6   :  { %4419 = vst.msk [vmem:[#allocation3 + $0x28] sm:$0xf] %vm1544_vm8, %v4382_v7  ;;  %v5555_v52 = vmul.f32 %v5534_v26, %v5391_v11  ;;  %5024 = vrot.lane.b32.xlu1 %v4977_v33, %s8120_s0  ;;  %v11771_v11 = vld [vmem:[#allocation25_spill] sm:$0xff] }
 0xda7   :  { %v5017_v15 = vpop.permute.xlu2 %5016 }
 0xda8   :  { %v5577_v53 = vadd.f32 %v10890_v43, %v5555_v52 }
 0xdaa   :  { %v5593_v38 = vmax.f32 %v5577_v53, 0.0  ;;  %v8125_v53 = vmov 32  }
 0xdab   :  { %7519 = vset.pattern.permute.xlu2 %v8125_v53  ;;  %7518 = vset.pattern.permute.xlu0 %v8125_v53 }
 0xdac   :  { %v5609_v34 = vpack.c.bf16 %v5593_v38, %v5593_v38  ;;  %7520 = vset.pattern.permute.xlu1 %v8125_v53 }
 0xdad   :  { %v3688_v21 = vpop.permute.xlu0 %3687 }
 0xdae   :  { %v3721_v20 = vmul.f32 %v3688_v21, %v10855_v0  ;;  %5655 = vrot.lane.b32.xlu0 %v5609_v34, %s8114_s11  ;;  %s8124_s11 = smov 88  }
 0xdaf   :  { %v3693_v30 = vpop.permute.xlu2 %3692 }
 0xdb0   :  { %v3739_v27 = vadd.f32 %v11136_v46, %v3721_v20  ;;  %v3722_v56 = vmul.f32 %v3693_v30, %v10863_v57 }
 0xdb2   :  { %v3755_v29 = vmax.f32 %v3739_v27, 0.0  ;;  %v3740_v40 = vadd.f32 %v11136_v46, %v3722_v56 }
 0xdb4   :  { %v3771_v5 = vpack.c.bf16 %v3755_v29, %v3755_v29  ;;  %v3756_v51 = vmax.f32 %v3740_v40, 0.0 }
 0xdb5   :  { %v5015_v13 = vpop.permute.xlu0 %5014 }
 0xdb6   :  { %3787 = vst.msk [vmem:[#allocation3 + $0x2c] sm:$0xf] %vm910_vm7, %v3771_v5  ;;  %v3772_v43 = vpack.c.bf16 %v3756_v51, %v3756_v51 }
 0xdb7   :  { %4420 = vst.msk [vmem:[#allocation3 + $0x2c] sm:$0xf] %vm1544_vm8, %v4384_v39 }
 0xdb8   :  { %5053 = vst.msk [vmem:[#allocation3 + $0x2c] sm:$0xf] %vm2178_vm9, %v5017_v15 }
 0xdb9   :  { %3788 = vst.msk [vmem:[#allocation3 + $0x30] sm:$0xf] %vm910_vm7, %v3772_v43 }
 0xdba   :  { %5052 = vst.msk [vmem:[#allocation3 + $0x28] sm:$0xf] %vm2178_vm9, %v5015_v13 }
 0xdbf   :  { %v4388_v0 = vpop.permute.xlu2 %4387 }
 0xdc7   :  { %v5648_v57 = vpop.permute.xlu1 %5647  ;;  %v5652_v3 = vpop.permute.xlu2 %5651 }
 0xdc8   :  { %5685 = vst.msk [vmem:[#allocation3 + $0x28] sm:$0xf] %vm2812_vm10, %v5648_v57  ;;  %v5650_v22 = vpop.permute.xlu0 %5649 }
 0xdc9   :  { %5686 = vst.msk [vmem:[#allocation3 + $0x2c] sm:$0xf] %vm2812_vm10, %v5650_v22 }
 0xdcf   :  { %v3698_v44 = vpop.permute.xlu1 %3697  ;;  %v3708_v61 = vpop.permute.xlu2 %3707 }
 0xdd0   :  { %v3723_v62 = vmul.f32 %v3698_v44, %v11771_v11  ;;  %v7040_v10 = vld [vmem:[#allocation3 + $0x28] sm:$0xff]  ;;  %v3725_v60 = vmul.f32 %v3708_v61, %v11772_v35 }
 0xdd1   :  { %5852 = vmatmul.bf16.gmra.mxu1 %v7040_v10 }
 0xdd2   :  { %v3741_v42 = vadd.f32 %v11136_v46, %v3723_v62  ;;  %v3743_v59 = vadd.f32 %v11136_v46, %v3725_v60 }
 0xdd4   :  { %v3757_v16 = vmax.f32 %v3741_v42, 0.0  ;;  %v3759_v47 = vmax.f32 %v3743_v59, 0.0  ;;  %v11774_v59 = vld [vmem:[#allocation27_spill] sm:$0xff] }
 0xdd6   :  { %v3773_v8 = vpack.c.bf16 %v3757_v16, %v3757_v16  ;;  %v3775_v36 = vpack.c.bf16 %v3759_v47, %v3759_v47 }
 0xdd7   :  { %v4386_v19 = vpop.permute.xlu0 %4385 }
 0xdd8   :  { %3789 = vst.msk [vmem:[#allocation3 + $0x34] sm:$0xf] %vm910_vm7, %v3773_v8 }
 0xdd9   :  { %4422 = vst.msk [vmem:[#allocation3 + $0x34] sm:$0xf] %vm1544_vm8, %v4388_v0 }
 0xdda   :  { %3791 = vst.msk [vmem:[#allocation3 + $0x3c] sm:$0xf] %vm910_vm7, %v3775_v36 }
 0xddb   :  { %4421 = vst.msk [vmem:[#allocation3 + $0x30] sm:$0xf] %vm1544_vm8, %v4386_v19 }
 0xddf   :  { %v5021_v12 = vpop.permute.xlu0 %5020 }
 0xde0   :  { %v5019_v4 = vpop.permute.xlu1 %5018  ;;  %5055 = vst.msk [vmem:[#allocation3 + $0x34] sm:$0xf] %vm2178_vm9, %v5021_v12  ;;  %v7318_v12 = vld [vmem:[%s11507_s1] sm:$0xff]  }
 0xde1   :  { %5054 = vst.msk [vmem:[#allocation3 + $0x30] sm:$0xf] %vm2178_vm9, %v5019_v4 }
 0xde2   :  { %5687 = vst.msk [vmem:[#allocation3 + $0x30] sm:$0xf] %vm2812_vm10, %v5652_v3 }
 0xde7   :  { %v3703_v48 = vpop.permute.xlu0 %3702 }
 0xde8   :  { %v3724_v63 = vmul.f32 %v3703_v48, %v11773_v24  ;;  %v7405_v48 = vld [vmem:[%s11507_s1 + $0x8] sm:$0xff]  }
 0xde9   :  { %v7324_v53 = vunpack.c.h.bf16 %v7405_v48 }
 0xdea   :  { %v3742_v2 = vadd.f32 %v11136_v46, %v3724_v63  ;;  %v5830_v46 = vpop.f32.mrf.mxu1 }
 0xdeb   :  { %v5868_v5 = vpack.c.bf16 %v5830_v46, %v11188_v32 }
 0xdec   :  { %v3758_v1 = vmax.f32 %v3742_v2, 0.0 }
 0xdee   :  { %v3774_v41 = vpack.c.bf16 %v3758_v1, %v3758_v1  ;;  %v7320_v1 = vunpack.c.h.bf16 %v7318_v12 }
 0xdef   :  { %v5654_v6 = vpop.permute.xlu1 %5653  ;;  %v5023_v58 = vpop.permute.xlu2 %5022 }
 0xdf0   :  { %3790 = vst.msk [vmem:[#allocation3 + $0x38] sm:$0xf] %vm910_vm7, %v3774_v41 }
 0xdf1   :  { %5688 = vst.msk [vmem:[#allocation3 + $0x34] sm:$0xf] %vm2812_vm10, %v5654_v6 }
 0xdf2   :  { %v5833_v23 = vpop.f32.mrf.mxu1 }
 0xdf7   :  { %v4390_v9 = vpop.permute.xlu1 %4389  ;;  %v5658_v31 = vpop.permute.xlu2 %5657 }
 0xdf8   :  { %4423 = vst.msk [vmem:[#allocation3 + $0x38] sm:$0xf] %vm1544_vm8, %v4390_v9  ;;  %v7041_v18 = vld [vmem:[#allocation3 + $0x30] sm:$0xff]  ;;  %v7319_v9 = vunpack.c.l.bf16 %v7318_v12 }
 0xdf9   :  { %5056 = vst.msk [vmem:[#allocation3 + $0x38] sm:$0xf] %vm2178_vm9, %v5023_v58  ;;  %5857 = vmatmul.bf16.gmra.mxu1 %v7041_v18  ;;  %v7323_v58 = vunpack.c.l.bf16 %v7405_v48 }
 0xdfa   :  { %v5835_v14 = vpop.f32.mrf.mxu1 }
 0xdfb   :  { %v5869_v40 = vpack.c.bf16 %v5835_v14, %v5833_v23 }
 0xdff   :  { %v4392_v37 = vpop.permute.xlu0 %4391 }
 0xe00   :  { %4424 = vst.msk [vmem:[#allocation3 + $0x3c] sm:$0xf] %vm1544_vm8, %v4392_v37 }
 0xe02   :  { %v5838_v7 = vpop.f32.mrf.mxu1 }
 0xe0a   :  { %v5840_v50 = vpop.f32.mrf.mxu1 }
 0xe0b   :  { %v5870_v29 = vpack.c.bf16 %v5840_v50, %v5838_v7 }
 0xe12   :  { %v5843_v55 = vpop.f32.mrf.mxu1 }
 0xe18   :  { %v5025_v45 = vpop.permute.xlu1 %5024 }
 0xe19   :  { %5057 = vst.msk [vmem:[#allocation3 + $0x3c] sm:$0xf] %vm2178_vm9, %v5025_v45 }
 0xe1a   :  { %5690 = vst.msk [vmem:[#allocation3 + $0x3c] sm:$0xf] %vm2812_vm10, %v5658_v31  ;;  %v5845_v28 = vpop.f32.mrf.mxu1 }
 0xe1b   :  { %v5871_v56 = vpack.c.bf16 %v5845_v28, %v5843_v55 }
 0xe20   :  { %v5656_v49 = vpop.permute.xlu0 %5655 }
 0xe21   :  { %5689 = vst.msk [vmem:[#allocation3 + $0x38] sm:$0xf] %vm2812_vm10, %v5656_v49 }
 0xe22   :  { %v5848_v17 = vpop.f32.mrf.mxu1 }
 0xe28   :  { %v7042_v25 = vld [vmem:[#allocation3 + $0x38] sm:$0xff] }
 0xe29   :  { %5862 = vmatmul.bf16.gmra.mxu1 %v7042_v25 }
 0xe2a   :  { %v5850_v54 = vpop.f32.mrf.mxu1 }
 0xe2b   :  { %v5872_v27 = vpack.c.bf16 %v5850_v54, %v5848_v17 }
 0xe4e   :  { %v5853_v33 = vpop.f32.mrf.mxu1 }
 0xe56   :  { %v5855_v26 = vpop.f32.mrf.mxu1 }
 0xe57   :  { %v5873_v30 = vpack.c.bf16 %v5855_v26, %v5853_v33 }
 0xe76   :  { %v11193_v52 = vpop.f32.mrf.mxu1 }
 0xe7e   :  { %v11195_v15 = vpop.f32.mrf.mxu1 }
 0xe7f   :  { %5918 = vrot.lane.b32.xlu2 %v11195_v15, %s8124_s11  ;;  %v5874_v20 = vpack.c.bf16 %v11195_v15, %v11193_v52 }
 0xe87   :  { %5912 = vrot.lane.b32.xlu2 %v5853_v33, %s8124_s11 }
 0xe8f   :  { %5906 = vrot.lane.b32.xlu2 %v5845_v28, %s8124_s11 }
 0xe97   :  { %5900 = vrot.lane.b32.xlu2 %v5838_v7, %s8124_s11 }
 0xe9f   :  { %5894 = vrot.lane.b32.xlu2 %v5830_v46, %s8124_s11 }
 0xea6   :  { %v11203_v38 = vpop.f32.mrf.mxu1 }
 0xea7   :  { %5981 = vperm.xlu2 %7519, %v5830_v46   ;;  %5920 = vrot.lane.b32.xlu0 %v11203_v38, %s8124_s11 }
 0xeae   :  { %v11207_v34 = vpop.f32.mrf.mxu1 }
 0xeaf   :  { %5989 = vperm.xlu2 %7519, %v5835_v14   ;;  %v5875_v21 = vpack.c.bf16 %v11207_v34, %v11203_v38  ;;  %5914 = vrot.lane.b32.xlu0 %v5855_v26, %s8124_s11 }
 0xeb0   :  { %5922 = vrot.lane.b32.xlu1 %v11207_v34, %s8124_s11 }
 0xeb1   :  { %6241 = vmatpush.bf16.msra.mxu0 %v5875_v21 }
 0xeb5   :  { %6242 = vmatpush.bf16.msra.mxu0 %v5874_v20 }
 0xeb7   :  { %6013 = vperm.xlu2 %7519, %v5850_v54   ;;  %5908 = vrot.lane.b32.xlu0 %v5848_v17, %s8124_s11 }
 0xeb8   :  { %5916 = vrot.lane.b32.xlu1 %v11193_v52, %s8124_s11 }
 0xeb9   :  { %6243 = vmatpush.bf16.msra.mxu0 %v5873_v30 }
 0xebd   :  { %6244 = vmatpush.bf16.msra.mxu0 %v5872_v27 }
 0xebf   :  { %6021 = vperm.xlu2 %7519, %v5855_v26   ;;  %5902 = vrot.lane.b32.xlu0 %v5840_v50, %s8124_s11 }
 0xec0   :  { %5910 = vrot.lane.b32.xlu1 %v5850_v54, %s8124_s11 }
 0xec1   :  { %6245 = vmatpush.bf16.msra.mxu0 %v5871_v56 }
 0xec5   :  { %6246 = vmatpush.bf16.msra.mxu0 %v5870_v29 }
 0xec7   :  { %5896 = vrot.lane.b32.xlu0 %v5833_v23, %s8124_s11 }
 0xec8   :  { %5904 = vrot.lane.b32.xlu1 %v5843_v55, %s8124_s11 }
 0xec9   :  { %6247 = vmatpush.bf16.msra.mxu0 %v5869_v40 }
 0xecd   :  { %6248 = vmatpush.bf16.msra.mxu0 %v5868_v5 }
 0xecf   :  { %5977 = vperm.xlu0 %7518, %v11188_v32  }
 0xed0   :  { %5898 = vrot.lane.b32.xlu1 %v5835_v14, %s8124_s11 }
 0xed7   :  { %5997 = vperm.xlu0 %7518, %v5840_v50  }
 0xed8   :  { %5892 = vrot.lane.b32.xlu1 %v11188_v32, %s8124_s11 }
 0xed9   :  { %v5919_v43 = vpop.permute.xlu2 %5918 }
 0xedf   :  { %6001 = vperm.xlu0 %7518, %v5843_v55  }
 0xee0   :  { %5985 = vperm.xlu1 %7520, %v5833_v23  }
 0xee1   :  { %v5913_v57 = vpop.permute.xlu2 %5912 }
 0xee7   :  { %6005 = vperm.xlu0 %7518, %v5845_v28  }
 0xee8   :  { %5993 = vperm.xlu1 %7520, %v5838_v7  }
 0xee9   :  { %v5907_v44 = vpop.permute.xlu2 %5906 }
 0xeef   :  { %6017 = vperm.xlu0 %7518, %v5853_v33  }
 0xef0   :  { %6009 = vperm.xlu1 %7520, %v5848_v17   ;;  %v7406_v17 = vld [vmem:[%s11507_s1 + $0x10] sm:$0xff]  }
 0xef1   :  { %v5901_v61 = vpop.permute.xlu2 %5900  ;;  %v7328_v26 = vunpack.c.h.bf16 %v7406_v17  ;;  %v7327_v27 = vunpack.c.l.bf16 %v7406_v17 }
 0xef9   :  { %v5895_v60 = vpop.permute.xlu2 %5894 }
 0xf01   :  { %v5982_v47 = vpop.permute.xlu2 %5981 }
 0xf09   :  { %v5990_v24 = vpop.permute.xlu2 %5989 }
 0xf19   :  { %v5921_v39 = vpop.permute.xlu0 %5920 }
 0xf21   :  { %v5915_v0 = vpop.permute.xlu0 %5914 }
 0xf22   :  { %v5923_v51 = vpop.permute.xlu1 %5922 }
 0xf23   :  { %6936 = vmatpush.xpose.msk.msrb.mxu2 %vm281_vm1, %v5923_v51 }
 0xf27   :  { %6937 = vmatpush.xpose.msk.msrb.mxu2 %vm281_vm1, %v5921_v39 }
 0xf29   :  { %v5909_v3 = vpop.permute.xlu0 %5908 }
 0xf2a   :  { %v5917_v13 = vpop.permute.xlu1 %5916 }
 0xf2b   :  { %6938 = vmatpush.xpose.msk.msrb.mxu2 %vm281_vm1, %v5919_v43  ;;  %v7407_v43 = vld [vmem:[%s11507_s1 + $0x18] sm:$0xff]  }
 0xf2f   :  { %6939 = vmatpush.xpose.msk.msrb.mxu2 %vm281_vm1, %v5917_v13 }
 0xf31   :  { %v5903_v62 = vpop.permute.xlu0 %5902 }
 0xf32   :  { %v5911_v22 = vpop.permute.xlu1 %5910 }
 0xf33   :  { %6940 = vmatpush.xpose.msk.msrb.mxu2 %vm281_vm1, %v5915_v0  ;;  %v7332_v0 = vunpack.c.h.bf16 %v7407_v43 }
 0xf37   :  { %6941 = vmatpush.xpose.msk.msrb.mxu2 %vm281_vm1, %v5913_v57 }
 0xf39   :  { %v5897_v35 = vpop.permute.xlu0 %5896 }
 0xf3a   :  { %v5905_v11 = vpop.permute.xlu1 %5904 }
 0xf3b   :  { %6942 = vmatpush.xpose.msk.msrb.mxu2 %vm281_vm1, %v5911_v22 }
 0xf3f   :  { %6943 = vmatpush.xpose.msk.msrb.mxu2 %vm281_vm1, %v5909_v3 }
 0xf41   :  { %v5978_v16 = vpop.permute.xlu0 %5977 }
 0xf42   :  { %v5899_v10 = vpop.permute.xlu1 %5898 }
 0xf43   :  { %6944 = vmatpush.xpose.msk.msrb.mxu2 %vm281_vm1, %v5907_v44 }
 0xf47   :  { %6945 = vmatpush.xpose.msk.msrb.mxu2 %vm281_vm1, %v5905_v11  ;;  %v7408_v11 = vld [vmem:[%s11507_s1 + $0x20] sm:$0xff]  }
 0xf49   :  { %v5998_v8 = vpop.permute.xlu0 %5997 }
 0xf4a   :  { %v5893_v42 = vpop.permute.xlu1 %5892 }
 0xf4b   :  { %6946 = vmatpush.xpose.msk.msrb.mxu2 %vm281_vm1, %v5903_v62  ;;  %v7335_v62 = vunpack.c.l.bf16 %v7408_v11 }
 0xf4f   :  { %6947 = vmatpush.xpose.msk.msrb.mxu2 %vm281_vm1, %v5901_v61 }
 0xf51   :  { %v11254_v63 = vpop.permute.xlu0 %6001 }
 0xf52   :  { %v5986_v36 = vpop.permute.xlu1 %5985 }
 0xf53   :  { %6948 = vmatpush.xpose.msk.msrb.mxu2 %vm281_vm1, %v5899_v10 }
 0xf57   :  { %6949 = vmatpush.xpose.msk.msrb.mxu2 %vm281_vm1, %v5897_v35  ;;  %v11775_v35 = vmov 0  }
 0xf59   :  { %v6006_v21 = vpop.permute.xlu0 %6005 }
 0xf5a   :  { %v5994_v32 = vpop.permute.xlu1 %5993 }
 0xf5b   :  { %6950 = vmatpush.xpose.msk.msrb.mxu2 %vm281_vm1, %v5895_v60 }
 0xf5f   :  { %6951 = vmatpush.xpose.msk.msrb.mxu2 %vm281_vm1, %v5893_v42  ;;  %v6014_v42 = vpop.permute.xlu2 %6013 }
 0xf62   :  { %6952 = vmatmul.msk.f32.vlgmr.msrb.gmra.mxu2 %vm281_vm1, %v11774_v59  ;;  %v6010_v13 = vpop.permute.xlu1 %6009 }
 0xf67   :  { %v6022_v12 = vpop.permute.xlu2 %6021 }
 0xfe5   :  { %v5973_v19 = vpop.f32.mrf.mxu2 }
 0xfe6   :  { %v11249_v4 = vperm.slane %v5973_v19, 0 }
 0xfe8   :  { %v6042_v2 = vadd.f32 %v11249_v4, %v5982_v47  ;;  %v6041_v41 = vadd.f32 %v11249_v4, %v5978_v16  ;;  %v6043_v6 = vadd.f32 %v11249_v4, %v5986_v36  ;;  %v6046_v18 = vadd.f32 %v11249_v4, %v5998_v8 }
 0xfe9   :  { %v6044_v37 = vadd.f32 %v11249_v4, %v5990_v24  ;;  %v6045_v23 = vadd.f32 %v11249_v4, %v5994_v32  ;;  %v6048_v29 = vadd.f32 %v11249_v4, %v6006_v21  ;;  %v6049_v22 = vadd.f32 %v11249_v4, %v6010_v13 }
 0xfea   :  { %vm6058_vm8 = vcmp.gt.f32.partialorder %v6042_v2, 0.0  ;;  %v6074_v46 = vmul.f32 0.2, %v6042_v2  ;;  %vm6057_vm9 = vcmp.gt.f32.partialorder %v6041_v41, 0.0  ;;  %v6073_v45 = vmul.f32 0.2, %v6041_v41 }
 0xfeb   :  { %vm6059_vm10 = vcmp.gt.f32.partialorder %v6043_v6, 0.0  ;;  %v6075_v31 = vmul.f32 0.2, %v6043_v6  ;;  %v6078_v28 = vmul.f32 0.2, %v6046_v18  ;;  %vm6062_vm5 = vcmp.gt.f32.partialorder %v6046_v18, 0.0 }
 0xfec   :  { %v6090_v49 = vsel %vm6058_vm8, %v6042_v2, %v6074_v46  ;;  %v6089_v14 = vsel %vm6057_vm9, %v6041_v41, %v6073_v45  ;;  %v6076_v54 = vmul.f32 0.2, %v6044_v37  ;;  %vm6060_vm6 = vcmp.gt.f32.partialorder %v6044_v37, 0.0 }
 0xfed   :  { %v11262_v25 = vadd.f32 %v7320_v1, %v6090_v49  ;;  %v11264_v7 = vadd.f32 %v7319_v9, %v6089_v14  ;;  %v6091_v50 = vsel %vm6059_vm10, %v6043_v6, %v6075_v31  ;;  %v6077_v33 = vmul.f32 0.2, %v6045_v23  ;;  %v6018_v6 = vpop.permute.xlu0 %6017 }
 0xfee   :  { %v11266_v55 = vadd.f32 %v7323_v58, %v6091_v50  ;;  %vm6061_vm11 = vcmp.gt.f32.partialorder %v6045_v23, 0.0  ;;  %v6094_v20 = vsel %vm6062_vm5, %v6046_v18, %v6078_v28  ;;  %v6092_v30 = vsel %vm6060_vm6, %v6044_v37, %v6076_v54 }
 0xfef   :  { %6155 = vmax.xlane.f32.xlu1 %v11262_v25  ;;  %6153 = vmax.xlane.f32.xlu2 %v11264_v7  ;;  %v6093_v56 = vsel %vm6061_vm11, %v6045_v23, %v6077_v33  ;;  %v11275_v40 = vadd.f32 %v7328_v26, %v6094_v20  ;;  %v11277_v5 = vadd.f32 %v7324_v53, %v6092_v30  ;;  %v6080_v39 = vmul.f32 0.2, %v6048_v29 }
 0xff0   :  { %6157 = vmax.xlane.f32.xlu0 %v11266_v55  ;;  %v11279_v51 = vadd.f32 %v7327_v27, %v6093_v56  ;;  %vm6064_vm12 = vcmp.gt.f32.partialorder %v6048_v29, 0.0  ;;  %v6081_v44 = vmul.f32 0.2, %v6049_v22  ;;  %vm6065_vm13 = vcmp.gt.f32.partialorder %v6049_v22, 0.0 }
 0xff1   :  { %v6096_v57 = vsel %vm6064_vm12, %v6048_v29, %v6080_v39  ;;  %v6047_v60 = vadd.f32 %v11249_v4, %v11254_v63  ;;  %v6050_v59 = vadd.f32 %v11249_v4, %v6014_v42  ;;  %v7331_v8 = vunpack.c.l.bf16 %v7407_v43  ;;  %v7409_v63 = vld [vmem:[%s11507_s1 + $0x28] sm:$0xff]  }
 0xff2   :  { %v11288_v3 = vadd.f32 %v7332_v0, %v6096_v57  ;;  %v6097_v61 = vsel %vm6065_vm13, %v6049_v22, %v6081_v44  ;;  %v7336_v36 = vunpack.c.h.bf16 %v7408_v11  ;;  %v6052_v48 = vadd.f32 %v11249_v4, %v6022_v12  ;;  %v7410_v57 = vld [vmem:[%s11507_s1 + $0x30] sm:$0xff]  }
 0xff3   :  { %v11294_v10 = vadd.f32 %v7335_v62, %v6097_v61  ;;  %v6079_v16 = vmul.f32 0.2, %v6047_v60  ;;  %vm6063_vm14 = vcmp.gt.f32.partialorder %v6047_v60, 0.0  ;;  %v6082_v47 = vmul.f32 0.2, %v6050_v59 }
 0xff4   :  { %vm6066_vm15 = vcmp.gt.f32.partialorder %v6050_v59, 0.0  ;;  %v6084_v24 = vmul.f32 0.2, %v6052_v48  ;;  %vm6068_vm0 = vcmp.gt.f32.partialorder %v6052_v48, 0.0  ;;  %v7340_v2 = vunpack.c.h.bf16 %v7409_v63 }
 0xff5   :  { %v6051_v23 = vadd.f32 %v11249_v4, %v6018_v6  ;;  %v7339_v54 = vunpack.c.l.bf16 %v7409_v63  ;;  %v7343_v22 = vunpack.c.l.bf16 %v7410_v57  ;;  %v7344_v42 = vunpack.c.h.bf16 %v7410_v57 }
 0xff6   :  { %v6100_v1 = vsel %vm6068_vm0, %v6052_v48, %v6084_v24  ;;  %vm6591_vm10 = vcmask 261120  }
 0xff7   :  { %6163 = vmax.xlane.f32.xlu1 %v11275_v40  ;;  %6159 = vmax.xlane.f32.xlu2 %v11277_v5  ;;  %v11315_v41 = vadd.f32 %v7340_v2, %v6100_v1  ;;  %v6083_v28 = vmul.f32 0.2, %v6051_v23  ;;  %vm6067_vm2 = vcmp.gt.f32.partialorder %v6051_v23, 0.0 }
 0xff8   :  { %6161 = vmax.xlane.f32.xlu0 %v11279_v51 }
 0xff9   :  { %v6099_v33 = vsel %vm6067_vm2, %v6051_v23, %v6083_v28 }
 0xffa   :  { %v11325_v53 = vadd.f32 %v7339_v54, %v6099_v33 }
0x1000   :  { %6167 = vmax.xlane.f32.xlu0 %v11288_v3 }
0x1008   :  { %6169 = vmax.xlane.f32.xlu0 %v11294_v10 }
0x100f   :  { %6029 = vperm.xlu2 %7519, %v11195_v15   ;;  %v6095_v15 = vsel %vm6063_vm14, %v6047_v60, %v6079_v16 }
0x1010   :  { %6025 = vperm.xlu1 %7520, %v11193_v52   ;;  %v6098_v52 = vsel %vm6066_vm15, %v6050_v59, %v6082_v47  ;;  %v11305_v19 = vadd.f32 %v7331_v8, %v6095_v15  ;;  %v7411_v59 = vld [vmem:[%s11507_s1 + $0x38] sm:$0xff]  }
0x1018   :  { %7523 = vset.pattern.permute.xlu1 %v11775_v35 }
0x101c   :  { %6033 = vperm.xlu0 %7518, %v11203_v38   ;;  %v11308_v38 = vadd.f32 %v7336_v36, %v6098_v52  ;;  %v7347_v36 = vunpack.c.l.bf16 %v7411_v59 }
0x1024   :  { %7522 = vset.pattern.permute.xlu0 %v11775_v35 }
0x1038   :  { %6165 = vmax.xlane.f32.xlu2 %v11305_v19 }
0x103a   :  { %6171 = vmax.xlane.f32.xlu1 %v11308_v38 }
0x1046   :  { %6175 = vmax.xlane.f32.xlu0 %v11315_v41 }
0x1050   :  { %6037 = vperm.xlu2 %7519, %v11207_v34  }
0x1058   :  { %7521 = vset.pattern.permute.xlu2 %v11775_v35 }
0x1062   :  { %v6154_v9 = vpop.xlane.xlu2 %6153  ;;  %v6156_v58 = vpop.xlane.xlu1 %6155 }
0x1063   :  { %v6185_v18 = vsub.f32 %v11264_v7, %v6154_v9  ;;  %v6186_v37 = vsub.f32 %v11262_v25, %v6156_v58  ;;  %v6158_v45 = vpop.xlane.xlu0 %6157 }
0x1064   :  { %v6187_v17 = vsub.f32 %v11266_v55, %v6158_v45 }
0x1065   :  { %v6201_v32 = vmul.f32 1.442695, %v6185_v18  ;;  %v6203_v46 = vmul.f32 1.442695, %v6186_v37 }
0x1066   :  { %v6205_v26 = vmul.f32 1.442695, %v6187_v17 }
0x1067   :  { %8046 = vpow2.f32 %v6201_v32 }
0x1068   :  { %8048 = vpow2.f32 %v6203_v46  ;;  %v7348_v46 = vunpack.c.h.bf16 %v7411_v59 }
0x106a   :  { %v6160_v31 = vpop.xlane.xlu2 %6159  ;;  %v6164_v21 = vpop.xlane.xlu1 %6163 }
0x106b   :  { %v6188_v34 = vsub.f32 %v11277_v5, %v6160_v31  ;;  %v6162_v7 = vpop.xlane.xlu0 %6161  ;;  %v6190_v56 = vsub.f32 %v11275_v40, %v6164_v21 }
0x106c   :  { %v6189_v27 = vsub.f32 %v11279_v51, %v6162_v7 }
0x106d   :  { %v8047_v49 = vpop.eup %8046  ;;  %v6207_v25 = vmul.f32 1.442695, %v6188_v34  ;;  %v6211_v43 = vmul.f32 1.442695, %v6190_v56 }
0x106e   :  { %v8049_v14 = vpop.eup %8048  ;;  %v6209_v5 = vmul.f32 1.442695, %v6189_v27 }
0x106f   :  { %v6233_v50 = vpack.c.bf16 %v8049_v14, %v8047_v49  ;;  %8050 = vpow2.f32 %v6207_v25 }
0x1070   :  { %8052 = vpow2.f32 %v6205_v26 }
0x1071   :  { %6249 = vmatmul.bf16.vlgmr.msra.gmra.mxu0 %v6233_v50  ;;  %6298 = vmatmul.bf16.vlgmr.msrb.gmra.mxu3 %v6233_v50  ;;  %8054 = vpow2.f32 %v6209_v5 }
0x1072   :  { %v6030_v13 = vpop.permute.xlu2 %6029  ;;  %8056 = vpow2.f32 %v6211_v43 }
0x1073   :  { %v6168_v20 = vpop.xlane.xlu0 %6167  ;;  %v6054_v51 = vadd.f32 %v11249_v4, %v6030_v13 }
0x1074   :  { %v6192_v63 = vsub.f32 %v11288_v3, %v6168_v20 }
0x1075   :  { %v8051_v30 = vpop.eup %8050  ;;  %v6086_v61 = vmul.f32 0.2, %v6054_v51  ;;  %vm6070_vm4 = vcmp.gt.f32.partialorder %v6054_v51, 0.0 }
0x1076   :  { %v8053_v55 = vpop.eup %8052  ;;  %v6215_v2 = vmul.f32 1.442695, %v6192_v63 }
0x1077   :  { %v6234_v29 = vpack.c.bf16 %v8051_v30, %v8053_v55  ;;  %v8055_v35 = vpop.eup %8054  ;;  %v6102_v47 = vsel %vm6070_vm4, %v6054_v51, %v6086_v61 }
0x1078   :  { %v8057_v60 = vpop.eup %8056  ;;  %v11342_v12 = vadd.f32 %v7344_v42, %v6102_v47  ;;  %8058 = vpow2.f32 %v6215_v2 }
0x1079   :  { %6173 = vmax.xlane.f32.xlu2 %v11325_v53  ;;  %v6235_v15 = vpack.c.bf16 %v8057_v60, %v8055_v35 }
0x107b   :  { %v6170_v40 = vpop.xlane.xlu0 %6169 }
0x107c   :  { %v6193_v3 = vsub.f32 %v11294_v10, %v6170_v40 }
0x107e   :  { %v8059_v32 = vpop.eup %8058  ;;  %v6217_v50 = vmul.f32 1.442695, %v6193_v3  ;;  %v6991_v3 = vld [vmem:[%s11504_s2 + $0x120] sm:$0xf] }
0x1081   :  { %6254 = vmatmul.bf16.gmra.mxu0 %v6234_v29  ;;  %6303 = vmatmul.bf16.gmra.mxu3 %v6234_v29 }
0x1082   :  { %v6026_v39 = vpop.permute.xlu1 %6025 }
0x1083   :  { %v6053_v0 = vadd.f32 %v11249_v4, %v6026_v39 }
0x1085   :  { %vm6069_vm3 = vcmp.gt.f32.partialorder %v6053_v0, 0.0  ;;  %v6085_v44 = vmul.f32 0.2, %v6053_v0 }
0x1087   :  { %v6101_v11 = vsel %vm6069_vm3, %v6053_v0, %v6085_v44 }
0x1088   :  { %v11335_v62 = vadd.f32 %v7343_v22, %v6101_v11 }
0x108a   :  { %6177 = vmax.xlane.f32.xlu1 %v11335_v62 }
0x108e   :  { %v6034_v16 = vpop.permute.xlu0 %6033 }
0x108f   :  { %v6055_v8 = vadd.f32 %v11249_v4, %v6034_v16 }
0x1091   :  { %vm6071_vm8 = vcmp.gt.f32.partialorder %v6055_v8, 0.0  ;;  %v6087_v52 = vmul.f32 0.2, %v6055_v8  ;;  %6259 = vmatmul.bf16.gmra.mxu0 %v6235_v15  ;;  %6308 = vmatmul.bf16.gmra.mxu3 %v6235_v15 }
0x1092   :  { %6179 = vmax.xlane.f32.xlu1 %v11342_v12 }
0x1093   :  { %v6103_v48 = vsel %vm6071_vm8, %v6055_v8, %v6087_v52 }
0x1094   :  { %v11345_v24 = vadd.f32 %v7347_v36, %v6103_v48 }
0x1096   :  { %6181 = vmax.xlane.f32.xlu2 %v11345_v24 }
0x10ab   :  { %v6166_v1 = vpop.xlane.xlu2 %6165 }
0x10ac   :  { %v6191_v6 = vsub.f32 %v11305_v19, %v6166_v1 }
0x10ad   :  { %v6172_v58 = vpop.xlane.xlu1 %6171 }
0x10ae   :  { %v6213_v9 = vmul.f32 1.442695, %v6191_v6  ;;  %v6194_v31 = vsub.f32 %v11308_v38, %v6172_v58  ;;  %v11365_v58 = vld [vmem:[%s11506_s3 + $0x2] ss:$0 sm:$0xff] }
0x10b0   :  { %8060 = vpow2.f32 %v6213_v9  ;;  %v6219_v34 = vmul.f32 1.442695, %v6194_v31 }
0x10b2   :  { %8062 = vpow2.f32 %v6219_v34 }
0x10b3   :  { %v6038_v18 = vpop.permute.xlu2 %6037  ;;  %8064 = vpow2.f32 %v6217_v50 }
0x10b4   :  { %v6056_v37 = vadd.f32 %v11249_v4, %v6038_v18 }
0x10b6   :  { %v8061_v45 = vpop.eup %8060  ;;  %vm6072_vm9 = vcmp.gt.f32.partialorder %v6056_v37, 0.0  ;;  %v6088_v23 = vmul.f32 0.2, %v6056_v37 }
0x10b7   :  { %v6236_v49 = vpack.c.bf16 %v8059_v32, %v8061_v45 }
0x10b8   :  { %v6104_v14 = vsel %vm6072_vm9, %v6056_v37, %v6088_v23  ;;  %v8063_v4 = vpop.eup %8062 }
0x10b9   :  { %6264 = vmatmul.bf16.gmra.mxu0 %v6236_v49  ;;  %6313 = vmatmul.bf16.gmra.mxu3 %v6236_v49  ;;  %v11353_v19 = vadd.f32 %v7348_v46, %v6104_v14  ;;  %v8065_v28 = vpop.eup %8064  ;;  %v6176_v38 = vpop.xlane.xlu0 %6175  ;;  %v7052_v14 = vld [vmem:[%s11504_s2 + $0x124] sm:$0xf0] }
0x10ba   :  { %v6237_v17 = vpack.c.bf16 %v8063_v4, %v8065_v28  ;;  %v6196_v7 = vsub.f32 %v11315_v41, %v6176_v38  ;;  %v6992_v50 = vor.u32 %v7052_v14, %v6991_v3  ;;  %v7051_v4 = vld [vmem:[%s11504_s2 + $0x114] sm:$0xf0] }
0x10bb   :  { %6183 = vmax.xlane.f32.xlu1 %v11353_v19 }
0x10bc   :  { %v6223_v10 = vmul.f32 1.442695, %v6196_v7  ;;  %6622 = vmatpush.bf16.msra.mxu2 %v6992_v50 }
0x10be   :  { %8066 = vpow2.f32 %v6223_v10 }
0x10c4   :  { %v8067_v21 = vpop.eup %8066 }
0x10c9   :  { %6269 = vmatmul.bf16.gmra.mxu0 %v6237_v17  ;;  %6318 = vmatmul.bf16.gmra.mxu3 %v6237_v17 }
0x10ec   :  { %v6174_v25 = vpop.xlane.xlu2 %6173 }
0x10ed   :  { %v6195_v54 = vsub.f32 %v11325_v53, %v6174_v25 }
0x10ef   :  { %v6221_v33 = vmul.f32 1.442695, %v6195_v54 }
0x10f1   :  { %8068 = vpow2.f32 %v6221_v33 }
0x10f4   :  { %v6299_v26 = vpop.f32.mrf.mxu3 }
0x10f5   :  { %8070 = vrcp.f32 %v6299_v26 }
0x10f7   :  { %v8069_v20 = vpop.eup %8068 }
0x10f8   :  { %v6238_v30 = vpack.c.bf16 %v8067_v21, %v8069_v20 }
0x10fa   :  { %6274 = vmatmul.bf16.gmra.mxu0 %v6238_v30  ;;  %6323 = vmatmul.bf16.gmra.mxu3 %v6238_v30 }
0x10fb   :  { %v8071_v27 = vpop.eup %8070 }
0x10fc   :  { %6357 = vperm.xlu2 %7521, %v8071_v27   ;;  %v6301_v55 = vpop.f32.mrf.mxu3 }
0x10fd   :  { %v6178_v56 = vpop.xlane.xlu1 %6177  ;;  %8072 = vrcp.f32 %v6301_v55 }
0x10fe   :  { %v6197_v41 = vsub.f32 %v11335_v62, %v6178_v56 }
0x1100   :  { %v6225_v5 = vmul.f32 1.442695, %v6197_v41 }
0x1103   :  { %v8073_v29 = vpop.eup %8072 }
0x1104   :  { %6362 = vperm.xlu0 %7522, %v8073_v29   ;;  %v6304_v53 = vpop.f32.mrf.mxu3 }
0x1105   :  { %8074 = vrcp.f32 %v6304_v53  ;;  %v6180_v39 = vpop.xlane.xlu1 %6179 }
0x1106   :  { %v6198_v43 = vsub.f32 %v11342_v12, %v6180_v39  ;;  %8076 = vpow2.f32 %v6225_v5 }
0x1108   :  { %v6227_v13 = vmul.f32 1.442695, %v6198_v43 }
0x1109   :  { %v6182_v60 = vpop.xlane.xlu2 %6181 }
0x110a   :  { %8078 = vpow2.f32 %v6227_v13  ;;  %v6199_v42 = vsub.f32 %v11345_v24, %v6182_v60  ;;  %v6250_v24 = vpop.f32.mrf.mxu0 }
0x110b   :  { %v8075_v0 = vpop.eup %8074 }
0x110c   :  { %v6306_v57 = vpop.f32.mrf.mxu3  ;;  %6367 = vperm.xlu1 %7523, %v8075_v0   ;;  %v8077_v22 = vpop.eup %8076  ;;  %v6229_v59 = vmul.f32 1.442695, %v6199_v42 }
0x110d   :  { %8080 = vrcp.f32 %v6306_v57 }
0x1110   :  { %v8079_v44 = vpop.eup %8078 }
0x1111   :  { %v6239_v51 = vpack.c.bf16 %v8079_v44, %v8077_v22 }
0x1112   :  { %v6252_v18 = vpop.f32.mrf.mxu0 }
0x1113   :  { %6279 = vmatmul.bf16.gmra.mxu0 %v6239_v51  ;;  %6328 = vmatmul.bf16.gmra.mxu3 %v6239_v51  ;;  %v8081_v40 = vpop.eup %8080 }
0x1114   :  { %v6309_v11 = vpop.f32.mrf.mxu3  ;;  %6372 = vperm.xlu2 %7521, %v8081_v40  }
0x1115   :  { %8082 = vrcp.f32 %v6309_v11 }
0x111a   :  { %v6255_v49 = vpop.f32.mrf.mxu0 }
0x111b   :  { %v8083_v62 = vpop.eup %8082 }
0x111c   :  { %v6311_v61 = vpop.f32.mrf.mxu3  ;;  %6377 = vperm.xlu1 %7523, %v8083_v62  }
0x111d   :  { %8084 = vrcp.f32 %v6311_v61 }
0x111e   :  { %8086 = vpow2.f32 %v6229_v59 }
0x1122   :  { %v6257_v34 = vpop.f32.mrf.mxu0 }
0x1123   :  { %v8085_v35 = vpop.eup %8084 }
0x1124   :  { %6382 = vperm.xlu2 %7521, %v8085_v35   ;;  %v8087_v15 = vpop.eup %8086 }
0x112a   :  { %v6260_v10 = vpop.f32.mrf.mxu0 }
0x112e   :  { %v6184_v16 = vpop.xlane.xlu1 %6183 }
0x112f   :  { %v6200_v47 = vsub.f32 %v11353_v19, %v6184_v16  ;;  %v6987_v19 = vld [vmem:[%s11504_s2 + $0x110] sm:$0xf] }
0x1130   :  { %v6988_v28 = vor.u32 %v7051_v4, %v6987_v19 }
0x1131   :  { %v6231_v8 = vmul.f32 1.442695, %v6200_v47 }
0x1132   :  { %6623 = vmatpush.bf16.msra.mxu2 %v6988_v28  ;;  %v6262_v27 = vpop.f32.mrf.mxu0 }
0x1133   :  { %8088 = vpow2.f32 %v6231_v8 }
0x1139   :  { %v8089_v36 = vpop.eup %8088 }
0x113a   :  { %v6240_v52 = vpack.c.bf16 %v8089_v36, %v8087_v15  ;;  %v6265_v16 = vpop.f32.mrf.mxu0 }
0x113c   :  { %6284 = vmatmul.bf16.gmra.mxu0 %v6240_v52  ;;  %v6314_v12 = vpop.f32.mrf.mxu3  ;;  %6333 = vmatmul.bf16.gmra.mxu3 %v6240_v52 }
0x113d   :  { %8090 = vrcp.f32 %v6314_v12 }
0x1142   :  { %v6267_v36 = vpop.f32.mrf.mxu0 }
0x1143   :  { %v8091_v48 = vpop.eup %8090 }
0x1144   :  { %v6316_v63 = vpop.f32.mrf.mxu3  ;;  %6387 = vperm.xlu1 %7523, %v8091_v48  }
0x1145   :  { %8092 = vrcp.f32 %v6316_v63 }
0x114b   :  { %v8093_v2 = vpop.eup %8092 }
0x114c   :  { %6392 = vperm.xlu2 %7521, %v8093_v2   ;;  %v6319_v1 = vpop.f32.mrf.mxu3 }
0x114d   :  { %8094 = vrcp.f32 %v6319_v1 }
0x1153   :  { %v8095_v6 = vpop.eup %8094 }
0x1154   :  { %6397 = vperm.xlu0 %7522, %v8095_v6   ;;  %v6321_v9 = vpop.f32.mrf.mxu3 }
0x1155   :  { %8096 = vrcp.f32 %v6321_v9 }
0x1156   :  { %v6358_v37 = vpop.permute.xlu2 %6357 }
0x1157   :  { %v6435_v32 = vmul.f32 %v6358_v37, %v6250_v24 }
0x1159   :  { %v6453_v46 = vadd.f32 %v11365_v58, %v6435_v32 }
0x115b   :  { %v8097_v45 = vpop.eup %8096  ;;  %v6469_v31 = vmax.f32 %v6453_v46, 0.0  ;;  %v6270_v46 = vpop.f32.mrf.mxu0 }
0x115c   :  { %6402 = vperm.xlu1 %7523, %v8097_v45  }
0x115d   :  { %v6485_v23 = vpack.c.bf16 %v6469_v31, %v6469_v31 }
0x115f   :  { %6501 = vst.msk [vmem:[#allocation2] sm:$0xf] %vm910_vm7, %v6485_v23 }
0x1163   :  { %v6272_v4 = vpop.f32.mrf.mxu0 }
0x116e   :  { %v6373_v17 = vpop.permute.xlu2 %6372 }
0x116f   :  { %v6438_v38 = vmul.f32 %v6373_v17, %v6257_v34 }
0x1171   :  { %v6456_v7 = vadd.f32 %v11365_v58, %v6438_v38 }
0x1173   :  { %v6472_v25 = vmax.f32 %v6456_v7, 0.0 }
0x1175   :  { %v6488_v54 = vpack.c.bf16 %v6472_v25, %v6472_v25 }
0x1176   :  { %v6363_v33 = vpop.permute.xlu0 %6362 }
0x1177   :  { %v6436_v26 = vmul.f32 %v6363_v33, %v6252_v18  ;;  %6504 = vst.msk [vmem:[#allocation2 + $0xc] sm:$0xf] %vm910_vm7, %v6488_v54  ;;  %v6275_v54 = vpop.f32.mrf.mxu0 }
0x1179   :  { %v6454_v21 = vadd.f32 %v11365_v58, %v6436_v26 }
0x117b   :  { %v6470_v20 = vmax.f32 %v6454_v21, 0.0 }
0x117d   :  { %v6324_v30 = vpop.f32.mrf.mxu3  ;;  %v6486_v55 = vpack.c.bf16 %v6470_v20, %v6470_v20 }
0x117e   :  { %8098 = vrcp.f32 %v6324_v30  ;;  %v6383_v56 = vpop.permute.xlu2 %6382  ;;  %v6368_v41 = vpop.permute.xlu1 %6367 }
0x117f   :  { %6502 = vst.msk [vmem:[#allocation2 + $0x4] sm:$0xf] %vm910_vm7, %v6486_v55  ;;  %v6440_v29 = vmul.f32 %v6383_v56, %v6262_v27  ;;  %v6437_v53 = vmul.f32 %v6368_v41, %v6255_v49  ;;  %v6277_v27 = vpop.f32.mrf.mxu0 }
0x1181   :  { %v6458_v5 = vadd.f32 %v11365_v58, %v6440_v29  ;;  %v6455_v39 = vadd.f32 %v11365_v58, %v6437_v53 }
0x1183   :  { %v6474_v13 = vmax.f32 %v6458_v5, 0.0  ;;  %v6471_v0 = vmax.f32 %v6455_v39, 0.0 }
0x1184   :  { %v8099_v43 = vpop.eup %8098 }
0x1185   :  { %6407 = vperm.xlu2 %7521, %v8099_v43   ;;  %v6326_v57 = vpop.f32.mrf.mxu3  ;;  %v6490_v22 = vpack.c.bf16 %v6474_v13, %v6474_v13  ;;  %v6487_v44 = vpack.c.bf16 %v6471_v0, %v6471_v0 }
0x1186   :  { %8100 = vrcp.f32 %v6326_v57  ;;  %v7053_v51 = vld [vmem:[#allocation2] sm:$0xff] }
0x1187   :  { %6506 = vst.msk [vmem:[#allocation2 + $0x14] sm:$0xf] %vm910_vm7, %v6490_v22  ;;  %6993 = vmatmul.msk.bf16.vlgmr.msra.gmra.mxu2 %vm6591_vm10, %v7053_v51 }
0x1188   :  { %6503 = vst.msk [vmem:[#allocation2 + $0x8] sm:$0xf] %vm910_vm7, %v6487_v44  ;;  %v11412_v44 = vld [vmem:[%s11506_s3 + $0x3] ss:$0 sm:$0xff] }
0x118c   :  { %v8101_v40 = vpop.eup %8100 }
0x118d   :  { %6412 = vperm.xlu0 %7522, %v8101_v40  }
0x118e   :  { %v6378_v11 = vpop.permute.xlu1 %6377 }
0x118f   :  { %v6439_v62 = vmul.f32 %v6378_v11, %v6260_v10  ;;  %v7054_v59 = vld [vmem:[#allocation2 + $0x8] sm:$0xff] }
0x1190   :  { %v6280_v55 = vpop.f32.mrf.mxu0 }
0x1191   :  { %v6457_v61 = vadd.f32 %v11365_v58, %v6439_v62 }
0x1193   :  { %v6473_v35 = vmax.f32 %v6457_v61, 0.0 }
0x1195   :  { %v6489_v60 = vpack.c.bf16 %v6473_v35, %v6473_v35 }
0x1196   :  { %v6329_v42 = vpop.f32.mrf.mxu3 }
0x1197   :  { %6505 = vst.msk [vmem:[#allocation2 + $0x10] sm:$0xf] %vm910_vm7, %v6489_v60  ;;  %8102 = vrcp.f32 %v6329_v42  ;;  %6994 = vmatmul.msk.bf16.gmra.mxu2 %vm6591_vm10, %v7054_v59 }
0x1198   :  { %v6282_v29 = vpop.f32.mrf.mxu0 }
0x119d   :  { %v8103_v47 = vpop.eup %8102 }
0x119e   :  { %6417 = vperm.xlu1 %7523, %v8103_v47   ;;  %v6331_v8 = vpop.f32.mrf.mxu3  ;;  %v7055_v48 = vld [vmem:[#allocation2 + $0x10] sm:$0xff] }
0x119f   :  { %8104 = vrcp.f32 %v6331_v8 }
0x11a5   :  { %v8105_v15 = vpop.eup %8104 }
0x11a6   :  { %v6393_v52 = vpop.permute.xlu2 %6392  ;;  %6422 = vperm.xlu2 %7521, %v8105_v15  }
0x11a7   :  { %v6442_v12 = vmul.f32 %v6393_v52, %v6267_v36  ;;  %6995 = vmatmul.msk.bf16.gmra.mxu2 %vm6591_vm10, %v7055_v48 }
0x11a9   :  { %v6460_v63 = vadd.f32 %v11365_v58, %v6442_v12 }
0x11ab   :  { %v6476_v2 = vmax.f32 %v6460_v63, 0.0 }
0x11ad   :  { %v6492_v24 = vpack.c.bf16 %v6476_v2, %v6476_v2 }
0x11af   :  { %6508 = vst.msk [vmem:[#allocation2 + $0x1c] sm:$0xf] %vm910_vm7, %v6492_v24 }
0x11b6   :  { %v6388_v1 = vpop.permute.xlu1 %6387 }
0x11b7   :  { %v6441_v6 = vmul.f32 %v6388_v1, %v6265_v16 }
0x11b9   :  { %v6459_v9 = vadd.f32 %v11365_v58, %v6441_v6  ;;  %v6285_v24 = vpop.f32.mrf.mxu0 }
0x11bb   :  { %v6475_v18 = vmax.f32 %v6459_v9, 0.0 }
0x11bd   :  { %v6491_v37 = vpack.c.bf16 %v6475_v18, %v6475_v18 }
0x11bf   :  { %6507 = vst.msk [vmem:[#allocation2 + $0x18] sm:$0xf] %vm910_vm7, %v6491_v37  ;;  %v6334_v32 = vpop.f32.mrf.mxu3 }
0x11c0   :  { %8106 = vrcp.f32 %v6334_v32 }
0x11c1   :  { %v6287_v32 = vpop.f32.mrf.mxu0 }
0x11c6   :  { %v8107_v45 = vpop.eup %8106  ;;  %v6398_v31 = vpop.permute.xlu0 %6397  ;;  %v7056_v23 = vld [vmem:[#allocation2 + $0x18] sm:$0xff] }
0x11c7   :  { %v6443_v49 = vmul.f32 %v6398_v31, %v6270_v46  ;;  %6427 = vperm.xlu0 %7522, %v8107_v45   ;;  %v6336_v3 = vpop.f32.mrf.mxu3  ;;  %6996 = vmatmul.msk.bf16.gmra.mxu2 %vm6591_vm10, %v7056_v23 }
0x11c8   :  { %8108 = vrcp.f32 %v6336_v3 }
0x11c9   :  { %v6461_v14 = vadd.f32 %v11365_v58, %v6443_v49 }
0x11cb   :  { %v6477_v19 = vmax.f32 %v6461_v14, 0.0 }
0x11cd   :  { %v6493_v34 = vpack.c.bf16 %v6477_v19, %v6477_v19 }
0x11ce   :  { %v8109_v50 = vpop.eup %8108  ;;  %v6403_v28 = vpop.permute.xlu1 %6402 }
0x11cf   :  { %6509 = vst.msk [vmem:[#allocation2 + $0x20] sm:$0xf] %vm910_vm7, %v6493_v34  ;;  %v6444_v17 = vmul.f32 %v6403_v28, %v6272_v4  ;;  %6432 = vperm.xlu1 %7523, %v8109_v50  }
0x11d1   :  { %v6462_v38 = vadd.f32 %v11365_v58, %v6444_v17 }
0x11d3   :  { %v6478_v7 = vmax.f32 %v6462_v38, 0.0 }
0x11d5   :  { %v6494_v10 = vpack.c.bf16 %v6478_v7, %v6478_v7 }
0x11d7   :  { %6510 = vst.msk [vmem:[#allocation2 + $0x24] sm:$0xf] %vm910_vm7, %v6494_v10 }
0x11de   :  { %v7057_v25 = vld [vmem:[#allocation2 + $0x20] sm:$0xff] }
0x11df   :  { %v6408_v33 = vpop.permute.xlu2 %6407  ;;  %6997 = vmatmul.msk.bf16.gmra.mxu2 %vm6591_vm10, %v7057_v25 }
0x11e0   :  { %v6445_v26 = vmul.f32 %v6408_v33, %v6275_v54 }
0x11e2   :  { %v6463_v21 = vadd.f32 %v11365_v58, %v6445_v26 }
0x11e4   :  { %v6479_v20 = vmax.f32 %v6463_v21, 0.0 }
0x11e6   :  { %v6495_v30 = vpack.c.bf16 %v6479_v20, %v6479_v20 }
0x11e8   :  { %6511 = vst.msk [vmem:[#allocation2 + $0x28] sm:$0xf] %vm910_vm7, %v6495_v30 }
0x11ff   :  { %v6413_v56 = vpop.permute.xlu0 %6412 }
0x1200   :  { %v6446_v41 = vmul.f32 %v6413_v56, %v6277_v27  ;;  %v6423_v53 = vpop.permute.xlu2 %6422 }
0x1201   :  { %v6448_v39 = vmul.f32 %v6423_v53, %v6282_v29 }
0x1202   :  { %v6464_v5 = vadd.f32 %v11365_v58, %v6446_v41 }
0x1203   :  { %v6466_v13 = vadd.f32 %v11365_v58, %v6448_v39 }
0x1204   :  { %v6480_v43 = vmax.f32 %v6464_v5, 0.0 }
0x1205   :  { %v6482_v57 = vmax.f32 %v6466_v13, 0.0 }
0x1206   :  { %v6496_v0 = vpack.c.bf16 %v6480_v43, %v6480_v43 }
0x1207   :  { %v6498_v22 = vpack.c.bf16 %v6482_v57, %v6482_v57 }
0x1208   :  { %6512 = vst.msk [vmem:[#allocation2 + $0x2c] sm:$0xf] %vm910_vm7, %v6496_v0 }
0x1209   :  { %6514 = vst.msk [vmem:[#allocation2 + $0x34] sm:$0xf] %vm910_vm7, %v6498_v22 }
0x120a   :  { %v6625_v51 = vpop.f32.mrf.mxu2 }
0x120b   :  { %v6626_v40 = vadd.f32 %v11412_v44, %v6625_v51 }
0x120d   :  { %6665 = vst.msk [vmem:[%s11508_s4] sm:$0xff] %vm281_vm1, %v6626_v40 }
0x120f   :  { %v7058_v11 = vld [vmem:[#allocation2 + $0x28] sm:$0xff] }
0x1210   :  { %v6418_v62 = vpop.permute.xlu1 %6417  ;;  %6998 = vmatmul.msk.bf16.gmra.mxu2 %vm6591_vm10, %v7058_v11 }
0x1211   :  { %v6447_v61 = vmul.f32 %v6418_v62, %v6280_v55 }
0x1212   :  { %v6627_v60 = vpop.f32.mrf.mxu2 }
0x1213   :  { %v6465_v35 = vadd.f32 %v11365_v58, %v6447_v61  ;;  %v6628_v42 = vadd.f32 %v11412_v44, %v6627_v60 }
0x1215   :  { %v6481_v59 = vmax.f32 %v6465_v35, 0.0  ;;  %6666 = vst.msk [vmem:[%s11508_s4 + $0x8] sm:$0xff] %vm281_vm1, %v6628_v42 }
0x1217   :  { %v6497_v16 = vpack.c.bf16 %v6481_v59, %v6481_v59 }
0x1219   :  { %6513 = vst.msk [vmem:[#allocation2 + $0x30] sm:$0xf] %vm910_vm7, %v6497_v16 }
0x121a   :  { %v6630_v47 = vpop.f32.mrf.mxu2 }
0x121b   :  { %v6631_v8 = vadd.f32 %v11412_v44, %v6630_v47 }
0x121d   :  { %6667 = vst.msk [vmem:[%s11508_s4 + $0x10] sm:$0xff] %vm281_vm1, %v6631_v8 }
0x1220   :  { %v7059_v15 = vld [vmem:[#allocation2 + $0x30] sm:$0xff] }
0x1221   :  { %6999 = vmatmul.msk.bf16.gmra.mxu2 %vm6591_vm10, %v7059_v15 }
0x1222   :  { %v6632_v36 = vpop.f32.mrf.mxu2 }
0x1223   :  { %v6633_v52 = vadd.f32 %v11412_v44, %v6632_v36 }
0x1225   :  { %6668 = vst.msk [vmem:[%s11508_s4 + $0x18] sm:$0xff] %vm281_vm1, %v6633_v52 }
0x122a   :  { %v6635_v12 = vpop.f32.mrf.mxu2 }
0x122b   :  { %v6636_v48 = vadd.f32 %v11412_v44, %v6635_v12 }
0x122d   :  { %6669 = vst.msk [vmem:[%s11508_s4 + $0x20] sm:$0xff] %vm281_vm1, %v6636_v48 }
0x1232   :  { %v6637_v63 = vpop.f32.mrf.mxu2 }
0x1233   :  { %v6638_v2 = vadd.f32 %v11412_v44, %v6637_v63 }
0x1235   :  { %6670 = vst.msk [vmem:[%s11508_s4 + $0x28] sm:$0xff] %vm281_vm1, %v6638_v2 }
0x1239   :  { %v6428_v1 = vpop.permute.xlu0 %6427 }
0x123a   :  { %v6449_v6 = vmul.f32 %v6428_v1, %v6285_v24 }
0x123c   :  { %v6467_v9 = vadd.f32 %v11365_v58, %v6449_v6 }
0x123e   :  { %v6483_v18 = vmax.f32 %v6467_v9, 0.0 }
0x1240   :  { %v6499_v37 = vpack.c.bf16 %v6483_v18, %v6483_v18 }
0x1241   :  { %v6433_v46 = vpop.permute.xlu1 %6432 }
0x1242   :  { %6515 = vst.msk [vmem:[#allocation2 + $0x38] sm:$0xf] %vm910_vm7, %v6499_v37  ;;  %v6450_v45 = vmul.f32 %v6433_v46, %v6287_v32 }
0x1244   :  { %v6468_v31 = vadd.f32 %v11365_v58, %v6450_v45 }
0x1246   :  { %v6484_v23 = vmax.f32 %v6468_v31, 0.0 }
0x1248   :  { %v6500_v49 = vpack.c.bf16 %v6484_v23, %v6484_v23 }
0x124a   :  { %6516 = vst.msk [vmem:[#allocation2 + $0x3c] sm:$0xf] %vm910_vm7, %v6500_v49  ;;  %v6640_v3 = vpop.f32.mrf.mxu2 }
0x124b   :  { %v6641_v14 = vadd.f32 %v11412_v44, %v6640_v3 }
0x124d   :  { %6671 = vst.msk [vmem:[%s11508_s4 + $0x30] sm:$0xff] %vm281_vm1, %v6641_v14 }
0x1251   :  { %v7060_v19 = vld [vmem:[#allocation2 + $0x38] sm:$0xff] }
0x1252   :  { %v6642_v34 = vpop.f32.mrf.mxu2  ;;  %7000 = vmatmul.msk.bf16.gmra.mxu2 %vm6591_vm10, %v7060_v19 }
0x1253   :  { %v6643_v50 = vadd.f32 %v11412_v44, %v6642_v34 }
0x1255   :  { %6672 = vst.msk [vmem:[%s11508_s4 + $0x38] sm:$0xff] %vm281_vm1, %v6643_v50 }
0x1262   :  { %v6645_v58 = vpop.f32.mrf.mxu2 }
0x1263   :  { %v6646_v4 = vadd.f32 %v11412_v44, %v6645_v58 }
0x1265   :  { %6673 = vst.msk [vmem:[%s11508_s4 + $0x40] sm:$0xff] %vm281_vm1, %v6646_v4 }
0x126a   :  { %v6647_v28 = vpop.f32.mrf.mxu2 }
0x126b   :  { %v6648_v17 = vadd.f32 %v11412_v44, %v6647_v28 }
0x126d   :  { %6674 = vst.msk [vmem:[%s11508_s4 + $0x48] sm:$0xff] %vm281_vm1, %v6648_v17 }
0x1293   :  { %v6650_v38 = vpop.f32.mrf.mxu2 }
0x1294   :  { %v6651_v7 = vadd.f32 %v11412_v44, %v6650_v38 }
0x1296   :  { %6675 = vst.msk [vmem:[%s11508_s4 + $0x50] sm:$0xff] %vm281_vm1, %v6651_v7 }
0x129b   :  { %v6652_v10 = vpop.f32.mrf.mxu2 }
0x129c   :  { %v6653_v25 = vadd.f32 %v11412_v44, %v6652_v10 }
0x129e   :  { %6676 = vst.msk [vmem:[%s11508_s4 + $0x58] sm:$0xff] %vm281_vm1, %v6653_v25 }
0x12a4   :  { %v6655_v54 = vpop.f32.mrf.mxu2 }
0x12a5   :  { %v6656_v33 = vadd.f32 %v11412_v44, %v6655_v54 }
0x12a7   :  { %6677 = vst.msk [vmem:[%s11508_s4 + $0x60] sm:$0xff] %vm281_vm1, %v6656_v33 }
0x12ac   :  { %v6657_v26 = vpop.f32.mrf.mxu2 }
0x12ad   :  { %v6658_v21 = vadd.f32 %v11412_v44, %v6657_v26 }
0x12af   :  { %6678 = vst.msk [vmem:[%s11508_s4 + $0x68] sm:$0xff] %vm281_vm1, %v6658_v21 }
0x12d5   :  { %v6660_v20 = vpop.f32.mrf.mxu2 }
0x12d6   :  { %v6661_v30 = vadd.f32 %v11412_v44, %v6660_v20 }
0x12d8   :  { %6679 = vst.msk [vmem:[%s11508_s4 + $0x70] sm:$0xff] %vm281_vm1, %v6661_v30 }
0x12dd   :  { %v6662_v27 = vpop.f32.mrf.mxu2 }
0x12de   :  { %v6663_v55 = vadd.f32 %v11412_v44, %v6662_v27 }
0x12e0   :  { %6680 = vst.msk [vmem:[%s11508_s4 + $0x78] sm:$0xff] %vm281_vm1, %v6663_v55 }

</bundles_post_ra>
